<compile_context>
chip_gen: v5e
topology: v5e:2x2
jax: 0.10.0
libtpu: 0.0.40
codegen_flags: <defaults>
</compile_context>

<pallas_src>
import numpy as np
import jax
import jax.numpy as jnp
from jax import lax
from jax.experimental import pallas as pl
from jax.experimental.pallas import tpu as pltpu

# ---------------- model hyper-parameters (small, consistent with __init__) ---
N_BATCH = 2
T_LEN = 16
NT = N_BATCH * T_LEN
HIDDEN = 32            # hidden_channels
FILTER = 64            # filter_channels
N_HEADS = 2            # n_heads
KCH = HIDDEN // N_HEADS
N_LAYERS = 2           # n_layers
KSIZE = 3              # kernel_size
PAD_L = (KSIZE - 1) // 2
PAD_R = KSIZE // 2
WINDOW = 4             # attentions.Encoder default window_size
NUM_REL = 2 * WINDOW + 1
OUT_CHANNELS = 8       # out_channels
VOCAB = 256            # f0_emb vocabulary
LN_EPS = 1e-5
NOICE_SCALE = 1.0


# ----------------------------- Pallas kernel --------------------------------
def _layer_norm(v, gamma, beta):
    mu = jnp.mean(v, axis=-1, keepdims=True)
    d = v - mu
    var = jnp.mean(d * d, axis=-1, keepdims=True)
    return d * lax.rsqrt(var + LN_EPS) * gamma + beta


def _conv_window(v, bmask):
    """(N*T, C) -> (N*T, K*C): lane-concat of the K shifted views of the whole
    stacked batch; taps that would cross a batch boundary are zeroed via bmask
    so each example keeps its own 'same' zero padding.  Collapses the K-tap
    conv into ONE MXU matmul against a (K*C, O) slab for the whole batch."""
    c = v.shape[1]
    vp = jnp.concatenate([jnp.zeros((PAD_L, c), jnp.float32), v,
                          jnp.zeros((PAD_R, c), jnp.float32)], axis=0)
    return jnp.concatenate(
        [vp[j:j + NT, :] * bmask[:, j:j + 1] for j in range(KSIZE)], axis=1)


def _text_encoder_kernel(x_ref, mcol_ref, mrow_ref, bmask_ref, f0_ref, noise_ref,
                         emb_ref, attn_w_ref, attn_b_ref, relk_ref, relv_ref,
                         ln_ref, ffw1_ref, ffb1_ref, ffw2_ref, ffb2_ref,
                         projw_ref, projb_ref, out_ref):
    """Whole TextEncoder forward (all layers, whole batch) in one invocation."""
    mcol = mcol_ref[...]                                      # (N*T, 1)
    bmask = bmask_ref[...]                                    # (N*T, K)

    # ---- x = x + f0_emb(f0): one-hot lookup as ONE MXU matmul (whole batch)
    voc_iota = lax.broadcasted_iota(jnp.int32, (NT, VOCAB), 1)
    onehot = (f0_ref[...] == voc_iota).astype(jnp.float32)    # (N*T, VOCAB)
    h = x_ref[...] + jnp.dot(onehot, emb_ref[...],
                             preferred_element_type=jnp.float32)
    h = h * mcol                                              # enc_ input mask

    # ---- shared geometry: band masks + per-batch attention masks (reused) --
    rowi = lax.broadcasted_iota(jnp.int32, (T_LEN, T_LEN), 0)
    coli = lax.broadcasted_iota(jnp.int32, (T_LEN, T_LEN), 1)
    rel_off = coli - rowi                                     # j - i
    band = [(rel_off == (r - WINDOW)).astype(jnp.float32) for r in range(NUM_REL)]
    attn_mask = [mcol[b * T_LEN:(b + 1) * T_LEN] * mrow_ref[b:b + 1, :]
                 for b in range(N_BATCH)]                     # each (T, T)
    inv_sqrt_k = KCH ** -0.5

    for l in range(N_LAYERS):
        w_all = attn_w_ref[l]                                 # (H, 4H)=[Wq|Wk|Wv|Wo]
        b_all = attn_b_ref[l]                                 # (1, 4H)
        rel_k = relk_ref[l]                                   # (2W+1, KCH)
        rel_v = relv_ref[l]                                   # (2W+1, KCH)
        ln_p = ln_ref[l]                                      # (4, H)

        # ---- multi-head self-attention with relative positions -------------
        # fused QKV for the whole stacked batch: one (N*T,H)@(H,3H) matmul
        qkv = jnp.dot(h, w_all[:, :3 * HIDDEN],
                      preferred_element_type=jnp.float32) + b_all[:, :3 * HIDDEN]
        rows = []
        for b in range(N_BATCH):                              # T x T core per batch
            qkv_b = qkv[b * T_LEN:(b + 1) * T_LEN]
            am = attn_mask[b]
            heads = []
            for hh in range(N_HEADS):
                lo, hi = hh * KCH, (hh + 1) * KCH
                qh = qkv_b[:, lo:hi] * inv_sqrt_k
                kh = qkv_b[:, HIDDEN + lo:HIDDEN + hi]
                vh = qkv_b[:, 2 * HIDDEN + lo:2 * HIDDEN + hi]

                scores = lax.dot_general(qh, kh, (((1,), (1,)), ((), ())),
                                         preferred_element_type=jnp.float32)
                # relative-key logits c[i, r] = qh[i] . rel_k[r], banded scatter
                c = lax.dot_general(qh, rel_k, (((1,), (1,)), ((), ())),
                                    preferred_element_type=jnp.float32)
                for r in range(NUM_REL):
                    scores = scores + band[r] * c[:, r:r + 1]
                scores = jnp.where(am > 0.0, scores, -1e4)

                smax = jnp.max(scores, axis=-1, keepdims=True)
                pe = jnp.exp(scores - smax)
                p = pe / jnp.sum(pe, axis=-1, keepdims=True)

                oh = jnp.dot(p, vh, preferred_element_type=jnp.float32)
                # relative-value contribution (banded gather of p)
                for r in range(NUM_REL):
                    wr = jnp.sum(p * band[r], axis=-1, keepdims=True)   # (T, 1)
                    oh = oh + wr * rel_v[r:r + 1, :]
                heads.append(oh)
            rows.append(jnp.concatenate(heads, axis=1))        # (T, H)
        attn_out = jnp.concatenate(rows, axis=0)               # (N*T, H)
        y = jnp.dot(attn_out, w_all[:, 3 * HIDDEN:],
                    preferred_element_type=jnp.float32) + b_all[:, 3 * HIDDEN:]
        h = _layer_norm(h + y, ln_p[0:1, :], ln_p[1:2, :])

        # ---- FFN: two K-tap convs, each ONE windowed matmul for the batch --
        t0 = h * mcol
        f1 = jnp.dot(_conv_window(t0, bmask), ffw1_ref[l],
                     preferred_element_type=jnp.float32) + ffb1_ref[l]
        f1 = jnp.maximum(f1, 0.0) * mcol
        y = (jnp.dot(_conv_window(f1, bmask), ffw2_ref[l],
                     preferred_element_type=jnp.float32) + ffb2_ref[l]) * mcol
        h = _layer_norm(h + y, ln_p[2:3, :], ln_p[3:4, :])

    h = h * mcol

    # ---- proj 1x1 conv + reparameterized sample (whole batch at once) ------
    stats = (jnp.dot(h, projw_ref[...], preferred_element_type=jnp.float32)
             + projb_ref[...]) * mcol
    m = stats[:, :OUT_CHANNELS]
    logs = stats[:, OUT_CHANNELS:]
    z = (m + noise_ref[...] * jnp.exp(logs) * NOICE_SCALE) * mcol
    # single packed output slab: [m | logs | z]
    out_ref[...] = jnp.concatenate([m, logs, z], axis=1).astype(out_ref.dtype)


# ------------------------- parameter packing / wrapper ----------------------
def pack_params(p):
    """Re-layout canonical (PyTorch-style) weights into a few stacked slabs."""
    ls = p["layers"]
    return {
        "emb": p["emb"],
        "attn_w": jnp.stack([jnp.concatenate(
            [l["wq"].T, l["wk"].T, l["wv"].T, l["wo"].T], axis=1) for l in ls]),
        "attn_b": jnp.stack([jnp.concatenate(
            [l["bq"], l["bk"], l["bv"], l["bo"]])[None, :] for l in ls]),
        "rel_k": jnp.stack([l["rel_k"] for l in ls]),
        "rel_v": jnp.stack([l["rel_v"] for l in ls]),
        "ln": jnp.stack([jnp.stack([l["ln1_g"], l["ln1_b"], l["ln2_g"], l["ln2_b"]])
                         for l in ls]),
        "ffw1": jnp.stack([jnp.transpose(l["w1"], (2, 1, 0)).reshape(
            KSIZE * HIDDEN, FILTER) for l in ls]),
        "ffb1": jnp.stack([l["b1"][None, :] for l in ls]),
        "ffw2": jnp.stack([jnp.transpose(l["w2"], (2, 1, 0)).reshape(
            KSIZE * FILTER, HIDDEN) for l in ls]),
        "ffb2": jnp.stack([l["b2"][None, :] for l in ls]),
        "proj_w": p["proj_w"].T,
        "proj_b": p["proj_b"][None, :],
    }


def _make_boundary_mask():
    """(N*T, K) mask: zero where conv tap j for stacked row i would read a row
    belonging to a different batch element (padding rows stay unmasked)."""
    bm = np.ones((NT, KSIZE), np.float32)
    for i in range(NT):
        for j in range(KSIZE):
            s = i + j - PAD_L
            if 0 <= s < NT and s // T_LEN != i // T_LEN:
                bm[i, j] = 0.0
    return bm


_BMASK = _make_boundary_mask()


@jax.jit
def text_encoder_forward(x, x_mask, f0, noise, params):
    """x: (N, H, T), x_mask: (N, 1, T), f0: (N, T) int32, noise: (N, OUT, T)."""
    kp = pack_params(params)
    xt = jnp.transpose(x, (0, 2, 1)).reshape(NT, HIDDEN)       # (N*T, H)
    mcol = jnp.transpose(x_mask, (0, 2, 1)).reshape(NT, 1)     # (N*T, 1)
    mrow = x_mask.reshape(N_BATCH, T_LEN)                      # (N, T)
    f0_col = f0.astype(jnp.int32).reshape(NT, 1)               # (N*T, 1)
    noise_t = jnp.transpose(noise, (0, 2, 1)).reshape(NT, OUT_CHANNELS)
    bmask = jnp.asarray(_BMASK)

    packed = pl.pallas_call(
        _text_encoder_kernel,
        out_shape=jax.ShapeDtypeStruct((NT, 3 * OUT_CHANNELS), jnp.float32),
        compiler_params=pltpu.CompilerParams(
            vmem_limit_bytes=32 * 1024 * 1024),
    )(xt, mcol, mrow, bmask, f0_col, noise_t,
      kp["emb"], kp["attn_w"], kp["attn_b"], kp["rel_k"], kp["rel_v"],
      kp["ln"], kp["ffw1"], kp["ffb1"], kp["ffw2"], kp["ffb2"],
      kp["proj_w"], kp["proj_b"])

    packed = packed.reshape(N_BATCH, T_LEN, 3 * OUT_CHANNELS)
    m = jnp.transpose(packed[..., :OUT_CHANNELS], (0, 2, 1))
    logs = jnp.transpose(packed[..., OUT_CHANNELS:2 * OUT_CHANNELS], (0, 2, 1))
    z = jnp.transpose(packed[..., 2 * OUT_CHANNELS:], (0, 2, 1))
    return z, m, logs, x_mask


# ------------------------- pure-JAX reference (faithful) --------------------
def _ref_conv1x1(x, w, b):
    return jnp.einsum("oc,nct->not", w, x,
                      precision=lax.Precision.HIGHEST) + b[None, :, None]


def _ref_layer_norm(x, g, b):
    xt = jnp.transpose(x, (0, 2, 1))
    mu = jnp.mean(xt, axis=-1, keepdims=True)
    var = jnp.mean((xt - mu) ** 2, axis=-1, keepdims=True)
    yt = (xt - mu) * lax.rsqrt(var + LN_EPS) * g + b
    return jnp.transpose(yt, (0, 2, 1))


def _ref_get_rel_emb(rel, length):
    pad = max(length - (WINDOW + 1), 0)
    start = max((WINDOW + 1) - length, 0)
    padded = jnp.pad(rel, ((pad, pad), (0, 0)))
    return padded[start:start + 2 * length - 1]


def _ref_rel_to_abs(x):
    n, hh, l, _ = x.shape
    x = jnp.pad(x, ((0, 0), (0, 0), (0, 0), (0, 1)))
    xf = jnp.pad(x.reshape(n, hh, l * 2 * l), ((0, 0), (0, 0), (0, l - 1)))
    return xf.reshape(n, hh, l + 1, 2 * l - 1)[:, :, :l, l - 1:]


def _ref_abs_to_rel(x):
    n, hh, l, _ = x.shape
    x = jnp.pad(x, ((0, 0), (0, 0), (0, 0), (0, l - 1)))
    xf = jnp.pad(x.reshape(n, hh, l * l + l * (l - 1)), ((0, 0), (0, 0), (l, 0)))
    return xf.reshape(n, hh, l, 2 * l)[:, :, :, 1:]


def _ref_mha(x, attn_mask, lp):
    n, d, t = x.shape
    q = _ref_conv1x1(x, lp["wq"], lp["bq"])
    k = _ref_conv1x1(x, lp["wk"], lp["bk"])
    v = _ref_conv1x1(x, lp["wv"], lp["bv"])
    split = lambda u: jnp.transpose(u.reshape(n, N_HEADS, KCH, t), (0, 1, 3, 2))
    qh, kh, vh = split(q) / (KCH ** 0.5), split(k), split(v)
    scores = jnp.einsum("nhtd,nhsd->nhts", qh, kh, precision=lax.Precision.HIGHEST)
    rel_k = _ref_get_rel_emb(lp["rel_k"], t)
    rel_logits = jnp.einsum("nhtd,md->nhtm", qh, rel_k,
                            precision=lax.Precision.HIGHEST)
    scores = scores + _ref_rel_to_abs(rel_logits)
    scores = jnp.where(attn_mask == 0, -1e4, scores)
    p = jax.nn.softmax(scores, axis=-1)
    out = jnp.einsum("nhts,nhsd->nhtd", p, vh, precision=lax.Precision.HIGHEST)
    rel_w = _ref_abs_to_rel(p)
    rel_v = _ref_get_rel_emb(lp["rel_v"], t)
    out = out + jnp.einsum("nhtm,md->nhtd", rel_w, rel_v,
                           precision=lax.Precision.HIGHEST)
    out = jnp.transpose(out, (0, 1, 3, 2)).reshape(n, d, t)
    return _ref_conv1x1(out, lp["wo"], lp["bo"])


def _ref_ffn(x, x_mask, lp):
    def conv(v, w, b):
        y = lax.conv_general_dilated(v, w, window_strides=(1,),
                                     padding=[(PAD_L, PAD_R)],
                                     dimension_numbers=("NCH", "OIH", "NCH"),
                                     precision=lax.Precision.HIGHEST)
        return y + b[None, :, None]
    h = jnp.maximum(conv(x * x_mask, lp["w1"], lp["b1"]), 0.0)
    return conv(h * x_mask, lp["w2"], lp["b2"]) * x_mask


def text_encoder_ref(x, x_mask, f0, noise, params):
    emb = jnp.take(params["emb"], f0, axis=0)                 # (N, T, H)
    x = x + jnp.transpose(emb, (0, 2, 1))
    attn_mask = x_mask[:, :, None, :] * x_mask[:, :, :, None]
    h = (x * x_mask) * x_mask
    for lp in params["layers"]:
        y = _ref_mha(h, attn_mask, lp)
        h = _ref_layer_norm(h + y, lp["ln1_g"], lp["ln1_b"])
        y = _ref_ffn(h, x_mask, lp)
        h = _ref_layer_norm(h + y, lp["ln2_g"], lp["ln2_b"])
    h = h * x_mask
    stats = _ref_conv1x1(h, params["proj_w"], params["proj_b"]) * x_mask
    m, logs = stats[:, :OUT_CHANNELS], stats[:, OUT_CHANNELS:]
    z = (m + noise * jnp.exp(logs) * NOICE_SCALE) * x_mask
    return z, m, logs, x_mask


# ----------------------------- parameters -----------------------------------
def make_params(key):
    keys = iter(jax.random.split(key, 64))
    s = 0.1

    def rnd(shape, scale=s):
        return jax.random.normal(next(keys), shape, jnp.float32) * scale

    layers = []
    for _ in range(N_LAYERS):
        layers.append({
            "wq": rnd((HIDDEN, HIDDEN)), "bq": rnd((HIDDEN,)),
            "wk": rnd((HIDDEN, HIDDEN)), "bk": rnd((HIDDEN,)),
            "wv": rnd((HIDDEN, HIDDEN)), "bv": rnd((HIDDEN,)),
            "wo": rnd((HIDDEN, HIDDEN)), "bo": rnd((HIDDEN,)),
            "rel_k": rnd((NUM_REL, KCH), KCH ** -0.5),
            "rel_v": rnd((NUM_REL, KCH), KCH ** -0.5),
            "ln1_g": 1.0 + rnd((HIDDEN,)), "ln1_b": rnd((HIDDEN,)),
            "ln2_g": 1.0 + rnd((HIDDEN,)), "ln2_b": rnd((HIDDEN,)),
            "w1": rnd((FILTER, HIDDEN, KSIZE)), "b1": rnd((FILTER,)),
            "w2": rnd((HIDDEN, FILTER, KSIZE)), "b2": rnd((HIDDEN,)),
        })
    return {
        "layers": layers,
        "emb": rnd((VOCAB, HIDDEN), HIDDEN ** -0.5),
        "proj_w": rnd((2 * OUT_CHANNELS, HIDDEN)),
        "proj_b": rnd((2 * OUT_CHANNELS,)),
    }


# --------------------------------- main --------------------------------------
if __name__ == "__main__":
    key = jax.random.PRNGKey(0)
    k_x, k_f0, k_noise, k_par = jax.random.split(key, 4)

    x = jax.random.normal(k_x, (N_BATCH, HIDDEN, T_LEN), jnp.float32)
    lengths = jnp.array([T_LEN, T_LEN - 5], jnp.int32)
    x_mask = (jnp.arange(T_LEN)[None, :] < lengths[:, None]
              ).astype(jnp.float32)[:, None, :]               # (N, 1, T)
    f0 = jax.random.randint(k_f0, (N_BATCH, T_LEN), 0, VOCAB, dtype=jnp.int32)
    noise = jax.random.normal(k_noise, (N_BATCH, OUT_CHANNELS, T_LEN), jnp.float32)
    params = make_params(k_par)

    z, m, logs, mask_out = text_encoder_forward(x, x_mask, f0, noise, params)
    jax.block_until_ready((z, m, logs))

    z_r, m_r, logs_r, _ = text_encoder_ref(x, x_mask, f0, noise, params)
    assert z.shape == (N_BATCH, OUT_CHANNELS, T_LEN) and z.dtype == jnp.float32
    for got, want in ((z, z_r), (m, m_r), (logs, logs_r)):
        err = float(jnp.max(jnp.abs(got - want)))
        assert err < 5e-4, f"mismatch vs reference: {err}"
    print("KERNEL_OK")
</pallas_src>

<mosaic_0001>
module attributes {stable_mosaic.version = 11 : i64} {
  func.func @_text_encoder_kernel(%arg0: memref<32x32xf32, #tpu.memory_space<vmem>>, %arg1: memref<32x1xf32, #tpu.memory_space<vmem>>, %arg2: memref<2x16xf32, #tpu.memory_space<vmem>>, %arg3: memref<32x3xf32, #tpu.memory_space<vmem>>, %arg4: memref<32x1xi32, #tpu.memory_space<vmem>>, %arg5: memref<32x8xf32, #tpu.memory_space<vmem>>, %arg6: memref<256x32xf32, #tpu.memory_space<vmem>>, %arg7: memref<2x32x128xf32, #tpu.memory_space<vmem>>, %arg8: memref<2x1x128xf32, #tpu.memory_space<vmem>>, %arg9: memref<2x9x16xf32, #tpu.memory_space<vmem>>, %arg10: memref<2x9x16xf32, #tpu.memory_space<vmem>>, %arg11: memref<2x4x32xf32, #tpu.memory_space<vmem>>, %arg12: memref<2x96x64xf32, #tpu.memory_space<vmem>>, %arg13: memref<2x1x64xf32, #tpu.memory_space<vmem>>, %arg14: memref<2x192x32xf32, #tpu.memory_space<vmem>>, %arg15: memref<2x1x32xf32, #tpu.memory_space<vmem>>, %arg16: memref<32x16xf32, #tpu.memory_space<vmem>>, %arg17: memref<1x16xf32, #tpu.memory_space<vmem>>, %arg18: memref<32x24xf32, #tpu.memory_space<vmem>>) attributes {dimension_semantics = [], scalar_prefetch = 0 : i64, scratch_operands = 0 : i64, tpu.core_type = #tpu.core_type<tc>} {
    %c0 = arith.constant 0 : index
    %c0_0 = arith.constant 0 : index
    %0 = vector.load %arg1[%c0, %c0_0] : memref<32x1xf32, #tpu.memory_space<vmem>>, vector<32x1xf32>
    %c0_1 = arith.constant 0 : index
    %c0_2 = arith.constant 0 : index
    %1 = vector.load %arg3[%c0_1, %c0_2] : memref<32x3xf32, #tpu.memory_space<vmem>>, vector<32x3xf32>
    %2 = tpu.iota {dimensions = array<i32: 1>} : vector<32x256xi32>
    %c0_3 = arith.constant 0 : index
    %c0_4 = arith.constant 0 : index
    %3 = vector.load %arg4[%c0_3, %c0_4] : memref<32x1xi32, #tpu.memory_space<vmem>>, vector<32x1xi32>
    %4 = vector.broadcast %3 : vector<32x1xi32> to vector<32x256xi32>
    %5 = arith.cmpi eq, %4, %2 : vector<32x256xi32>
    %6 = arith.extui %5 : vector<32x256xi1> to vector<32x256xi32>
    %7 = arith.sitofp %6 : vector<32x256xi32> to vector<32x256xf32>
    %c0_5 = arith.constant 0 : index
    %c0_6 = arith.constant 0 : index
    %8 = vector.load %arg0[%c0_5, %c0_6] : memref<32x32xf32, #tpu.memory_space<vmem>>, vector<32x32xf32>
    %c0_7 = arith.constant 0 : index
    %c0_8 = arith.constant 0 : index
    %9 = vector.load %arg6[%c0_7, %c0_8] : memref<256x32xf32, #tpu.memory_space<vmem>>, vector<256x32xf32>
    %cst = arith.constant dense<0.000000e+00> : vector<32x32xf32>
    %10 = tpu.matmul %7, %9, %cst {dimension_numbers = #tpu.dot_dimension_numbers<[1], [0], [0], [1], [0, 0, 1, 1], [], []>} : vector<32x256xf32>, vector<256x32xf32>, vector<32x32xf32> -> vector<32x32xf32>
    %11 = arith.addf %8, %10 : vector<32x32xf32>
    %12 = vector.broadcast %0 : vector<32x1xf32> to vector<32x32xf32>
    %13 = arith.mulf %11, %12 : vector<32x32xf32>
    %14 = tpu.iota {dimensions = array<i32: 0>} : vector<16x16xi32>
    %15 = tpu.iota {dimensions = array<i32: 1>} : vector<16x16xi32>
    %16 = arith.subi %15, %14 : vector<16x16xi32>
    %c-4_i32 = arith.constant -4 : i32
    %17 = vector.broadcast %c-4_i32 : i32 to vector<16x16xi32>
    %18 = arith.cmpi eq, %16, %17 : vector<16x16xi32>
    %19 = arith.extui %18 : vector<16x16xi1> to vector<16x16xi32>
    %20 = arith.sitofp %19 : vector<16x16xi32> to vector<16x16xf32>
    %c-3_i32 = arith.constant -3 : i32
    %21 = vector.broadcast %c-3_i32 : i32 to vector<16x16xi32>
    %22 = arith.cmpi eq, %16, %21 : vector<16x16xi32>
    %23 = arith.extui %22 : vector<16x16xi1> to vector<16x16xi32>
    %24 = arith.sitofp %23 : vector<16x16xi32> to vector<16x16xf32>
    %c-2_i32 = arith.constant -2 : i32
    %25 = vector.broadcast %c-2_i32 : i32 to vector<16x16xi32>
    %26 = arith.cmpi eq, %16, %25 : vector<16x16xi32>
    %27 = arith.extui %26 : vector<16x16xi1> to vector<16x16xi32>
    %28 = arith.sitofp %27 : vector<16x16xi32> to vector<16x16xf32>
    %c-1_i32 = arith.constant -1 : i32
    %29 = vector.broadcast %c-1_i32 : i32 to vector<16x16xi32>
    %30 = arith.cmpi eq, %16, %29 : vector<16x16xi32>
    %31 = arith.extui %30 : vector<16x16xi1> to vector<16x16xi32>
    %32 = arith.sitofp %31 : vector<16x16xi32> to vector<16x16xf32>
    %c0_i32 = arith.constant 0 : i32
    %33 = vector.broadcast %c0_i32 : i32 to vector<16x16xi32>
    %34 = arith.cmpi eq, %16, %33 : vector<16x16xi32>
    %35 = arith.extui %34 : vector<16x16xi1> to vector<16x16xi32>
    %36 = arith.sitofp %35 : vector<16x16xi32> to vector<16x16xf32>
    %c1_i32 = arith.constant 1 : i32
    %37 = vector.broadcast %c1_i32 : i32 to vector<16x16xi32>
    %38 = arith.cmpi eq, %16, %37 : vector<16x16xi32>
    %39 = arith.extui %38 : vector<16x16xi1> to vector<16x16xi32>
    %40 = arith.sitofp %39 : vector<16x16xi32> to vector<16x16xf32>
    %c2_i32 = arith.constant 2 : i32
    %41 = vector.broadcast %c2_i32 : i32 to vector<16x16xi32>
    %42 = arith.cmpi eq, %16, %41 : vector<16x16xi32>
    %43 = arith.extui %42 : vector<16x16xi1> to vector<16x16xi32>
    %44 = arith.sitofp %43 : vector<16x16xi32> to vector<16x16xf32>
    %c3_i32 = arith.constant 3 : i32
    %45 = vector.broadcast %c3_i32 : i32 to vector<16x16xi32>
    %46 = arith.cmpi eq, %16, %45 : vector<16x16xi32>
    %47 = arith.extui %46 : vector<16x16xi1> to vector<16x16xi32>
    %48 = arith.sitofp %47 : vector<16x16xi32> to vector<16x16xf32>
    %c4_i32 = arith.constant 4 : i32
    %49 = vector.broadcast %c4_i32 : i32 to vector<16x16xi32>
    %50 = arith.cmpi eq, %16, %49 : vector<16x16xi32>
    %51 = arith.extui %50 : vector<16x16xi1> to vector<16x16xi32>
    %52 = arith.sitofp %51 : vector<16x16xi32> to vector<16x16xf32>
    %53 = vector.extract_strided_slice %0 {offsets = [0, 0], sizes = [16, 1], strides = [1, 1]} : vector<32x1xf32> to vector<16x1xf32>
    %c0_9 = arith.constant 0 : index
    %c0_10 = arith.constant 0 : index
    %54 = vector.load %arg2[%c0_9, %c0_10] : memref<2x16xf32, #tpu.memory_space<vmem>>, vector<1x16xf32>
    %55 = vector.broadcast %53 : vector<16x1xf32> to vector<16x16xf32>
    %56 = vector.broadcast %54 : vector<1x16xf32> to vector<16x16xf32>
    %57 = arith.mulf %55, %56 : vector<16x16xf32>
    %58 = vector.extract_strided_slice %0 {offsets = [16, 0], sizes = [16, 1], strides = [1, 1]} : vector<32x1xf32> to vector<16x1xf32>
    %c1 = arith.constant 1 : index
    %c0_11 = arith.constant 0 : index
    %59 = vector.load %arg2[%c1, %c0_11] : memref<2x16xf32, #tpu.memory_space<vmem>>, vector<1x16xf32>
    %60 = vector.broadcast %58 : vector<16x1xf32> to vector<16x16xf32>
    %61 = vector.broadcast %59 : vector<1x16xf32> to vector<16x16xf32>
    %62 = arith.mulf %60, %61 : vector<16x16xf32>
    %c0_12 = arith.constant 0 : index
    %c0_13 = arith.constant 0 : index
    %c0_14 = arith.constant 0 : index
    %63 = vector.load %arg7[%c0_12, %c0_13, %c0_14] : memref<2x32x128xf32, #tpu.memory_space<vmem>>, vector<1x32x128xf32>
    %64 = vector.shape_cast %63 : vector<1x32x128xf32> to vector<32x128xf32>
    %c0_15 = arith.constant 0 : index
    %c0_16 = arith.constant 0 : index
    %c0_17 = arith.constant 0 : index
    %65 = vector.load %arg8[%c0_15, %c0_16, %c0_17] : memref<2x1x128xf32, #tpu.memory_space<vmem>>, vector<1x1x128xf32>
    %66 = vector.shape_cast %65 : vector<1x1x128xf32> to vector<1x128xf32>
    %c0_18 = arith.constant 0 : index
    %c0_19 = arith.constant 0 : index
    %c0_20 = arith.constant 0 : index
    %67 = vector.load %arg9[%c0_18, %c0_19, %c0_20] : memref<2x9x16xf32, #tpu.memory_space<vmem>>, vector<1x9x16xf32>
    %68 = vector.shape_cast %67 : vector<1x9x16xf32> to vector<9x16xf32>
    %c0_21 = arith.constant 0 : index
    %c0_22 = arith.constant 0 : index
    %c0_23 = arith.constant 0 : index
    %69 = vector.load %arg10[%c0_21, %c0_22, %c0_23] : memref<2x9x16xf32, #tpu.memory_space<vmem>>, vector<1x9x16xf32>
    %70 = vector.shape_cast %69 : vector<1x9x16xf32> to vector<9x16xf32>
    %c0_24 = arith.constant 0 : index
    %c0_25 = arith.constant 0 : index
    %c0_26 = arith.constant 0 : index
    %71 = vector.load %arg11[%c0_24, %c0_25, %c0_26] : memref<2x4x32xf32, #tpu.memory_space<vmem>>, vector<1x4x32xf32>
    %72 = vector.shape_cast %71 : vector<1x4x32xf32> to vector<4x32xf32>
    %73 = vector.extract_strided_slice %64 {offsets = [0, 0], sizes = [32, 96], strides = [1, 1]} : vector<32x128xf32> to vector<32x96xf32>
    %cst_27 = arith.constant dense<0.000000e+00> : vector<32x96xf32>
    %74 = tpu.matmul %13, %73, %cst_27 {dimension_numbers = #tpu.dot_dimension_numbers<[1], [0], [0], [1], [0, 0, 1, 1], [], []>} : vector<32x32xf32>, vector<32x96xf32>, vector<32x96xf32> -> vector<32x96xf32>
    %75 = vector.extract_strided_slice %66 {offsets = [0, 0], sizes = [1, 96], strides = [1, 1]} : vector<1x128xf32> to vector<1x96xf32>
    %76 = vector.broadcast %75 : vector<1x96xf32> to vector<32x96xf32>
    %77 = arith.addf %74, %76 : vector<32x96xf32>
    %78 = vector.extract_strided_slice %77 {offsets = [0, 0], sizes = [16, 96], strides = [1, 1]} : vector<32x96xf32> to vector<16x96xf32>
    %79 = vector.extract_strided_slice %78 {offsets = [0, 0], sizes = [16, 16], strides = [1, 1]} : vector<16x96xf32> to vector<16x16xf32>
    %cst_28 = arith.constant 2.500000e-01 : f32
    %80 = vector.broadcast %cst_28 : f32 to vector<16x16xf32>
    %81 = arith.mulf %79, %80 : vector<16x16xf32>
    %82 = vector.extract_strided_slice %78 {offsets = [0, 32], sizes = [16, 16], strides = [1, 1]} : vector<16x96xf32> to vector<16x16xf32>
    %83 = vector.extract_strided_slice %78 {offsets = [0, 64], sizes = [16, 16], strides = [1, 1]} : vector<16x96xf32> to vector<16x16xf32>
    %cst_29 = arith.constant dense<0.000000e+00> : vector<16x16xf32>
    %84 = tpu.matmul %81, %82, %cst_29 {dimension_numbers = #tpu.dot_dimension_numbers<[1], [1], [0], [0], [0, 0, 1, 0], [], []>} : vector<16x16xf32>, vector<16x16xf32>, vector<16x16xf32> -> vector<16x16xf32>
    %cst_30 = arith.constant dense<0.000000e+00> : vector<16x9xf32>
    %85 = tpu.matmul %81, %68, %cst_30 {dimension_numbers = #tpu.dot_dimension_numbers<[1], [1], [0], [0], [0, 0, 1, 0], [], []>} : vector<16x16xf32>, vector<9x16xf32>, vector<16x9xf32> -> vector<16x9xf32>
    %86 = vector.extract_strided_slice %85 {offsets = [0, 0], sizes = [16, 1], strides = [1, 1]} : vector<16x9xf32> to vector<16x1xf32>
    %87 = vector.broadcast %86 : vector<16x1xf32> to vector<16x16xf32>
    %88 = arith.mulf %20, %87 : vector<16x16xf32>
    %89 = arith.addf %84, %88 : vector<16x16xf32>
    %90 = vector.extract_strided_slice %85 {offsets = [0, 1], sizes = [16, 1], strides = [1, 1]} : vector<16x9xf32> to vector<16x1xf32>
    %91 = vector.broadcast %90 : vector<16x1xf32> to vector<16x16xf32>
    %92 = arith.mulf %24, %91 : vector<16x16xf32>
    %93 = arith.addf %89, %92 : vector<16x16xf32>
    %94 = vector.extract_strided_slice %85 {offsets = [0, 2], sizes = [16, 1], strides = [1, 1]} : vector<16x9xf32> to vector<16x1xf32>
    %95 = vector.broadcast %94 : vector<16x1xf32> to vector<16x16xf32>
    %96 = arith.mulf %28, %95 : vector<16x16xf32>
    %97 = arith.addf %93, %96 : vector<16x16xf32>
    %98 = vector.extract_strided_slice %85 {offsets = [0, 3], sizes = [16, 1], strides = [1, 1]} : vector<16x9xf32> to vector<16x1xf32>
    %99 = vector.broadcast %98 : vector<16x1xf32> to vector<16x16xf32>
    %100 = arith.mulf %32, %99 : vector<16x16xf32>
    %101 = arith.addf %97, %100 : vector<16x16xf32>
    %102 = vector.extract_strided_slice %85 {offsets = [0, 4], sizes = [16, 1], strides = [1, 1]} : vector<16x9xf32> to vector<16x1xf32>
    %103 = vector.broadcast %102 : vector<16x1xf32> to vector<16x16xf32>
    %104 = arith.mulf %36, %103 : vector<16x16xf32>
    %105 = arith.addf %101, %104 : vector<16x16xf32>
    %106 = vector.extract_strided_slice %85 {offsets = [0, 5], sizes = [16, 1], strides = [1, 1]} : vector<16x9xf32> to vector<16x1xf32>
    %107 = vector.broadcast %106 : vector<16x1xf32> to vector<16x16xf32>
    %108 = arith.mulf %40, %107 : vector<16x16xf32>
    %109 = arith.addf %105, %108 : vector<16x16xf32>
    %110 = vector.extract_strided_slice %85 {offsets = [0, 6], sizes = [16, 1], strides = [1, 1]} : vector<16x9xf32> to vector<16x1xf32>
    %111 = vector.broadcast %110 : vector<16x1xf32> to vector<16x16xf32>
    %112 = arith.mulf %44, %111 : vector<16x16xf32>
    %113 = arith.addf %109, %112 : vector<16x16xf32>
    %114 = vector.extract_strided_slice %85 {offsets = [0, 7], sizes = [16, 1], strides = [1, 1]} : vector<16x9xf32> to vector<16x1xf32>
    %115 = vector.broadcast %114 : vector<16x1xf32> to vector<16x16xf32>
    %116 = arith.mulf %48, %115 : vector<16x16xf32>
    %117 = arith.addf %113, %116 : vector<16x16xf32>
    %118 = vector.extract_strided_slice %85 {offsets = [0, 8], sizes = [16, 1], strides = [1, 1]} : vector<16x9xf32> to vector<16x1xf32>
    %119 = vector.broadcast %118 : vector<16x1xf32> to vector<16x16xf32>
    %120 = arith.mulf %52, %119 : vector<16x16xf32>
    %121 = arith.addf %117, %120 : vector<16x16xf32>
    %cst_31 = arith.constant 0.000000e+00 : f32
    %122 = vector.broadcast %cst_31 : f32 to vector<16x16xf32>
    %123 = arith.cmpf ogt, %57, %122 : vector<16x16xf32>
    %cst_32 = arith.constant -1.000000e+04 : f32
    %124 = vector.broadcast %cst_32 : f32 to vector<16x16xf32>
    %125 = arith.select %123, %121, %124 : vector<16x16xi1>, vector<16x16xf32>
    %cst_33 = arith.constant dense<0xFF800000> : vector<16xf32>
    %126 = vector.multi_reduction <maximumf>, %125, %cst_33 [1] : vector<16x16xf32> to vector<16xf32>
    %127 = vector.shape_cast %126 : vector<16xf32> to vector<16x1xf32>
    %128 = vector.broadcast %127 : vector<16x1xf32> to vector<16x16xf32>
    %129 = arith.subf %125, %128 : vector<16x16xf32>
    %130 = math.exp %129 : vector<16x16xf32>
    %cst_34 = arith.constant dense<0.000000e+00> : vector<16xf32>
    %131 = vector.multi_reduction <add>, %130, %cst_34 [1] : vector<16x16xf32> to vector<16xf32>
    %132 = vector.shape_cast %131 : vector<16xf32> to vector<16x1xf32>
    %133 = vector.broadcast %132 : vector<16x1xf32> to vector<16x16xf32>
    %134 = arith.divf %130, %133 : vector<16x16xf32>
    %cst_35 = arith.constant dense<0.000000e+00> : vector<16x16xf32>
    %135 = tpu.matmul %134, %83, %cst_35 {dimension_numbers = #tpu.dot_dimension_numbers<[1], [0], [0], [1], [0, 0, 1, 1], [], []>} : vector<16x16xf32>, vector<16x16xf32>, vector<16x16xf32> -> vector<16x16xf32>
    %136 = arith.mulf %134, %20 : vector<16x16xf32>
    %cst_36 = arith.constant dense<0.000000e+00> : vector<16xf32>
    %137 = vector.multi_reduction <add>, %136, %cst_36 [1] : vector<16x16xf32> to vector<16xf32>
    %138 = vector.shape_cast %137 : vector<16xf32> to vector<16x1xf32>
    %139 = vector.extract_strided_slice %70 {offsets = [0, 0], sizes = [1, 16], strides = [1, 1]} : vector<9x16xf32> to vector<1x16xf32>
    %140 = vector.broadcast %138 : vector<16x1xf32> to vector<16x16xf32>
    %141 = vector.broadcast %139 : vector<1x16xf32> to vector<16x16xf32>
    %142 = arith.mulf %140, %141 : vector<16x16xf32>
    %143 = arith.addf %135, %142 : vector<16x16xf32>
    %144 = arith.mulf %134, %24 : vector<16x16xf32>
    %cst_37 = arith.constant dense<0.000000e+00> : vector<16xf32>
    %145 = vector.multi_reduction <add>, %144, %cst_37 [1] : vector<16x16xf32> to vector<16xf32>
    %146 = vector.shape_cast %145 : vector<16xf32> to vector<16x1xf32>
    %147 = vector.extract_strided_slice %70 {offsets = [1, 0], sizes = [1, 16], strides = [1, 1]} : vector<9x16xf32> to vector<1x16xf32>
    %148 = vector.broadcast %146 : vector<16x1xf32> to vector<16x16xf32>
    %149 = vector.broadcast %147 : vector<1x16xf32> to vector<16x16xf32>
    %150 = arith.mulf %148, %149 : vector<16x16xf32>
    %151 = arith.addf %143, %150 : vector<16x16xf32>
    %152 = arith.mulf %134, %28 : vector<16x16xf32>
    %cst_38 = arith.constant dense<0.000000e+00> : vector<16xf32>
    %153 = vector.multi_reduction <add>, %152, %cst_38 [1] : vector<16x16xf32> to vector<16xf32>
    %154 = vector.shape_cast %153 : vector<16xf32> to vector<16x1xf32>
    %155 = vector.extract_strided_slice %70 {offsets = [2, 0], sizes = [1, 16], strides = [1, 1]} : vector<9x16xf32> to vector<1x16xf32>
    %156 = vector.broadcast %154 : vector<16x1xf32> to vector<16x16xf32>
    %157 = vector.broadcast %155 : vector<1x16xf32> to vector<16x16xf32>
    %158 = arith.mulf %156, %157 : vector<16x16xf32>
    %159 = arith.addf %151, %158 : vector<16x16xf32>
    %160 = arith.mulf %134, %32 : vector<16x16xf32>
    %cst_39 = arith.constant dense<0.000000e+00> : vector<16xf32>
    %161 = vector.multi_reduction <add>, %160, %cst_39 [1] : vector<16x16xf32> to vector<16xf32>
    %162 = vector.shape_cast %161 : vector<16xf32> to vector<16x1xf32>
    %163 = vector.extract_strided_slice %70 {offsets = [3, 0], sizes = [1, 16], strides = [1, 1]} : vector<9x16xf32> to vector<1x16xf32>
    %164 = vector.broadcast %162 : vector<16x1xf32> to vector<16x16xf32>
    %165 = vector.broadcast %163 : vector<1x16xf32> to vector<16x16xf32>
    %166 = arith.mulf %164, %165 : vector<16x16xf32>
    %167 = arith.addf %159, %166 : vector<16x16xf32>
    %168 = arith.mulf %134, %36 : vector<16x16xf32>
    %cst_40 = arith.constant dense<0.000000e+00> : vector<16xf32>
    %169 = vector.multi_reduction <add>, %168, %cst_40 [1] : vector<16x16xf32> to vector<16xf32>
    %170 = vector.shape_cast %169 : vector<16xf32> to vector<16x1xf32>
    %171 = vector.extract_strided_slice %70 {offsets = [4, 0], sizes = [1, 16], strides = [1, 1]} : vector<9x16xf32> to vector<1x16xf32>
    %172 = vector.broadcast %170 : vector<16x1xf32> to vector<16x16xf32>
    %173 = vector.broadcast %171 : vector<1x16xf32> to vector<16x16xf32>
    %174 = arith.mulf %172, %173 : vector<16x16xf32>
    %175 = arith.addf %167, %174 : vector<16x16xf32>
    %176 = arith.mulf %134, %40 : vector<16x16xf32>
    %cst_41 = arith.constant dense<0.000000e+00> : vector<16xf32>
    %177 = vector.multi_reduction <add>, %176, %cst_41 [1] : vector<16x16xf32> to vector<16xf32>
    %178 = vector.shape_cast %177 : vector<16xf32> to vector<16x1xf32>
    %179 = vector.extract_strided_slice %70 {offsets = [5, 0], sizes = [1, 16], strides = [1, 1]} : vector<9x16xf32> to vector<1x16xf32>
    %180 = vector.broadcast %178 : vector<16x1xf32> to vector<16x16xf32>
    %181 = vector.broadcast %179 : vector<1x16xf32> to vector<16x16xf32>
    %182 = arith.mulf %180, %181 : vector<16x16xf32>
    %183 = arith.addf %175, %182 : vector<16x16xf32>
    %184 = arith.mulf %134, %44 : vector<16x16xf32>
    %cst_42 = arith.constant dense<0.000000e+00> : vector<16xf32>
    %185 = vector.multi_reduction <add>, %184, %cst_42 [1] : vector<16x16xf32> to vector<16xf32>
    %186 = vector.shape_cast %185 : vector<16xf32> to vector<16x1xf32>
    %187 = vector.extract_strided_slice %70 {offsets = [6, 0], sizes = [1, 16], strides = [1, 1]} : vector<9x16xf32> to vector<1x16xf32>
    %188 = vector.broadcast %186 : vector<16x1xf32> to vector<16x16xf32>
    %189 = vector.broadcast %187 : vector<1x16xf32> to vector<16x16xf32>
    %190 = arith.mulf %188, %189 : vector<16x16xf32>
    %191 = arith.addf %183, %190 : vector<16x16xf32>
    %192 = arith.mulf %134, %48 : vector<16x16xf32>
    %cst_43 = arith.constant dense<0.000000e+00> : vector<16xf32>
    %193 = vector.multi_reduction <add>, %192, %cst_43 [1] : vector<16x16xf32> to vector<16xf32>
    %194 = vector.shape_cast %193 : vector<16xf32> to vector<16x1xf32>
    %195 = vector.extract_strided_slice %70 {offsets = [7, 0], sizes = [1, 16], strides = [1, 1]} : vector<9x16xf32> to vector<1x16xf32>
    %196 = vector.broadcast %194 : vector<16x1xf32> to vector<16x16xf32>
    %197 = vector.broadcast %195 : vector<1x16xf32> to vector<16x16xf32>
    %198 = arith.mulf %196, %197 : vector<16x16xf32>
    %199 = arith.addf %191, %198 : vector<16x16xf32>
    %200 = arith.mulf %134, %52 : vector<16x16xf32>
    %cst_44 = arith.constant dense<0.000000e+00> : vector<16xf32>
    %201 = vector.multi_reduction <add>, %200, %cst_44 [1] : vector<16x16xf32> to vector<16xf32>
    %202 = vector.shape_cast %201 : vector<16xf32> to vector<16x1xf32>
    %203 = vector.extract_strided_slice %70 {offsets = [8, 0], sizes = [1, 16], strides = [1, 1]} : vector<9x16xf32> to vector<1x16xf32>
    %204 = vector.broadcast %202 : vector<16x1xf32> to vector<16x16xf32>
    %205 = vector.broadcast %203 : vector<1x16xf32> to vector<16x16xf32>
    %206 = arith.mulf %204, %205 : vector<16x16xf32>
    %207 = arith.addf %199, %206 : vector<16x16xf32>
    %208 = vector.extract_strided_slice %78 {offsets = [0, 16], sizes = [16, 16], strides = [1, 1]} : vector<16x96xf32> to vector<16x16xf32>
    %cst_45 = arith.constant 2.500000e-01 : f32
    %209 = vector.broadcast %cst_45 : f32 to vector<16x16xf32>
    %210 = arith.mulf %208, %209 : vector<16x16xf32>
    %211 = vector.extract_strided_slice %78 {offsets = [0, 48], sizes = [16, 16], strides = [1, 1]} : vector<16x96xf32> to vector<16x16xf32>
    %212 = vector.extract_strided_slice %78 {offsets = [0, 80], sizes = [16, 16], strides = [1, 1]} : vector<16x96xf32> to vector<16x16xf32>
    %cst_46 = arith.constant dense<0.000000e+00> : vector<16x16xf32>
    %213 = tpu.matmul %210, %211, %cst_46 {dimension_numbers = #tpu.dot_dimension_numbers<[1], [1], [0], [0], [0, 0, 1, 0], [], []>} : vector<16x16xf32>, vector<16x16xf32>, vector<16x16xf32> -> vector<16x16xf32>
    %cst_47 = arith.constant dense<0.000000e+00> : vector<16x9xf32>
    %214 = tpu.matmul %210, %68, %cst_47 {dimension_numbers = #tpu.dot_dimension_numbers<[1], [1], [0], [0], [0, 0, 1, 0], [], []>} : vector<16x16xf32>, vector<9x16xf32>, vector<16x9xf32> -> vector<16x9xf32>
    %215 = vector.extract_strided_slice %214 {offsets = [0, 0], sizes = [16, 1], strides = [1, 1]} : vector<16x9xf32> to vector<16x1xf32>
    %216 = vector.broadcast %215 : vector<16x1xf32> to vector<16x16xf32>
    %217 = arith.mulf %20, %216 : vector<16x16xf32>
    %218 = arith.addf %213, %217 : vector<16x16xf32>
    %219 = vector.extract_strided_slice %214 {offsets = [0, 1], sizes = [16, 1], strides = [1, 1]} : vector<16x9xf32> to vector<16x1xf32>
    %220 = vector.broadcast %219 : vector<16x1xf32> to vector<16x16xf32>
    %221 = arith.mulf %24, %220 : vector<16x16xf32>
    %222 = arith.addf %218, %221 : vector<16x16xf32>
    %223 = vector.extract_strided_slice %214 {offsets = [0, 2], sizes = [16, 1], strides = [1, 1]} : vector<16x9xf32> to vector<16x1xf32>
    %224 = vector.broadcast %223 : vector<16x1xf32> to vector<16x16xf32>
    %225 = arith.mulf %28, %224 : vector<16x16xf32>
    %226 = arith.addf %222, %225 : vector<16x16xf32>
    %227 = vector.extract_strided_slice %214 {offsets = [0, 3], sizes = [16, 1], strides = [1, 1]} : vector<16x9xf32> to vector<16x1xf32>
    %228 = vector.broadcast %227 : vector<16x1xf32> to vector<16x16xf32>
    %229 = arith.mulf %32, %228 : vector<16x16xf32>
    %230 = arith.addf %226, %229 : vector<16x16xf32>
    %231 = vector.extract_strided_slice %214 {offsets = [0, 4], sizes = [16, 1], strides = [1, 1]} : vector<16x9xf32> to vector<16x1xf32>
    %232 = vector.broadcast %231 : vector<16x1xf32> to vector<16x16xf32>
    %233 = arith.mulf %36, %232 : vector<16x16xf32>
    %234 = arith.addf %230, %233 : vector<16x16xf32>
    %235 = vector.extract_strided_slice %214 {offsets = [0, 5], sizes = [16, 1], strides = [1, 1]} : vector<16x9xf32> to vector<16x1xf32>
    %236 = vector.broadcast %235 : vector<16x1xf32> to vector<16x16xf32>
    %237 = arith.mulf %40, %236 : vector<16x16xf32>
    %238 = arith.addf %234, %237 : vector<16x16xf32>
    %239 = vector.extract_strided_slice %214 {offsets = [0, 6], sizes = [16, 1], strides = [1, 1]} : vector<16x9xf32> to vector<16x1xf32>
    %240 = vector.broadcast %239 : vector<16x1xf32> to vector<16x16xf32>
    %241 = arith.mulf %44, %240 : vector<16x16xf32>
    %242 = arith.addf %238, %241 : vector<16x16xf32>
    %243 = vector.extract_strided_slice %214 {offsets = [0, 7], sizes = [16, 1], strides = [1, 1]} : vector<16x9xf32> to vector<16x1xf32>
    %244 = vector.broadcast %243 : vector<16x1xf32> to vector<16x16xf32>
    %245 = arith.mulf %48, %244 : vector<16x16xf32>
    %246 = arith.addf %242, %245 : vector<16x16xf32>
    %247 = vector.extract_strided_slice %214 {offsets = [0, 8], sizes = [16, 1], strides = [1, 1]} : vector<16x9xf32> to vector<16x1xf32>
    %248 = vector.broadcast %247 : vector<16x1xf32> to vector<16x16xf32>
    %249 = arith.mulf %52, %248 : vector<16x16xf32>
    %250 = arith.addf %246, %249 : vector<16x16xf32>
    %cst_48 = arith.constant 0.000000e+00 : f32
    %251 = vector.broadcast %cst_48 : f32 to vector<16x16xf32>
    %252 = arith.cmpf ogt, %57, %251 : vector<16x16xf32>
    %cst_49 = arith.constant -1.000000e+04 : f32
    %253 = vector.broadcast %cst_49 : f32 to vector<16x16xf32>
    %254 = arith.select %252, %250, %253 : vector<16x16xi1>, vector<16x16xf32>
    %cst_50 = arith.constant dense<0xFF800000> : vector<16xf32>
    %255 = vector.multi_reduction <maximumf>, %254, %cst_50 [1] : vector<16x16xf32> to vector<16xf32>
    %256 = vector.shape_cast %255 : vector<16xf32> to vector<16x1xf32>
    %257 = vector.broadcast %256 : vector<16x1xf32> to vector<16x16xf32>
    %258 = arith.subf %254, %257 : vector<16x16xf32>
    %259 = math.exp %258 : vector<16x16xf32>
    %cst_51 = arith.constant dense<0.000000e+00> : vector<16xf32>
    %260 = vector.multi_reduction <add>, %259, %cst_51 [1] : vector<16x16xf32> to vector<16xf32>
    %261 = vector.shape_cast %260 : vector<16xf32> to vector<16x1xf32>
    %262 = vector.broadcast %261 : vector<16x1xf32> to vector<16x16xf32>
    %263 = arith.divf %259, %262 : vector<16x16xf32>
    %cst_52 = arith.constant dense<0.000000e+00> : vector<16x16xf32>
    %264 = tpu.matmul %263, %212, %cst_52 {dimension_numbers = #tpu.dot_dimension_numbers<[1], [0], [0], [1], [0, 0, 1, 1], [], []>} : vector<16x16xf32>, vector<16x16xf32>, vector<16x16xf32> -> vector<16x16xf32>
    %265 = arith.mulf %263, %20 : vector<16x16xf32>
    %cst_53 = arith.constant dense<0.000000e+00> : vector<16xf32>
    %266 = vector.multi_reduction <add>, %265, %cst_53 [1] : vector<16x16xf32> to vector<16xf32>
    %267 = vector.shape_cast %266 : vector<16xf32> to vector<16x1xf32>
    %268 = vector.extract_strided_slice %70 {offsets = [0, 0], sizes = [1, 16], strides = [1, 1]} : vector<9x16xf32> to vector<1x16xf32>
    %269 = vector.broadcast %267 : vector<16x1xf32> to vector<16x16xf32>
    %270 = vector.broadcast %268 : vector<1x16xf32> to vector<16x16xf32>
    %271 = arith.mulf %269, %270 : vector<16x16xf32>
    %272 = arith.addf %264, %271 : vector<16x16xf32>
    %273 = arith.mulf %263, %24 : vector<16x16xf32>
    %cst_54 = arith.constant dense<0.000000e+00> : vector<16xf32>
    %274 = vector.multi_reduction <add>, %273, %cst_54 [1] : vector<16x16xf32> to vector<16xf32>
    %275 = vector.shape_cast %274 : vector<16xf32> to vector<16x1xf32>
    %276 = vector.extract_strided_slice %70 {offsets = [1, 0], sizes = [1, 16], strides = [1, 1]} : vector<9x16xf32> to vector<1x16xf32>
    %277 = vector.broadcast %275 : vector<16x1xf32> to vector<16x16xf32>
    %278 = vector.broadcast %276 : vector<1x16xf32> to vector<16x16xf32>
    %279 = arith.mulf %277, %278 : vector<16x16xf32>
    %280 = arith.addf %272, %279 : vector<16x16xf32>
    %281 = arith.mulf %263, %28 : vector<16x16xf32>
    %cst_55 = arith.constant dense<0.000000e+00> : vector<16xf32>
    %282 = vector.multi_reduction <add>, %281, %cst_55 [1] : vector<16x16xf32> to vector<16xf32>
    %283 = vector.shape_cast %282 : vector<16xf32> to vector<16x1xf32>
    %284 = vector.extract_strided_slice %70 {offsets = [2, 0], sizes = [1, 16], strides = [1, 1]} : vector<9x16xf32> to vector<1x16xf32>
    %285 = vector.broadcast %283 : vector<16x1xf32> to vector<16x16xf32>
    %286 = vector.broadcast %284 : vector<1x16xf32> to vector<16x16xf32>
    %287 = arith.mulf %285, %286 : vector<16x16xf32>
    %288 = arith.addf %280, %287 : vector<16x16xf32>
    %289 = arith.mulf %263, %32 : vector<16x16xf32>
    %cst_56 = arith.constant dense<0.000000e+00> : vector<16xf32>
    %290 = vector.multi_reduction <add>, %289, %cst_56 [1] : vector<16x16xf32> to vector<16xf32>
    %291 = vector.shape_cast %290 : vector<16xf32> to vector<16x1xf32>
    %292 = vector.extract_strided_slice %70 {offsets = [3, 0], sizes = [1, 16], strides = [1, 1]} : vector<9x16xf32> to vector<1x16xf32>
    %293 = vector.broadcast %291 : vector<16x1xf32> to vector<16x16xf32>
    %294 = vector.broadcast %292 : vector<1x16xf32> to vector<16x16xf32>
    %295 = arith.mulf %293, %294 : vector<16x16xf32>
    %296 = arith.addf %288, %295 : vector<16x16xf32>
    %297 = arith.mulf %263, %36 : vector<16x16xf32>
    %cst_57 = arith.constant dense<0.000000e+00> : vector<16xf32>
    %298 = vector.multi_reduction <add>, %297, %cst_57 [1] : vector<16x16xf32> to vector<16xf32>
    %299 = vector.shape_cast %298 : vector<16xf32> to vector<16x1xf32>
    %300 = vector.extract_strided_slice %70 {offsets = [4, 0], sizes = [1, 16], strides = [1, 1]} : vector<9x16xf32> to vector<1x16xf32>
    %301 = vector.broadcast %299 : vector<16x1xf32> to vector<16x16xf32>
    %302 = vector.broadcast %300 : vector<1x16xf32> to vector<16x16xf32>
    %303 = arith.mulf %301, %302 : vector<16x16xf32>
    %304 = arith.addf %296, %303 : vector<16x16xf32>
    %305 = arith.mulf %263, %40 : vector<16x16xf32>
    %cst_58 = arith.constant dense<0.000000e+00> : vector<16xf32>
    %306 = vector.multi_reduction <add>, %305, %cst_58 [1] : vector<16x16xf32> to vector<16xf32>
    %307 = vector.shape_cast %306 : vector<16xf32> to vector<16x1xf32>
    %308 = vector.extract_strided_slice %70 {offsets = [5, 0], sizes = [1, 16], strides = [1, 1]} : vector<9x16xf32> to vector<1x16xf32>
    %309 = vector.broadcast %307 : vector<16x1xf32> to vector<16x16xf32>
    %310 = vector.broadcast %308 : vector<1x16xf32> to vector<16x16xf32>
    %311 = arith.mulf %309, %310 : vector<16x16xf32>
    %312 = arith.addf %304, %311 : vector<16x16xf32>
    %313 = arith.mulf %263, %44 : vector<16x16xf32>
    %cst_59 = arith.constant dense<0.000000e+00> : vector<16xf32>
    %314 = vector.multi_reduction <add>, %313, %cst_59 [1] : vector<16x16xf32> to vector<16xf32>
    %315 = vector.shape_cast %314 : vector<16xf32> to vector<16x1xf32>
    %316 = vector.extract_strided_slice %70 {offsets = [6, 0], sizes = [1, 16], strides = [1, 1]} : vector<9x16xf32> to vector<1x16xf32>
    %317 = vector.broadcast %315 : vector<16x1xf32> to vector<16x16xf32>
    %318 = vector.broadcast %316 : vector<1x16xf32> to vector<16x16xf32>
    %319 = arith.mulf %317, %318 : vector<16x16xf32>
    %320 = arith.addf %312, %319 : vector<16x16xf32>
    %321 = arith.mulf %263, %48 : vector<16x16xf32>
    %cst_60 = arith.constant dense<0.000000e+00> : vector<16xf32>
    %322 = vector.multi_reduction <add>, %321, %cst_60 [1] : vector<16x16xf32> to vector<16xf32>
    %323 = vector.shape_cast %322 : vector<16xf32> to vector<16x1xf32>
    %324 = vector.extract_strided_slice %70 {offsets = [7, 0], sizes = [1, 16], strides = [1, 1]} : vector<9x16xf32> to vector<1x16xf32>
    %325 = vector.broadcast %323 : vector<16x1xf32> to vector<16x16xf32>
    %326 = vector.broadcast %324 : vector<1x16xf32> to vector<16x16xf32>
    %327 = arith.mulf %325, %326 : vector<16x16xf32>
    %328 = arith.addf %320, %327 : vector<16x16xf32>
    %329 = arith.mulf %263, %52 : vector<16x16xf32>
    %cst_61 = arith.constant dense<0.000000e+00> : vector<16xf32>
    %330 = vector.multi_reduction <add>, %329, %cst_61 [1] : vector<16x16xf32> to vector<16xf32>
    %331 = vector.shape_cast %330 : vector<16xf32> to vector<16x1xf32>
    %332 = vector.extract_strided_slice %70 {offsets = [8, 0], sizes = [1, 16], strides = [1, 1]} : vector<9x16xf32> to vector<1x16xf32>
    %333 = vector.broadcast %331 : vector<16x1xf32> to vector<16x16xf32>
    %334 = vector.broadcast %332 : vector<1x16xf32> to vector<16x16xf32>
    %335 = arith.mulf %333, %334 : vector<16x16xf32>
    %336 = arith.addf %328, %335 : vector<16x16xf32>
    %337 = tpu.concatenate %207, %336 in 1 : vector<16x16xf32>, vector<16x16xf32> -> vector<16x32xf32>
    %338 = vector.extract_strided_slice %77 {offsets = [16, 0], sizes = [16, 96], strides = [1, 1]} : vector<32x96xf32> to vector<16x96xf32>
    %339 = vector.extract_strided_slice %338 {offsets = [0, 0], sizes = [16, 16], strides = [1, 1]} : vector<16x96xf32> to vector<16x16xf32>
    %cst_62 = arith.constant 2.500000e-01 : f32
    %340 = vector.broadcast %cst_62 : f32 to vector<16x16xf32>
    %341 = arith.mulf %339, %340 : vector<16x16xf32>
    %342 = vector.extract_strided_slice %338 {offsets = [0, 32], sizes = [16, 16], strides = [1, 1]} : vector<16x96xf32> to vector<16x16xf32>
    %343 = vector.extract_strided_slice %338 {offsets = [0, 64], sizes = [16, 16], strides = [1, 1]} : vector<16x96xf32> to vector<16x16xf32>
    %cst_63 = arith.constant dense<0.000000e+00> : vector<16x16xf32>
    %344 = tpu.matmul %341, %342, %cst_63 {dimension_numbers = #tpu.dot_dimension_numbers<[1], [1], [0], [0], [0, 0, 1, 0], [], []>} : vector<16x16xf32>, vector<16x16xf32>, vector<16x16xf32> -> vector<16x16xf32>
    %cst_64 = arith.constant dense<0.000000e+00> : vector<16x9xf32>
    %345 = tpu.matmul %341, %68, %cst_64 {dimension_numbers = #tpu.dot_dimension_numbers<[1], [1], [0], [0], [0, 0, 1, 0], [], []>} : vector<16x16xf32>, vector<9x16xf32>, vector<16x9xf32> -> vector<16x9xf32>
    %346 = vector.extract_strided_slice %345 {offsets = [0, 0], sizes = [16, 1], strides = [1, 1]} : vector<16x9xf32> to vector<16x1xf32>
    %347 = vector.broadcast %346 : vector<16x1xf32> to vector<16x16xf32>
    %348 = arith.mulf %20, %347 : vector<16x16xf32>
    %349 = arith.addf %344, %348 : vector<16x16xf32>
    %350 = vector.extract_strided_slice %345 {offsets = [0, 1], sizes = [16, 1], strides = [1, 1]} : vector<16x9xf32> to vector<16x1xf32>
    %351 = vector.broadcast %350 : vector<16x1xf32> to vector<16x16xf32>
    %352 = arith.mulf %24, %351 : vector<16x16xf32>
    %353 = arith.addf %349, %352 : vector<16x16xf32>
    %354 = vector.extract_strided_slice %345 {offsets = [0, 2], sizes = [16, 1], strides = [1, 1]} : vector<16x9xf32> to vector<16x1xf32>
    %355 = vector.broadcast %354 : vector<16x1xf32> to vector<16x16xf32>
    %356 = arith.mulf %28, %355 : vector<16x16xf32>
    %357 = arith.addf %353, %356 : vector<16x16xf32>
    %358 = vector.extract_strided_slice %345 {offsets = [0, 3], sizes = [16, 1], strides = [1, 1]} : vector<16x9xf32> to vector<16x1xf32>
    %359 = vector.broadcast %358 : vector<16x1xf32> to vector<16x16xf32>
    %360 = arith.mulf %32, %359 : vector<16x16xf32>
    %361 = arith.addf %357, %360 : vector<16x16xf32>
    %362 = vector.extract_strided_slice %345 {offsets = [0, 4], sizes = [16, 1], strides = [1, 1]} : vector<16x9xf32> to vector<16x1xf32>
    %363 = vector.broadcast %362 : vector<16x1xf32> to vector<16x16xf32>
    %364 = arith.mulf %36, %363 : vector<16x16xf32>
    %365 = arith.addf %361, %364 : vector<16x16xf32>
    %366 = vector.extract_strided_slice %345 {offsets = [0, 5], sizes = [16, 1], strides = [1, 1]} : vector<16x9xf32> to vector<16x1xf32>
    %367 = vector.broadcast %366 : vector<16x1xf32> to vector<16x16xf32>
    %368 = arith.mulf %40, %367 : vector<16x16xf32>
    %369 = arith.addf %365, %368 : vector<16x16xf32>
    %370 = vector.extract_strided_slice %345 {offsets = [0, 6], sizes = [16, 1], strides = [1, 1]} : vector<16x9xf32> to vector<16x1xf32>
    %371 = vector.broadcast %370 : vector<16x1xf32> to vector<16x16xf32>
    %372 = arith.mulf %44, %371 : vector<16x16xf32>
    %373 = arith.addf %369, %372 : vector<16x16xf32>
    %374 = vector.extract_strided_slice %345 {offsets = [0, 7], sizes = [16, 1], strides = [1, 1]} : vector<16x9xf32> to vector<16x1xf32>
    %375 = vector.broadcast %374 : vector<16x1xf32> to vector<16x16xf32>
    %376 = arith.mulf %48, %375 : vector<16x16xf32>
    %377 = arith.addf %373, %376 : vector<16x16xf32>
    %378 = vector.extract_strided_slice %345 {offsets = [0, 8], sizes = [16, 1], strides = [1, 1]} : vector<16x9xf32> to vector<16x1xf32>
    %379 = vector.broadcast %378 : vector<16x1xf32> to vector<16x16xf32>
    %380 = arith.mulf %52, %379 : vector<16x16xf32>
    %381 = arith.addf %377, %380 : vector<16x16xf32>
    %cst_65 = arith.constant 0.000000e+00 : f32
    %382 = vector.broadcast %cst_65 : f32 to vector<16x16xf32>
    %383 = arith.cmpf ogt, %62, %382 : vector<16x16xf32>
    %cst_66 = arith.constant -1.000000e+04 : f32
    %384 = vector.broadcast %cst_66 : f32 to vector<16x16xf32>
    %385 = arith.select %383, %381, %384 : vector<16x16xi1>, vector<16x16xf32>
    %cst_67 = arith.constant dense<0xFF800000> : vector<16xf32>
    %386 = vector.multi_reduction <maximumf>, %385, %cst_67 [1] : vector<16x16xf32> to vector<16xf32>
    %387 = vector.shape_cast %386 : vector<16xf32> to vector<16x1xf32>
    %388 = vector.broadcast %387 : vector<16x1xf32> to vector<16x16xf32>
    %389 = arith.subf %385, %388 : vector<16x16xf32>
    %390 = math.exp %389 : vector<16x16xf32>
    %cst_68 = arith.constant dense<0.000000e+00> : vector<16xf32>
    %391 = vector.multi_reduction <add>, %390, %cst_68 [1] : vector<16x16xf32> to vector<16xf32>
    %392 = vector.shape_cast %391 : vector<16xf32> to vector<16x1xf32>
    %393 = vector.broadcast %392 : vector<16x1xf32> to vector<16x16xf32>
    %394 = arith.divf %390, %393 : vector<16x16xf32>
    %cst_69 = arith.constant dense<0.000000e+00> : vector<16x16xf32>
    %395 = tpu.matmul %394, %343, %cst_69 {dimension_numbers = #tpu.dot_dimension_numbers<[1], [0], [0], [1], [0, 0, 1, 1], [], []>} : vector<16x16xf32>, vector<16x16xf32>, vector<16x16xf32> -> vector<16x16xf32>
    %396 = arith.mulf %394, %20 : vector<16x16xf32>
    %cst_70 = arith.constant dense<0.000000e+00> : vector<16xf32>
    %397 = vector.multi_reduction <add>, %396, %cst_70 [1] : vector<16x16xf32> to vector<16xf32>
    %398 = vector.shape_cast %397 : vector<16xf32> to vector<16x1xf32>
    %399 = vector.extract_strided_slice %70 {offsets = [0, 0], sizes = [1, 16], strides = [1, 1]} : vector<9x16xf32> to vector<1x16xf32>
    %400 = vector.broadcast %398 : vector<16x1xf32> to vector<16x16xf32>
    %401 = vector.broadcast %399 : vector<1x16xf32> to vector<16x16xf32>
    %402 = arith.mulf %400, %401 : vector<16x16xf32>
    %403 = arith.addf %395, %402 : vector<16x16xf32>
    %404 = arith.mulf %394, %24 : vector<16x16xf32>
    %cst_71 = arith.constant dense<0.000000e+00> : vector<16xf32>
    %405 = vector.multi_reduction <add>, %404, %cst_71 [1] : vector<16x16xf32> to vector<16xf32>
    %406 = vector.shape_cast %405 : vector<16xf32> to vector<16x1xf32>
    %407 = vector.extract_strided_slice %70 {offsets = [1, 0], sizes = [1, 16], strides = [1, 1]} : vector<9x16xf32> to vector<1x16xf32>
    %408 = vector.broadcast %406 : vector<16x1xf32> to vector<16x16xf32>
    %409 = vector.broadcast %407 : vector<1x16xf32> to vector<16x16xf32>
    %410 = arith.mulf %408, %409 : vector<16x16xf32>
    %411 = arith.addf %403, %410 : vector<16x16xf32>
    %412 = arith.mulf %394, %28 : vector<16x16xf32>
    %cst_72 = arith.constant dense<0.000000e+00> : vector<16xf32>
    %413 = vector.multi_reduction <add>, %412, %cst_72 [1] : vector<16x16xf32> to vector<16xf32>
    %414 = vector.shape_cast %413 : vector<16xf32> to vector<16x1xf32>
    %415 = vector.extract_strided_slice %70 {offsets = [2, 0], sizes = [1, 16], strides = [1, 1]} : vector<9x16xf32> to vector<1x16xf32>
    %416 = vector.broadcast %414 : vector<16x1xf32> to vector<16x16xf32>
    %417 = vector.broadcast %415 : vector<1x16xf32> to vector<16x16xf32>
    %418 = arith.mulf %416, %417 : vector<16x16xf32>
    %419 = arith.addf %411, %418 : vector<16x16xf32>
    %420 = arith.mulf %394, %32 : vector<16x16xf32>
    %cst_73 = arith.constant dense<0.000000e+00> : vector<16xf32>
    %421 = vector.multi_reduction <add>, %420, %cst_73 [1] : vector<16x16xf32> to vector<16xf32>
    %422 = vector.shape_cast %421 : vector<16xf32> to vector<16x1xf32>
    %423 = vector.extract_strided_slice %70 {offsets = [3, 0], sizes = [1, 16], strides = [1, 1]} : vector<9x16xf32> to vector<1x16xf32>
    %424 = vector.broadcast %422 : vector<16x1xf32> to vector<16x16xf32>
    %425 = vector.broadcast %423 : vector<1x16xf32> to vector<16x16xf32>
    %426 = arith.mulf %424, %425 : vector<16x16xf32>
    %427 = arith.addf %419, %426 : vector<16x16xf32>
    %428 = arith.mulf %394, %36 : vector<16x16xf32>
    %cst_74 = arith.constant dense<0.000000e+00> : vector<16xf32>
    %429 = vector.multi_reduction <add>, %428, %cst_74 [1] : vector<16x16xf32> to vector<16xf32>
    %430 = vector.shape_cast %429 : vector<16xf32> to vector<16x1xf32>
    %431 = vector.extract_strided_slice %70 {offsets = [4, 0], sizes = [1, 16], strides = [1, 1]} : vector<9x16xf32> to vector<1x16xf32>
    %432 = vector.broadcast %430 : vector<16x1xf32> to vector<16x16xf32>
    %433 = vector.broadcast %431 : vector<1x16xf32> to vector<16x16xf32>
    %434 = arith.mulf %432, %433 : vector<16x16xf32>
    %435 = arith.addf %427, %434 : vector<16x16xf32>
    %436 = arith.mulf %394, %40 : vector<16x16xf32>
    %cst_75 = arith.constant dense<0.000000e+00> : vector<16xf32>
    %437 = vector.multi_reduction <add>, %436, %cst_75 [1] : vector<16x16xf32> to vector<16xf32>
    %438 = vector.shape_cast %437 : vector<16xf32> to vector<16x1xf32>
    %439 = vector.extract_strided_slice %70 {offsets = [5, 0], sizes = [1, 16], strides = [1, 1]} : vector<9x16xf32> to vector<1x16xf32>
    %440 = vector.broadcast %438 : vector<16x1xf32> to vector<16x16xf32>
    %441 = vector.broadcast %439 : vector<1x16xf32> to vector<16x16xf32>
    %442 = arith.mulf %440, %441 : vector<16x16xf32>
    %443 = arith.addf %435, %442 : vector<16x16xf32>
    %444 = arith.mulf %394, %44 : vector<16x16xf32>
    %cst_76 = arith.constant dense<0.000000e+00> : vector<16xf32>
    %445 = vector.multi_reduction <add>, %444, %cst_76 [1] : vector<16x16xf32> to vector<16xf32>
    %446 = vector.shape_cast %445 : vector<16xf32> to vector<16x1xf32>
    %447 = vector.extract_strided_slice %70 {offsets = [6, 0], sizes = [1, 16], strides = [1, 1]} : vector<9x16xf32> to vector<1x16xf32>
    %448 = vector.broadcast %446 : vector<16x1xf32> to vector<16x16xf32>
    %449 = vector.broadcast %447 : vector<1x16xf32> to vector<16x16xf32>
    %450 = arith.mulf %448, %449 : vector<16x16xf32>
    %451 = arith.addf %443, %450 : vector<16x16xf32>
    %452 = arith.mulf %394, %48 : vector<16x16xf32>
    %cst_77 = arith.constant dense<0.000000e+00> : vector<16xf32>
    %453 = vector.multi_reduction <add>, %452, %cst_77 [1] : vector<16x16xf32> to vector<16xf32>
    %454 = vector.shape_cast %453 : vector<16xf32> to vector<16x1xf32>
    %455 = vector.extract_strided_slice %70 {offsets = [7, 0], sizes = [1, 16], strides = [1, 1]} : vector<9x16xf32> to vector<1x16xf32>
    %456 = vector.broadcast %454 : vector<16x1xf32> to vector<16x16xf32>
    %457 = vector.broadcast %455 : vector<1x16xf32> to vector<16x16xf32>
    %458 = arith.mulf %456, %457 : vector<16x16xf32>
    %459 = arith.addf %451, %458 : vector<16x16xf32>
    %460 = arith.mulf %394, %52 : vector<16x16xf32>
    %cst_78 = arith.constant dense<0.000000e+00> : vector<16xf32>
    %461 = vector.multi_reduction <add>, %460, %cst_78 [1] : vector<16x16xf32> to vector<16xf32>
    %462 = vector.shape_cast %461 : vector<16xf32> to vector<16x1xf32>
    %463 = vector.extract_strided_slice %70 {offsets = [8, 0], sizes = [1, 16], strides = [1, 1]} : vector<9x16xf32> to vector<1x16xf32>
    %464 = vector.broadcast %462 : vector<16x1xf32> to vector<16x16xf32>
    %465 = vector.broadcast %463 : vector<1x16xf32> to vector<16x16xf32>
    %466 = arith.mulf %464, %465 : vector<16x16xf32>
    %467 = arith.addf %459, %466 : vector<16x16xf32>
    %468 = vector.extract_strided_slice %338 {offsets = [0, 16], sizes = [16, 16], strides = [1, 1]} : vector<16x96xf32> to vector<16x16xf32>
    %cst_79 = arith.constant 2.500000e-01 : f32
    %469 = vector.broadcast %cst_79 : f32 to vector<16x16xf32>
    %470 = arith.mulf %468, %469 : vector<16x16xf32>
    %471 = vector.extract_strided_slice %338 {offsets = [0, 48], sizes = [16, 16], strides = [1, 1]} : vector<16x96xf32> to vector<16x16xf32>
    %472 = vector.extract_strided_slice %338 {offsets = [0, 80], sizes = [16, 16], strides = [1, 1]} : vector<16x96xf32> to vector<16x16xf32>
    %cst_80 = arith.constant dense<0.000000e+00> : vector<16x16xf32>
    %473 = tpu.matmul %470, %471, %cst_80 {dimension_numbers = #tpu.dot_dimension_numbers<[1], [1], [0], [0], [0, 0, 1, 0], [], []>} : vector<16x16xf32>, vector<16x16xf32>, vector<16x16xf32> -> vector<16x16xf32>
    %cst_81 = arith.constant dense<0.000000e+00> : vector<16x9xf32>
    %474 = tpu.matmul %470, %68, %cst_81 {dimension_numbers = #tpu.dot_dimension_numbers<[1], [1], [0], [0], [0, 0, 1, 0], [], []>} : vector<16x16xf32>, vector<9x16xf32>, vector<16x9xf32> -> vector<16x9xf32>
    %475 = vector.extract_strided_slice %474 {offsets = [0, 0], sizes = [16, 1], strides = [1, 1]} : vector<16x9xf32> to vector<16x1xf32>
    %476 = vector.broadcast %475 : vector<16x1xf32> to vector<16x16xf32>
    %477 = arith.mulf %20, %476 : vector<16x16xf32>
    %478 = arith.addf %473, %477 : vector<16x16xf32>
    %479 = vector.extract_strided_slice %474 {offsets = [0, 1], sizes = [16, 1], strides = [1, 1]} : vector<16x9xf32> to vector<16x1xf32>
    %480 = vector.broadcast %479 : vector<16x1xf32> to vector<16x16xf32>
    %481 = arith.mulf %24, %480 : vector<16x16xf32>
    %482 = arith.addf %478, %481 : vector<16x16xf32>
    %483 = vector.extract_strided_slice %474 {offsets = [0, 2], sizes = [16, 1], strides = [1, 1]} : vector<16x9xf32> to vector<16x1xf32>
    %484 = vector.broadcast %483 : vector<16x1xf32> to vector<16x16xf32>
    %485 = arith.mulf %28, %484 : vector<16x16xf32>
    %486 = arith.addf %482, %485 : vector<16x16xf32>
    %487 = vector.extract_strided_slice %474 {offsets = [0, 3], sizes = [16, 1], strides = [1, 1]} : vector<16x9xf32> to vector<16x1xf32>
    %488 = vector.broadcast %487 : vector<16x1xf32> to vector<16x16xf32>
    %489 = arith.mulf %32, %488 : vector<16x16xf32>
    %490 = arith.addf %486, %489 : vector<16x16xf32>
    %491 = vector.extract_strided_slice %474 {offsets = [0, 4], sizes = [16, 1], strides = [1, 1]} : vector<16x9xf32> to vector<16x1xf32>
    %492 = vector.broadcast %491 : vector<16x1xf32> to vector<16x16xf32>
    %493 = arith.mulf %36, %492 : vector<16x16xf32>
    %494 = arith.addf %490, %493 : vector<16x16xf32>
    %495 = vector.extract_strided_slice %474 {offsets = [0, 5], sizes = [16, 1], strides = [1, 1]} : vector<16x9xf32> to vector<16x1xf32>
    %496 = vector.broadcast %495 : vector<16x1xf32> to vector<16x16xf32>
    %497 = arith.mulf %40, %496 : vector<16x16xf32>
    %498 = arith.addf %494, %497 : vector<16x16xf32>
    %499 = vector.extract_strided_slice %474 {offsets = [0, 6], sizes = [16, 1], strides = [1, 1]} : vector<16x9xf32> to vector<16x1xf32>
    %500 = vector.broadcast %499 : vector<16x1xf32> to vector<16x16xf32>
    %501 = arith.mulf %44, %500 : vector<16x16xf32>
    %502 = arith.addf %498, %501 : vector<16x16xf32>
    %503 = vector.extract_strided_slice %474 {offsets = [0, 7], sizes = [16, 1], strides = [1, 1]} : vector<16x9xf32> to vector<16x1xf32>
    %504 = vector.broadcast %503 : vector<16x1xf32> to vector<16x16xf32>
    %505 = arith.mulf %48, %504 : vector<16x16xf32>
    %506 = arith.addf %502, %505 : vector<16x16xf32>
    %507 = vector.extract_strided_slice %474 {offsets = [0, 8], sizes = [16, 1], strides = [1, 1]} : vector<16x9xf32> to vector<16x1xf32>
    %508 = vector.broadcast %507 : vector<16x1xf32> to vector<16x16xf32>
    %509 = arith.mulf %52, %508 : vector<16x16xf32>
    %510 = arith.addf %506, %509 : vector<16x16xf32>
    %cst_82 = arith.constant 0.000000e+00 : f32
    %511 = vector.broadcast %cst_82 : f32 to vector<16x16xf32>
    %512 = arith.cmpf ogt, %62, %511 : vector<16x16xf32>
    %cst_83 = arith.constant -1.000000e+04 : f32
    %513 = vector.broadcast %cst_83 : f32 to vector<16x16xf32>
    %514 = arith.select %512, %510, %513 : vector<16x16xi1>, vector<16x16xf32>
    %cst_84 = arith.constant dense<0xFF800000> : vector<16xf32>
    %515 = vector.multi_reduction <maximumf>, %514, %cst_84 [1] : vector<16x16xf32> to vector<16xf32>
    %516 = vector.shape_cast %515 : vector<16xf32> to vector<16x1xf32>
    %517 = vector.broadcast %516 : vector<16x1xf32> to vector<16x16xf32>
    %518 = arith.subf %514, %517 : vector<16x16xf32>
    %519 = math.exp %518 : vector<16x16xf32>
    %cst_85 = arith.constant dense<0.000000e+00> : vector<16xf32>
    %520 = vector.multi_reduction <add>, %519, %cst_85 [1] : vector<16x16xf32> to vector<16xf32>
    %521 = vector.shape_cast %520 : vector<16xf32> to vector<16x1xf32>
    %522 = vector.broadcast %521 : vector<16x1xf32> to vector<16x16xf32>
    %523 = arith.divf %519, %522 : vector<16x16xf32>
    %cst_86 = arith.constant dense<0.000000e+00> : vector<16x16xf32>
    %524 = tpu.matmul %523, %472, %cst_86 {dimension_numbers = #tpu.dot_dimension_numbers<[1], [0], [0], [1], [0, 0, 1, 1], [], []>} : vector<16x16xf32>, vector<16x16xf32>, vector<16x16xf32> -> vector<16x16xf32>
    %525 = arith.mulf %523, %20 : vector<16x16xf32>
    %cst_87 = arith.constant dense<0.000000e+00> : vector<16xf32>
    %526 = vector.multi_reduction <add>, %525, %cst_87 [1] : vector<16x16xf32> to vector<16xf32>
    %527 = vector.shape_cast %526 : vector<16xf32> to vector<16x1xf32>
    %528 = vector.extract_strided_slice %70 {offsets = [0, 0], sizes = [1, 16], strides = [1, 1]} : vector<9x16xf32> to vector<1x16xf32>
    %529 = vector.broadcast %527 : vector<16x1xf32> to vector<16x16xf32>
    %530 = vector.broadcast %528 : vector<1x16xf32> to vector<16x16xf32>
    %531 = arith.mulf %529, %530 : vector<16x16xf32>
    %532 = arith.addf %524, %531 : vector<16x16xf32>
    %533 = arith.mulf %523, %24 : vector<16x16xf32>
    %cst_88 = arith.constant dense<0.000000e+00> : vector<16xf32>
    %534 = vector.multi_reduction <add>, %533, %cst_88 [1] : vector<16x16xf32> to vector<16xf32>
    %535 = vector.shape_cast %534 : vector<16xf32> to vector<16x1xf32>
    %536 = vector.extract_strided_slice %70 {offsets = [1, 0], sizes = [1, 16], strides = [1, 1]} : vector<9x16xf32> to vector<1x16xf32>
    %537 = vector.broadcast %535 : vector<16x1xf32> to vector<16x16xf32>
    %538 = vector.broadcast %536 : vector<1x16xf32> to vector<16x16xf32>
    %539 = arith.mulf %537, %538 : vector<16x16xf32>
    %540 = arith.addf %532, %539 : vector<16x16xf32>
    %541 = arith.mulf %523, %28 : vector<16x16xf32>
    %cst_89 = arith.constant dense<0.000000e+00> : vector<16xf32>
    %542 = vector.multi_reduction <add>, %541, %cst_89 [1] : vector<16x16xf32> to vector<16xf32>
    %543 = vector.shape_cast %542 : vector<16xf32> to vector<16x1xf32>
    %544 = vector.extract_strided_slice %70 {offsets = [2, 0], sizes = [1, 16], strides = [1, 1]} : vector<9x16xf32> to vector<1x16xf32>
    %545 = vector.broadcast %543 : vector<16x1xf32> to vector<16x16xf32>
    %546 = vector.broadcast %544 : vector<1x16xf32> to vector<16x16xf32>
    %547 = arith.mulf %545, %546 : vector<16x16xf32>
    %548 = arith.addf %540, %547 : vector<16x16xf32>
    %549 = arith.mulf %523, %32 : vector<16x16xf32>
    %cst_90 = arith.constant dense<0.000000e+00> : vector<16xf32>
    %550 = vector.multi_reduction <add>, %549, %cst_90 [1] : vector<16x16xf32> to vector<16xf32>
    %551 = vector.shape_cast %550 : vector<16xf32> to vector<16x1xf32>
    %552 = vector.extract_strided_slice %70 {offsets = [3, 0], sizes = [1, 16], strides = [1, 1]} : vector<9x16xf32> to vector<1x16xf32>
    %553 = vector.broadcast %551 : vector<16x1xf32> to vector<16x16xf32>
    %554 = vector.broadcast %552 : vector<1x16xf32> to vector<16x16xf32>
    %555 = arith.mulf %553, %554 : vector<16x16xf32>
    %556 = arith.addf %548, %555 : vector<16x16xf32>
    %557 = arith.mulf %523, %36 : vector<16x16xf32>
    %cst_91 = arith.constant dense<0.000000e+00> : vector<16xf32>
    %558 = vector.multi_reduction <add>, %557, %cst_91 [1] : vector<16x16xf32> to vector<16xf32>
    %559 = vector.shape_cast %558 : vector<16xf32> to vector<16x1xf32>
    %560 = vector.extract_strided_slice %70 {offsets = [4, 0], sizes = [1, 16], strides = [1, 1]} : vector<9x16xf32> to vector<1x16xf32>
    %561 = vector.broadcast %559 : vector<16x1xf32> to vector<16x16xf32>
    %562 = vector.broadcast %560 : vector<1x16xf32> to vector<16x16xf32>
    %563 = arith.mulf %561, %562 : vector<16x16xf32>
    %564 = arith.addf %556, %563 : vector<16x16xf32>
    %565 = arith.mulf %523, %40 : vector<16x16xf32>
    %cst_92 = arith.constant dense<0.000000e+00> : vector<16xf32>
    %566 = vector.multi_reduction <add>, %565, %cst_92 [1] : vector<16x16xf32> to vector<16xf32>
    %567 = vector.shape_cast %566 : vector<16xf32> to vector<16x1xf32>
    %568 = vector.extract_strided_slice %70 {offsets = [5, 0], sizes = [1, 16], strides = [1, 1]} : vector<9x16xf32> to vector<1x16xf32>
    %569 = vector.broadcast %567 : vector<16x1xf32> to vector<16x16xf32>
    %570 = vector.broadcast %568 : vector<1x16xf32> to vector<16x16xf32>
    %571 = arith.mulf %569, %570 : vector<16x16xf32>
    %572 = arith.addf %564, %571 : vector<16x16xf32>
    %573 = arith.mulf %523, %44 : vector<16x16xf32>
    %cst_93 = arith.constant dense<0.000000e+00> : vector<16xf32>
    %574 = vector.multi_reduction <add>, %573, %cst_93 [1] : vector<16x16xf32> to vector<16xf32>
    %575 = vector.shape_cast %574 : vector<16xf32> to vector<16x1xf32>
    %576 = vector.extract_strided_slice %70 {offsets = [6, 0], sizes = [1, 16], strides = [1, 1]} : vector<9x16xf32> to vector<1x16xf32>
    %577 = vector.broadcast %575 : vector<16x1xf32> to vector<16x16xf32>
    %578 = vector.broadcast %576 : vector<1x16xf32> to vector<16x16xf32>
    %579 = arith.mulf %577, %578 : vector<16x16xf32>
    %580 = arith.addf %572, %579 : vector<16x16xf32>
    %581 = arith.mulf %523, %48 : vector<16x16xf32>
    %cst_94 = arith.constant dense<0.000000e+00> : vector<16xf32>
    %582 = vector.multi_reduction <add>, %581, %cst_94 [1] : vector<16x16xf32> to vector<16xf32>
    %583 = vector.shape_cast %582 : vector<16xf32> to vector<16x1xf32>
    %584 = vector.extract_strided_slice %70 {offsets = [7, 0], sizes = [1, 16], strides = [1, 1]} : vector<9x16xf32> to vector<1x16xf32>
    %585 = vector.broadcast %583 : vector<16x1xf32> to vector<16x16xf32>
    %586 = vector.broadcast %584 : vector<1x16xf32> to vector<16x16xf32>
    %587 = arith.mulf %585, %586 : vector<16x16xf32>
    %588 = arith.addf %580, %587 : vector<16x16xf32>
    %589 = arith.mulf %523, %52 : vector<16x16xf32>
    %cst_95 = arith.constant dense<0.000000e+00> : vector<16xf32>
    %590 = vector.multi_reduction <add>, %589, %cst_95 [1] : vector<16x16xf32> to vector<16xf32>
    %591 = vector.shape_cast %590 : vector<16xf32> to vector<16x1xf32>
    %592 = vector.extract_strided_slice %70 {offsets = [8, 0], sizes = [1, 16], strides = [1, 1]} : vector<9x16xf32> to vector<1x16xf32>
    %593 = vector.broadcast %591 : vector<16x1xf32> to vector<16x16xf32>
    %594 = vector.broadcast %592 : vector<1x16xf32> to vector<16x16xf32>
    %595 = arith.mulf %593, %594 : vector<16x16xf32>
    %596 = arith.addf %588, %595 : vector<16x16xf32>
    %597 = tpu.concatenate %467, %596 in 1 : vector<16x16xf32>, vector<16x16xf32> -> vector<16x32xf32>
    %598 = tpu.concatenate %337, %597 in 0 : vector<16x32xf32>, vector<16x32xf32> -> vector<32x32xf32>
    %599 = vector.extract_strided_slice %64 {offsets = [0, 96], sizes = [32, 32], strides = [1, 1]} : vector<32x128xf32> to vector<32x32xf32>
    %cst_96 = arith.constant dense<0.000000e+00> : vector<32x32xf32>
    %600 = tpu.matmul %598, %599, %cst_96 {dimension_numbers = #tpu.dot_dimension_numbers<[1], [0], [0], [1], [0, 0, 1, 1], [], []>} : vector<32x32xf32>, vector<32x32xf32>, vector<32x32xf32> -> vector<32x32xf32>
    %601 = vector.extract_strided_slice %66 {offsets = [0, 96], sizes = [1, 32], strides = [1, 1]} : vector<1x128xf32> to vector<1x32xf32>
    %602 = vector.broadcast %601 : vector<1x32xf32> to vector<32x32xf32>
    %603 = arith.addf %600, %602 : vector<32x32xf32>
    %604 = arith.addf %13, %603 : vector<32x32xf32>
    %605 = vector.extract_strided_slice %72 {offsets = [0, 0], sizes = [1, 32], strides = [1, 1]} : vector<4x32xf32> to vector<1x32xf32>
    %606 = vector.extract_strided_slice %72 {offsets = [1, 0], sizes = [1, 32], strides = [1, 1]} : vector<4x32xf32> to vector<1x32xf32>
    %cst_97 = arith.constant dense<0.000000e+00> : vector<32xf32>
    %607 = vector.multi_reduction <add>, %604, %cst_97 [1] : vector<32x32xf32> to vector<32xf32>
    %608 = vector.shape_cast %607 : vector<32xf32> to vector<32x1xf32>
    %cst_98 = arith.constant 3.200000e+01 : f32
    %609 = vector.broadcast %cst_98 : f32 to vector<32x1xf32>
    %610 = arith.divf %608, %609 : vector<32x1xf32>
    %611 = vector.broadcast %610 : vector<32x1xf32> to vector<32x32xf32>
    %612 = arith.subf %604, %611 : vector<32x32xf32>
    %613 = arith.mulf %612, %612 : vector<32x32xf32>
    %cst_99 = arith.constant dense<0.000000e+00> : vector<32xf32>
    %614 = vector.multi_reduction <add>, %613, %cst_99 [1] : vector<32x32xf32> to vector<32xf32>
    %615 = vector.shape_cast %614 : vector<32xf32> to vector<32x1xf32>
    %cst_100 = arith.constant 3.200000e+01 : f32
    %616 = vector.broadcast %cst_100 : f32 to vector<32x1xf32>
    %617 = arith.divf %615, %616 : vector<32x1xf32>
    %cst_101 = arith.constant 9.99999974E-6 : f32
    %618 = vector.broadcast %cst_101 : f32 to vector<32x1xf32>
    %619 = arith.addf %617, %618 : vector<32x1xf32>
    %620 = math.rsqrt %619 : vector<32x1xf32>
    %621 = vector.broadcast %620 : vector<32x1xf32> to vector<32x32xf32>
    %622 = arith.mulf %612, %621 : vector<32x32xf32>
    %623 = vector.broadcast %605 : vector<1x32xf32> to vector<32x32xf32>
    %624 = arith.mulf %622, %623 : vector<32x32xf32>
    %625 = vector.broadcast %606 : vector<1x32xf32> to vector<32x32xf32>
    %626 = arith.addf %624, %625 : vector<32x32xf32>
    %627 = vector.broadcast %0 : vector<32x1xf32> to vector<32x32xf32>
    %628 = arith.mulf %626, %627 : vector<32x32xf32>
    %cst_102 = arith.constant 0.000000e+00 : f32
    %629 = vector.broadcast %cst_102 : f32 to vector<1x32xf32>
    %cst_103 = arith.constant 0.000000e+00 : f32
    %630 = vector.broadcast %cst_103 : f32 to vector<1x32xf32>
    %631 = tpu.concatenate %629, %628, %630 in 0 : vector<1x32xf32>, vector<32x32xf32>, vector<1x32xf32> -> vector<34x32xf32>
    %632 = vector.extract_strided_slice %631 {offsets = [0, 0], sizes = [32, 32], strides = [1, 1]} : vector<34x32xf32> to vector<32x32xf32>
    %633 = vector.extract_strided_slice %1 {offsets = [0, 0], sizes = [32, 1], strides = [1, 1]} : vector<32x3xf32> to vector<32x1xf32>
    %634 = vector.broadcast %633 : vector<32x1xf32> to vector<32x32xf32>
    %635 = arith.mulf %632, %634 : vector<32x32xf32>
    %636 = vector.extract_strided_slice %631 {offsets = [1, 0], sizes = [32, 32], strides = [1, 1]} : vector<34x32xf32> to vector<32x32xf32>
    %637 = vector.extract_strided_slice %1 {offsets = [0, 1], sizes = [32, 1], strides = [1, 1]} : vector<32x3xf32> to vector<32x1xf32>
    %638 = vector.broadcast %637 : vector<32x1xf32> to vector<32x32xf32>
    %639 = arith.mulf %636, %638 : vector<32x32xf32>
    %640 = vector.extract_strided_slice %631 {offsets = [2, 0], sizes = [32, 32], strides = [1, 1]} : vector<34x32xf32> to vector<32x32xf32>
    %641 = vector.extract_strided_slice %1 {offsets = [0, 2], sizes = [32, 1], strides = [1, 1]} : vector<32x3xf32> to vector<32x1xf32>
    %642 = vector.broadcast %641 : vector<32x1xf32> to vector<32x32xf32>
    %643 = arith.mulf %640, %642 : vector<32x32xf32>
    %644 = tpu.concatenate %635, %639, %643 in 1 : vector<32x32xf32>, vector<32x32xf32>, vector<32x32xf32> -> vector<32x96xf32>
    %c0_104 = arith.constant 0 : index
    %c0_105 = arith.constant 0 : index
    %c0_106 = arith.constant 0 : index
    %645 = vector.load %arg12[%c0_104, %c0_105, %c0_106] : memref<2x96x64xf32, #tpu.memory_space<vmem>>, vector<1x96x64xf32>
    %646 = vector.shape_cast %645 : vector<1x96x64xf32> to vector<96x64xf32>
    %cst_107 = arith.constant dense<0.000000e+00> : vector<32x64xf32>
    %647 = tpu.matmul %644, %646, %cst_107 {dimension_numbers = #tpu.dot_dimension_numbers<[1], [0], [0], [1], [0, 0, 1, 1], [], []>} : vector<32x96xf32>, vector<96x64xf32>, vector<32x64xf32> -> vector<32x64xf32>
    %c0_108 = arith.constant 0 : index
    %c0_109 = arith.constant 0 : index
    %c0_110 = arith.constant 0 : index
    %648 = vector.load %arg13[%c0_108, %c0_109, %c0_110] : memref<2x1x64xf32, #tpu.memory_space<vmem>>, vector<1x1x64xf32>
    %649 = vector.shape_cast %648 : vector<1x1x64xf32> to vector<1x64xf32>
    %650 = vector.broadcast %649 : vector<1x64xf32> to vector<32x64xf32>
    %651 = arith.addf %647, %650 : vector<32x64xf32>
    %cst_111 = arith.constant 0.000000e+00 : f32
    %652 = vector.broadcast %cst_111 : f32 to vector<32x64xf32>
    %653 = arith.maximumf %651, %652 : vector<32x64xf32>
    %654 = vector.broadcast %0 : vector<32x1xf32> to vector<32x64xf32>
    %655 = arith.mulf %653, %654 : vector<32x64xf32>
    %cst_112 = arith.constant 0.000000e+00 : f32
    %656 = vector.broadcast %cst_112 : f32 to vector<1x64xf32>
    %cst_113 = arith.constant 0.000000e+00 : f32
    %657 = vector.broadcast %cst_113 : f32 to vector<1x64xf32>
    %658 = tpu.concatenate %656, %655, %657 in 0 : vector<1x64xf32>, vector<32x64xf32>, vector<1x64xf32> -> vector<34x64xf32>
    %659 = vector.extract_strided_slice %658 {offsets = [0, 0], sizes = [32, 64], strides = [1, 1]} : vector<34x64xf32> to vector<32x64xf32>
    %660 = vector.extract_strided_slice %1 {offsets = [0, 0], sizes = [32, 1], strides = [1, 1]} : vector<32x3xf32> to vector<32x1xf32>
    %661 = vector.broadcast %660 : vector<32x1xf32> to vector<32x64xf32>
    %662 = arith.mulf %659, %661 : vector<32x64xf32>
    %663 = vector.extract_strided_slice %658 {offsets = [1, 0], sizes = [32, 64], strides = [1, 1]} : vector<34x64xf32> to vector<32x64xf32>
    %664 = vector.extract_strided_slice %1 {offsets = [0, 1], sizes = [32, 1], strides = [1, 1]} : vector<32x3xf32> to vector<32x1xf32>
    %665 = vector.broadcast %664 : vector<32x1xf32> to vector<32x64xf32>
    %666 = arith.mulf %663, %665 : vector<32x64xf32>
    %667 = vector.extract_strided_slice %658 {offsets = [2, 0], sizes = [32, 64], strides = [1, 1]} : vector<34x64xf32> to vector<32x64xf32>
    %668 = vector.extract_strided_slice %1 {offsets = [0, 2], sizes = [32, 1], strides = [1, 1]} : vector<32x3xf32> to vector<32x1xf32>
    %669 = vector.broadcast %668 : vector<32x1xf32> to vector<32x64xf32>
    %670 = arith.mulf %667, %669 : vector<32x64xf32>
    %671 = tpu.concatenate %662, %666, %670 in 1 : vector<32x64xf32>, vector<32x64xf32>, vector<32x64xf32> -> vector<32x192xf32>
    %c0_114 = arith.constant 0 : index
    %c0_115 = arith.constant 0 : index
    %c0_116 = arith.constant 0 : index
    %672 = vector.load %arg14[%c0_114, %c0_115, %c0_116] : memref<2x192x32xf32, #tpu.memory_space<vmem>>, vector<1x192x32xf32>
    %673 = vector.shape_cast %672 : vector<1x192x32xf32> to vector<192x32xf32>
    %cst_117 = arith.constant dense<0.000000e+00> : vector<32x32xf32>
    %674 = tpu.matmul %671, %673, %cst_117 {dimension_numbers = #tpu.dot_dimension_numbers<[1], [0], [0], [1], [0, 0, 1, 1], [], []>} : vector<32x192xf32>, vector<192x32xf32>, vector<32x32xf32> -> vector<32x32xf32>
    %c0_118 = arith.constant 0 : index
    %c0_119 = arith.constant 0 : index
    %c0_120 = arith.constant 0 : index
    %675 = vector.load %arg15[%c0_118, %c0_119, %c0_120] : memref<2x1x32xf32, #tpu.memory_space<vmem>>, vector<1x1x32xf32>
    %676 = vector.shape_cast %675 : vector<1x1x32xf32> to vector<1x32xf32>
    %677 = vector.broadcast %676 : vector<1x32xf32> to vector<32x32xf32>
    %678 = arith.addf %674, %677 : vector<32x32xf32>
    %679 = vector.broadcast %0 : vector<32x1xf32> to vector<32x32xf32>
    %680 = arith.mulf %678, %679 : vector<32x32xf32>
    %681 = arith.addf %626, %680 : vector<32x32xf32>
    %682 = vector.extract_strided_slice %72 {offsets = [2, 0], sizes = [1, 32], strides = [1, 1]} : vector<4x32xf32> to vector<1x32xf32>
    %683 = vector.extract_strided_slice %72 {offsets = [3, 0], sizes = [1, 32], strides = [1, 1]} : vector<4x32xf32> to vector<1x32xf32>
    %cst_121 = arith.constant dense<0.000000e+00> : vector<32xf32>
    %684 = vector.multi_reduction <add>, %681, %cst_121 [1] : vector<32x32xf32> to vector<32xf32>
    %685 = vector.shape_cast %684 : vector<32xf32> to vector<32x1xf32>
    %cst_122 = arith.constant 3.200000e+01 : f32
    %686 = vector.broadcast %cst_122 : f32 to vector<32x1xf32>
    %687 = arith.divf %685, %686 : vector<32x1xf32>
    %688 = vector.broadcast %687 : vector<32x1xf32> to vector<32x32xf32>
    %689 = arith.subf %681, %688 : vector<32x32xf32>
    %690 = arith.mulf %689, %689 : vector<32x32xf32>
    %cst_123 = arith.constant dense<0.000000e+00> : vector<32xf32>
    %691 = vector.multi_reduction <add>, %690, %cst_123 [1] : vector<32x32xf32> to vector<32xf32>
    %692 = vector.shape_cast %691 : vector<32xf32> to vector<32x1xf32>
    %cst_124 = arith.constant 3.200000e+01 : f32
    %693 = vector.broadcast %cst_124 : f32 to vector<32x1xf32>
    %694 = arith.divf %692, %693 : vector<32x1xf32>
    %cst_125 = arith.constant 9.99999974E-6 : f32
    %695 = vector.broadcast %cst_125 : f32 to vector<32x1xf32>
    %696 = arith.addf %694, %695 : vector<32x1xf32>
    %697 = math.rsqrt %696 : vector<32x1xf32>
    %698 = vector.broadcast %697 : vector<32x1xf32> to vector<32x32xf32>
    %699 = arith.mulf %689, %698 : vector<32x32xf32>
    %700 = vector.broadcast %682 : vector<1x32xf32> to vector<32x32xf32>
    %701 = arith.mulf %699, %700 : vector<32x32xf32>
    %702 = vector.broadcast %683 : vector<1x32xf32> to vector<32x32xf32>
    %703 = arith.addf %701, %702 : vector<32x32xf32>
    %c1_126 = arith.constant 1 : index
    %c0_127 = arith.constant 0 : index
    %c0_128 = arith.constant 0 : index
    %704 = vector.load %arg7[%c1_126, %c0_127, %c0_128] : memref<2x32x128xf32, #tpu.memory_space<vmem>>, vector<1x32x128xf32>
    %705 = vector.shape_cast %704 : vector<1x32x128xf32> to vector<32x128xf32>
    %c1_129 = arith.constant 1 : index
    %c0_130 = arith.constant 0 : index
    %c0_131 = arith.constant 0 : index
    %706 = vector.load %arg8[%c1_129, %c0_130, %c0_131] : memref<2x1x128xf32, #tpu.memory_space<vmem>>, vector<1x1x128xf32>
    %707 = vector.shape_cast %706 : vector<1x1x128xf32> to vector<1x128xf32>
    %c1_132 = arith.constant 1 : index
    %c0_133 = arith.constant 0 : index
    %c0_134 = arith.constant 0 : index
    %708 = vector.load %arg9[%c1_132, %c0_133, %c0_134] : memref<2x9x16xf32, #tpu.memory_space<vmem>>, vector<1x9x16xf32>
    %709 = vector.shape_cast %708 : vector<1x9x16xf32> to vector<9x16xf32>
    %c1_135 = arith.constant 1 : index
    %c0_136 = arith.constant 0 : index
    %c0_137 = arith.constant 0 : index
    %710 = vector.load %arg10[%c1_135, %c0_136, %c0_137] : memref<2x9x16xf32, #tpu.memory_space<vmem>>, vector<1x9x16xf32>
    %711 = vector.shape_cast %710 : vector<1x9x16xf32> to vector<9x16xf32>
    %c1_138 = arith.constant 1 : index
    %c0_139 = arith.constant 0 : index
    %c0_140 = arith.constant 0 : index
    %712 = vector.load %arg11[%c1_138, %c0_139, %c0_140] : memref<2x4x32xf32, #tpu.memory_space<vmem>>, vector<1x4x32xf32>
    %713 = vector.shape_cast %712 : vector<1x4x32xf32> to vector<4x32xf32>
    %714 = vector.extract_strided_slice %705 {offsets = [0, 0], sizes = [32, 96], strides = [1, 1]} : vector<32x128xf32> to vector<32x96xf32>
    %cst_141 = arith.constant dense<0.000000e+00> : vector<32x96xf32>
    %715 = tpu.matmul %703, %714, %cst_141 {dimension_numbers = #tpu.dot_dimension_numbers<[1], [0], [0], [1], [0, 0, 1, 1], [], []>} : vector<32x32xf32>, vector<32x96xf32>, vector<32x96xf32> -> vector<32x96xf32>
    %716 = vector.extract_strided_slice %707 {offsets = [0, 0], sizes = [1, 96], strides = [1, 1]} : vector<1x128xf32> to vector<1x96xf32>
    %717 = vector.broadcast %716 : vector<1x96xf32> to vector<32x96xf32>
    %718 = arith.addf %715, %717 : vector<32x96xf32>
    %719 = vector.extract_strided_slice %718 {offsets = [0, 0], sizes = [16, 96], strides = [1, 1]} : vector<32x96xf32> to vector<16x96xf32>
    %720 = vector.extract_strided_slice %719 {offsets = [0, 0], sizes = [16, 16], strides = [1, 1]} : vector<16x96xf32> to vector<16x16xf32>
    %cst_142 = arith.constant 2.500000e-01 : f32
    %721 = vector.broadcast %cst_142 : f32 to vector<16x16xf32>
    %722 = arith.mulf %720, %721 : vector<16x16xf32>
    %723 = vector.extract_strided_slice %719 {offsets = [0, 32], sizes = [16, 16], strides = [1, 1]} : vector<16x96xf32> to vector<16x16xf32>
    %724 = vector.extract_strided_slice %719 {offsets = [0, 64], sizes = [16, 16], strides = [1, 1]} : vector<16x96xf32> to vector<16x16xf32>
    %cst_143 = arith.constant dense<0.000000e+00> : vector<16x16xf32>
    %725 = tpu.matmul %722, %723, %cst_143 {dimension_numbers = #tpu.dot_dimension_numbers<[1], [1], [0], [0], [0, 0, 1, 0], [], []>} : vector<16x16xf32>, vector<16x16xf32>, vector<16x16xf32> -> vector<16x16xf32>
    %cst_144 = arith.constant dense<0.000000e+00> : vector<16x9xf32>
    %726 = tpu.matmul %722, %709, %cst_144 {dimension_numbers = #tpu.dot_dimension_numbers<[1], [1], [0], [0], [0, 0, 1, 0], [], []>} : vector<16x16xf32>, vector<9x16xf32>, vector<16x9xf32> -> vector<16x9xf32>
    %727 = vector.extract_strided_slice %726 {offsets = [0, 0], sizes = [16, 1], strides = [1, 1]} : vector<16x9xf32> to vector<16x1xf32>
    %728 = vector.broadcast %727 : vector<16x1xf32> to vector<16x16xf32>
    %729 = arith.mulf %20, %728 : vector<16x16xf32>
    %730 = arith.addf %725, %729 : vector<16x16xf32>
    %731 = vector.extract_strided_slice %726 {offsets = [0, 1], sizes = [16, 1], strides = [1, 1]} : vector<16x9xf32> to vector<16x1xf32>
    %732 = vector.broadcast %731 : vector<16x1xf32> to vector<16x16xf32>
    %733 = arith.mulf %24, %732 : vector<16x16xf32>
    %734 = arith.addf %730, %733 : vector<16x16xf32>
    %735 = vector.extract_strided_slice %726 {offsets = [0, 2], sizes = [16, 1], strides = [1, 1]} : vector<16x9xf32> to vector<16x1xf32>
    %736 = vector.broadcast %735 : vector<16x1xf32> to vector<16x16xf32>
    %737 = arith.mulf %28, %736 : vector<16x16xf32>
    %738 = arith.addf %734, %737 : vector<16x16xf32>
    %739 = vector.extract_strided_slice %726 {offsets = [0, 3], sizes = [16, 1], strides = [1, 1]} : vector<16x9xf32> to vector<16x1xf32>
    %740 = vector.broadcast %739 : vector<16x1xf32> to vector<16x16xf32>
    %741 = arith.mulf %32, %740 : vector<16x16xf32>
    %742 = arith.addf %738, %741 : vector<16x16xf32>
    %743 = vector.extract_strided_slice %726 {offsets = [0, 4], sizes = [16, 1], strides = [1, 1]} : vector<16x9xf32> to vector<16x1xf32>
    %744 = vector.broadcast %743 : vector<16x1xf32> to vector<16x16xf32>
    %745 = arith.mulf %36, %744 : vector<16x16xf32>
    %746 = arith.addf %742, %745 : vector<16x16xf32>
    %747 = vector.extract_strided_slice %726 {offsets = [0, 5], sizes = [16, 1], strides = [1, 1]} : vector<16x9xf32> to vector<16x1xf32>
    %748 = vector.broadcast %747 : vector<16x1xf32> to vector<16x16xf32>
    %749 = arith.mulf %40, %748 : vector<16x16xf32>
    %750 = arith.addf %746, %749 : vector<16x16xf32>
    %751 = vector.extract_strided_slice %726 {offsets = [0, 6], sizes = [16, 1], strides = [1, 1]} : vector<16x9xf32> to vector<16x1xf32>
    %752 = vector.broadcast %751 : vector<16x1xf32> to vector<16x16xf32>
    %753 = arith.mulf %44, %752 : vector<16x16xf32>
    %754 = arith.addf %750, %753 : vector<16x16xf32>
    %755 = vector.extract_strided_slice %726 {offsets = [0, 7], sizes = [16, 1], strides = [1, 1]} : vector<16x9xf32> to vector<16x1xf32>
    %756 = vector.broadcast %755 : vector<16x1xf32> to vector<16x16xf32>
    %757 = arith.mulf %48, %756 : vector<16x16xf32>
    %758 = arith.addf %754, %757 : vector<16x16xf32>
    %759 = vector.extract_strided_slice %726 {offsets = [0, 8], sizes = [16, 1], strides = [1, 1]} : vector<16x9xf32> to vector<16x1xf32>
    %760 = vector.broadcast %759 : vector<16x1xf32> to vector<16x16xf32>
    %761 = arith.mulf %52, %760 : vector<16x16xf32>
    %762 = arith.addf %758, %761 : vector<16x16xf32>
    %cst_145 = arith.constant 0.000000e+00 : f32
    %763 = vector.broadcast %cst_145 : f32 to vector<16x16xf32>
    %764 = arith.cmpf ogt, %57, %763 : vector<16x16xf32>
    %cst_146 = arith.constant -1.000000e+04 : f32
    %765 = vector.broadcast %cst_146 : f32 to vector<16x16xf32>
    %766 = arith.select %764, %762, %765 : vector<16x16xi1>, vector<16x16xf32>
    %cst_147 = arith.constant dense<0xFF800000> : vector<16xf32>
    %767 = vector.multi_reduction <maximumf>, %766, %cst_147 [1] : vector<16x16xf32> to vector<16xf32>
    %768 = vector.shape_cast %767 : vector<16xf32> to vector<16x1xf32>
    %769 = vector.broadcast %768 : vector<16x1xf32> to vector<16x16xf32>
    %770 = arith.subf %766, %769 : vector<16x16xf32>
    %771 = math.exp %770 : vector<16x16xf32>
    %cst_148 = arith.constant dense<0.000000e+00> : vector<16xf32>
    %772 = vector.multi_reduction <add>, %771, %cst_148 [1] : vector<16x16xf32> to vector<16xf32>
    %773 = vector.shape_cast %772 : vector<16xf32> to vector<16x1xf32>
    %774 = vector.broadcast %773 : vector<16x1xf32> to vector<16x16xf32>
    %775 = arith.divf %771, %774 : vector<16x16xf32>
    %cst_149 = arith.constant dense<0.000000e+00> : vector<16x16xf32>
    %776 = tpu.matmul %775, %724, %cst_149 {dimension_numbers = #tpu.dot_dimension_numbers<[1], [0], [0], [1], [0, 0, 1, 1], [], []>} : vector<16x16xf32>, vector<16x16xf32>, vector<16x16xf32> -> vector<16x16xf32>
    %777 = arith.mulf %775, %20 : vector<16x16xf32>
    %cst_150 = arith.constant dense<0.000000e+00> : vector<16xf32>
    %778 = vector.multi_reduction <add>, %777, %cst_150 [1] : vector<16x16xf32> to vector<16xf32>
    %779 = vector.shape_cast %778 : vector<16xf32> to vector<16x1xf32>
    %780 = vector.extract_strided_slice %711 {offsets = [0, 0], sizes = [1, 16], strides = [1, 1]} : vector<9x16xf32> to vector<1x16xf32>
    %781 = vector.broadcast %779 : vector<16x1xf32> to vector<16x16xf32>
    %782 = vector.broadcast %780 : vector<1x16xf32> to vector<16x16xf32>
    %783 = arith.mulf %781, %782 : vector<16x16xf32>
    %784 = arith.addf %776, %783 : vector<16x16xf32>
    %785 = arith.mulf %775, %24 : vector<16x16xf32>
    %cst_151 = arith.constant dense<0.000000e+00> : vector<16xf32>
    %786 = vector.multi_reduction <add>, %785, %cst_151 [1] : vector<16x16xf32> to vector<16xf32>
    %787 = vector.shape_cast %786 : vector<16xf32> to vector<16x1xf32>
    %788 = vector.extract_strided_slice %711 {offsets = [1, 0], sizes = [1, 16], strides = [1, 1]} : vector<9x16xf32> to vector<1x16xf32>
    %789 = vector.broadcast %787 : vector<16x1xf32> to vector<16x16xf32>
    %790 = vector.broadcast %788 : vector<1x16xf32> to vector<16x16xf32>
    %791 = arith.mulf %789, %790 : vector<16x16xf32>
    %792 = arith.addf %784, %791 : vector<16x16xf32>
    %793 = arith.mulf %775, %28 : vector<16x16xf32>
    %cst_152 = arith.constant dense<0.000000e+00> : vector<16xf32>
    %794 = vector.multi_reduction <add>, %793, %cst_152 [1] : vector<16x16xf32> to vector<16xf32>
    %795 = vector.shape_cast %794 : vector<16xf32> to vector<16x1xf32>
    %796 = vector.extract_strided_slice %711 {offsets = [2, 0], sizes = [1, 16], strides = [1, 1]} : vector<9x16xf32> to vector<1x16xf32>
    %797 = vector.broadcast %795 : vector<16x1xf32> to vector<16x16xf32>
    %798 = vector.broadcast %796 : vector<1x16xf32> to vector<16x16xf32>
    %799 = arith.mulf %797, %798 : vector<16x16xf32>
    %800 = arith.addf %792, %799 : vector<16x16xf32>
    %801 = arith.mulf %775, %32 : vector<16x16xf32>
    %cst_153 = arith.constant dense<0.000000e+00> : vector<16xf32>
    %802 = vector.multi_reduction <add>, %801, %cst_153 [1] : vector<16x16xf32> to vector<16xf32>
    %803 = vector.shape_cast %802 : vector<16xf32> to vector<16x1xf32>
    %804 = vector.extract_strided_slice %711 {offsets = [3, 0], sizes = [1, 16], strides = [1, 1]} : vector<9x16xf32> to vector<1x16xf32>
    %805 = vector.broadcast %803 : vector<16x1xf32> to vector<16x16xf32>
    %806 = vector.broadcast %804 : vector<1x16xf32> to vector<16x16xf32>
    %807 = arith.mulf %805, %806 : vector<16x16xf32>
    %808 = arith.addf %800, %807 : vector<16x16xf32>
    %809 = arith.mulf %775, %36 : vector<16x16xf32>
    %cst_154 = arith.constant dense<0.000000e+00> : vector<16xf32>
    %810 = vector.multi_reduction <add>, %809, %cst_154 [1] : vector<16x16xf32> to vector<16xf32>
    %811 = vector.shape_cast %810 : vector<16xf32> to vector<16x1xf32>
    %812 = vector.extract_strided_slice %711 {offsets = [4, 0], sizes = [1, 16], strides = [1, 1]} : vector<9x16xf32> to vector<1x16xf32>
    %813 = vector.broadcast %811 : vector<16x1xf32> to vector<16x16xf32>
    %814 = vector.broadcast %812 : vector<1x16xf32> to vector<16x16xf32>
    %815 = arith.mulf %813, %814 : vector<16x16xf32>
    %816 = arith.addf %808, %815 : vector<16x16xf32>
    %817 = arith.mulf %775, %40 : vector<16x16xf32>
    %cst_155 = arith.constant dense<0.000000e+00> : vector<16xf32>
    %818 = vector.multi_reduction <add>, %817, %cst_155 [1] : vector<16x16xf32> to vector<16xf32>
    %819 = vector.shape_cast %818 : vector<16xf32> to vector<16x1xf32>
    %820 = vector.extract_strided_slice %711 {offsets = [5, 0], sizes = [1, 16], strides = [1, 1]} : vector<9x16xf32> to vector<1x16xf32>
    %821 = vector.broadcast %819 : vector<16x1xf32> to vector<16x16xf32>
    %822 = vector.broadcast %820 : vector<1x16xf32> to vector<16x16xf32>
    %823 = arith.mulf %821, %822 : vector<16x16xf32>
    %824 = arith.addf %816, %823 : vector<16x16xf32>
    %825 = arith.mulf %775, %44 : vector<16x16xf32>
    %cst_156 = arith.constant dense<0.000000e+00> : vector<16xf32>
    %826 = vector.multi_reduction <add>, %825, %cst_156 [1] : vector<16x16xf32> to vector<16xf32>
    %827 = vector.shape_cast %826 : vector<16xf32> to vector<16x1xf32>
    %828 = vector.extract_strided_slice %711 {offsets = [6, 0], sizes = [1, 16], strides = [1, 1]} : vector<9x16xf32> to vector<1x16xf32>
    %829 = vector.broadcast %827 : vector<16x1xf32> to vector<16x16xf32>
    %830 = vector.broadcast %828 : vector<1x16xf32> to vector<16x16xf32>
    %831 = arith.mulf %829, %830 : vector<16x16xf32>
    %832 = arith.addf %824, %831 : vector<16x16xf32>
    %833 = arith.mulf %775, %48 : vector<16x16xf32>
    %cst_157 = arith.constant dense<0.000000e+00> : vector<16xf32>
    %834 = vector.multi_reduction <add>, %833, %cst_157 [1] : vector<16x16xf32> to vector<16xf32>
    %835 = vector.shape_cast %834 : vector<16xf32> to vector<16x1xf32>
    %836 = vector.extract_strided_slice %711 {offsets = [7, 0], sizes = [1, 16], strides = [1, 1]} : vector<9x16xf32> to vector<1x16xf32>
    %837 = vector.broadcast %835 : vector<16x1xf32> to vector<16x16xf32>
    %838 = vector.broadcast %836 : vector<1x16xf32> to vector<16x16xf32>
    %839 = arith.mulf %837, %838 : vector<16x16xf32>
    %840 = arith.addf %832, %839 : vector<16x16xf32>
    %841 = arith.mulf %775, %52 : vector<16x16xf32>
    %cst_158 = arith.constant dense<0.000000e+00> : vector<16xf32>
    %842 = vector.multi_reduction <add>, %841, %cst_158 [1] : vector<16x16xf32> to vector<16xf32>
    %843 = vector.shape_cast %842 : vector<16xf32> to vector<16x1xf32>
    %844 = vector.extract_strided_slice %711 {offsets = [8, 0], sizes = [1, 16], strides = [1, 1]} : vector<9x16xf32> to vector<1x16xf32>
    %845 = vector.broadcast %843 : vector<16x1xf32> to vector<16x16xf32>
    %846 = vector.broadcast %844 : vector<1x16xf32> to vector<16x16xf32>
    %847 = arith.mulf %845, %846 : vector<16x16xf32>
    %848 = arith.addf %840, %847 : vector<16x16xf32>
    %849 = vector.extract_strided_slice %719 {offsets = [0, 16], sizes = [16, 16], strides = [1, 1]} : vector<16x96xf32> to vector<16x16xf32>
    %cst_159 = arith.constant 2.500000e-01 : f32
    %850 = vector.broadcast %cst_159 : f32 to vector<16x16xf32>
    %851 = arith.mulf %849, %850 : vector<16x16xf32>
    %852 = vector.extract_strided_slice %719 {offsets = [0, 48], sizes = [16, 16], strides = [1, 1]} : vector<16x96xf32> to vector<16x16xf32>
    %853 = vector.extract_strided_slice %719 {offsets = [0, 80], sizes = [16, 16], strides = [1, 1]} : vector<16x96xf32> to vector<16x16xf32>
    %cst_160 = arith.constant dense<0.000000e+00> : vector<16x16xf32>
    %854 = tpu.matmul %851, %852, %cst_160 {dimension_numbers = #tpu.dot_dimension_numbers<[1], [1], [0], [0], [0, 0, 1, 0], [], []>} : vector<16x16xf32>, vector<16x16xf32>, vector<16x16xf32> -> vector<16x16xf32>
    %cst_161 = arith.constant dense<0.000000e+00> : vector<16x9xf32>
    %855 = tpu.matmul %851, %709, %cst_161 {dimension_numbers = #tpu.dot_dimension_numbers<[1], [1], [0], [0], [0, 0, 1, 0], [], []>} : vector<16x16xf32>, vector<9x16xf32>, vector<16x9xf32> -> vector<16x9xf32>
    %856 = vector.extract_strided_slice %855 {offsets = [0, 0], sizes = [16, 1], strides = [1, 1]} : vector<16x9xf32> to vector<16x1xf32>
    %857 = vector.broadcast %856 : vector<16x1xf32> to vector<16x16xf32>
    %858 = arith.mulf %20, %857 : vector<16x16xf32>
    %859 = arith.addf %854, %858 : vector<16x16xf32>
    %860 = vector.extract_strided_slice %855 {offsets = [0, 1], sizes = [16, 1], strides = [1, 1]} : vector<16x9xf32> to vector<16x1xf32>
    %861 = vector.broadcast %860 : vector<16x1xf32> to vector<16x16xf32>
    %862 = arith.mulf %24, %861 : vector<16x16xf32>
    %863 = arith.addf %859, %862 : vector<16x16xf32>
    %864 = vector.extract_strided_slice %855 {offsets = [0, 2], sizes = [16, 1], strides = [1, 1]} : vector<16x9xf32> to vector<16x1xf32>
    %865 = vector.broadcast %864 : vector<16x1xf32> to vector<16x16xf32>
    %866 = arith.mulf %28, %865 : vector<16x16xf32>
    %867 = arith.addf %863, %866 : vector<16x16xf32>
    %868 = vector.extract_strided_slice %855 {offsets = [0, 3], sizes = [16, 1], strides = [1, 1]} : vector<16x9xf32> to vector<16x1xf32>
    %869 = vector.broadcast %868 : vector<16x1xf32> to vector<16x16xf32>
    %870 = arith.mulf %32, %869 : vector<16x16xf32>
    %871 = arith.addf %867, %870 : vector<16x16xf32>
    %872 = vector.extract_strided_slice %855 {offsets = [0, 4], sizes = [16, 1], strides = [1, 1]} : vector<16x9xf32> to vector<16x1xf32>
    %873 = vector.broadcast %872 : vector<16x1xf32> to vector<16x16xf32>
    %874 = arith.mulf %36, %873 : vector<16x16xf32>
    %875 = arith.addf %871, %874 : vector<16x16xf32>
    %876 = vector.extract_strided_slice %855 {offsets = [0, 5], sizes = [16, 1], strides = [1, 1]} : vector<16x9xf32> to vector<16x1xf32>
    %877 = vector.broadcast %876 : vector<16x1xf32> to vector<16x16xf32>
    %878 = arith.mulf %40, %877 : vector<16x16xf32>
    %879 = arith.addf %875, %878 : vector<16x16xf32>
    %880 = vector.extract_strided_slice %855 {offsets = [0, 6], sizes = [16, 1], strides = [1, 1]} : vector<16x9xf32> to vector<16x1xf32>
    %881 = vector.broadcast %880 : vector<16x1xf32> to vector<16x16xf32>
    %882 = arith.mulf %44, %881 : vector<16x16xf32>
    %883 = arith.addf %879, %882 : vector<16x16xf32>
    %884 = vector.extract_strided_slice %855 {offsets = [0, 7], sizes = [16, 1], strides = [1, 1]} : vector<16x9xf32> to vector<16x1xf32>
    %885 = vector.broadcast %884 : vector<16x1xf32> to vector<16x16xf32>
    %886 = arith.mulf %48, %885 : vector<16x16xf32>
    %887 = arith.addf %883, %886 : vector<16x16xf32>
    %888 = vector.extract_strided_slice %855 {offsets = [0, 8], sizes = [16, 1], strides = [1, 1]} : vector<16x9xf32> to vector<16x1xf32>
    %889 = vector.broadcast %888 : vector<16x1xf32> to vector<16x16xf32>
    %890 = arith.mulf %52, %889 : vector<16x16xf32>
    %891 = arith.addf %887, %890 : vector<16x16xf32>
    %cst_162 = arith.constant 0.000000e+00 : f32
    %892 = vector.broadcast %cst_162 : f32 to vector<16x16xf32>
    %893 = arith.cmpf ogt, %57, %892 : vector<16x16xf32>
    %cst_163 = arith.constant -1.000000e+04 : f32
    %894 = vector.broadcast %cst_163 : f32 to vector<16x16xf32>
    %895 = arith.select %893, %891, %894 : vector<16x16xi1>, vector<16x16xf32>
    %cst_164 = arith.constant dense<0xFF800000> : vector<16xf32>
    %896 = vector.multi_reduction <maximumf>, %895, %cst_164 [1] : vector<16x16xf32> to vector<16xf32>
    %897 = vector.shape_cast %896 : vector<16xf32> to vector<16x1xf32>
    %898 = vector.broadcast %897 : vector<16x1xf32> to vector<16x16xf32>
    %899 = arith.subf %895, %898 : vector<16x16xf32>
    %900 = math.exp %899 : vector<16x16xf32>
    %cst_165 = arith.constant dense<0.000000e+00> : vector<16xf32>
    %901 = vector.multi_reduction <add>, %900, %cst_165 [1] : vector<16x16xf32> to vector<16xf32>
    %902 = vector.shape_cast %901 : vector<16xf32> to vector<16x1xf32>
    %903 = vector.broadcast %902 : vector<16x1xf32> to vector<16x16xf32>
    %904 = arith.divf %900, %903 : vector<16x16xf32>
    %cst_166 = arith.constant dense<0.000000e+00> : vector<16x16xf32>
    %905 = tpu.matmul %904, %853, %cst_166 {dimension_numbers = #tpu.dot_dimension_numbers<[1], [0], [0], [1], [0, 0, 1, 1], [], []>} : vector<16x16xf32>, vector<16x16xf32>, vector<16x16xf32> -> vector<16x16xf32>
    %906 = arith.mulf %904, %20 : vector<16x16xf32>
    %cst_167 = arith.constant dense<0.000000e+00> : vector<16xf32>
    %907 = vector.multi_reduction <add>, %906, %cst_167 [1] : vector<16x16xf32> to vector<16xf32>
    %908 = vector.shape_cast %907 : vector<16xf32> to vector<16x1xf32>
    %909 = vector.extract_strided_slice %711 {offsets = [0, 0], sizes = [1, 16], strides = [1, 1]} : vector<9x16xf32> to vector<1x16xf32>
    %910 = vector.broadcast %908 : vector<16x1xf32> to vector<16x16xf32>
    %911 = vector.broadcast %909 : vector<1x16xf32> to vector<16x16xf32>
    %912 = arith.mulf %910, %911 : vector<16x16xf32>
    %913 = arith.addf %905, %912 : vector<16x16xf32>
    %914 = arith.mulf %904, %24 : vector<16x16xf32>
    %cst_168 = arith.constant dense<0.000000e+00> : vector<16xf32>
    %915 = vector.multi_reduction <add>, %914, %cst_168 [1] : vector<16x16xf32> to vector<16xf32>
    %916 = vector.shape_cast %915 : vector<16xf32> to vector<16x1xf32>
    %917 = vector.extract_strided_slice %711 {offsets = [1, 0], sizes = [1, 16], strides = [1, 1]} : vector<9x16xf32> to vector<1x16xf32>
    %918 = vector.broadcast %916 : vector<16x1xf32> to vector<16x16xf32>
    %919 = vector.broadcast %917 : vector<1x16xf32> to vector<16x16xf32>
    %920 = arith.mulf %918, %919 : vector<16x16xf32>
    %921 = arith.addf %913, %920 : vector<16x16xf32>
    %922 = arith.mulf %904, %28 : vector<16x16xf32>
    %cst_169 = arith.constant dense<0.000000e+00> : vector<16xf32>
    %923 = vector.multi_reduction <add>, %922, %cst_169 [1] : vector<16x16xf32> to vector<16xf32>
    %924 = vector.shape_cast %923 : vector<16xf32> to vector<16x1xf32>
    %925 = vector.extract_strided_slice %711 {offsets = [2, 0], sizes = [1, 16], strides = [1, 1]} : vector<9x16xf32> to vector<1x16xf32>
    %926 = vector.broadcast %924 : vector<16x1xf32> to vector<16x16xf32>
    %927 = vector.broadcast %925 : vector<1x16xf32> to vector<16x16xf32>
    %928 = arith.mulf %926, %927 : vector<16x16xf32>
    %929 = arith.addf %921, %928 : vector<16x16xf32>
    %930 = arith.mulf %904, %32 : vector<16x16xf32>
    %cst_170 = arith.constant dense<0.000000e+00> : vector<16xf32>
    %931 = vector.multi_reduction <add>, %930, %cst_170 [1] : vector<16x16xf32> to vector<16xf32>
    %932 = vector.shape_cast %931 : vector<16xf32> to vector<16x1xf32>
    %933 = vector.extract_strided_slice %711 {offsets = [3, 0], sizes = [1, 16], strides = [1, 1]} : vector<9x16xf32> to vector<1x16xf32>
    %934 = vector.broadcast %932 : vector<16x1xf32> to vector<16x16xf32>
    %935 = vector.broadcast %933 : vector<1x16xf32> to vector<16x16xf32>
    %936 = arith.mulf %934, %935 : vector<16x16xf32>
    %937 = arith.addf %929, %936 : vector<16x16xf32>
    %938 = arith.mulf %904, %36 : vector<16x16xf32>
    %cst_171 = arith.constant dense<0.000000e+00> : vector<16xf32>
    %939 = vector.multi_reduction <add>, %938, %cst_171 [1] : vector<16x16xf32> to vector<16xf32>
    %940 = vector.shape_cast %939 : vector<16xf32> to vector<16x1xf32>
    %941 = vector.extract_strided_slice %711 {offsets = [4, 0], sizes = [1, 16], strides = [1, 1]} : vector<9x16xf32> to vector<1x16xf32>
    %942 = vector.broadcast %940 : vector<16x1xf32> to vector<16x16xf32>
    %943 = vector.broadcast %941 : vector<1x16xf32> to vector<16x16xf32>
    %944 = arith.mulf %942, %943 : vector<16x16xf32>
    %945 = arith.addf %937, %944 : vector<16x16xf32>
    %946 = arith.mulf %904, %40 : vector<16x16xf32>
    %cst_172 = arith.constant dense<0.000000e+00> : vector<16xf32>
    %947 = vector.multi_reduction <add>, %946, %cst_172 [1] : vector<16x16xf32> to vector<16xf32>
    %948 = vector.shape_cast %947 : vector<16xf32> to vector<16x1xf32>
    %949 = vector.extract_strided_slice %711 {offsets = [5, 0], sizes = [1, 16], strides = [1, 1]} : vector<9x16xf32> to vector<1x16xf32>
    %950 = vector.broadcast %948 : vector<16x1xf32> to vector<16x16xf32>
    %951 = vector.broadcast %949 : vector<1x16xf32> to vector<16x16xf32>
    %952 = arith.mulf %950, %951 : vector<16x16xf32>
    %953 = arith.addf %945, %952 : vector<16x16xf32>
    %954 = arith.mulf %904, %44 : vector<16x16xf32>
    %cst_173 = arith.constant dense<0.000000e+00> : vector<16xf32>
    %955 = vector.multi_reduction <add>, %954, %cst_173 [1] : vector<16x16xf32> to vector<16xf32>
    %956 = vector.shape_cast %955 : vector<16xf32> to vector<16x1xf32>
    %957 = vector.extract_strided_slice %711 {offsets = [6, 0], sizes = [1, 16], strides = [1, 1]} : vector<9x16xf32> to vector<1x16xf32>
    %958 = vector.broadcast %956 : vector<16x1xf32> to vector<16x16xf32>
    %959 = vector.broadcast %957 : vector<1x16xf32> to vector<16x16xf32>
    %960 = arith.mulf %958, %959 : vector<16x16xf32>
    %961 = arith.addf %953, %960 : vector<16x16xf32>
    %962 = arith.mulf %904, %48 : vector<16x16xf32>
    %cst_174 = arith.constant dense<0.000000e+00> : vector<16xf32>
    %963 = vector.multi_reduction <add>, %962, %cst_174 [1] : vector<16x16xf32> to vector<16xf32>
    %964 = vector.shape_cast %963 : vector<16xf32> to vector<16x1xf32>
    %965 = vector.extract_strided_slice %711 {offsets = [7, 0], sizes = [1, 16], strides = [1, 1]} : vector<9x16xf32> to vector<1x16xf32>
    %966 = vector.broadcast %964 : vector<16x1xf32> to vector<16x16xf32>
    %967 = vector.broadcast %965 : vector<1x16xf32> to vector<16x16xf32>
    %968 = arith.mulf %966, %967 : vector<16x16xf32>
    %969 = arith.addf %961, %968 : vector<16x16xf32>
    %970 = arith.mulf %904, %52 : vector<16x16xf32>
    %cst_175 = arith.constant dense<0.000000e+00> : vector<16xf32>
    %971 = vector.multi_reduction <add>, %970, %cst_175 [1] : vector<16x16xf32> to vector<16xf32>
    %972 = vector.shape_cast %971 : vector<16xf32> to vector<16x1xf32>
    %973 = vector.extract_strided_slice %711 {offsets = [8, 0], sizes = [1, 16], strides = [1, 1]} : vector<9x16xf32> to vector<1x16xf32>
    %974 = vector.broadcast %972 : vector<16x1xf32> to vector<16x16xf32>
    %975 = vector.broadcast %973 : vector<1x16xf32> to vector<16x16xf32>
    %976 = arith.mulf %974, %975 : vector<16x16xf32>
    %977 = arith.addf %969, %976 : vector<16x16xf32>
    %978 = tpu.concatenate %848, %977 in 1 : vector<16x16xf32>, vector<16x16xf32> -> vector<16x32xf32>
    %979 = vector.extract_strided_slice %718 {offsets = [16, 0], sizes = [16, 96], strides = [1, 1]} : vector<32x96xf32> to vector<16x96xf32>
    %980 = vector.extract_strided_slice %979 {offsets = [0, 0], sizes = [16, 16], strides = [1, 1]} : vector<16x96xf32> to vector<16x16xf32>
    %cst_176 = arith.constant 2.500000e-01 : f32
    %981 = vector.broadcast %cst_176 : f32 to vector<16x16xf32>
    %982 = arith.mulf %980, %981 : vector<16x16xf32>
    %983 = vector.extract_strided_slice %979 {offsets = [0, 32], sizes = [16, 16], strides = [1, 1]} : vector<16x96xf32> to vector<16x16xf32>
    %984 = vector.extract_strided_slice %979 {offsets = [0, 64], sizes = [16, 16], strides = [1, 1]} : vector<16x96xf32> to vector<16x16xf32>
    %cst_177 = arith.constant dense<0.000000e+00> : vector<16x16xf32>
    %985 = tpu.matmul %982, %983, %cst_177 {dimension_numbers = #tpu.dot_dimension_numbers<[1], [1], [0], [0], [0, 0, 1, 0], [], []>} : vector<16x16xf32>, vector<16x16xf32>, vector<16x16xf32> -> vector<16x16xf32>
    %cst_178 = arith.constant dense<0.000000e+00> : vector<16x9xf32>
    %986 = tpu.matmul %982, %709, %cst_178 {dimension_numbers = #tpu.dot_dimension_numbers<[1], [1], [0], [0], [0, 0, 1, 0], [], []>} : vector<16x16xf32>, vector<9x16xf32>, vector<16x9xf32> -> vector<16x9xf32>
    %987 = vector.extract_strided_slice %986 {offsets = [0, 0], sizes = [16, 1], strides = [1, 1]} : vector<16x9xf32> to vector<16x1xf32>
    %988 = vector.broadcast %987 : vector<16x1xf32> to vector<16x16xf32>
    %989 = arith.mulf %20, %988 : vector<16x16xf32>
    %990 = arith.addf %985, %989 : vector<16x16xf32>
    %991 = vector.extract_strided_slice %986 {offsets = [0, 1], sizes = [16, 1], strides = [1, 1]} : vector<16x9xf32> to vector<16x1xf32>
    %992 = vector.broadcast %991 : vector<16x1xf32> to vector<16x16xf32>
    %993 = arith.mulf %24, %992 : vector<16x16xf32>
    %994 = arith.addf %990, %993 : vector<16x16xf32>
    %995 = vector.extract_strided_slice %986 {offsets = [0, 2], sizes = [16, 1], strides = [1, 1]} : vector<16x9xf32> to vector<16x1xf32>
    %996 = vector.broadcast %995 : vector<16x1xf32> to vector<16x16xf32>
    %997 = arith.mulf %28, %996 : vector<16x16xf32>
    %998 = arith.addf %994, %997 : vector<16x16xf32>
    %999 = vector.extract_strided_slice %986 {offsets = [0, 3], sizes = [16, 1], strides = [1, 1]} : vector<16x9xf32> to vector<16x1xf32>
    %1000 = vector.broadcast %999 : vector<16x1xf32> to vector<16x16xf32>
    %1001 = arith.mulf %32, %1000 : vector<16x16xf32>
    %1002 = arith.addf %998, %1001 : vector<16x16xf32>
    %1003 = vector.extract_strided_slice %986 {offsets = [0, 4], sizes = [16, 1], strides = [1, 1]} : vector<16x9xf32> to vector<16x1xf32>
    %1004 = vector.broadcast %1003 : vector<16x1xf32> to vector<16x16xf32>
    %1005 = arith.mulf %36, %1004 : vector<16x16xf32>
    %1006 = arith.addf %1002, %1005 : vector<16x16xf32>
    %1007 = vector.extract_strided_slice %986 {offsets = [0, 5], sizes = [16, 1], strides = [1, 1]} : vector<16x9xf32> to vector<16x1xf32>
    %1008 = vector.broadcast %1007 : vector<16x1xf32> to vector<16x16xf32>
    %1009 = arith.mulf %40, %1008 : vector<16x16xf32>
    %1010 = arith.addf %1006, %1009 : vector<16x16xf32>
    %1011 = vector.extract_strided_slice %986 {offsets = [0, 6], sizes = [16, 1], strides = [1, 1]} : vector<16x9xf32> to vector<16x1xf32>
    %1012 = vector.broadcast %1011 : vector<16x1xf32> to vector<16x16xf32>
    %1013 = arith.mulf %44, %1012 : vector<16x16xf32>
    %1014 = arith.addf %1010, %1013 : vector<16x16xf32>
    %1015 = vector.extract_strided_slice %986 {offsets = [0, 7], sizes = [16, 1], strides = [1, 1]} : vector<16x9xf32> to vector<16x1xf32>
    %1016 = vector.broadcast %1015 : vector<16x1xf32> to vector<16x16xf32>
    %1017 = arith.mulf %48, %1016 : vector<16x16xf32>
    %1018 = arith.addf %1014, %1017 : vector<16x16xf32>
    %1019 = vector.extract_strided_slice %986 {offsets = [0, 8], sizes = [16, 1], strides = [1, 1]} : vector<16x9xf32> to vector<16x1xf32>
    %1020 = vector.broadcast %1019 : vector<16x1xf32> to vector<16x16xf32>
    %1021 = arith.mulf %52, %1020 : vector<16x16xf32>
    %1022 = arith.addf %1018, %1021 : vector<16x16xf32>
    %cst_179 = arith.constant 0.000000e+00 : f32
    %1023 = vector.broadcast %cst_179 : f32 to vector<16x16xf32>
    %1024 = arith.cmpf ogt, %62, %1023 : vector<16x16xf32>
    %cst_180 = arith.constant -1.000000e+04 : f32
    %1025 = vector.broadcast %cst_180 : f32 to vector<16x16xf32>
    %1026 = arith.select %1024, %1022, %1025 : vector<16x16xi1>, vector<16x16xf32>
    %cst_181 = arith.constant dense<0xFF800000> : vector<16xf32>
    %1027 = vector.multi_reduction <maximumf>, %1026, %cst_181 [1] : vector<16x16xf32> to vector<16xf32>
    %1028 = vector.shape_cast %1027 : vector<16xf32> to vector<16x1xf32>
    %1029 = vector.broadcast %1028 : vector<16x1xf32> to vector<16x16xf32>
    %1030 = arith.subf %1026, %1029 : vector<16x16xf32>
    %1031 = math.exp %1030 : vector<16x16xf32>
    %cst_182 = arith.constant dense<0.000000e+00> : vector<16xf32>
    %1032 = vector.multi_reduction <add>, %1031, %cst_182 [1] : vector<16x16xf32> to vector<16xf32>
    %1033 = vector.shape_cast %1032 : vector<16xf32> to vector<16x1xf32>
    %1034 = vector.broadcast %1033 : vector<16x1xf32> to vector<16x16xf32>
    %1035 = arith.divf %1031, %1034 : vector<16x16xf32>
    %cst_183 = arith.constant dense<0.000000e+00> : vector<16x16xf32>
    %1036 = tpu.matmul %1035, %984, %cst_183 {dimension_numbers = #tpu.dot_dimension_numbers<[1], [0], [0], [1], [0, 0, 1, 1], [], []>} : vector<16x16xf32>, vector<16x16xf32>, vector<16x16xf32> -> vector<16x16xf32>
    %1037 = arith.mulf %1035, %20 : vector<16x16xf32>
    %cst_184 = arith.constant dense<0.000000e+00> : vector<16xf32>
    %1038 = vector.multi_reduction <add>, %1037, %cst_184 [1] : vector<16x16xf32> to vector<16xf32>
    %1039 = vector.shape_cast %1038 : vector<16xf32> to vector<16x1xf32>
    %1040 = vector.extract_strided_slice %711 {offsets = [0, 0], sizes = [1, 16], strides = [1, 1]} : vector<9x16xf32> to vector<1x16xf32>
    %1041 = vector.broadcast %1039 : vector<16x1xf32> to vector<16x16xf32>
    %1042 = vector.broadcast %1040 : vector<1x16xf32> to vector<16x16xf32>
    %1043 = arith.mulf %1041, %1042 : vector<16x16xf32>
    %1044 = arith.addf %1036, %1043 : vector<16x16xf32>
    %1045 = arith.mulf %1035, %24 : vector<16x16xf32>
    %cst_185 = arith.constant dense<0.000000e+00> : vector<16xf32>
    %1046 = vector.multi_reduction <add>, %1045, %cst_185 [1] : vector<16x16xf32> to vector<16xf32>
    %1047 = vector.shape_cast %1046 : vector<16xf32> to vector<16x1xf32>
    %1048 = vector.extract_strided_slice %711 {offsets = [1, 0], sizes = [1, 16], strides = [1, 1]} : vector<9x16xf32> to vector<1x16xf32>
    %1049 = vector.broadcast %1047 : vector<16x1xf32> to vector<16x16xf32>
    %1050 = vector.broadcast %1048 : vector<1x16xf32> to vector<16x16xf32>
    %1051 = arith.mulf %1049, %1050 : vector<16x16xf32>
    %1052 = arith.addf %1044, %1051 : vector<16x16xf32>
    %1053 = arith.mulf %1035, %28 : vector<16x16xf32>
    %cst_186 = arith.constant dense<0.000000e+00> : vector<16xf32>
    %1054 = vector.multi_reduction <add>, %1053, %cst_186 [1] : vector<16x16xf32> to vector<16xf32>
    %1055 = vector.shape_cast %1054 : vector<16xf32> to vector<16x1xf32>
    %1056 = vector.extract_strided_slice %711 {offsets = [2, 0], sizes = [1, 16], strides = [1, 1]} : vector<9x16xf32> to vector<1x16xf32>
    %1057 = vector.broadcast %1055 : vector<16x1xf32> to vector<16x16xf32>
    %1058 = vector.broadcast %1056 : vector<1x16xf32> to vector<16x16xf32>
    %1059 = arith.mulf %1057, %1058 : vector<16x16xf32>
    %1060 = arith.addf %1052, %1059 : vector<16x16xf32>
    %1061 = arith.mulf %1035, %32 : vector<16x16xf32>
    %cst_187 = arith.constant dense<0.000000e+00> : vector<16xf32>
    %1062 = vector.multi_reduction <add>, %1061, %cst_187 [1] : vector<16x16xf32> to vector<16xf32>
    %1063 = vector.shape_cast %1062 : vector<16xf32> to vector<16x1xf32>
    %1064 = vector.extract_strided_slice %711 {offsets = [3, 0], sizes = [1, 16], strides = [1, 1]} : vector<9x16xf32> to vector<1x16xf32>
    %1065 = vector.broadcast %1063 : vector<16x1xf32> to vector<16x16xf32>
    %1066 = vector.broadcast %1064 : vector<1x16xf32> to vector<16x16xf32>
    %1067 = arith.mulf %1065, %1066 : vector<16x16xf32>
    %1068 = arith.addf %1060, %1067 : vector<16x16xf32>
    %1069 = arith.mulf %1035, %36 : vector<16x16xf32>
    %cst_188 = arith.constant dense<0.000000e+00> : vector<16xf32>
    %1070 = vector.multi_reduction <add>, %1069, %cst_188 [1] : vector<16x16xf32> to vector<16xf32>
    %1071 = vector.shape_cast %1070 : vector<16xf32> to vector<16x1xf32>
    %1072 = vector.extract_strided_slice %711 {offsets = [4, 0], sizes = [1, 16], strides = [1, 1]} : vector<9x16xf32> to vector<1x16xf32>
    %1073 = vector.broadcast %1071 : vector<16x1xf32> to vector<16x16xf32>
    %1074 = vector.broadcast %1072 : vector<1x16xf32> to vector<16x16xf32>
    %1075 = arith.mulf %1073, %1074 : vector<16x16xf32>
    %1076 = arith.addf %1068, %1075 : vector<16x16xf32>
    %1077 = arith.mulf %1035, %40 : vector<16x16xf32>
    %cst_189 = arith.constant dense<0.000000e+00> : vector<16xf32>
    %1078 = vector.multi_reduction <add>, %1077, %cst_189 [1] : vector<16x16xf32> to vector<16xf32>
    %1079 = vector.shape_cast %1078 : vector<16xf32> to vector<16x1xf32>
    %1080 = vector.extract_strided_slice %711 {offsets = [5, 0], sizes = [1, 16], strides = [1, 1]} : vector<9x16xf32> to vector<1x16xf32>
    %1081 = vector.broadcast %1079 : vector<16x1xf32> to vector<16x16xf32>
    %1082 = vector.broadcast %1080 : vector<1x16xf32> to vector<16x16xf32>
    %1083 = arith.mulf %1081, %1082 : vector<16x16xf32>
    %1084 = arith.addf %1076, %1083 : vector<16x16xf32>
    %1085 = arith.mulf %1035, %44 : vector<16x16xf32>
    %cst_190 = arith.constant dense<0.000000e+00> : vector<16xf32>
    %1086 = vector.multi_reduction <add>, %1085, %cst_190 [1] : vector<16x16xf32> to vector<16xf32>
    %1087 = vector.shape_cast %1086 : vector<16xf32> to vector<16x1xf32>
    %1088 = vector.extract_strided_slice %711 {offsets = [6, 0], sizes = [1, 16], strides = [1, 1]} : vector<9x16xf32> to vector<1x16xf32>
    %1089 = vector.broadcast %1087 : vector<16x1xf32> to vector<16x16xf32>
    %1090 = vector.broadcast %1088 : vector<1x16xf32> to vector<16x16xf32>
    %1091 = arith.mulf %1089, %1090 : vector<16x16xf32>
    %1092 = arith.addf %1084, %1091 : vector<16x16xf32>
    %1093 = arith.mulf %1035, %48 : vector<16x16xf32>
    %cst_191 = arith.constant dense<0.000000e+00> : vector<16xf32>
    %1094 = vector.multi_reduction <add>, %1093, %cst_191 [1] : vector<16x16xf32> to vector<16xf32>
    %1095 = vector.shape_cast %1094 : vector<16xf32> to vector<16x1xf32>
    %1096 = vector.extract_strided_slice %711 {offsets = [7, 0], sizes = [1, 16], strides = [1, 1]} : vector<9x16xf32> to vector<1x16xf32>
    %1097 = vector.broadcast %1095 : vector<16x1xf32> to vector<16x16xf32>
    %1098 = vector.broadcast %1096 : vector<1x16xf32> to vector<16x16xf32>
    %1099 = arith.mulf %1097, %1098 : vector<16x16xf32>
    %1100 = arith.addf %1092, %1099 : vector<16x16xf32>
    %1101 = arith.mulf %1035, %52 : vector<16x16xf32>
    %cst_192 = arith.constant dense<0.000000e+00> : vector<16xf32>
    %1102 = vector.multi_reduction <add>, %1101, %cst_192 [1] : vector<16x16xf32> to vector<16xf32>
    %1103 = vector.shape_cast %1102 : vector<16xf32> to vector<16x1xf32>
    %1104 = vector.extract_strided_slice %711 {offsets = [8, 0], sizes = [1, 16], strides = [1, 1]} : vector<9x16xf32> to vector<1x16xf32>
    %1105 = vector.broadcast %1103 : vector<16x1xf32> to vector<16x16xf32>
    %1106 = vector.broadcast %1104 : vector<1x16xf32> to vector<16x16xf32>
    %1107 = arith.mulf %1105, %1106 : vector<16x16xf32>
    %1108 = arith.addf %1100, %1107 : vector<16x16xf32>
    %1109 = vector.extract_strided_slice %979 {offsets = [0, 16], sizes = [16, 16], strides = [1, 1]} : vector<16x96xf32> to vector<16x16xf32>
    %cst_193 = arith.constant 2.500000e-01 : f32
    %1110 = vector.broadcast %cst_193 : f32 to vector<16x16xf32>
    %1111 = arith.mulf %1109, %1110 : vector<16x16xf32>
    %1112 = vector.extract_strided_slice %979 {offsets = [0, 48], sizes = [16, 16], strides = [1, 1]} : vector<16x96xf32> to vector<16x16xf32>
    %1113 = vector.extract_strided_slice %979 {offsets = [0, 80], sizes = [16, 16], strides = [1, 1]} : vector<16x96xf32> to vector<16x16xf32>
    %cst_194 = arith.constant dense<0.000000e+00> : vector<16x16xf32>
    %1114 = tpu.matmul %1111, %1112, %cst_194 {dimension_numbers = #tpu.dot_dimension_numbers<[1], [1], [0], [0], [0, 0, 1, 0], [], []>} : vector<16x16xf32>, vector<16x16xf32>, vector<16x16xf32> -> vector<16x16xf32>
    %cst_195 = arith.constant dense<0.000000e+00> : vector<16x9xf32>
    %1115 = tpu.matmul %1111, %709, %cst_195 {dimension_numbers = #tpu.dot_dimension_numbers<[1], [1], [0], [0], [0, 0, 1, 0], [], []>} : vector<16x16xf32>, vector<9x16xf32>, vector<16x9xf32> -> vector<16x9xf32>
    %1116 = vector.extract_strided_slice %1115 {offsets = [0, 0], sizes = [16, 1], strides = [1, 1]} : vector<16x9xf32> to vector<16x1xf32>
    %1117 = vector.broadcast %1116 : vector<16x1xf32> to vector<16x16xf32>
    %1118 = arith.mulf %20, %1117 : vector<16x16xf32>
    %1119 = arith.addf %1114, %1118 : vector<16x16xf32>
    %1120 = vector.extract_strided_slice %1115 {offsets = [0, 1], sizes = [16, 1], strides = [1, 1]} : vector<16x9xf32> to vector<16x1xf32>
    %1121 = vector.broadcast %1120 : vector<16x1xf32> to vector<16x16xf32>
    %1122 = arith.mulf %24, %1121 : vector<16x16xf32>
    %1123 = arith.addf %1119, %1122 : vector<16x16xf32>
    %1124 = vector.extract_strided_slice %1115 {offsets = [0, 2], sizes = [16, 1], strides = [1, 1]} : vector<16x9xf32> to vector<16x1xf32>
    %1125 = vector.broadcast %1124 : vector<16x1xf32> to vector<16x16xf32>
    %1126 = arith.mulf %28, %1125 : vector<16x16xf32>
    %1127 = arith.addf %1123, %1126 : vector<16x16xf32>
    %1128 = vector.extract_strided_slice %1115 {offsets = [0, 3], sizes = [16, 1], strides = [1, 1]} : vector<16x9xf32> to vector<16x1xf32>
    %1129 = vector.broadcast %1128 : vector<16x1xf32> to vector<16x16xf32>
    %1130 = arith.mulf %32, %1129 : vector<16x16xf32>
    %1131 = arith.addf %1127, %1130 : vector<16x16xf32>
    %1132 = vector.extract_strided_slice %1115 {offsets = [0, 4], sizes = [16, 1], strides = [1, 1]} : vector<16x9xf32> to vector<16x1xf32>
    %1133 = vector.broadcast %1132 : vector<16x1xf32> to vector<16x16xf32>
    %1134 = arith.mulf %36, %1133 : vector<16x16xf32>
    %1135 = arith.addf %1131, %1134 : vector<16x16xf32>
    %1136 = vector.extract_strided_slice %1115 {offsets = [0, 5], sizes = [16, 1], strides = [1, 1]} : vector<16x9xf32> to vector<16x1xf32>
    %1137 = vector.broadcast %1136 : vector<16x1xf32> to vector<16x16xf32>
    %1138 = arith.mulf %40, %1137 : vector<16x16xf32>
    %1139 = arith.addf %1135, %1138 : vector<16x16xf32>
    %1140 = vector.extract_strided_slice %1115 {offsets = [0, 6], sizes = [16, 1], strides = [1, 1]} : vector<16x9xf32> to vector<16x1xf32>
    %1141 = vector.broadcast %1140 : vector<16x1xf32> to vector<16x16xf32>
    %1142 = arith.mulf %44, %1141 : vector<16x16xf32>
    %1143 = arith.addf %1139, %1142 : vector<16x16xf32>
    %1144 = vector.extract_strided_slice %1115 {offsets = [0, 7], sizes = [16, 1], strides = [1, 1]} : vector<16x9xf32> to vector<16x1xf32>
    %1145 = vector.broadcast %1144 : vector<16x1xf32> to vector<16x16xf32>
    %1146 = arith.mulf %48, %1145 : vector<16x16xf32>
    %1147 = arith.addf %1143, %1146 : vector<16x16xf32>
    %1148 = vector.extract_strided_slice %1115 {offsets = [0, 8], sizes = [16, 1], strides = [1, 1]} : vector<16x9xf32> to vector<16x1xf32>
    %1149 = vector.broadcast %1148 : vector<16x1xf32> to vector<16x16xf32>
    %1150 = arith.mulf %52, %1149 : vector<16x16xf32>
    %1151 = arith.addf %1147, %1150 : vector<16x16xf32>
    %cst_196 = arith.constant 0.000000e+00 : f32
    %1152 = vector.broadcast %cst_196 : f32 to vector<16x16xf32>
    %1153 = arith.cmpf ogt, %62, %1152 : vector<16x16xf32>
    %cst_197 = arith.constant -1.000000e+04 : f32
    %1154 = vector.broadcast %cst_197 : f32 to vector<16x16xf32>
    %1155 = arith.select %1153, %1151, %1154 : vector<16x16xi1>, vector<16x16xf32>
    %cst_198 = arith.constant dense<0xFF800000> : vector<16xf32>
    %1156 = vector.multi_reduction <maximumf>, %1155, %cst_198 [1] : vector<16x16xf32> to vector<16xf32>
    %1157 = vector.shape_cast %1156 : vector<16xf32> to vector<16x1xf32>
    %1158 = vector.broadcast %1157 : vector<16x1xf32> to vector<16x16xf32>
    %1159 = arith.subf %1155, %1158 : vector<16x16xf32>
    %1160 = math.exp %1159 : vector<16x16xf32>
    %cst_199 = arith.constant dense<0.000000e+00> : vector<16xf32>
    %1161 = vector.multi_reduction <add>, %1160, %cst_199 [1] : vector<16x16xf32> to vector<16xf32>
    %1162 = vector.shape_cast %1161 : vector<16xf32> to vector<16x1xf32>
    %1163 = vector.broadcast %1162 : vector<16x1xf32> to vector<16x16xf32>
    %1164 = arith.divf %1160, %1163 : vector<16x16xf32>
    %cst_200 = arith.constant dense<0.000000e+00> : vector<16x16xf32>
    %1165 = tpu.matmul %1164, %1113, %cst_200 {dimension_numbers = #tpu.dot_dimension_numbers<[1], [0], [0], [1], [0, 0, 1, 1], [], []>} : vector<16x16xf32>, vector<16x16xf32>, vector<16x16xf32> -> vector<16x16xf32>
    %1166 = arith.mulf %1164, %20 : vector<16x16xf32>
    %cst_201 = arith.constant dense<0.000000e+00> : vector<16xf32>
    %1167 = vector.multi_reduction <add>, %1166, %cst_201 [1] : vector<16x16xf32> to vector<16xf32>
    %1168 = vector.shape_cast %1167 : vector<16xf32> to vector<16x1xf32>
    %1169 = vector.extract_strided_slice %711 {offsets = [0, 0], sizes = [1, 16], strides = [1, 1]} : vector<9x16xf32> to vector<1x16xf32>
    %1170 = vector.broadcast %1168 : vector<16x1xf32> to vector<16x16xf32>
    %1171 = vector.broadcast %1169 : vector<1x16xf32> to vector<16x16xf32>
    %1172 = arith.mulf %1170, %1171 : vector<16x16xf32>
    %1173 = arith.addf %1165, %1172 : vector<16x16xf32>
    %1174 = arith.mulf %1164, %24 : vector<16x16xf32>
    %cst_202 = arith.constant dense<0.000000e+00> : vector<16xf32>
    %1175 = vector.multi_reduction <add>, %1174, %cst_202 [1] : vector<16x16xf32> to vector<16xf32>
    %1176 = vector.shape_cast %1175 : vector<16xf32> to vector<16x1xf32>
    %1177 = vector.extract_strided_slice %711 {offsets = [1, 0], sizes = [1, 16], strides = [1, 1]} : vector<9x16xf32> to vector<1x16xf32>
    %1178 = vector.broadcast %1176 : vector<16x1xf32> to vector<16x16xf32>
    %1179 = vector.broadcast %1177 : vector<1x16xf32> to vector<16x16xf32>
    %1180 = arith.mulf %1178, %1179 : vector<16x16xf32>
    %1181 = arith.addf %1173, %1180 : vector<16x16xf32>
    %1182 = arith.mulf %1164, %28 : vector<16x16xf32>
    %cst_203 = arith.constant dense<0.000000e+00> : vector<16xf32>
    %1183 = vector.multi_reduction <add>, %1182, %cst_203 [1] : vector<16x16xf32> to vector<16xf32>
    %1184 = vector.shape_cast %1183 : vector<16xf32> to vector<16x1xf32>
    %1185 = vector.extract_strided_slice %711 {offsets = [2, 0], sizes = [1, 16], strides = [1, 1]} : vector<9x16xf32> to vector<1x16xf32>
    %1186 = vector.broadcast %1184 : vector<16x1xf32> to vector<16x16xf32>
    %1187 = vector.broadcast %1185 : vector<1x16xf32> to vector<16x16xf32>
    %1188 = arith.mulf %1186, %1187 : vector<16x16xf32>
    %1189 = arith.addf %1181, %1188 : vector<16x16xf32>
    %1190 = arith.mulf %1164, %32 : vector<16x16xf32>
    %cst_204 = arith.constant dense<0.000000e+00> : vector<16xf32>
    %1191 = vector.multi_reduction <add>, %1190, %cst_204 [1] : vector<16x16xf32> to vector<16xf32>
    %1192 = vector.shape_cast %1191 : vector<16xf32> to vector<16x1xf32>
    %1193 = vector.extract_strided_slice %711 {offsets = [3, 0], sizes = [1, 16], strides = [1, 1]} : vector<9x16xf32> to vector<1x16xf32>
    %1194 = vector.broadcast %1192 : vector<16x1xf32> to vector<16x16xf32>
    %1195 = vector.broadcast %1193 : vector<1x16xf32> to vector<16x16xf32>
    %1196 = arith.mulf %1194, %1195 : vector<16x16xf32>
    %1197 = arith.addf %1189, %1196 : vector<16x16xf32>
    %1198 = arith.mulf %1164, %36 : vector<16x16xf32>
    %cst_205 = arith.constant dense<0.000000e+00> : vector<16xf32>
    %1199 = vector.multi_reduction <add>, %1198, %cst_205 [1] : vector<16x16xf32> to vector<16xf32>
    %1200 = vector.shape_cast %1199 : vector<16xf32> to vector<16x1xf32>
    %1201 = vector.extract_strided_slice %711 {offsets = [4, 0], sizes = [1, 16], strides = [1, 1]} : vector<9x16xf32> to vector<1x16xf32>
    %1202 = vector.broadcast %1200 : vector<16x1xf32> to vector<16x16xf32>
    %1203 = vector.broadcast %1201 : vector<1x16xf32> to vector<16x16xf32>
    %1204 = arith.mulf %1202, %1203 : vector<16x16xf32>
    %1205 = arith.addf %1197, %1204 : vector<16x16xf32>
    %1206 = arith.mulf %1164, %40 : vector<16x16xf32>
    %cst_206 = arith.constant dense<0.000000e+00> : vector<16xf32>
    %1207 = vector.multi_reduction <add>, %1206, %cst_206 [1] : vector<16x16xf32> to vector<16xf32>
    %1208 = vector.shape_cast %1207 : vector<16xf32> to vector<16x1xf32>
    %1209 = vector.extract_strided_slice %711 {offsets = [5, 0], sizes = [1, 16], strides = [1, 1]} : vector<9x16xf32> to vector<1x16xf32>
    %1210 = vector.broadcast %1208 : vector<16x1xf32> to vector<16x16xf32>
    %1211 = vector.broadcast %1209 : vector<1x16xf32> to vector<16x16xf32>
    %1212 = arith.mulf %1210, %1211 : vector<16x16xf32>
    %1213 = arith.addf %1205, %1212 : vector<16x16xf32>
    %1214 = arith.mulf %1164, %44 : vector<16x16xf32>
    %cst_207 = arith.constant dense<0.000000e+00> : vector<16xf32>
    %1215 = vector.multi_reduction <add>, %1214, %cst_207 [1] : vector<16x16xf32> to vector<16xf32>
    %1216 = vector.shape_cast %1215 : vector<16xf32> to vector<16x1xf32>
    %1217 = vector.extract_strided_slice %711 {offsets = [6, 0], sizes = [1, 16], strides = [1, 1]} : vector<9x16xf32> to vector<1x16xf32>
    %1218 = vector.broadcast %1216 : vector<16x1xf32> to vector<16x16xf32>
    %1219 = vector.broadcast %1217 : vector<1x16xf32> to vector<16x16xf32>
    %1220 = arith.mulf %1218, %1219 : vector<16x16xf32>
    %1221 = arith.addf %1213, %1220 : vector<16x16xf32>
    %1222 = arith.mulf %1164, %48 : vector<16x16xf32>
    %cst_208 = arith.constant dense<0.000000e+00> : vector<16xf32>
    %1223 = vector.multi_reduction <add>, %1222, %cst_208 [1] : vector<16x16xf32> to vector<16xf32>
    %1224 = vector.shape_cast %1223 : vector<16xf32> to vector<16x1xf32>
    %1225 = vector.extract_strided_slice %711 {offsets = [7, 0], sizes = [1, 16], strides = [1, 1]} : vector<9x16xf32> to vector<1x16xf32>
    %1226 = vector.broadcast %1224 : vector<16x1xf32> to vector<16x16xf32>
    %1227 = vector.broadcast %1225 : vector<1x16xf32> to vector<16x16xf32>
    %1228 = arith.mulf %1226, %1227 : vector<16x16xf32>
    %1229 = arith.addf %1221, %1228 : vector<16x16xf32>
    %1230 = arith.mulf %1164, %52 : vector<16x16xf32>
    %cst_209 = arith.constant dense<0.000000e+00> : vector<16xf32>
    %1231 = vector.multi_reduction <add>, %1230, %cst_209 [1] : vector<16x16xf32> to vector<16xf32>
    %1232 = vector.shape_cast %1231 : vector<16xf32> to vector<16x1xf32>
    %1233 = vector.extract_strided_slice %711 {offsets = [8, 0], sizes = [1, 16], strides = [1, 1]} : vector<9x16xf32> to vector<1x16xf32>
    %1234 = vector.broadcast %1232 : vector<16x1xf32> to vector<16x16xf32>
    %1235 = vector.broadcast %1233 : vector<1x16xf32> to vector<16x16xf32>
    %1236 = arith.mulf %1234, %1235 : vector<16x16xf32>
    %1237 = arith.addf %1229, %1236 : vector<16x16xf32>
    %1238 = tpu.concatenate %1108, %1237 in 1 : vector<16x16xf32>, vector<16x16xf32> -> vector<16x32xf32>
    %1239 = tpu.concatenate %978, %1238 in 0 : vector<16x32xf32>, vector<16x32xf32> -> vector<32x32xf32>
    %1240 = vector.extract_strided_slice %705 {offsets = [0, 96], sizes = [32, 32], strides = [1, 1]} : vector<32x128xf32> to vector<32x32xf32>
    %cst_210 = arith.constant dense<0.000000e+00> : vector<32x32xf32>
    %1241 = tpu.matmul %1239, %1240, %cst_210 {dimension_numbers = #tpu.dot_dimension_numbers<[1], [0], [0], [1], [0, 0, 1, 1], [], []>} : vector<32x32xf32>, vector<32x32xf32>, vector<32x32xf32> -> vector<32x32xf32>
    %1242 = vector.extract_strided_slice %707 {offsets = [0, 96], sizes = [1, 32], strides = [1, 1]} : vector<1x128xf32> to vector<1x32xf32>
    %1243 = vector.broadcast %1242 : vector<1x32xf32> to vector<32x32xf32>
    %1244 = arith.addf %1241, %1243 : vector<32x32xf32>
    %1245 = arith.addf %703, %1244 : vector<32x32xf32>
    %1246 = vector.extract_strided_slice %713 {offsets = [0, 0], sizes = [1, 32], strides = [1, 1]} : vector<4x32xf32> to vector<1x32xf32>
    %1247 = vector.extract_strided_slice %713 {offsets = [1, 0], sizes = [1, 32], strides = [1, 1]} : vector<4x32xf32> to vector<1x32xf32>
    %cst_211 = arith.constant dense<0.000000e+00> : vector<32xf32>
    %1248 = vector.multi_reduction <add>, %1245, %cst_211 [1] : vector<32x32xf32> to vector<32xf32>
    %1249 = vector.shape_cast %1248 : vector<32xf32> to vector<32x1xf32>
    %cst_212 = arith.constant 3.200000e+01 : f32
    %1250 = vector.broadcast %cst_212 : f32 to vector<32x1xf32>
    %1251 = arith.divf %1249, %1250 : vector<32x1xf32>
    %1252 = vector.broadcast %1251 : vector<32x1xf32> to vector<32x32xf32>
    %1253 = arith.subf %1245, %1252 : vector<32x32xf32>
    %1254 = arith.mulf %1253, %1253 : vector<32x32xf32>
    %cst_213 = arith.constant dense<0.000000e+00> : vector<32xf32>
    %1255 = vector.multi_reduction <add>, %1254, %cst_213 [1] : vector<32x32xf32> to vector<32xf32>
    %1256 = vector.shape_cast %1255 : vector<32xf32> to vector<32x1xf32>
    %cst_214 = arith.constant 3.200000e+01 : f32
    %1257 = vector.broadcast %cst_214 : f32 to vector<32x1xf32>
    %1258 = arith.divf %1256, %1257 : vector<32x1xf32>
    %cst_215 = arith.constant 9.99999974E-6 : f32
    %1259 = vector.broadcast %cst_215 : f32 to vector<32x1xf32>
    %1260 = arith.addf %1258, %1259 : vector<32x1xf32>
    %1261 = math.rsqrt %1260 : vector<32x1xf32>
    %1262 = vector.broadcast %1261 : vector<32x1xf32> to vector<32x32xf32>
    %1263 = arith.mulf %1253, %1262 : vector<32x32xf32>
    %1264 = vector.broadcast %1246 : vector<1x32xf32> to vector<32x32xf32>
    %1265 = arith.mulf %1263, %1264 : vector<32x32xf32>
    %1266 = vector.broadcast %1247 : vector<1x32xf32> to vector<32x32xf32>
    %1267 = arith.addf %1265, %1266 : vector<32x32xf32>
    %1268 = vector.broadcast %0 : vector<32x1xf32> to vector<32x32xf32>
    %1269 = arith.mulf %1267, %1268 : vector<32x32xf32>
    %cst_216 = arith.constant 0.000000e+00 : f32
    %1270 = vector.broadcast %cst_216 : f32 to vector<1x32xf32>
    %cst_217 = arith.constant 0.000000e+00 : f32
    %1271 = vector.broadcast %cst_217 : f32 to vector<1x32xf32>
    %1272 = tpu.concatenate %1270, %1269, %1271 in 0 : vector<1x32xf32>, vector<32x32xf32>, vector<1x32xf32> -> vector<34x32xf32>
    %1273 = vector.extract_strided_slice %1272 {offsets = [0, 0], sizes = [32, 32], strides = [1, 1]} : vector<34x32xf32> to vector<32x32xf32>
    %1274 = vector.extract_strided_slice %1 {offsets = [0, 0], sizes = [32, 1], strides = [1, 1]} : vector<32x3xf32> to vector<32x1xf32>
    %1275 = vector.broadcast %1274 : vector<32x1xf32> to vector<32x32xf32>
    %1276 = arith.mulf %1273, %1275 : vector<32x32xf32>
    %1277 = vector.extract_strided_slice %1272 {offsets = [1, 0], sizes = [32, 32], strides = [1, 1]} : vector<34x32xf32> to vector<32x32xf32>
    %1278 = vector.extract_strided_slice %1 {offsets = [0, 1], sizes = [32, 1], strides = [1, 1]} : vector<32x3xf32> to vector<32x1xf32>
    %1279 = vector.broadcast %1278 : vector<32x1xf32> to vector<32x32xf32>
    %1280 = arith.mulf %1277, %1279 : vector<32x32xf32>
    %1281 = vector.extract_strided_slice %1272 {offsets = [2, 0], sizes = [32, 32], strides = [1, 1]} : vector<34x32xf32> to vector<32x32xf32>
    %1282 = vector.extract_strided_slice %1 {offsets = [0, 2], sizes = [32, 1], strides = [1, 1]} : vector<32x3xf32> to vector<32x1xf32>
    %1283 = vector.broadcast %1282 : vector<32x1xf32> to vector<32x32xf32>
    %1284 = arith.mulf %1281, %1283 : vector<32x32xf32>
    %1285 = tpu.concatenate %1276, %1280, %1284 in 1 : vector<32x32xf32>, vector<32x32xf32>, vector<32x32xf32> -> vector<32x96xf32>
    %c1_218 = arith.constant 1 : index
    %c0_219 = arith.constant 0 : index
    %c0_220 = arith.constant 0 : index
    %1286 = vector.load %arg12[%c1_218, %c0_219, %c0_220] : memref<2x96x64xf32, #tpu.memory_space<vmem>>, vector<1x96x64xf32>
    %1287 = vector.shape_cast %1286 : vector<1x96x64xf32> to vector<96x64xf32>
    %cst_221 = arith.constant dense<0.000000e+00> : vector<32x64xf32>
    %1288 = tpu.matmul %1285, %1287, %cst_221 {dimension_numbers = #tpu.dot_dimension_numbers<[1], [0], [0], [1], [0, 0, 1, 1], [], []>} : vector<32x96xf32>, vector<96x64xf32>, vector<32x64xf32> -> vector<32x64xf32>
    %c1_222 = arith.constant 1 : index
    %c0_223 = arith.constant 0 : index
    %c0_224 = arith.constant 0 : index
    %1289 = vector.load %arg13[%c1_222, %c0_223, %c0_224] : memref<2x1x64xf32, #tpu.memory_space<vmem>>, vector<1x1x64xf32>
    %1290 = vector.shape_cast %1289 : vector<1x1x64xf32> to vector<1x64xf32>
    %1291 = vector.broadcast %1290 : vector<1x64xf32> to vector<32x64xf32>
    %1292 = arith.addf %1288, %1291 : vector<32x64xf32>
    %cst_225 = arith.constant 0.000000e+00 : f32
    %1293 = vector.broadcast %cst_225 : f32 to vector<32x64xf32>
    %1294 = arith.maximumf %1292, %1293 : vector<32x64xf32>
    %1295 = vector.broadcast %0 : vector<32x1xf32> to vector<32x64xf32>
    %1296 = arith.mulf %1294, %1295 : vector<32x64xf32>
    %cst_226 = arith.constant 0.000000e+00 : f32
    %1297 = vector.broadcast %cst_226 : f32 to vector<1x64xf32>
    %cst_227 = arith.constant 0.000000e+00 : f32
    %1298 = vector.broadcast %cst_227 : f32 to vector<1x64xf32>
    %1299 = tpu.concatenate %1297, %1296, %1298 in 0 : vector<1x64xf32>, vector<32x64xf32>, vector<1x64xf32> -> vector<34x64xf32>
    %1300 = vector.extract_strided_slice %1299 {offsets = [0, 0], sizes = [32, 64], strides = [1, 1]} : vector<34x64xf32> to vector<32x64xf32>
    %1301 = vector.extract_strided_slice %1 {offsets = [0, 0], sizes = [32, 1], strides = [1, 1]} : vector<32x3xf32> to vector<32x1xf32>
    %1302 = vector.broadcast %1301 : vector<32x1xf32> to vector<32x64xf32>
    %1303 = arith.mulf %1300, %1302 : vector<32x64xf32>
    %1304 = vector.extract_strided_slice %1299 {offsets = [1, 0], sizes = [32, 64], strides = [1, 1]} : vector<34x64xf32> to vector<32x64xf32>
    %1305 = vector.extract_strided_slice %1 {offsets = [0, 1], sizes = [32, 1], strides = [1, 1]} : vector<32x3xf32> to vector<32x1xf32>
    %1306 = vector.broadcast %1305 : vector<32x1xf32> to vector<32x64xf32>
    %1307 = arith.mulf %1304, %1306 : vector<32x64xf32>
    %1308 = vector.extract_strided_slice %1299 {offsets = [2, 0], sizes = [32, 64], strides = [1, 1]} : vector<34x64xf32> to vector<32x64xf32>
    %1309 = vector.extract_strided_slice %1 {offsets = [0, 2], sizes = [32, 1], strides = [1, 1]} : vector<32x3xf32> to vector<32x1xf32>
    %1310 = vector.broadcast %1309 : vector<32x1xf32> to vector<32x64xf32>
    %1311 = arith.mulf %1308, %1310 : vector<32x64xf32>
    %1312 = tpu.concatenate %1303, %1307, %1311 in 1 : vector<32x64xf32>, vector<32x64xf32>, vector<32x64xf32> -> vector<32x192xf32>
    %c1_228 = arith.constant 1 : index
    %c0_229 = arith.constant 0 : index
    %c0_230 = arith.constant 0 : index
    %1313 = vector.load %arg14[%c1_228, %c0_229, %c0_230] : memref<2x192x32xf32, #tpu.memory_space<vmem>>, vector<1x192x32xf32>
    %1314 = vector.shape_cast %1313 : vector<1x192x32xf32> to vector<192x32xf32>
    %cst_231 = arith.constant dense<0.000000e+00> : vector<32x32xf32>
    %1315 = tpu.matmul %1312, %1314, %cst_231 {dimension_numbers = #tpu.dot_dimension_numbers<[1], [0], [0], [1], [0, 0, 1, 1], [], []>} : vector<32x192xf32>, vector<192x32xf32>, vector<32x32xf32> -> vector<32x32xf32>
    %c1_232 = arith.constant 1 : index
    %c0_233 = arith.constant 0 : index
    %c0_234 = arith.constant 0 : index
    %1316 = vector.load %arg15[%c1_232, %c0_233, %c0_234] : memref<2x1x32xf32, #tpu.memory_space<vmem>>, vector<1x1x32xf32>
    %1317 = vector.shape_cast %1316 : vector<1x1x32xf32> to vector<1x32xf32>
    %1318 = vector.broadcast %1317 : vector<1x32xf32> to vector<32x32xf32>
    %1319 = arith.addf %1315, %1318 : vector<32x32xf32>
    %1320 = vector.broadcast %0 : vector<32x1xf32> to vector<32x32xf32>
    %1321 = arith.mulf %1319, %1320 : vector<32x32xf32>
    %1322 = arith.addf %1267, %1321 : vector<32x32xf32>
    %1323 = vector.extract_strided_slice %713 {offsets = [2, 0], sizes = [1, 32], strides = [1, 1]} : vector<4x32xf32> to vector<1x32xf32>
    %1324 = vector.extract_strided_slice %713 {offsets = [3, 0], sizes = [1, 32], strides = [1, 1]} : vector<4x32xf32> to vector<1x32xf32>
    %cst_235 = arith.constant dense<0.000000e+00> : vector<32xf32>
    %1325 = vector.multi_reduction <add>, %1322, %cst_235 [1] : vector<32x32xf32> to vector<32xf32>
    %1326 = vector.shape_cast %1325 : vector<32xf32> to vector<32x1xf32>
    %cst_236 = arith.constant 3.200000e+01 : f32
    %1327 = vector.broadcast %cst_236 : f32 to vector<32x1xf32>
    %1328 = arith.divf %1326, %1327 : vector<32x1xf32>
    %1329 = vector.broadcast %1328 : vector<32x1xf32> to vector<32x32xf32>
    %1330 = arith.subf %1322, %1329 : vector<32x32xf32>
    %1331 = arith.mulf %1330, %1330 : vector<32x32xf32>
    %cst_237 = arith.constant dense<0.000000e+00> : vector<32xf32>
    %1332 = vector.multi_reduction <add>, %1331, %cst_237 [1] : vector<32x32xf32> to vector<32xf32>
    %1333 = vector.shape_cast %1332 : vector<32xf32> to vector<32x1xf32>
    %cst_238 = arith.constant 3.200000e+01 : f32
    %1334 = vector.broadcast %cst_238 : f32 to vector<32x1xf32>
    %1335 = arith.divf %1333, %1334 : vector<32x1xf32>
    %cst_239 = arith.constant 9.99999974E-6 : f32
    %1336 = vector.broadcast %cst_239 : f32 to vector<32x1xf32>
    %1337 = arith.addf %1335, %1336 : vector<32x1xf32>
    %1338 = math.rsqrt %1337 : vector<32x1xf32>
    %1339 = vector.broadcast %1338 : vector<32x1xf32> to vector<32x32xf32>
    %1340 = arith.mulf %1330, %1339 : vector<32x32xf32>
    %1341 = vector.broadcast %1323 : vector<1x32xf32> to vector<32x32xf32>
    %1342 = arith.mulf %1340, %1341 : vector<32x32xf32>
    %1343 = vector.broadcast %1324 : vector<1x32xf32> to vector<32x32xf32>
    %1344 = arith.addf %1342, %1343 : vector<32x32xf32>
    %1345 = vector.broadcast %0 : vector<32x1xf32> to vector<32x32xf32>
    %1346 = arith.mulf %1344, %1345 : vector<32x32xf32>
    %c0_240 = arith.constant 0 : index
    %c0_241 = arith.constant 0 : index
    %1347 = vector.load %arg16[%c0_240, %c0_241] : memref<32x16xf32, #tpu.memory_space<vmem>>, vector<32x16xf32>
    %cst_242 = arith.constant dense<0.000000e+00> : vector<32x16xf32>
    %1348 = tpu.matmul %1346, %1347, %cst_242 {dimension_numbers = #tpu.dot_dimension_numbers<[1], [0], [0], [1], [0, 0, 1, 1], [], []>} : vector<32x32xf32>, vector<32x16xf32>, vector<32x16xf32> -> vector<32x16xf32>
    %c0_243 = arith.constant 0 : index
    %c0_244 = arith.constant 0 : index
    %1349 = vector.load %arg17[%c0_243, %c0_244] : memref<1x16xf32, #tpu.memory_space<vmem>>, vector<1x16xf32>
    %1350 = vector.broadcast %1349 : vector<1x16xf32> to vector<32x16xf32>
    %1351 = arith.addf %1348, %1350 : vector<32x16xf32>
    %1352 = vector.broadcast %0 : vector<32x1xf32> to vector<32x16xf32>
    %1353 = arith.mulf %1351, %1352 : vector<32x16xf32>
    %1354 = vector.extract_strided_slice %1353 {offsets = [0, 0], sizes = [32, 8], strides = [1, 1]} : vector<32x16xf32> to vector<32x8xf32>
    %1355 = vector.extract_strided_slice %1353 {offsets = [0, 8], sizes = [32, 8], strides = [1, 1]} : vector<32x16xf32> to vector<32x8xf32>
    %c0_245 = arith.constant 0 : index
    %c0_246 = arith.constant 0 : index
    %1356 = vector.load %arg5[%c0_245, %c0_246] : memref<32x8xf32, #tpu.memory_space<vmem>>, vector<32x8xf32>
    %1357 = math.exp %1355 : vector<32x8xf32>
    %1358 = arith.mulf %1356, %1357 : vector<32x8xf32>
    %cst_247 = arith.constant 1.000000e+00 : f32
    %1359 = vector.broadcast %cst_247 : f32 to vector<32x8xf32>
    %1360 = arith.mulf %1358, %1359 : vector<32x8xf32>
    %1361 = arith.addf %1354, %1360 : vector<32x8xf32>
    %1362 = vector.broadcast %0 : vector<32x1xf32> to vector<32x8xf32>
    %1363 = arith.mulf %1361, %1362 : vector<32x8xf32>
    %1364 = tpu.concatenate %1354, %1355, %1363 in 1 : vector<32x8xf32>, vector<32x8xf32>, vector<32x8xf32> -> vector<32x24xf32>
    %c0_248 = arith.constant 0 : index
    %c0_249 = arith.constant 0 : index
    %1365 = vector.load %arg18[%c0_248, %c0_249] : memref<32x24xf32, #tpu.memory_space<vmem>>, vector<32x24xf32>
    tpu.vector_store %arg18[%c0_248, %c0_249], %1364 {strides = array<i32>} : memref<32x24xf32, #tpu.memory_space<vmem>>, vector<32x24xf32>,
    return
  }
}

</mosaic_0001>

<bundles_post_ra>
// kernel: text_encoder_forward.1
= control target key start
LH: loop header
LB: loop body
LE: loop exit
PB: predicated region body
PF: predicated region fallthrough
CT: control target
= control target key end

     0   :  { %v8515_v0 = vmov 0   ;;  %v67_v37 = vlaneseq  ;;  %v5344_v49 = vmov 1.0   ;;  %vm356_vm8 = vcmask 130048   ;;  %s5354_s20 = smov 112   ;;  %s5356_s24 = smov 80   ;;  %s8493_s4 = inlined_call_operand.vmem [shape: s32[32,1], index: 4, kind: input, shape index: {}]   ;;  %s8494_s6 = inlined_call_operand.vmem [shape: f32[256,32], index: 6, kind: input, shape index: {}]   ;;  %s8495_s1 = inlined_call_operand.vmem [shape: f32[32,1], index: 1, kind: input, shape index: {}]   ;;  %s8496_s2 = inlined_call_operand.vmem [shape: f32[2,16], index: 2, kind: input, shape index: {}]   ;;  %s8497_s8 = inlined_call_operand.vmem [shape: f32[2,1,128], index: 8, kind: input, shape index: {}]   ;;  %s8498_s7 = inlined_call_operand.vmem [shape: f32[2,32,128], index: 7, kind: input, shape index: {}]   ;;  %s8499_s9 = inlined_call_operand.vmem [shape: f32[2,9,16], index: 9, kind: input, shape index: {}]   ;;  %s8500_s0 = inlined_call_operand.vmem [shape: f32[32,32], index: 0, kind: input, shape index: {}]   ;;  %s8501_s10 = inlined_call_operand.vmem [shape: f32[2,9,16], index: 10, kind: input, shape index: {}]   ;;  %s8502_s3 = inlined_call_operand.vmem [shape: f32[32,3], index: 3, kind: input, shape index: {}]   ;;  %s8503_s11 = inlined_call_operand.vmem [shape: f32[2,4,32], index: 11, kind: input, shape index: {}]   ;;  %s8504_s12 = inlined_call_operand.vmem [shape: f32[2,96,64], index: 12, kind: input, shape index: {}]   ;;  %s8505_s13 = inlined_call_operand.vmem [shape: f32[2,1,64], index: 13, kind: input, shape index: {}]   ;;  %s8506_s14 = inlined_call_operand.vmem [shape: f32[2,192,32], index: 14, kind: input, shape index: {}]   ;;  %s8507_s15 = inlined_call_operand.vmem [shape: f32[2,1,32], index: 15, kind: input, shape index: {}]   ;;  %s8508_s16 = inlined_call_operand.vmem [shape: f32[32,16], index: 16, kind: input, shape index: {}]   ;;  %s8509_s17 = inlined_call_operand.vmem [shape: f32[1,16], index: 17, kind: input, shape index: {}]   ;;  %s8510_s5 = inlined_call_operand.vmem [shape: f32[32,8], index: 5, kind: input, shape index: {}]   ;;  %s8511_s18 = inlined_call_operand.vmem [shape: f32[32,24], index: 18, kind: output, shape index: {}]  }
   0x1   :  { %8616 = sst [smem:[#allocation36_spill]] %s8493_s4  ;;  %5015 = vset.pattern.permute.xlu0 %v8515_v0  ;;  %5016 = vset.pattern.permute.xlu1 %v8515_v0  ;;  %v5588_v53 = vld [vmem:[%s8498_s7 + $0x18] sm:$0xff]  ;;  %v5594_v54 = vld [vmem:[%s8498_s7 + $0x10] sm:$0xff]  ;;  %v5602_v56 = vld [vmem:[%s8498_s7 + $0x8] sm:$0xff]  ;;  %vm312_vm9 = vcmask 261120   ;;  %s5357_s25 = smov 64  }
   0x2   :  { %8617 = sst [smem:[#allocation37_spill]] %s8494_s6  ;;  %5017 = vset.pattern.permute.xlu2 %v8515_v0  ;;  %v68_v40 = vand.u32 127, %v67_v37  ;;  %v233_v41 = vshrl.u32 %v67_v37, 7  ;;  %337 = vmatpush.msra.mxu2 %v5588_v53  ;;  %8622 = vst [vmem:[#allocation2_spill] sm:$0xff] %v5602_v56  ;;  %v5607_v57 = vld [vmem:[%s8498_s7] sm:$0xff]  ;;  %s5345_s6 = smov 96  }
   0x3   :  { %8618 = sst [smem:[#allocation38_spill]] %s8495_s1  ;;  %8623 = vst [vmem:[#allocation3_spill] sm:$0xff] %v5607_v57  ;;  %v5616_v59 = vld [vmem:[%s8499_s9 + $0x8] sm:$0x1]  ;;  %v110_v61 = vld [vmem:[%s8500_s0] sm:$0xff]  ;;  %s5358_s26 = smov 48  }
   0x4   :  { %s8619_s29 = sld [smem:[#allocation36_spill]]  ;;  %v234_v43 = vadd.s32 8, %v233_v41  ;;  %v5578_v44 = vsub.s32 %v68_v40, %v233_v41  ;;  %v69_v47 = vadd.s32 128, %v68_v40  ;;  %338 = vmatpush.msra.mxu2 %v5594_v54  ;;  %4991 = vmatpush.xpose.msk.msra.mxu3 %vm356_vm8, %v5616_v59 }
   0x5   :  { %s8620_s22 = sld [smem:[#allocation37_spill]] }
   0x6   :  { %s8621_s23 = sld [smem:[#allocation38_spill]]  ;;  %v5580_v45 = vsub.s32 %v68_v40, %v234_v43  ;;  %339 = vmatpush.msra.mxu2 %v5602_v56  ;;  %vm237_vm10 = vcmp.eq.s32.totalorder %v5578_v44, 4294967292  ;;  %vm243_vm11 = vcmp.eq.s32.totalorder %v5578_v44, 4294967293  ;;  %vm249_vm12 = vcmp.eq.s32.totalorder %v5578_v44, 4294967294 }
   0x7   :  { %vm255_vm13 = vcmp.eq.s32.totalorder %v5578_v44, 4294967295  ;;  %vm261_vm14 = vcmp.eq.s32.totalorder %v5578_v44, 0  ;;  %vm267_vm15 = vcmp.eq.s32.totalorder %v5578_v44, 1 }
   0x8   :  { %340 = vmatpush.msra.mxu2 %v5607_v57 }
   0xa   :  { %v70_v1 = vld [vmem:[%s8619_s29] sm:$0xff]  ;;  %v72_v2 = vld [vmem:[%s8619_s29 + $0x10] sm:$0xff]  ;;  %v73_v3 = vld [vmem:[%s8619_s29 + $0x18] sm:$0xff]  ;;  %4831 = vmatpush.xpose.msk.msrb.mxu2 %vm356_vm8, %v5616_v59 }
   0xb   :  { %75 = vperm.xlu0 %5015, %v70_v1   ;;  %81 = vperm.xlu1 %5016, %v72_v2   ;;  %v129_v4 = vld [vmem:[%s8620_s22 + $0x78] sm:$0xff]  ;;  %v128_v6 = vld [vmem:[%s8620_s22 + $0x70] sm:$0xff]  ;;  %v127_v8 = vld [vmem:[%s8620_s22 + $0x68] sm:$0xff] }
   0xc   :  { %146 = vmatpush.msra.mxu0 %v129_v4  ;;  %v145_v5 = vld [vmem:[%s8620_s22 + $0xf8] sm:$0xff]  ;;  %v144_v7 = vld [vmem:[%s8620_s22 + $0xf0] sm:$0xff]  ;;  %84 = vperm.xlu2 %5017, %v73_v3   ;;  %v143_v9 = vld [vmem:[%s8620_s22 + $0xe8] sm:$0xff] }
   0xd   :  { %175 = vmatpush.msra.mxu1 %v145_v5  ;;  %v126_v10 = vld [vmem:[%s8620_s22 + $0x60] sm:$0xff]  ;;  %v71_v11 = vld [vmem:[%s8619_s29 + $0x8] sm:$0xff]  ;;  %v125_v13 = vld [vmem:[%s8620_s22 + $0x58] sm:$0xff]  ;;  %s5360_s29 = smov 16  }
   0xe   :  { %147 = vmatpush.msra.mxu0 %v128_v6  ;;  %v142_v12 = vld [vmem:[%s8620_s22 + $0xe0] sm:$0xff]  ;;  %v141_v14 = vld [vmem:[%s8620_s22 + $0xd8] sm:$0xff]  ;;  %v124_v15 = vld [vmem:[%s8620_s22 + $0x50] sm:$0xff] }
   0xf   :  { %176 = vmatpush.msra.mxu1 %v144_v7  ;;  %v140_v16 = vld [vmem:[%s8620_s22 + $0xd0] sm:$0xff]  ;;  %v123_v17 = vld [vmem:[%s8620_s22 + $0x48] sm:$0xff]  ;;  %v59_v18 = vld [vmem:[%s8621_s23] sm:$0xff] }
  0x10   :  { %148 = vmatpush.msra.mxu0 %v127_v8  ;;  %v139_v19 = vld [vmem:[%s8620_s22 + $0xc8] sm:$0xff]  ;;  %v122_v20 = vld [vmem:[%s8620_s22 + $0x40] sm:$0xff]  ;;  %v61_v21 = vld [vmem:[%s8621_s23 + $0x10] sm:$0xff] }
  0x11   :  { %177 = vmatpush.msra.mxu1 %v143_v9  ;;  %v138_v22 = vld [vmem:[%s8620_s22 + $0xc0] sm:$0xff]  ;;  %v121_v23 = vld [vmem:[%s8620_s22 + $0x38] sm:$0xff]  ;;  %v120_v25 = vld [vmem:[%s8620_s22 + $0x30] sm:$0xff] }
  0x12   :  { %149 = vmatpush.msra.mxu0 %v126_v10  ;;  %v137_v24 = vld [vmem:[%s8620_s22 + $0xb8] sm:$0xff]  ;;  %v136_v26 = vld [vmem:[%s8620_s22 + $0xb0] sm:$0xff]  ;;  %v119_v27 = vld [vmem:[%s8620_s22 + $0x28] sm:$0xff] }
  0x13   :  { %78 = vperm.xlu0 %5015, %v71_v11   ;;  %178 = vmatpush.msra.mxu1 %v142_v12  ;;  %v135_v28 = vld [vmem:[%s8620_s22 + $0xa8] sm:$0xff]  ;;  %v118_v29 = vld [vmem:[%s8620_s22 + $0x20] sm:$0xff]  ;;  %v117_v31 = vld [vmem:[%s8620_s22 + $0x18] sm:$0xff] }
  0x14   :  { %150 = vmatpush.msra.mxu0 %v125_v13  ;;  %210 = vperm.xlu1 %5016, %v59_v18   ;;  %v134_v30 = vld [vmem:[%s8620_s22 + $0xa0] sm:$0xff]  ;;  %v133_v32 = vld [vmem:[%s8620_s22 + $0x98] sm:$0xff]  ;;  %v116_v33 = vld [vmem:[%s8620_s22 + $0x10] sm:$0xff] }
  0x15   :  { %179 = vmatpush.msra.mxu1 %v141_v14  ;;  %v132_v34 = vld [vmem:[%s8620_s22 + $0x90] sm:$0xff]  ;;  %v115_v35 = vld [vmem:[%s8620_s22 + $0x8] sm:$0xff]  ;;  %v114_v38 = vld [vmem:[%s8620_s22] sm:$0xff] }
  0x16   :  { %151 = vmatpush.msra.mxu0 %v124_v15  ;;  %v131_v36 = vld [vmem:[%s8620_s22 + $0x88] sm:$0xff]  ;;  %v130_v39 = vld [vmem:[%s8620_s22 + $0x80] sm:$0xff]  ;;  %v62_v42 = vld [vmem:[%s8621_s23 + $0x18] sm:$0xff] }
  0x17   :  { %180 = vmatpush.msra.mxu1 %v140_v16  ;;  %v60_v46 = vld [vmem:[%s8621_s23 + $0x8] sm:$0xff]  ;;  %v112_v12 = vld [vmem:[%s8500_s0 + $0x10] sm:$0xff] }
  0x18   :  { %152 = vmatpush.msra.mxu0 %v123_v17  ;;  %215 = vperm.xlu2 %5017, %v60_v46   ;;  %v111_v5 = vld [vmem:[%s8500_s0 + $0x8] sm:$0xff]  ;;  %v8523_v46 = vmov 5  }
  0x19   :  { %181 = vmatpush.msra.mxu1 %v139_v19  ;;  %v113_v19 = vld [vmem:[%s8500_s0 + $0x18] sm:$0xff] }
  0x1a   :  { %153 = vmatpush.msra.mxu0 %v122_v20 }
  0x1b   :  { %220 = vperm.xlu0 %5015, %v61_v21   ;;  %182 = vmatpush.msra.mxu1 %v138_v22 }
  0x1c   :  { %154 = vmatpush.msra.mxu0 %v121_v23  ;;  %225 = vperm.xlu1 %5016, %v62_v42  }
  0x1d   :  { %183 = vmatpush.msra.mxu1 %v137_v24 }
  0x1e   :  { %155 = vmatpush.msra.mxu0 %v120_v25  ;;  %v5669_v25 = vld [vmem:[%s8499_s9] sm:$0xff] }
  0x1f   :  { %184 = vmatpush.msra.mxu1 %v136_v26  ;;  %4832 = vmatpush.xpose.msk.msrb.mxu2 %vm356_vm8, %v5669_v25  ;;  %v5224_v26 = vld [vmem:[%s8497_s8] ss:$0 sm:$0xff] }
  0x20   :  { %156 = vmatpush.msra.mxu0 %v119_v27  ;;  %4992 = vmatpush.xpose.msk.msra.mxu3 %vm356_vm8, %v5669_v25 }
  0x21   :  { %185 = vmatpush.msra.mxu1 %v135_v28 }
  0x22   :  { %157 = vmatpush.msra.mxu0 %v118_v29 }
  0x23   :  { %186 = vmatpush.msra.mxu1 %v134_v30 }
  0x24   :  { %158 = vmatpush.msra.mxu0 %v117_v31 }
  0x25   :  { %187 = vmatpush.msra.mxu1 %v133_v32 }
  0x26   :  { %159 = vmatpush.msra.mxu0 %v116_v33 }
  0x27   :  { %188 = vmatpush.msra.mxu1 %v132_v34 }
  0x28   :  { %160 = vmatpush.msra.mxu0 %v115_v35 }
  0x29   :  { %189 = vmatpush.msra.mxu1 %v131_v36 }
  0x2a   :  { %161 = vmatpush.msra.mxu0 %v114_v38 }
  0x2b   :  { %190 = vmatpush.msra.mxu1 %v130_v39  ;;  %v8531_v39 = vmov 2  }
  0x2c   :  { %4851 = vmatpush.xpose.msk.msrb.mxu0 %vm356_vm8, %v5616_v59  ;;  %5019 = vset.pattern.permute.xlu0 %v8531_v39 }
  0x2d   :  { %4993 = vmatpush.xpose.msk.msrb.mxu1 %vm356_vm8, %v5616_v59 }
  0x30   :  { %4852 = vmatpush.xpose.msk.msrb.mxu0 %vm356_vm8, %v5669_v25 }
  0x31   :  { %4994 = vmatpush.xpose.msk.msrb.mxu1 %vm356_vm8, %v5669_v25 }
  0x66   :  { %v85_v52 = vpop.permute.xlu2 %84 }
  0x67   :  { %vm92_vm6 = vcmp.eq.s32.totalorder %v85_v52, %v68_v40  ;;  %vm93_vm7 = vcmp.eq.s32.totalorder %v85_v52, %v69_v47  ;;  %v8517_v52 = vmov 8  }
  0x72   :  { %v5639_v9 = vpop.permute.xlu2 %215 }
  0x73   :  { %8626 = vst [vmem:[#allocation6_spill] sm:$0xff] %v5639_v9 }
  0x7d   :  { %v76_v48 = vpop.permute.xlu0 %75  ;;  %v82_v51 = vpop.permute.xlu1 %81 }
  0x7e   :  { %vm86_vm0 = vcmp.eq.s32.totalorder %v76_v48, %v68_v40  ;;  %vm87_vm1 = vcmp.eq.s32.totalorder %v76_v48, %v69_v47  ;;  %vm90_vm4 = vcmp.eq.s32.totalorder %v82_v51, %v68_v40  ;;  %vm91_vm5 = vcmp.eq.s32.totalorder %v82_v51, %v69_v47 }
  0x7f   :  { %4801 = vmatmul.msk.f32.vlgmr.msra.gmra.mxu0 %vm86_vm0, %v5344_v49  ;;  %4805 = vmatmul.msk.f32.vlgmr.msra.gmra.mxu1 %vm87_vm1, %v5344_v49  ;;  %v8519_v48 = vmov 3   ;;  %v8525_v51 = vmov 7   ;;  %vm273_vm0 = vcmp.eq.s32.totalorder %v5578_v44, 2  ;;  %vm279_vm1 = vcmp.eq.s32.totalorder %v5578_v44, 3 }
  0x85   :  { %v79_v50 = vpop.permute.xlu0 %78 }
  0x86   :  { %vm88_vm2 = vcmp.eq.s32.totalorder %v79_v50, %v68_v40  ;;  %vm89_vm3 = vcmp.eq.s32.totalorder %v79_v50, %v69_v47  ;;  %v5629_v2 = vpop.permute.xlu1 %210  ;;  %v8521_v40 = vmov 1   ;;  %v8529_v47 = vmov 6  }
  0x87   :  { %4802 = vmatmul.msk.f32.gmra.mxu0 %vm88_vm2, %v5344_v49  ;;  %4806 = vmatmul.msk.f32.gmra.mxu1 %vm89_vm3, %v5344_v49  ;;  %8624 = vst [vmem:[#allocation4_spill] sm:$0xff] %v5629_v2  ;;  %vm285_vm2 = vcmp.eq.s32.totalorder %v5578_v44, 4 }
  0x88   :  { %5018 = vset.pattern.permute.xlu2 %v8521_v40 }
  0x8d   :  { %v5649_v16 = vpop.permute.xlu0 %220 }
  0x8e   :  { %8628 = vst [vmem:[#allocation8_spill] sm:$0xff] %v5649_v16  ;;  %v5659_v23 = vpop.permute.xlu1 %225 }
  0x8f   :  { %4803 = vmatmul.msk.f32.gmra.mxu0 %vm90_vm4, %v5344_v49  ;;  %4807 = vmatmul.msk.f32.gmra.mxu1 %vm91_vm5, %v5344_v49  ;;  %8630 = vst [vmem:[#allocation10_spill] sm:$0xff] %v5659_v23  ;;  %vm238_vm4 = vcmp.eq.s32.totalorder %v5580_v45, 4294967292  ;;  %vm244_vm5 = vcmp.eq.s32.totalorder %v5580_v45, 4294967293 }
  0x97   :  { %4804 = vmatmul.msk.f32.gmra.mxu0 %vm92_vm6, %v5344_v49  ;;  %4808 = vmatmul.msk.f32.gmra.mxu1 %vm93_vm7, %v5344_v49  ;;  %v8527_v49 = vmov 4   ;;  %vm250_vm6 = vcmp.eq.s32.totalorder %v5580_v45, 4294967294  ;;  %vm256_vm7 = vcmp.eq.s32.totalorder %v5580_v45, 4294967295 }
  0xfc   :  { %v163_v60 = vpop.f32.mrf.mxu0  ;;  %v192_v62 = vpop.f32.mrf.mxu1 }
  0xfd   :  { %v193_v63 = vadd.f32 %v192_v62, %v163_v60 }
  0xff   :  { %v204_v1 = vadd.f32 %v193_v63, %v110_v61  ;;  %v5355_v63 = vmov 0.0  }
 0x101   :  { %v5632_v3 = vmul.f32 %v5629_v2, %v204_v1  ;;  %v5743_v1 = vsel %vm237_vm10, 1.0, %v5355_v63  ;;  %vm262_vm10 = vcmp.eq.s32.totalorder %v5580_v45, 0 }
 0x102   :  { %8632 = vst [vmem:[#allocation12_spill] sm:$0xff] %v5743_v1  ;;  %v5821_v58 = vsel %vm262_vm10, 1.0, %v5355_v63 }
 0x103   :  { %8625 = vst [vmem:[#allocation5_spill] sm:$0xff] %v5632_v3  ;;  %4827 = vmatmul.msk.f32.vlgmr.msra.gmra.mxu2 %vm312_vm9, %v5632_v3 }
 0x104   :  { %v166_v4 = vpop.f32.mrf.mxu0  ;;  %v195_v6 = vpop.f32.mrf.mxu1 }
 0x105   :  { %v196_v7 = vadd.f32 %v195_v6, %v166_v4 }
 0x107   :  { %v205_v8 = vadd.f32 %v196_v7, %v111_v5 }
 0x109   :  { %v5642_v10 = vmul.f32 %v5639_v9, %v205_v8  ;;  %v5748_v8 = vsel %vm243_vm11, 1.0, %v5355_v63  ;;  %vm268_vm11 = vcmp.eq.s32.totalorder %v5580_v45, 1 }
 0x10a   :  { %8633 = vst [vmem:[#allocation13_spill] sm:$0xff] %v5748_v8 }
 0x10b   :  { %8627 = vst [vmem:[#allocation7_spill] sm:$0xff] %v5642_v10  ;;  %4828 = vmatmul.msk.f32.gmra.mxu2 %vm312_vm9, %v5642_v10 }
 0x10c   :  { %v169_v11 = vpop.f32.mrf.mxu0  ;;  %v198_v13 = vpop.f32.mrf.mxu1 }
 0x10d   :  { %v199_v14 = vadd.f32 %v198_v13, %v169_v11 }
 0x10f   :  { %v206_v15 = vadd.f32 %v199_v14, %v112_v12  ;;  %v5754_v14 = vsel %vm249_vm12, 1.0, %v5355_v63  ;;  %vm274_vm12 = vcmp.eq.s32.totalorder %v5580_v45, 2 }
 0x110   :  { %8634 = vst [vmem:[#allocation14_spill] sm:$0xff] %v5754_v14 }
 0x111   :  { %v5652_v17 = vmul.f32 %v5649_v16, %v206_v15  ;;  %v5757_v15 = vsel %vm255_vm13, 1.0, %v5355_v63  ;;  %vm280_vm13 = vcmp.eq.s32.totalorder %v5580_v45, 3 }
 0x113   :  { %8629 = vst [vmem:[#allocation9_spill] sm:$0xff] %v5652_v17  ;;  %4829 = vmatmul.msk.f32.gmra.mxu2 %vm312_vm9, %v5652_v17 }
 0x114   :  { %v172_v18 = vpop.f32.mrf.mxu0  ;;  %v201_v20 = vpop.f32.mrf.mxu1 }
 0x115   :  { %v202_v21 = vadd.f32 %v201_v20, %v172_v18 }
 0x117   :  { %v207_v22 = vadd.f32 %v202_v21, %v113_v19 }
 0x119   :  { %v5662_v24 = vmul.f32 %v5659_v23, %v207_v22  ;;  %v5764_v22 = vsel %vm261_vm14, 1.0, %v5355_v63  ;;  %vm286_vm14 = vcmp.eq.s32.totalorder %v5580_v45, 4 }
 0x11b   :  { %8631 = vst [vmem:[#allocation11_spill] sm:$0xff] %v5662_v24  ;;  %4830 = vmatmul.msk.f32.gmra.mxu2 %vm312_vm9, %v5662_v24 }
 0x186   :  { %v342_v27 = vpop.f32.mrf.mxu2 }
 0x187   :  { %v5682_v28 = vadd.f32 %v5224_v26, %v342_v27 }
 0x189   :  { %406 = vrot.lane.b32.xlu0 %v5682_v28, %s5345_s6  ;;  %v354_v29 = vmul.f32 0.25, %v5682_v28 }
 0x18b   :  { %4833 = vmatmul.msk.f32.vlgmr.msrb.gmra.mxu2 %vm356_vm8, %v354_v29 }
 0x18e   :  { %v345_v30 = vpop.f32.mrf.mxu2 }
 0x18f   :  { %v5688_v31 = vadd.f32 %v5224_v26, %v345_v30 }
 0x191   :  { %408 = vrot.lane.b32.xlu2 %v5688_v31, %s5345_s6  ;;  %v5693_v32 = vmul.f32 0.25, %v5688_v31 }
 0x193   :  { %4834 = vmatmul.msk.f32.vlgmr.msra.gmra.mxu3 %vm356_vm8, %v5693_v32 }
 0x196   :  { %v348_v33 = vpop.f32.mrf.mxu2 }
 0x197   :  { %v5697_v34 = vadd.f32 %v5224_v26, %v348_v33 }
 0x199   :  { %v5700_v35 = vmul.f32 0.25, %v5697_v34 }
 0x19b   :  { %4853 = vmatmul.msk.f32.vlgmr.msrb.gmra.mxu0 %vm356_vm8, %v5700_v35 }
 0x19e   :  { %v351_v36 = vpop.f32.mrf.mxu2 }
 0x19f   :  { %v5704_v37 = vadd.f32 %v5224_v26, %v351_v36 }
 0x1a1   :  { %v5707_v38 = vmul.f32 0.25, %v5704_v37 }
 0x1a3   :  { %4854 = vmatmul.msk.f32.vlgmr.msrb.gmra.mxu1 %vm356_vm8, %v5707_v38 }
 0x1eb   :  { %v409_v41 = vpop.permute.xlu2 %408 }
 0x1ec   :  { %4835 = vmatpush.xpose.msk.msrb.mxu3 %vm356_vm8, %v409_v41  ;;  %v5773_v41 = vsel %vm273_vm0, 1.0, %v5355_v63 }
 0x1fb   :  { %v407_v42 = vpop.permute.xlu0 %406 }
 0x1fc   :  { %4836 = vmatpush.xpose.msk.msrb.mxu3 %vm356_vm8, %v407_v42 }
 0x1ff   :  { %4837 = vmatmul.msk.f32.vlgmr.msrb.gmra.mxu3 %vm356_vm8, %v354_v29 }
 0x200   :  { %4841 = vmatpush.xpose.msk.msra.mxu3 %vm356_vm8, %v5616_v59 }
 0x204   :  { %4842 = vmatpush.xpose.msk.msra.mxu3 %vm356_vm8, %v5669_v25 }
 0x207   :  { %4838 = vmatmul.msk.f32.gmra.mxu3 %vm356_vm8, %v5693_v32 }
 0x20e   :  { %v386_v43 = vpop.f32.mrf.mxu2 }
 0x20f   :  { %450 = vperm.xlu0 %5019, %v386_v43   ;;  %438 = vperm.xlu2 %5018, %v386_v43  }
 0x210   :  { %394 = vperm.xlu1 %5016, %v386_v43  }
 0x216   :  { %v389_v50 = vpop.f32.mrf.mxu3 }
 0x217   :  { %5022 = vset.pattern.permute.xlu0 %v8523_v46  ;;  %5023 = vset.pattern.permute.xlu2 %v8529_v47 }
 0x218   :  { %5020 = vset.pattern.permute.xlu1 %v8519_v48  ;;  %486 = vperm.xlu0 %5022, %v386_v43  }
 0x219   :  { %498 = vperm.xlu2 %5023, %v386_v43   ;;  %462 = vperm.xlu1 %5020, %v386_v43  }
 0x220   :  { %5030 = vset.pattern.permute.xlu0 %v8527_v49 }
 0x221   :  { %5024 = vset.pattern.permute.xlu2 %v8525_v51  ;;  %5021 = vset.pattern.permute.xlu1 %v8527_v49 }
 0x222   :  { %478 = vperm.xlu0 %5030, %v389_v50   ;;  %510 = vperm.xlu2 %5024, %v386_v43  }
 0x223   :  { %474 = vperm.xlu1 %5021, %v386_v43  }
 0x22a   :  { %5034 = vset.pattern.permute.xlu0 %v8517_v52  ;;  %5026 = vset.pattern.permute.xlu2 %v8515_v0 }
 0x22b   :  { %5025 = vset.pattern.permute.xlu1 %v8517_v52  ;;  %526 = vperm.xlu0 %5034, %v389_v50  }
 0x22c   :  { %399 = vperm.xlu2 %5026, %v389_v50   ;;  %522 = vperm.xlu1 %5025, %v386_v43  }
 0x233   :  { %735 = vrot.lane.b32.xlu0 %v354_v29, %s5354_s20  ;;  %v5768_v29 = vsel %vm267_vm15, 1.0, %v5355_v63 }
 0x234   :  { %5027 = vset.pattern.permute.xlu2 %v8521_v40  ;;  %5028 = vset.pattern.permute.xlu1 %v8531_v39 }
 0x235   :  { %442 = vperm.xlu2 %5027, %v389_v50   ;;  %454 = vperm.xlu1 %5028, %v389_v50  }
 0x236   :  { %5044 = vset.pattern.permute.xlu0 %v8515_v0 }
 0x23d   :  { %5031 = vset.pattern.permute.xlu2 %v8523_v46  ;;  %5029 = vset.pattern.permute.xlu1 %v8519_v48 }
 0x23e   :  { %490 = vperm.xlu2 %5031, %v389_v50   ;;  %466 = vperm.xlu1 %5029, %v389_v50  }
 0x246   :  { %5033 = vset.pattern.permute.xlu2 %v8525_v51  ;;  %5032 = vset.pattern.permute.xlu1 %v8529_v47 }
 0x247   :  { %514 = vperm.xlu2 %5033, %v389_v50   ;;  %502 = vperm.xlu1 %5032, %v389_v50   ;;  %v5777_v50 = vsel %vm279_vm1, 1.0, %v5355_v63 }
 0x24f   :  { %5040 = vset.pattern.permute.xlu2 %v8515_v0  ;;  %5041 = vset.pattern.permute.xlu1 %v8521_v40 }
 0x269   :  { %v439_v60 = vpop.permute.xlu2 %438 }
 0x26a   :  { %v445_v13 = vmul.f32 %v5748_v8, %v439_v60 }
 0x273   :  { %v499_v4 = vpop.permute.xlu2 %498 }
 0x274   :  { %v505_v60 = vmul.f32 %v5773_v41, %v499_v4 }
 0x27c   :  { %v511_v19 = vpop.permute.xlu2 %510 }
 0x281   :  { %v451_v61 = vpop.permute.xlu0 %450 }
 0x282   :  { %v395_v62 = vpop.permute.xlu1 %394  ;;  %v431_v6 = vpop.f32.mrf.mxu3  ;;  %v457_v20 = vmul.f32 %v5754_v14, %v451_v61 }
 0x283   :  { %v402_v5 = vmul.f32 %v5743_v1, %v395_v62  ;;  %v5225_v62 = vld [vmem:[%s8496_s2] ss:$0 sm:$0xff] }
 0x284   :  { %v5845_v0 = vmul.f32 %v5225_v62, %v5639_v9 }
 0x285   :  { %v432_v12 = vadd.f32 %v431_v6, %v402_v5  ;;  %v517_v6 = vmul.f32 %v5777_v50, %v511_v19 }
 0x286   :  { %v400_v5 = vpop.permute.xlu2 %399  ;;  %8636 = vst [vmem:[#allocation16_spill] sm:$0xff] %v5845_v0  ;;  %vm534_vm15 = vcmp.gt.f32.partialorder %v5845_v0, 0.0 }
 0x287   :  { %v447_v18 = vadd.f32 %v445_v13, %v432_v12 }
 0x289   :  { %v459_v26 = vadd.f32 %v457_v20, %v447_v18  ;;  %v5789_v18 = vmul.f32 %v5225_v62, %v5629_v2 }
 0x28a   :  { %v487_v7 = vpop.permute.xlu0 %486 }
 0x28b   :  { %v463_v11 = vpop.permute.xlu1 %462  ;;  %v493_v42 = vmul.f32 %v5768_v29, %v487_v7  ;;  %8635 = vst [vmem:[#allocation15_spill] sm:$0xff] %v5789_v18  ;;  %vm533_vm3 = vcmp.gt.f32.partialorder %v5789_v18, 0.0 }
 0x28c   :  { %v469_v21 = vmul.f32 %v5757_v15, %v463_v11  ;;  %v5786_v11 = vsel %vm285_vm2, 1.0, %v5355_v63 }
 0x28e   :  { %v471_v33 = vadd.f32 %v469_v21, %v459_v26 }
 0x28f   :  { %v443_v26 = vpop.permute.xlu2 %442 }
 0x294   :  { %v479_v27 = vpop.permute.xlu0 %478 }
 0x295   :  { %v475_v30 = vpop.permute.xlu1 %474 }
 0x296   :  { %v481_v36 = vmul.f32 %v5764_v22, %v475_v30 }
 0x298   :  { %v483_v43 = vadd.f32 %v481_v36, %v471_v33  ;;  %v5804_v36 = vsel %vm238_vm4, 1.0, %v5355_v63 }
 0x29a   :  { %v495_v61 = vadd.f32 %v493_v42, %v483_v43  ;;  %v5807_v42 = vsel %vm244_vm5, 1.0, %v5355_v63  ;;  %v434_v43 = vpop.f32.mrf.mxu3 }
 0x29c   :  { %v507_v7 = vadd.f32 %v505_v60, %v495_v61  ;;  %v5810_v60 = vsel %vm250_vm6, 1.0, %v5355_v63  ;;  %v403_v61 = vmul.f32 %v5804_v36, %v400_v5 }
 0x29d   :  { %v527_v12 = vpop.permute.xlu0 %526 }
 0x29e   :  { %v523_v13 = vpop.permute.xlu1 %522  ;;  %v519_v44 = vadd.f32 %v517_v6, %v507_v7  ;;  %v446_v6 = vmul.f32 %v5807_v42, %v443_v26  ;;  %v435_v7 = vadd.f32 %v434_v43, %v403_v61  ;;  %v482_v43 = vmul.f32 %v5821_v58, %v479_v27 }
 0x29f   :  { %v529_v4 = vmul.f32 %v5786_v11, %v523_v13 }
 0x2a1   :  { %v531_v20 = vadd.f32 %v529_v4, %v519_v44  ;;  %v5818_v44 = vsel %vm256_vm7, 1.0, %v5355_v63  ;;  %v448_v4 = vadd.f32 %v446_v6, %v435_v7  ;;  %v5832_v6 = vsel %vm274_vm12, 1.0, %v5355_v63 }
 0x2a3   :  { %v535_v21 = vsel %vm533_vm3, %v531_v20, -10000.0  ;;  %v491_v20 = vpop.permute.xlu2 %490 }
 0x2a4   :  { %v537_v19 = vsel %vm356_vm8, %v535_v21, -inf }
 0x2a5   :  { %538 = vmax.xlane.f32.xlu1 %v537_v19  ;;  %v5798_v30 = vpop.permute.xlu0 %735 }
 0x2a6   :  { %4843 = vmatmul.msk.f32.vlgmr.msra.gmra.mxu3 %vm356_vm8, %v5798_v30 }
 0x2a7   :  { %v455_v33 = vpop.permute.xlu1 %454 }
 0x2a8   :  { %v458_v13 = vmul.f32 %v5810_v60, %v455_v33  ;;  %v5828_v33 = vsel %vm268_vm11, 1.0, %v5355_v63 }
 0x2a9   :  { %v494_v7 = vmul.f32 %v5828_v33, %v491_v20 }
 0x2aa   :  { %v460_v55 = vadd.f32 %v458_v13, %v448_v4  ;;  %v5837_v13 = vsel %vm280_vm13, 1.0, %v5355_v63 }
 0x2b0   :  { %v467_v19 = vpop.permute.xlu1 %466 }
 0x2b1   :  { %v470_v5 = vmul.f32 %v5818_v44, %v467_v19 }
 0x2b3   :  { %v472_v26 = vadd.f32 %v470_v5, %v460_v55  ;;  %v515_v55 = vpop.permute.xlu2 %514  ;;  %v5841_v5 = vsel %vm286_vm14, 1.0, %v5355_v63 }
 0x2b4   :  { %v530_v20 = vmul.f32 %v5841_v5, %v527_v12 }
 0x2b5   :  { %v484_v61 = vadd.f32 %v482_v43, %v472_v26  ;;  %v518_v26 = vmul.f32 %v5837_v13, %v515_v55 }
 0x2b7   :  { %v496_v4 = vadd.f32 %v494_v7, %v484_v61 }
 0x2b9   :  { %v503_v27 = vpop.permute.xlu1 %502 }
 0x2ba   :  { %v506_v19 = vmul.f32 %v5832_v6, %v503_v27 }
 0x2bc   :  { %v508_v43 = vadd.f32 %v506_v19, %v496_v4 }
 0x2be   :  { %v520_v45 = vadd.f32 %v518_v26, %v508_v43 }
 0x2c0   :  { %v532_v52 = vadd.f32 %v530_v20, %v520_v45  ;;  %v5882_v20 = vpack.i.bf16 %v5682_v28, %v5688_v31 }
 0x2c2   :  { %v536_v61 = vsel %vm534_vm15, %v532_v52, -10000.0 }
 0x2c3   :  { %v540_v7 = vsel %vm356_vm8, %v536_v61, -inf }
 0x2c4   :  { %541 = vmax.xlane.f32.xlu2 %v540_v7 }
 0x2dc   :  { %737 = vrot.lane.b32.xlu2 %v5693_v32, %s5354_s20 }
 0x2e4   :  { %780 = vrot.lane.b32.xlu2 %v5688_v31, %s5356_s24 }
 0x318   :  { %v539_v63 = vpop.xlane.xlu1 %538 }
 0x319   :  { %v543_v62 = vsub.f32 %v535_v21, %v539_v63 }
 0x31b   :  { %v545_v12 = vmul.f32 1.442695, %v543_v62 }
 0x31d   :  { %5235 = vpow2.f32 %v545_v12 }
 0x323   :  { %v5856_v55 = vpop.eup %5235 }
 0x324   :  { %v549_v27 = vsel %vm356_vm8, %v5856_v55, 0.0 }
 0x325   :  { %550 = vadd.xlane.f32.xlu0 %v549_v27 }
 0x329   :  { %v5860_v52 = vpop.f32.mrf.mxu3 }
 0x32a   :  { %768 = vperm.xlu2 %5040, %v5860_v52  }
 0x332   :  { %5042 = vset.pattern.permute.xlu2 %v8531_v39 }
 0x333   :  { %822 = vperm.xlu2 %5042, %v5860_v52  }
 0x337   :  { %v542_v32 = vpop.xlane.xlu2 %541 }
 0x338   :  { %v544_v4 = vsub.f32 %v536_v61, %v542_v32 }
 0x339   :  { %778 = vrot.lane.b32.xlu0 %v5682_v28, %s5356_s24 }
 0x33a   :  { %v547_v21 = vmul.f32 1.442695, %v544_v4 }
 0x33b   :  { %5045 = vset.pattern.permute.xlu2 %v8527_v49 }
 0x33c   :  { %5237 = vpow2.f32 %v547_v21  ;;  %846 = vperm.xlu2 %5045, %v5860_v52  }
 0x33f   :  { %v5869_v19 = vpop.permute.xlu2 %737 }
 0x340   :  { %4844 = vmatmul.msk.f32.gmra.mxu3 %vm356_vm8, %v5869_v19 }
 0x342   :  { %v5873_v26 = vpop.eup %5237 }
 0x343   :  { %v552_v43 = vsel %vm356_vm8, %v5873_v26, 0.0 }
 0x344   :  { %553 = vadd.xlane.f32.xlu1 %v552_v43  ;;  %5047 = vset.pattern.permute.xlu2 %v8523_v46 }
 0x345   :  { %858 = vperm.xlu2 %5047, %v5860_v52  }
 0x34d   :  { %5050 = vset.pattern.permute.xlu2 %v8519_v48 }
 0x35d   :  { %5036 = vrot.lane.b32.xlu1 %v5882_v20, %s5357_s25 }
 0x365   :  { %810 = vperm.xlu1 %5041, %v5860_v52  }
 0x36d   :  { %5043 = vset.pattern.permute.xlu1 %v8519_v48 }
 0x36e   :  { %834 = vperm.xlu1 %5043, %v5860_v52  }
 0x376   :  { %5046 = vset.pattern.permute.xlu1 %v8521_v40 }
 0x398   :  { %v551_v45 = vpop.xlane.xlu0 %550 }
 0x399   :  { %5239 = vrcp.f32 %v551_v45  ;;  %v566_v21 = vand.u32 2147483648, %v551_v45  ;;  %vm560_vm1 = vweird.f32 %v551_v45  ;;  %v564_v43 = vand.u32 2147483647, %v551_v45 }
 0x39b   :  { %v567_v40 = vor.u32 1.1754944e-38, %v566_v21  ;;  %vm565_vm4 = vcmp.eq.f32.partialorder %v564_v43, 8.507059e+37  ;;  %v8638_v21 = vmov 5  }
 0x39f   :  { %v5240_v7 = vpop.eup %5239 }
 0x3a0   :  { %v556_v63 = vmul.f32 %v5240_v7, %v551_v45  ;;  %vm561_vm0 = vweird.f32 %v5240_v7 }
 0x3a1   :  { %vm562_vm2 = vmor %vm560_vm1, %vm561_vm0 }
 0x3a2   :  { %v557_v28 = vsub.f32 1.0, %v556_v63 }
 0x3a4   :  { %v558_v12 = vmul.f32 %v5240_v7, %v557_v28 }
 0x3a6   :  { %v559_v32 = vadd.f32 %v5240_v7, %v558_v12 }
 0x3a8   :  { %v563_v48 = vsel %vm562_vm2, %v5240_v7, %v559_v32 }
 0x3a9   :  { %v568_v12 = vsel %vm565_vm4, %v567_v40, %v563_v48  ;;  %v781_v40 = vpop.permute.xlu2 %780 }
 0x3b7   :  { %v554_v61 = vpop.xlane.xlu1 %553 }
 0x3b8   :  { %5241 = vrcp.f32 %v554_v61  ;;  %v581_v45 = vand.u32 2147483648, %v554_v61  ;;  %vm575_vm6 = vweird.f32 %v554_v61  ;;  %v579_v7 = vand.u32 2147483647, %v554_v61 }
 0x3ba   :  { %v582_v48 = vor.u32 1.1754944e-38, %v581_v45  ;;  %vm580_vm10 = vcmp.eq.f32.partialorder %v579_v7, 8.507059e+37 }
 0x3be   :  { %v5242_v31 = vpop.eup %5241 }
 0x3bf   :  { %v571_v27 = vmul.f32 %v5242_v31, %v554_v61  ;;  %vm576_vm5 = vweird.f32 %v5242_v31  ;;  %v8639_v61 = vmov 8  }
 0x3c0   :  { %vm577_vm7 = vmor %vm575_vm6, %vm576_vm5 }
 0x3c1   :  { %v572_v4 = vsub.f32 1.0, %v571_v27 }
 0x3c3   :  { %v763_v62 = vpop.f32.mrf.mxu3  ;;  %v573_v63 = vmul.f32 %v5242_v31, %v572_v4  ;;  %v8637_v4 = vmov 7  }
 0x3c4   :  { %838 = vperm.xlu2 %5050, %v763_v62   ;;  %814 = vperm.xlu1 %5046, %v763_v62  }
 0x3c5   :  { %773 = vperm.xlu0 %5044, %v763_v62   ;;  %v574_v46 = vadd.f32 %v5242_v31, %v573_v63 }
 0x3c7   :  { %v578_v32 = vsel %vm577_vm7, %v5242_v31, %v574_v46  ;;  %v779_v46 = vpop.permute.xlu0 %778 }
 0x3cc   :  { %5052 = vset.pattern.permute.xlu2 %v8527_v49  ;;  %5048 = vset.pattern.permute.xlu1 %v8531_v39  ;;  %v5895_v49 = vmul.f32 %v5856_v55, %v568_v12  ;;  %v583_v55 = vsel %vm580_vm10, %v582_v48, %v578_v32 }
 0x3cd   :  { %5049 = vset.pattern.permute.xlu0 %v8529_v47  ;;  %850 = vperm.xlu2 %5052, %v763_v62  }
 0x3ce   :  { %826 = vperm.xlu1 %5048, %v763_v62   ;;  %870 = vperm.xlu0 %5049, %v5860_v52  }
 0x3cf   :  { %v5037_v28 = vpop.permute.xlu1 %5036 }
 0x3d0   :  { %v5038_v27 = vunpack.i.l.bf16 %v5037_v28  ;;  %v5039_v51 = vunpack.i.h.bf16 %v5037_v28 }
 0x3d2   :  { %622 = vmatpush.msra.mxu2 %v5038_v27 }
 0x3d4   :  { %623 = vmatpush.msra.mxu2 %v5039_v51  ;;  %v5905_v51 = vmul.f32 %v5873_v26, %v583_v55  ;;  %v8640_v26 = vmov 0  }
 0x3d5   :  { %5055 = vset.pattern.permute.xlu2 %v8529_v47  ;;  %4839 = vmatmul.msk.f32.vlgmr.msra.gmra.mxu2 %vm356_vm8, %v5895_v49 }
 0x3d6   :  { %5051 = vset.pattern.permute.xlu1 %v8637_v4  ;;  %5054 = vset.pattern.permute.xlu0 %v8638_v21 }
 0x3d7   :  { %4845 = vmatpush.xpose.msk.msrb.mxu2 %vm356_vm8, %v781_v40  ;;  %874 = vperm.xlu2 %5055, %v763_v62   ;;  %v811_v31 = vpop.permute.xlu1 %810 }
 0x3d8   :  { %882 = vperm.xlu1 %5051, %v5860_v52   ;;  %862 = vperm.xlu0 %5054, %v763_v62  }
 0x3db   :  { %4846 = vmatpush.xpose.msk.msrb.mxu2 %vm356_vm8, %v779_v46  ;;  %v817_v46 = vmul.f32 %v5748_v8, %v811_v31 }
 0x3dd   :  { %4840 = vmatmul.msk.f32.gmra.mxu2 %vm356_vm8, %v5905_v51 }
 0x3df   :  { %5057 = vset.pattern.permute.xlu2 %v8639_v61 }
 0x3e0   :  { %5053 = vset.pattern.permute.xlu1 %v8639_v61  ;;  %898 = vperm.xlu2 %5057, %v763_v62  }
 0x3e1   :  { %894 = vperm.xlu1 %5053, %v5860_v52   ;;  %5070 = vset.pattern.permute.xlu0 %v8529_v47  ;;  %v769_v52 = vpop.permute.xlu2 %768 }
 0x3e2   :  { %v776_v40 = vmul.f32 %v5743_v1, %v769_v52 }
 0x3e5   :  { %4847 = vmatmul.msk.f32.vlgmr.msrb.gmra.mxu2 %vm356_vm8, %v5798_v30  ;;  %v835_v30 = vpop.permute.xlu1 %834 }
 0x3e6   :  { %v841_v24 = vmul.f32 %v5757_v15, %v835_v30 }
 0x3e8   :  { %1471 = vrot.lane.b32.xlu2 %v5700_v35, %s5354_s20 }
 0x3e9   :  { %5056 = vset.pattern.permute.xlu1 %v8637_v4  ;;  %5063 = vset.pattern.permute.xlu2 %v8640_v26  ;;  %v823_v43 = vpop.permute.xlu2 %822 }
 0x3ea   :  { %886 = vperm.xlu1 %5056, %v763_v62  }
 0x3ed   :  { %4848 = vmatmul.msk.f32.gmra.mxu2 %vm356_vm8, %v5869_v19 }
 0x3f0   :  { %1514 = vrot.lane.b32.xlu2 %v5697_v34, %s5356_s24 }
 0x3f1   :  { %v847_v63 = vpop.permute.xlu2 %846 }
 0x3f2   :  { %5064 = vset.pattern.permute.xlu1 %v8531_v39  ;;  %v829_v39 = vmul.f32 %v5754_v14, %v823_v43  ;;  %v853_v10 = vmul.f32 %v5764_v22, %v847_v63 }
 0x3f9   :  { %v859_v12 = vpop.permute.xlu2 %858 }
 0x3fa   :  { %v865_v52 = vmul.f32 %v5768_v29, %v859_v12 }
 0x41e   :  { %v839_v7 = vpop.permute.xlu2 %838 }
 0x427   :  { %v851_v48 = vpop.permute.xlu2 %850 }
 0x428   :  { %v854_v12 = vmul.f32 %v5821_v58, %v851_v48 }
 0x436   :  { %v815_v28 = vpop.permute.xlu1 %814 }
 0x437   :  { %v774_v32 = vpop.permute.xlu0 %773  ;;  %v818_v57 = vmul.f32 %v5807_v42, %v815_v28 }
 0x438   :  { %v777_v3 = vmul.f32 %v5804_v36, %v774_v32 }
 0x440   :  { %v827_v45 = vpop.permute.xlu1 %826  ;;  %v871_v2 = vpop.permute.xlu0 %870 }
 0x441   :  { %v830_v43 = vmul.f32 %v5810_v60, %v827_v45 }
 0x44a   :  { %v883_v19 = vpop.permute.xlu1 %882  ;;  %v863_v32 = vpop.permute.xlu0 %862 }
 0x44b   :  { %v889_v63 = vmul.f32 %v5777_v50, %v883_v19 }
 0x458   :  { %v5925_v27 = vpop.f32.mrf.mxu2 }
 0x459   :  { %8641 = vst [vmem:[#allocation17_spill] sm:$0xff] %v5925_v27  ;;  %v895_v27 = vpop.permute.xlu1 %894 }
 0x45a   :  { %v901_v28 = vmul.f32 %v5786_v11, %v895_v27 }
 0x460   :  { %v5927_v62 = vpop.f32.mrf.mxu2 }
 0x461   :  { %8642 = vst [vmem:[#allocation18_spill] sm:$0xff] %v5927_v62  ;;  %v887_v45 = vpop.permute.xlu1 %886 }
 0x462   :  { %v890_v48 = vmul.f32 %v5837_v13, %v887_v45 }
 0x468   :  { %v803_v55 = vpop.f32.mrf.mxu2 }
 0x469   :  { %v804_v47 = vadd.f32 %v803_v55, %v776_v40  ;;  %v875_v55 = vpop.permute.xlu2 %874 }
 0x46b   :  { %v819_v9 = vadd.f32 %v817_v46, %v804_v47  ;;  %v877_v47 = vmul.f32 %v5773_v41, %v871_v2 }
 0x46d   :  { %v831_v17 = vadd.f32 %v829_v39, %v819_v9  ;;  %v842_v39 = vmul.f32 %v5818_v44, %v839_v7 }
 0x46f   :  { %v843_v62 = vadd.f32 %v841_v24, %v831_v17 }
 0x470   :  { %v806_v56 = vpop.f32.mrf.mxu2 }
 0x471   :  { %v855_v31 = vadd.f32 %v853_v10, %v843_v62  ;;  %v807_v40 = vadd.f32 %v806_v56, %v777_v3  ;;  %v866_v3 = vmul.f32 %v5828_v33, %v863_v32  ;;  %v899_v46 = vpop.permute.xlu2 %898 }
 0x473   :  { %v820_v30 = vadd.f32 %v818_v57, %v807_v40  ;;  %v867_v9 = vadd.f32 %v865_v52, %v855_v31  ;;  %v878_v57 = vmul.f32 %v5832_v6, %v875_v55  ;;  %v902_v31 = vmul.f32 %v5841_v5, %v899_v46 }
 0x475   :  { %v832_v17 = vadd.f32 %v830_v43, %v820_v30  ;;  %v879_v24 = vadd.f32 %v877_v47, %v867_v9  ;;  %v5961_v30 = vpop.f32.mrf.mxu0  ;;  %v5968_v9 = vpop.f32.mrf.mxu1 }
 0x477   :  { %v844_v10 = vadd.f32 %v842_v39, %v832_v17  ;;  %v891_v56 = vadd.f32 %v889_v63, %v879_v24 }
 0x479   :  { %v856_v2 = vadd.f32 %v854_v12, %v844_v10  ;;  %v903_v62 = vadd.f32 %v901_v28, %v891_v56  ;;  %v5983_v45 = vpop.permute.xlu2 %1471 }
 0x47b   :  { %v905_v7 = vsel %vm533_vm3, %v903_v62, -10000.0  ;;  %v868_v19 = vadd.f32 %v866_v3, %v856_v2 }
 0x47c   :  { %v907_v52 = vsel %vm356_vm8, %v905_v7, -inf }
 0x47d   :  { %908 = vmax.xlane.f32.xlu1 %v907_v52  ;;  %v880_v27 = vadd.f32 %v878_v57, %v868_v19 }
 0x47f   :  { %v892_v40 = vadd.f32 %v890_v48, %v880_v27  ;;  %v8646_v27 = vmov 2  }
 0x481   :  { %v904_v47 = vadd.f32 %v902_v31, %v892_v40  ;;  %v1515_v46 = vpop.permute.xlu2 %1514 }
 0x483   :  { %v906_v43 = vsel %vm534_vm15, %v904_v47, -10000.0 }
 0x484   :  { %v910_v55 = vsel %vm356_vm8, %v906_v43, -inf }
 0x485   :  { %911 = vmax.xlane.f32.xlu0 %v910_v55 }
 0x496   :  { %1473 = vrot.lane.b32.xlu1 %v5707_v38, %s5354_s20 }
 0x499   :  { %5059 = vrot.lane.b32.xlu0 %v5882_v20, %s5358_s26  ;;  %v8643_v20 = vmov 1  }
 0x49e   :  { %1151 = vrot.lane.b32.xlu1 %v5697_v34, %s5345_s6 }
 0x4a1   :  { %1516 = vrot.lane.b32.xlu0 %v5704_v37, %s5356_s24 }
 0x4a6   :  { %1195 = vperm.xlu1 %5064, %v5961_v30  }
 0x4a9   :  { %1153 = vrot.lane.b32.xlu0 %v5704_v37, %s5345_s6 }
 0x4ae   :  { %5066 = vset.pattern.permute.xlu1 %v8640_v26 }
 0x4b1   :  { %1243 = vperm.xlu0 %5070, %v5961_v30  }
 0x4b9   :  { %5075 = vset.pattern.permute.xlu0 %v8638_v21 }
 0x4ba   :  { %1235 = vperm.xlu0 %5075, %v5968_v9  }
 0x4c2   :  { %5076 = vset.pattern.permute.xlu0 %v8643_v20 }
 0x4c3   :  { %1183 = vperm.xlu0 %5076, %v5961_v30  }
 0x4cb   :  { %1187 = vperm.xlu0 %5076, %v5968_v9  }
 0x4f0   :  { %v909_v39 = vpop.xlane.xlu1 %908 }
 0x4f1   :  { %v913_v63 = vsub.f32 %v905_v7, %v909_v39 }
 0x4f3   :  { %v915_v17 = vmul.f32 1.442695, %v913_v63 }
 0x4f5   :  { %5243 = vpow2.f32 %v915_v17 }
 0x4f8   :  { %v912_v24 = vpop.xlane.xlu0 %911 }
 0x4f9   :  { %v914_v32 = vsub.f32 %v906_v43, %v912_v24 }
 0x4fb   :  { %v5975_v12 = vpop.eup %5243  ;;  %v917_v28 = vmul.f32 1.442695, %v914_v32 }
 0x4fc   :  { %v919_v10 = vsel %vm356_vm8, %v5975_v12, 0.0 }
 0x4fd   :  { %5245 = vpow2.f32 %v917_v28  ;;  %920 = vadd.xlane.f32.xlu2 %v919_v10 }
 0x503   :  { %v5979_v56 = vpop.eup %5245 }
 0x504   :  { %v922_v3 = vsel %vm356_vm8, %v5979_v56, 0.0 }
 0x505   :  { %923 = vadd.xlane.f32.xlu1 %v922_v3 }
 0x508   :  { %v5988_v19 = vpop.permute.xlu1 %1473 }
 0x50b   :  { %v5060_v2 = vpop.permute.xlu0 %5059 }
 0x50c   :  { %v5061_v62 = vunpack.i.l.bf16 %v5060_v2  ;;  %v5062_v57 = vunpack.i.h.bf16 %v5060_v2 }
 0x50e   :  { %991 = vmatpush.msrb.mxu3 %v5061_v62 }
 0x510   :  { %992 = vmatpush.msrb.mxu3 %v5062_v57  ;;  %v1152_v48 = vpop.permute.xlu1 %1151 }
 0x512   :  { %4861 = vmatpush.xpose.msk.msra.mxu3 %vm356_vm8, %v5616_v59  ;;  %v8644_v59 = vmov 3  }
 0x513   :  { %v1517_v7 = vpop.permute.xlu0 %1516 }
 0x514   :  { %4865 = vmatpush.xpose.msk.msra.mxu0 %vm356_vm8, %v1517_v7 }
 0x515   :  { %1139 = vperm.xlu2 %5063, %v5961_v30  }
 0x516   :  { %4862 = vmatpush.xpose.msk.msra.mxu3 %vm356_vm8, %v5669_v25  ;;  %v8645_v25 = vmov 4  }
 0x518   :  { %4866 = vmatpush.xpose.msk.msra.mxu0 %vm356_vm8, %v1515_v46 }
 0x51b   :  { %4867 = vmatmul.msk.f32.vlgmr.msra.gmra.mxu0 %vm356_vm8, %v5983_v45  ;;  %v1154_v52 = vpop.permute.xlu0 %1153 }
 0x51c   :  { %4855 = vmatpush.xpose.msk.msra.mxu1 %vm356_vm8, %v1154_v52 }
 0x51d   :  { %5065 = vset.pattern.permute.xlu2 %v8644_v59 }
 0x51e   :  { %1144 = vperm.xlu1 %5066, %v5968_v9   ;;  %1207 = vperm.xlu2 %5065, %v5961_v30  }
 0x520   :  { %4856 = vmatpush.xpose.msk.msra.mxu1 %vm356_vm8, %v1152_v48 }
 0x523   :  { %4857 = vmatmul.msk.f32.vlgmr.msra.gmra.mxu1 %vm356_vm8, %v5700_v35  ;;  %4868 = vmatmul.msk.f32.gmra.mxu0 %vm356_vm8, %v5988_v19  ;;  %v8647_v35 = vmov 6  }
 0x526   :  { %5068 = vset.pattern.permute.xlu1 %v8638_v21  ;;  %5067 = vset.pattern.permute.xlu2 %v8645_v25 }
 0x527   :  { %1231 = vperm.xlu1 %5068, %v5961_v30   ;;  %1219 = vperm.xlu2 %5067, %v5961_v30  }
 0x52b   :  { %4858 = vmatmul.msk.f32.gmra.mxu1 %vm356_vm8, %v5707_v38  ;;  %v1196_v38 = vpop.permute.xlu1 %1195 }
 0x52f   :  { %5071 = vset.pattern.permute.xlu1 %v8644_v59  ;;  %5069 = vset.pattern.permute.xlu2 %v8646_v27 }
 0x530   :  { %1211 = vperm.xlu1 %5071, %v5968_v9   ;;  %1199 = vperm.xlu2 %5069, %v5968_v9  }
 0x538   :  { %5073 = vset.pattern.permute.xlu1 %v8645_v25  ;;  %5072 = vset.pattern.permute.xlu2 %v8637_v4 }
 0x539   :  { %1223 = vperm.xlu1 %5073, %v5968_v9   ;;  %1255 = vperm.xlu2 %5072, %v5961_v30  }
 0x541   :  { %5077 = vset.pattern.permute.xlu1 %v8647_v35  ;;  %5074 = vset.pattern.permute.xlu2 %v8639_v61 }
 0x542   :  { %1247 = vperm.xlu1 %5077, %v5968_v9   ;;  %1267 = vperm.xlu2 %5074, %v5961_v30  }
 0x54a   :  { %5079 = vset.pattern.permute.xlu1 %v8639_v61  ;;  %5078 = vset.pattern.permute.xlu2 %v8637_v4 }
 0x54b   :  { %1271 = vperm.xlu1 %5079, %v5968_v9   ;;  %1259 = vperm.xlu2 %5078, %v5968_v9  }
 0x553   :  { %5081 = vset.pattern.permute.xlu1 %v8646_v27  ;;  %5080 = vset.pattern.permute.xlu2 %v8640_v26 }
 0x570   :  { %v921_v31 = vpop.xlane.xlu2 %920 }
 0x571   :  { %5247 = vrcp.f32 %v921_v31  ;;  %v936_v39 = vand.u32 2147483648, %v921_v31  ;;  %v934_v17 = vand.u32 2147483647, %v921_v31  ;;  %vm930_vm12 = vweird.f32 %v921_v31 }
 0x573   :  { %v937_v32 = vor.u32 1.1754944e-38, %v936_v39  ;;  %vm935_vm14 = vcmp.eq.f32.partialorder %v934_v17, 8.507059e+37 }
 0x577   :  { %v5248_v40 = vpop.eup %5247 }
 0x578   :  { %v926_v47 = vmul.f32 %v5248_v40, %v921_v31  ;;  %v924_v43 = vpop.xlane.xlu1 %923  ;;  %v1140_v30 = vpop.permute.xlu2 %1139  ;;  %vm931_vm11 = vweird.f32 %v5248_v40 }
 0x579   :  { %5249 = vrcp.f32 %v924_v43  ;;  %vm932_vm13 = vmor %vm930_vm12, %vm931_vm11  ;;  %v951_v57 = vand.u32 2147483648, %v924_v43  ;;  %v949_v46 = vand.u32 2147483647, %v924_v43  ;;  %vm945_vm1 = vweird.f32 %v924_v43 }
 0x57a   :  { %v927_v55 = vsub.f32 1.0, %v926_v47 }
 0x57b   :  { %v952_v31 = vor.u32 1.1754944e-38, %v951_v57  ;;  %vm950_vm4 = vcmp.eq.f32.partialorder %v949_v46, 8.507059e+37  ;;  %v1202_v57 = vmul.f32 %v5754_v14, %v1196_v38  ;;  %v5226_v38 = vld [vmem:[%s8496_s2 + $0x1] ss:$0 sm:$0xff]  ;;  %s5359_s2 = smov 32  }
 0x57c   :  { %v928_v63 = vmul.f32 %v5248_v40, %v927_v55 }
 0x57e   :  { %v929_v24 = vadd.f32 %v5248_v40, %v928_v63 }
 0x57f   :  { %v5250_v9 = vpop.eup %5249 }
 0x580   :  { %v933_v28 = vsel %vm932_vm13, %v5248_v40, %v929_v24  ;;  %v941_v10 = vmul.f32 %v5250_v9, %v924_v43  ;;  %vm946_vm0 = vweird.f32 %v5250_v9  ;;  %v1208_v52 = vpop.permute.xlu2 %1207  ;;  %v1244_v40 = vpop.permute.xlu0 %1243 }
 0x581   :  { %v938_v3 = vsel %vm935_vm14, %v937_v32, %v933_v28  ;;  %vm947_vm2 = vmor %vm945_vm1, %vm946_vm0  ;;  %v1214_v46 = vmul.f32 %v5757_v15, %v1208_v52  ;;  %v1250_v52 = vmul.f32 %v5773_v41, %v1244_v40 }
 0x582   :  { %v6030_v2 = vmul.f32 %v5975_v12, %v938_v3  ;;  %v942_v62 = vsub.f32 1.0, %v941_v10 }
 0x584   :  { %v943_v7 = vmul.f32 %v5250_v9, %v942_v62  ;;  %4849 = vmatmul.msk.f32.vlgmr.msrb.gmra.mxu3 %vm356_vm8, %v6030_v2 }
 0x586   :  { %v944_v48 = vadd.f32 %v5250_v9, %v943_v7 }
 0x588   :  { %v948_v47 = vsel %vm947_vm2, %v5250_v9, %v944_v48  ;;  %v1220_v39 = vpop.permute.xlu2 %1219  ;;  %v1236_v17 = vpop.permute.xlu0 %1235  ;;  %v1147_v9 = vmul.f32 %v5743_v1, %v1140_v30 }
 0x589   :  { %v953_v55 = vsel %vm950_vm4, %v952_v31, %v948_v47  ;;  %v1226_v31 = vmul.f32 %v5764_v22, %v1220_v39 }
 0x58a   :  { %v6035_v12 = vmul.f32 %v5979_v56, %v953_v55 }
 0x58c   :  { %4850 = vmatmul.msk.f32.gmra.mxu3 %vm356_vm8, %v6035_v12 }
 0x590   :  { %v1145_v63 = vpop.permute.xlu1 %1144  ;;  %v1200_v24 = vpop.permute.xlu2 %1199 }
 0x591   :  { %v1184_v32 = vpop.permute.xlu0 %1183  ;;  %v1148_v47 = vmul.f32 %v5804_v36, %v1145_v63 }
 0x592   :  { %v1190_v56 = vmul.f32 %v5748_v8, %v1184_v32 }
 0x594   :  { %4863 = vmatmul.msk.f32.vlgmr.msra.gmra.mxu3 %vm356_vm8, %v5983_v45 }
 0x598   :  { %v1256_v3 = vpop.permute.xlu2 %1255 }
 0x599   :  { %v1232_v43 = vpop.permute.xlu1 %1231  ;;  %v1188_v48 = vpop.permute.xlu0 %1187 }
 0x59a   :  { %v1191_v30 = vmul.f32 %v5807_v42, %v1188_v48  ;;  %v1238_v32 = vmul.f32 %v5768_v29, %v1232_v43  ;;  %v6059_v48 = vmul.f32 %v5226_v38, %v5649_v16 }
 0x59c   :  { %4864 = vmatmul.msk.f32.gmra.mxu3 %vm356_vm8, %v5988_v19  ;;  %8648 = vst [vmem:[#allocation19_spill] sm:$0xff] %v6059_v48  ;;  %vm1278_vm5 = vcmp.gt.f32.partialorder %v6059_v48, 0.0 }
 0x5a0   :  { %v1176_v28 = vpop.f32.mrf.mxu1  ;;  %v1268_v63 = vpop.permute.xlu2 %1267 }
 0x5a1   :  { %v1177_v10 = vadd.f32 %v1176_v28, %v1147_v9 }
 0x5a2   :  { %v1212_v62 = vpop.permute.xlu1 %1211 }
 0x5a3   :  { %v1192_v7 = vadd.f32 %v1190_v56, %v1177_v10  ;;  %v1203_v56 = vmul.f32 %v5810_v60, %v1200_v24  ;;  %v1215_v43 = vmul.f32 %v5818_v44, %v1212_v62  ;;  %v1239_v62 = vmul.f32 %v5828_v33, %v1236_v17 }
 0x5a5   :  { %v1204_v45 = vadd.f32 %v1202_v57, %v1192_v7  ;;  %v1262_v7 = vmul.f32 %v5777_v50, %v1256_v3 }
 0x5a7   :  { %v1216_v19 = vadd.f32 %v1214_v46, %v1204_v45 }
 0x5a8   :  { %v1179_v55 = vpop.f32.mrf.mxu1 }
 0x5a9   :  { %v1228_v9 = vadd.f32 %v1226_v31, %v1216_v19  ;;  %v1180_v28 = vadd.f32 %v1179_v55, %v1148_v47  ;;  %v1274_v31 = vmul.f32 %v5786_v11, %v1268_v63 }
 0x5ab   :  { %v1193_v10 = vadd.f32 %v1191_v30, %v1180_v28  ;;  %v1224_v39 = vpop.permute.xlu1 %1223  ;;  %v1240_v57 = vadd.f32 %v1238_v32, %v1228_v9 }
 0x5ac   :  { %v1227_v24 = vmul.f32 %v5821_v58, %v1224_v39 }
 0x5ad   :  { %v1205_v46 = vadd.f32 %v1203_v56, %v1193_v10  ;;  %v1252_v45 = vadd.f32 %v1250_v52, %v1240_v57  ;;  %v1260_v52 = vpop.permute.xlu2 %1259  ;;  %v6071_v57 = vmul.f32 %v5226_v38, %v5659_v23 }
 0x5ae   :  { %v1263_v10 = vmul.f32 %v5837_v13, %v1260_v52 }
 0x5af   :  { %v1264_v47 = vadd.f32 %v1262_v7, %v1252_v45  ;;  %v1217_v19 = vadd.f32 %v1215_v43, %v1205_v46  ;;  %8649 = vst [vmem:[#allocation20_spill] sm:$0xff] %v6071_v57  ;;  %vm1279_vm6 = vcmp.gt.f32.partialorder %v6071_v57, 0.0 }
 0x5b1   :  { %v1276_v40 = vadd.f32 %v1274_v31, %v1264_v47  ;;  %v1229_v3 = vadd.f32 %v1227_v24, %v1217_v19 }
 0x5b3   :  { %v1280_v55 = vsel %vm1278_vm5, %v1276_v40, -10000.0  ;;  %v1241_v28 = vadd.f32 %v1239_v62, %v1229_v3 }
 0x5b4   :  { %v1248_v30 = vpop.permute.xlu1 %1247  ;;  %v1282_v32 = vsel %vm356_vm8, %v1280_v55, -inf }
 0x5b5   :  { %1283 = vmax.xlane.f32.xlu1 %v1282_v32  ;;  %v1251_v9 = vmul.f32 %v5832_v6, %v1248_v30 }
 0x5b7   :  { %v1253_v56 = vadd.f32 %v1251_v9, %v1241_v28  ;;  %v6106_v9 = vpack.i.bf16 %v5697_v34, %v5704_v37  ;;  %v1000_v34 = vmul.f32 %v5748_v8, %v6030_v2 }
 0x5b9   :  { %v1265_v7 = vadd.f32 %v1263_v10, %v1253_v56 }
 0x5bd   :  { %v1272_v39 = vpop.permute.xlu1 %1271 }
 0x5be   :  { %v1275_v63 = vmul.f32 %v5841_v5, %v1272_v39  ;;  %v955_v39 = vmul.f32 %v5743_v1, %v6030_v2 }
 0x5c0   :  { %v1277_v46 = vadd.f32 %v1275_v63, %v1265_v7  ;;  %v957_v63 = vsel %vm356_vm8, %v955_v39, 0.0 }
 0x5c2   :  { %v1281_v17 = vsel %vm1279_vm6, %v1277_v46, -10000.0  ;;  %v1539_v46 = vpop.f32.mrf.mxu0 }
 0x5c3   :  { %v1285_v45 = vsel %vm356_vm8, %v1281_v17, -inf }
 0x5c4   :  { %1286 = vmax.xlane.f32.xlu2 %v1285_v45 }
 0x607   :  { %v6078_v43 = vpop.f32.mrf.mxu3 }
 0x60f   :  { %v6080_v31 = vpop.f32.mrf.mxu3 }
 0x617   :  { %v1496_v47 = vpop.f32.mrf.mxu3 }
 0x618   :  { %1546 = vperm.xlu0 %5076, %v1496_v47   ;;  %1558 = vperm.xlu1 %5081, %v1496_v47  }
 0x619   :  { %1504 = vperm.xlu2 %5080, %v1496_v47  }
 0x61f   :  { %v1499_v38 = vpop.f32.mrf.mxu3 }
 0x620   :  { %5085 = vset.pattern.permute.xlu0 %v8647_v35  ;;  %5084 = vset.pattern.permute.xlu1 %v8638_v21 }
 0x621   :  { %5082 = vset.pattern.permute.xlu2 %v8644_v59  ;;  %1606 = vperm.xlu0 %5085, %v1496_v47  }
 0x622   :  { %1594 = vperm.xlu1 %5084, %v1496_v47   ;;  %1570 = vperm.xlu2 %5082, %v1496_v47  }
 0x628   :  { %v1284_v19 = vpop.xlane.xlu1 %1283 }
 0x629   :  { %5089 = vset.pattern.permute.xlu0 %v8643_v20  ;;  %v1288_v40 = vsub.f32 %v1280_v55, %v1284_v19 }
 0x62a   :  { %5088 = vset.pattern.permute.xlu1 %v8640_v26  ;;  %5083 = vset.pattern.permute.xlu2 %v8645_v25 }
 0x62b   :  { %1550 = vperm.xlu0 %5089, %v1499_v38   ;;  %1509 = vperm.xlu1 %5088, %v1499_v38   ;;  %v1290_v24 = vmul.f32 1.442695, %v1288_v40 }
 0x62c   :  { %1582 = vperm.xlu2 %5083, %v1496_v47  }
 0x62d   :  { %5251 = vpow2.f32 %v1290_v24 }
 0x633   :  { %5093 = vset.pattern.permute.xlu0 %v8638_v21  ;;  %5091 = vset.pattern.permute.xlu1 %v8644_v59  ;;  %v6100_v3 = vpop.eup %5251 }
 0x634   :  { %5086 = vset.pattern.permute.xlu2 %v8637_v4  ;;  %1598 = vperm.xlu0 %5093, %v1499_v38   ;;  %v1294_v30 = vsel %vm356_vm8, %v6100_v3, 0.0 }
 0x635   :  { %1574 = vperm.xlu1 %5091, %v1499_v38   ;;  %1618 = vperm.xlu2 %5086, %v1496_v47  }
 0x637   :  { %v1287_v32 = vpop.xlane.xlu2 %1286 }
 0x638   :  { %v1289_v55 = vsub.f32 %v1281_v17, %v1287_v32  ;;  %v1002_v17 = vsel %vm356_vm8, %v1000_v34, 0.0 }
 0x63a   :  { %v1292_v62 = vmul.f32 1.442695, %v1289_v55 }
 0x63c   :  { %5117 = vset.pattern.permute.xlu0 %v8643_v20  ;;  %5253 = vpow2.f32 %v1292_v62 }
 0x63d   :  { %5092 = vset.pattern.permute.xlu1 %v8645_v25  ;;  %5087 = vset.pattern.permute.xlu2 %v8639_v61 }
 0x63e   :  { %1586 = vperm.xlu1 %5092, %v1499_v38   ;;  %1630 = vperm.xlu2 %5087, %v1496_v47  }
 0x642   :  { %v6110_v52 = vpop.eup %5253 }
 0x643   :  { %v1297_v56 = vsel %vm356_vm8, %v6110_v52, 0.0 }
 0x646   :  { %5094 = vset.pattern.permute.xlu1 %v8647_v35  ;;  %5090 = vset.pattern.permute.xlu2 %v8646_v27 }
 0x647   :  { %1610 = vperm.xlu1 %5094, %v1499_v38   ;;  %1562 = vperm.xlu2 %5090, %v1499_v38  }
 0x64f   :  { %5096 = vset.pattern.permute.xlu1 %v8639_v61  ;;  %5095 = vset.pattern.permute.xlu2 %v8637_v4 }
 0x650   :  { %1634 = vperm.xlu1 %5096, %v1499_v38   ;;  %1622 = vperm.xlu2 %5095, %v1499_v38  }
 0x658   :  { %5119 = vset.pattern.permute.xlu1 %v8646_v27  ;;  %5118 = vset.pattern.permute.xlu2 %v8643_v20 }
 0x65e   :  { %1295 = vadd.xlane.f32.xlu0 %v1294_v30  ;;  %v1024_v30 = vmul.f32 %v5757_v15, %v6030_v2 }
 0x660   :  { %v1026_v39 = vsel %vm356_vm8, %v1024_v30, 0.0 }
 0x672   :  { %5103 = vrot.lane.b32.xlu0 %v6106_v9, %s5357_s25 }
 0x673   :  { %v1505_v28 = vpop.permute.xlu2 %1504 }
 0x674   :  { %v1512_v7 = vmul.f32 %v5743_v1, %v1505_v28 }
 0x676   :  { %v1540_v38 = vadd.f32 %v1539_v46, %v1512_v7 }
 0x67a   :  { %1298 = vadd.xlane.f32.xlu1 %v1297_v56 }
 0x67c   :  { %v1571_v10 = vpop.permute.xlu2 %1570 }
 0x67d   :  { %v1577_v32 = vmul.f32 %v5757_v15, %v1571_v10  ;;  %v956_v10 = vmul.f32 %v5804_v36, %v6035_v12 }
 0x67f   :  { %v960_v30 = vsel %vm356_vm8, %v956_v10, 0.0  ;;  %v1542_v10 = vpop.f32.mrf.mxu0 }
 0x682   :  { %958 = vadd.xlane.f32.xlu1 %v957_v63 }
 0x686   :  { %v1583_v37 = vpop.permute.xlu2 %1582 }
 0x687   :  { %v1589_v28 = vmul.f32 %v5764_v22, %v1583_v37 }
 0x68a   :  { %1003 = vadd.xlane.f32.xlu1 %v1002_v17  ;;  %v1547_v45 = vpop.permute.xlu0 %1546  ;;  %v1559_v47 = vpop.permute.xlu1 %1558  ;;  %v1036_v17 = vmul.f32 %v5764_v22, %v6030_v2 }
 0x68b   :  { %v1553_v19 = vmul.f32 %v5748_v8, %v1547_v45  ;;  %v1565_v24 = vmul.f32 %v5754_v14, %v1559_v47 }
 0x68d   :  { %v1555_v40 = vadd.f32 %v1553_v19, %v1540_v38 }
 0x68f   :  { %v1567_v55 = vadd.f32 %v1565_v24, %v1555_v40  ;;  %v1619_v62 = vpop.permute.xlu2 %1618  ;;  %v1038_v40 = vsel %vm356_vm8, %v1036_v17, 0.0 }
 0x690   :  { %v1625_v37 = vmul.f32 %v5777_v50, %v1619_v62  ;;  %v1072_v62 = vmul.f32 %v5777_v50, %v6030_v2 }
 0x691   :  { %v1579_v56 = vadd.f32 %v1577_v32, %v1567_v55 }
 0x692   :  { %1027 = vadd.xlane.f32.xlu1 %v1026_v39 }
 0x693   :  { %v1591_v63 = vadd.f32 %v1589_v28, %v1579_v56  ;;  %v1607_v34 = vpop.permute.xlu0 %1606  ;;  %v1001_v28 = vmul.f32 %v5807_v42, %v6035_v12 }
 0x694   :  { %v1595_v7 = vpop.permute.xlu1 %1594  ;;  %v1613_v45 = vmul.f32 %v5773_v41, %v1607_v34 }
 0x695   :  { %v1601_v46 = vmul.f32 %v5768_v29, %v1595_v7  ;;  %v1005_v34 = vsel %vm356_vm8, %v1001_v28, 0.0  ;;  %v1074_v7 = vsel %vm356_vm8, %v1072_v62, 0.0 }
 0x697   :  { %v1603_v47 = vadd.f32 %v1601_v46, %v1591_v63  ;;  %v1048_v46 = vmul.f32 %v5768_v29, %v6030_v2 }
 0x698   :  { %v1631_v38 = vpop.permute.xlu2 %1630 }
 0x699   :  { %v1615_v19 = vadd.f32 %v1613_v45, %v1603_v47  ;;  %v1637_v24 = vmul.f32 %v5786_v11, %v1631_v38  ;;  %v1050_v47 = vsel %vm356_vm8, %v1048_v46, 0.0 }
 0x69a   :  { %1039 = vadd.xlane.f32.xlu1 %v1038_v40 }
 0x69b   :  { %v1627_v32 = vadd.f32 %v1625_v37, %v1615_v19  ;;  %v1013_v19 = vmul.f32 %v5810_v60, %v6035_v12 }
 0x69c   :  { %961 = vadd.xlane.f32.xlu0 %v960_v30 }
 0x69d   :  { %v1510_v55 = vpop.permute.xlu1 %1509  ;;  %v1639_v56 = vadd.f32 %v1637_v24, %v1627_v32  ;;  %v1551_v38 = vpop.permute.xlu0 %1550 }
 0x69e   :  { %v1513_v45 = vmul.f32 %v5804_v36, %v1510_v55  ;;  %v1554_v24 = vmul.f32 %v5807_v42, %v1551_v38 }
 0x69f   :  { %v6142_v39 = vsel %vm1278_vm5, %v1639_v56, -10000.0  ;;  %v1017_v56 = vsel %vm356_vm8, %v1013_v19, 0.0  ;;  %v1084_v19 = vmul.f32 %v5786_v11, %v6030_v2 }
 0x6a0   :  { %v1643_v63 = vsel %vm356_vm8, %v6142_v39, -inf  ;;  %v1543_v37 = vadd.f32 %v1542_v10, %v1513_v45 }
 0x6a1   :  { %1644 = vmax.xlane.f32.xlu2 %v1643_v63  ;;  %v1563_v40 = vpop.permute.xlu2 %1562 }
 0x6a2   :  { %1006 = vadd.xlane.f32.xlu1 %v1005_v34  ;;  %v1556_v32 = vadd.f32 %v1554_v24, %v1543_v37  ;;  %v1566_v28 = vmul.f32 %v5810_v60, %v1563_v40  ;;  %v1025_v34 = vmul.f32 %v5818_v44, %v6035_v12 }
 0x6a4   :  { %1075 = vadd.xlane.f32.xlu0 %v1074_v7  ;;  %v1568_v62 = vadd.f32 %v1566_v28, %v1556_v32  ;;  %v1029_v10 = vsel %vm356_vm8, %v1025_v34, 0.0  ;;  %v1086_v32 = vsel %vm356_vm8, %v1084_v19, 0.0 }
 0x6a6   :  { %v1599_v46 = vpop.permute.xlu0 %1598 }
 0x6a7   :  { %v1575_v17 = vpop.permute.xlu1 %1574  ;;  %v1602_v38 = vmul.f32 %v5828_v33, %v1599_v46  ;;  %v1061_v46 = vmul.f32 %v5832_v6, %v6035_v12 }
 0x6a8   :  { %v1578_v55 = vmul.f32 %v5818_v44, %v1575_v17 }
 0x6aa   :  { %1051 = vadd.xlane.f32.xlu1 %v1050_v47  ;;  %v1580_v7 = vadd.f32 %v1578_v55, %v1568_v62  ;;  %v1623_v40 = vpop.permute.xlu2 %1622  ;;  %v1073_v62 = vmul.f32 %v5837_v13, %v6035_v12 }
 0x6b0   :  { %v1587_v30 = vpop.permute.xlu1 %1586 }
 0x6b1   :  { %v1590_v63 = vmul.f32 %v5821_v58, %v1587_v30  ;;  %v1626_v30 = vmul.f32 %v5837_v13, %v1623_v40 }
 0x6b2   :  { %1018 = vadd.xlane.f32.xlu1 %v1017_v56 }
 0x6b3   :  { %v1592_v45 = vadd.f32 %v1590_v63, %v1580_v7  ;;  %v1077_v7 = vsel %vm356_vm8, %v1073_v62, 0.0 }
 0x6b5   :  { %v1604_v37 = vadd.f32 %v1602_v38, %v1592_v45  ;;  %v631_v45 = vmul.f32 %v5748_v8, %v5895_v49 }
 0x6b9   :  { %v1611_v47 = vpop.permute.xlu1 %1610  ;;  %5098 = vrot.lane.b32.xlu2 %v6106_v9, %s5358_s26 }
 0x6ba   :  { %1030 = vadd.xlane.f32.xlu1 %v1029_v10  ;;  %v1614_v17 = vmul.f32 %v5832_v6, %v1611_v47  ;;  %v1065_v47 = vsel %vm356_vm8, %v1061_v46, 0.0  ;;  %v633_v10 = vsel %vm356_vm8, %v631_v45, 0.0 }
 0x6bc   :  { %v1616_v24 = vadd.f32 %v1614_v17, %v1604_v37  ;;  %v585_v17 = vmul.f32 %v5743_v1, %v5895_v49 }
 0x6be   :  { %v1628_v9 = vadd.f32 %v1626_v30, %v1616_v24  ;;  %v587_v19 = vsel %vm356_vm8, %v585_v17, 0.0  ;;  %v644_v30 = vmul.f32 %v5754_v14, %v5895_v49  ;;  %v1060_v17 = vmul.f32 %v5773_v41, %v6030_v2 }
 0x6c0   :  { %v646_v62 = vsel %vm356_vm8, %v644_v30, 0.0 }
 0x6c2   :  { %1087 = vadd.xlane.f32.xlu1 %v1086_v32  ;;  %v1635_v28 = vpop.permute.xlu1 %1634 }
 0x6c3   :  { %v1638_v56 = vmul.f32 %v5841_v5, %v1635_v28  ;;  %v1012_v28 = vmul.f32 %v5754_v14, %v6030_v2 }
 0x6c5   :  { %v1640_v55 = vadd.f32 %v1638_v56, %v1628_v9 }
 0x6c7   :  { %v6177_v63 = vsel %vm1279_vm6, %v1640_v55, -10000.0 }
 0x6c8   :  { %v1646_v34 = vsel %vm356_vm8, %v6177_v63, -inf }
 0x6c9   :  { %1647 = vmax.xlane.f32.xlu0 %v1646_v34  ;;  %v1014_v34 = vsel %vm356_vm8, %v1012_v28, 0.0 }
 0x6ca   :  { %1078 = vadd.xlane.f32.xlu1 %v1077_v7 }
 0x6d1   :  { %1066 = vadd.xlane.f32.xlu0 %v1065_v47  ;;  %v1296_v38 = vpop.xlane.xlu0 %1295 }
 0x6d2   :  { %634 = vadd.xlane.f32.xlu1 %v633_v10  ;;  %5255 = vrcp.f32 %v1296_v38  ;;  %v1311_v9 = vand.u32 2147483648, %v1296_v38  ;;  %vm1305_vm10 = vweird.f32 %v1296_v38  ;;  %v1309_v55 = vand.u32 2147483647, %v1296_v38 }
 0x6d4   :  { %v1312_v46 = vor.u32 1.1754944e-38, %v1311_v9  ;;  %vm1310_vm12 = vcmp.eq.f32.partialorder %v1309_v55, 8.507059e+37 }
 0x6d8   :  { %v5256_v37 = vpop.eup %5255 }
 0x6d9   :  { %v1301_v40 = vmul.f32 %v5256_v37, %v1296_v38  ;;  %588 = vadd.xlane.f32.xlu0 %v587_v19  ;;  %vm1306_vm7 = vweird.f32 %v5256_v37 }
 0x6da   :  { %vm1307_vm11 = vmor %vm1305_vm10, %vm1306_vm7 }
 0x6db   :  { %v1302_v24 = vsub.f32 1.0, %v1301_v40  ;;  %v1062_v40 = vsel %vm356_vm8, %v1060_v17, 0.0 }
 0x6dd   :  { %v1303_v32 = vmul.f32 %v5256_v37, %v1302_v24  ;;  %v1037_v24 = vmul.f32 %v5821_v58, %v6035_v12 }
 0x6df   :  { %v1304_v56 = vadd.f32 %v5256_v37, %v1303_v32  ;;  %v1041_v30 = vsel %vm356_vm8, %v1037_v24, 0.0 }
 0x6e1   :  { %647 = vadd.xlane.f32.xlu0 %v646_v62  ;;  %v1308_v7 = vsel %vm1307_vm11, %v5256_v37, %v1304_v56 }
 0x6e2   :  { %1015 = vadd.xlane.f32.xlu2 %v1014_v34  ;;  %v1313_v47 = vsel %vm1310_vm12, %v1312_v46, %v1308_v7 }
 0x6e3   :  { %v6200_v38 = vmul.f32 %v6100_v3, %v1313_v47  ;;  %v1049_v3 = vmul.f32 %v5828_v33, %v6035_v12 }
 0x6e4   :  { %v5104_v45 = vpop.permute.xlu0 %5103 }
 0x6e5   :  { %v5105_v10 = vunpack.i.l.bf16 %v5104_v45  ;;  %v5106_v19 = vunpack.i.h.bf16 %v5104_v45  ;;  %v1053_v62 = vsel %vm356_vm8, %v1049_v3, 0.0  ;;  %v1085_v45 = vmul.f32 %v5841_v5, %v6035_v12 }
 0x6e7   :  { %1366 = vmatpush.msra.mxu2 %v5105_v10  ;;  %v1089_v17 = vsel %vm356_vm8, %v1085_v45, 0.0  ;;  %v8650_v45 = vpack.i.bf16 %v5594_v54, %v5588_v53  ;;  %v684_v54 = vmul.f32 %v5828_v33, %v5905_v51 }
 0x6e9   :  { %1367 = vmatpush.msra.mxu2 %v5106_v19  ;;  %v657_v19 = vmul.f32 %v5757_v15, %v5895_v49 }
 0x6ea   :  { %4859 = vmatmul.msk.f32.vlgmr.msra.gmra.mxu2 %vm356_vm8, %v6200_v38  ;;  %1063 = vadd.xlane.f32.xlu2 %v1062_v40 }
 0x6eb   :  { %v659_v40 = vsel %vm356_vm8, %v657_v19, 0.0 }
 0x6ed   :  { %v1299_v37 = vpop.xlane.xlu1 %1298 }
 0x6ee   :  { %5257 = vrcp.f32 %v1299_v37  ;;  %v1326_v56 = vand.u32 2147483648, %v1299_v37  ;;  %v1324_v55 = vand.u32 2147483647, %v1299_v37  ;;  %vm1320_vm14 = vweird.f32 %v1299_v37 }
 0x6f0   :  { %v1327_v7 = vor.u32 1.1754944e-38, %v1326_v56  ;;  %vm1325_vm1 = vcmp.eq.f32.partialorder %v1324_v55, 8.507059e+37 }
 0x6f2   :  { %1042 = vadd.xlane.f32.xlu2 %v1041_v30  ;;  %v696_v30 = vmul.f32 %v5773_v41, %v5895_v49 }
 0x6f4   :  { %v5258_v2 = vpop.eup %5257 }
 0x6f5   :  { %v1316_v32 = vmul.f32 %v5258_v2, %v1299_v37  ;;  %vm1321_vm13 = vweird.f32 %v5258_v2  ;;  %v632_v37 = vmul.f32 %v5807_v42, %v5905_v51  ;;  %v959_v53 = vpop.xlane.xlu1 %958 }
 0x6f6   :  { %vm1322_vm0 = vmor %vm1320_vm14, %vm1321_vm13 }
 0x6f7   :  { %v1317_v28 = vsub.f32 1.0, %v1316_v32  ;;  %v636_v12 = vsel %vm356_vm8, %v632_v37, 0.0  ;;  %v698_v32 = vsel %vm356_vm8, %v696_v30, 0.0  ;;  %v722_v37 = vmul.f32 %v5786_v11, %v5895_v49 }
 0x6f9   :  { %v1318_v9 = vmul.f32 %v5258_v2, %v1317_v28 }
 0x6fa   :  { %1054 = vadd.xlane.f32.xlu2 %v1053_v62 }
 0x6fb   :  { %v1319_v34 = vadd.f32 %v5258_v2, %v1318_v9 }
 0x6fd   :  { %v1323_v46 = vsel %vm1322_vm0, %v5258_v2, %v1319_v34 }
 0x6fe   :  { %v1328_v47 = vsel %vm1325_vm1, %v1327_v7, %v1323_v46  ;;  %v645_v7 = vmul.f32 %v5810_v60, %v5905_v51 }
 0x6ff   :  { %v6214_v10 = vmul.f32 %v6110_v52, %v1328_v47 }
 0x700   :  { %v649_v46 = vsel %vm356_vm8, %v645_v7, 0.0 }
 0x701   :  { %4860 = vmatmul.msk.f32.gmra.mxu2 %vm356_vm8, %v6214_v10 }
 0x702   :  { %1090 = vadd.xlane.f32.xlu2 %v1089_v17  ;;  %v709_v17 = vmul.f32 %v5777_v50, %v5895_v49 }
 0x704   :  { %v711_v19 = vsel %vm356_vm8, %v709_v17, 0.0  ;;  %v8652_v17 = vld [vmem:[#allocation2_spill] sm:$0xff] }
 0x70a   :  { %660 = vadd.xlane.f32.xlu2 %v659_v40 }
 0x70f   :  { %v6236_v34 = vpop.xlane.xlu0 %961 }
 0x712   :  { %637 = vadd.xlane.f32.xlu2 %v636_v12 }
 0x714   :  { %v1645_v52 = vpop.xlane.xlu2 %1644 }
 0x715   :  { %v1649_v24 = vsub.f32 %v6142_v39, %v1645_v52  ;;  %v670_v39 = vmul.f32 %v5764_v22, %v5895_v49 }
 0x717   :  { %v1651_v2 = vmul.f32 1.442695, %v1649_v24  ;;  %v672_v62 = vsel %vm356_vm8, %v670_v39, 0.0  ;;  %v6245_v47 = vpop.xlane.xlu0 %1075  ;;  %v724_v24 = vsel %vm356_vm8, %v722_v37, 0.0 }
 0x719   :  { %5259 = vpow2.f32 %v1651_v2 }
 0x71a   :  { %699 = vadd.xlane.f32.xlu2 %v698_v32  ;;  %v688_v32 = vsel %vm356_vm8, %v684_v54, 0.0 }
 0x71c   :  { %v5099_v3 = vpop.permute.xlu2 %5098 }
 0x71d   :  { %v5100_v28 = vunpack.i.l.bf16 %v5099_v3  ;;  %v5101_v9 = vunpack.i.h.bf16 %v5099_v3  ;;  %v1004_v3 = vpop.xlane.xlu1 %1003 }
 0x71f   :  { %v6229_v56 = vpop.eup %5259  ;;  %1727 = vmatpush.msrb.mxu1 %v5100_v28 }
 0x720   :  { %v1655_v55 = vsel %vm356_vm8, %v6229_v56, 0.0 }
 0x721   :  { %1728 = vmatpush.msrb.mxu1 %v5101_v9  ;;  %1656 = vadd.xlane.f32.xlu0 %v1655_v55  ;;  %v683_v9 = vmul.f32 %v5768_v29, %v5895_v49  ;;  %v697_v55 = vmul.f32 %v5832_v6, %v5905_v51 }
 0x723   :  { %v701_v7 = vsel %vm356_vm8, %v697_v55, 0.0  ;;  %v1375_v55 = vmul.f32 %v5748_v8, %v6200_v38 }
 0x725   :  { %v1028_v39 = vpop.xlane.xlu1 %1027 }
 0x729   :  { %673 = vadd.xlane.f32.xlu0 %v672_v62  ;;  %v685_v62 = vsel %vm356_vm8, %v683_v9, 0.0 }
 0x72d   :  { %v1040_v37 = vpop.xlane.xlu1 %1039 }
 0x731   :  { %650 = vadd.xlane.f32.xlu0 %v649_v46  ;;  %v658_v46 = vmul.f32 %v5818_v44, %v5905_v51 }
 0x732   :  { %5108 = vrot.lane.b32.xlu2 %v8650_v45, %s5359_s2  ;;  %v8651_v45 = vld [vmem:[#allocation3_spill] sm:$0xff] }
 0x733   :  { %v662_v49 = vsel %vm356_vm8, %v658_v46, 0.0 }
 0x735   :  { %v6280_v54 = vpop.xlane.xlu1 %1006 }
 0x739   :  { %712 = vadd.xlane.f32.xlu0 %v711_v19  ;;  %v8653_v19 = vpack.i.bf16 %v8651_v45, %v8652_v17  ;;  %v1377_v17 = vsel %vm356_vm8, %v1375_v55, 0.0 }
 0x73c   :  { %v1648_v40 = vpop.xlane.xlu0 %1647 }
 0x73d   :  { %v1650_v12 = vsub.f32 %v6177_v63, %v1648_v40  ;;  %v586_v63 = vmul.f32 %v5804_v36, %v5905_v51 }
 0x73f   :  { %v1653_v52 = vmul.f32 1.442695, %v1650_v12  ;;  %v590_v28 = vsel %vm356_vm8, %v586_v63, 0.0  ;;  %v671_v12 = vmul.f32 %v5821_v58, %v5905_v51  ;;  %v306_v63 = vld [vmem:[%s8501_s10] sm:$0xff] }
 0x740   :  { %v6290_v9 = vperm.slane %v306_v63, 0  ;;  %v6315_v0 = vperm.slane %v306_v63, 4 }
 0x741   :  { %5261 = vpow2.f32 %v1653_v52  ;;  %725 = vadd.xlane.f32.xlu0 %v724_v24  ;;  %v675_v52 = vsel %vm356_vm8, %v671_v12, 0.0 }
 0x742   :  { %v963_v46 = vmul.f32 %v959_v53, %v6290_v9  ;;  %v6309_v53 = vperm.slane %v306_v63, 3 }
 0x744   :  { %v6297_v45 = vpop.xlane.xlu0 %1066  ;;  %v995_v12 = vadd.f32 %v6078_v43, %v963_v46 }
 0x747   :  { %v6256_v30 = vpop.eup %5261 }
 0x748   :  { %v1658_v2 = vsel %vm356_vm8, %v6256_v30, 0.0 }
 0x749   :  { %1659 = vadd.xlane.f32.xlu1 %v1658_v2  ;;  %689 = vadd.xlane.f32.xlu0 %v688_v32  ;;  %v1330_v2 = vmul.f32 %v5743_v1, %v6200_v38 }
 0x74b   :  { %v1332_v32 = vsel %vm356_vm8, %v1330_v2, 0.0  ;;  %v1387_v2 = vmul.f32 %v5754_v14, %v6200_v38 }
 0x74c   :  { %v6317_v43 = vpop.xlane.xlu0 %588 }
 0x751   :  { %591 = vadd.xlane.f32.xlu1 %v590_v28 }
 0x754   :  { %v6332_v4 = vpop.xlane.xlu0 %647 }
 0x755   :  { %v1016_v40 = vpop.xlane.xlu2 %1015 }
 0x759   :  { %686 = vadd.xlane.f32.xlu1 %v685_v62  ;;  %v1052_v62 = vpop.xlane.xlu1 %1051 }
 0x75b   :  { %702 = vadd.xlane.f32.xlu2 %v701_v7  ;;  %v6294_v7 = vperm.slane %v306_v63, 1 }
 0x75d   :  { %5113 = vrot.lane.b32.xlu0 %v8653_v19, %s5359_s2  ;;  %v1064_v24 = vpop.xlane.xlu2 %1063  ;;  %v1008_v19 = vmul.f32 %v1004_v3, %v6294_v7  ;;  %v1032_v3 = vmul.f32 %v1028_v39, %v6309_v53 }
 0x75f   :  { %v1010_v57 = vadd.f32 %v1008_v19, %v995_v12  ;;  %v1044_v19 = vmul.f32 %v1040_v37, %v6315_v0  ;;  %v6322_v12 = vperm.slane %v306_v63, 5  ;;  %v6335_v37 = vperm.slane %v306_v63, 7 }
 0x761   :  { %663 = vadd.xlane.f32.xlu1 %v662_v49  ;;  %v6301_v49 = vperm.slane %v306_v63, 2  ;;  %v6311_v48 = vpop.xlane.xlu1 %1018  ;;  %v1056_v39 = vmul.f32 %v1052_v62, %v6322_v12 }
 0x765   :  { %v6288_v28 = vpop.xlane.xlu2 %1042 }
 0x769   :  { %676 = vadd.xlane.f32.xlu1 %v675_v52  ;;  %v1020_v52 = vmul.f32 %v1016_v40, %v6301_v49  ;;  %v710_v40 = vmul.f32 %v5837_v13, %v5905_v51 }
 0x76b   :  { %v1022_v55 = vadd.f32 %v1020_v52, %v1010_v57  ;;  %v714_v18 = vsel %vm356_vm8, %v710_v40, 0.0  ;;  %v6344_v40 = vld [vmem:[%s8501_s10 + $0x8] ss:$0 sm:$0xff] }
 0x76d   :  { %v1034_v46 = vadd.f32 %v1032_v3, %v1022_v55 }
 0x76f   :  { %v1046_v52 = vadd.f32 %v1044_v19, %v1034_v46 }
 0x771   :  { %1333 = vadd.xlane.f32.xlu1 %v1332_v32  ;;  %v6307_v32 = vpop.xlane.xlu2 %1054  ;;  %v1058_v61 = vadd.f32 %v1056_v39, %v1046_v52 }
 0x779   :  { %1378 = vadd.xlane.f32.xlu1 %v1377_v17  ;;  %v1389_v17 = vsel %vm356_vm8, %v1387_v2, 0.0  ;;  %v6325_v57 = vpop.xlane.xlu2 %1090  ;;  %v6327_v2 = vpop.xlane.xlu1 %1030 }
 0x781   :  { %1390 = vadd.xlane.f32.xlu1 %v1389_v17  ;;  %v6330_v17 = vperm.slane %v306_v63, 6  ;;  %v6337_v59 = vpop.xlane.xlu2 %660  ;;  %v1088_v62 = vpop.xlane.xlu1 %1087 }
 0x782   :  { %v1092_v52 = vmul.f32 %v6344_v40, %v1088_v62 }
 0x783   :  { %v1068_v55 = vmul.f32 %v1064_v24, %v6330_v17 }
 0x785   :  { %v1070_v3 = vadd.f32 %v1068_v55, %v1058_v61 }
 0x787   :  { %715 = vadd.xlane.f32.xlu0 %v714_v18  ;;  %v1080_v18 = vmul.f32 %v6245_v47, %v6335_v37 }
 0x789   :  { %v1082_v46 = vadd.f32 %v1080_v18, %v1070_v3  ;;  %v6348_v63 = vpop.xlane.xlu2 %637  ;;  %v6358_v23 = vpop.xlane.xlu1 %1078 }
 0x78b   :  { %v1094_v24 = vadd.f32 %v1092_v52, %v1082_v46 }
 0x791   :  { %v6352_v46 = vpop.xlane.xlu2 %699 }
 0x794   :  { %v1657_v19 = vpop.xlane.xlu0 %1656 }
 0x795   :  { %5263 = vrcp.f32 %v1657_v19  ;;  %v1672_v55 = vand.u32 2147483648, %v1657_v19  ;;  %v1670_v21 = vand.u32 2147483647, %v1657_v19  ;;  %vm1666_vm4 = vweird.f32 %v1657_v19 }
 0x797   :  { %v1673_v18 = vor.u32 1.1754944e-38, %v1672_v55  ;;  %vm1671_vm10 = vcmp.eq.f32.partialorder %v1670_v21, 8.507059e+37 }
 0x799   :  { %v5109_v21 = vpop.permute.xlu2 %5108 }
 0x79a   :  { %1098 = vrot.lane.b32.xlu1 %v1094_v24, %s5360_s29 }
 0x79b   :  { %v5264_v61 = vpop.eup %5263 }
 0x79c   :  { %v1662_v39 = vmul.f32 %v5264_v61, %v1657_v19  ;;  %vm1667_vm2 = vweird.f32 %v5264_v61  ;;  %v6350_v25 = vpop.xlane.xlu0 %673 }
 0x79d   :  { %vm1668_vm7 = vmor %vm1666_vm4, %vm1667_vm2 }
 0x79e   :  { %v1663_v47 = vsub.f32 1.0, %v1662_v39 }
 0x7a0   :  { %v1664_v35 = vmul.f32 %v5264_v61, %v1663_v47 }
 0x7a2   :  { %v1665_v3 = vadd.f32 %v5264_v61, %v1664_v35 }
 0x7a4   :  { %v1669_v62 = vsel %vm1668_vm7, %v5264_v61, %v1665_v3  ;;  %v6362_v55 = vpop.xlane.xlu0 %650  ;;  %v5111_v3 = vunpack.i.h.bf16 %v5109_v21 }
 0x7a5   :  { %v1674_v52 = vsel %vm1671_vm10, %v1673_v18, %v1669_v62  ;;  %v5110_v18 = vunpack.i.l.bf16 %v5109_v21 }
 0x7a6   :  { %v1675_v24 = vmul.f32 %v6229_v56, %v1674_v52 }
 0x7a7   :  { %1885 = vmatpush.msrb.mxu2 %v5110_v18 }
 0x7a8   :  { %4869 = vmatmul.msk.f32.vlgmr.msrb.gmra.mxu1 %vm356_vm8, %v1675_v24  ;;  %v1748_v39 = vmul.f32 %v5754_v14, %v1675_v24  ;;  %v1691_v47 = vmul.f32 %v5743_v1, %v1675_v24  ;;  %v1796_v61 = vmul.f32 %v5773_v41, %v1675_v24  ;;  %v1760_v56 = vmul.f32 %v5757_v15, %v1675_v24 }
 0x7a9   :  { %1886 = vmatpush.msrb.mxu2 %v5111_v3  ;;  %v1808_v21 = vmul.f32 %v5777_v50, %v1675_v24 }
 0x7aa   :  { %v1750_v35 = vsel %vm356_vm8, %v1748_v39, 0.0  ;;  %v1693_v19 = vsel %vm356_vm8, %v1691_v47, 0.0  ;;  %v1798_v62 = vsel %vm356_vm8, %v1796_v61, 0.0  ;;  %v1762_v52 = vsel %vm356_vm8, %v1760_v56, 0.0  ;;  %v6368_v39 = vpop.xlane.xlu1 %634 }
 0x7ab   :  { %1751 = vadd.xlane.f32.xlu2 %v1750_v35  ;;  %1694 = vadd.xlane.f32.xlu0 %v1693_v19  ;;  %v1772_v35 = vmul.f32 %v5764_v22, %v1675_v24  ;;  %v1736_v61 = vmul.f32 %v5748_v8, %v1675_v24  ;;  %v1810_v56 = vsel %vm356_vm8, %v1808_v21, 0.0 }
 0x7ac   :  { %v6370_v47 = vpop.xlane.xlu0 %712 }
 0x7ad   :  { %v1774_v19 = vsel %vm356_vm8, %v1772_v35, 0.0  ;;  %v1784_v35 = vmul.f32 %v5768_v29, %v1675_v24 }
 0x7b3   :  { %1799 = vadd.xlane.f32.xlu2 %v1798_v62  ;;  %1763 = vadd.xlane.f32.xlu0 %v1762_v52  ;;  %v1738_v62 = vsel %vm356_vm8, %v1736_v61, 0.0 }
 0x7b4   :  { %v6375_v18 = vpop.xlane.xlu0 %725 }
 0x7bb   :  { %1775 = vadd.xlane.f32.xlu0 %v1774_v19 }
 0x7bc   :  { %v1660_v14 = vpop.xlane.xlu1 %1659  ;;  %v6383_v27 = vpop.xlane.xlu0 %689 }
 0x7bd   :  { %5265 = vrcp.f32 %v1660_v14  ;;  %v1687_v16 = vand.u32 2147483648, %v1660_v14  ;;  %v1685_v20 = vand.u32 2147483647, %v1660_v14  ;;  %vm1681_vm12 = vweird.f32 %v1660_v14 }
 0x7bf   :  { %v1688_v21 = vor.u32 1.1754944e-38, %v1687_v16  ;;  %vm1686_vm14 = vcmp.eq.f32.partialorder %v1685_v20, 8.507059e+37 }
 0x7c3   :  { %v5266_v3 = vpop.eup %5265  ;;  %1811 = vadd.xlane.f32.xlu0 %v1810_v56  ;;  %v1786_v56 = vsel %vm356_vm8, %v1784_v35, 0.0 }
 0x7c4   :  { %v1677_v52 = vmul.f32 %v5266_v3, %v1660_v14  ;;  %1739 = vadd.xlane.f32.xlu1 %v1738_v62  ;;  %vm1682_vm11 = vweird.f32 %v5266_v3  ;;  %v6381_v26 = vpop.xlane.xlu1 %591 }
 0x7c5   :  { %vm1683_vm13 = vmor %vm1681_vm12, %vm1682_vm11  ;;  %vm2019_vm12 = vcmask 1040384  }
 0x7c6   :  { %v1678_v1 = vsub.f32 1.0, %v1677_v52 }
 0x7c8   :  { %v1679_v19 = vmul.f32 %v5266_v3, %v1678_v1  ;;  %v1820_v1 = vmul.f32 %v5786_v11, %v1675_v24 }
 0x7ca   :  { %v1680_v8 = vadd.f32 %v5266_v3, %v1679_v19 }
 0x7cc   :  { %v1684_v61 = vsel %vm1683_vm13, %v5266_v3, %v1680_v8  ;;  %1787 = vadd.xlane.f32.xlu1 %v1786_v56  ;;  %v6396_v35 = vpop.xlane.xlu1 %686  ;;  %vm2099_vm13 = vcmask 1041408  }
 0x7cd   :  { %v1689_v62 = vsel %vm1686_vm14, %v1688_v21, %v1684_v61  ;;  %vm2122_vm14 = vcmask 1046528  }
 0x7ce   :  { %v6387_v52 = vmul.f32 %v6256_v30, %v1689_v62  ;;  %v1822_v30 = vsel %vm356_vm8, %v1820_v1, 0.0 }
 0x7cf   :  { %v5114_v14 = vpop.permute.xlu0 %5113 }
 0x7d0   :  { %4870 = vmatmul.msk.f32.gmra.mxu1 %vm356_vm8, %v6387_v52  ;;  %v1749_v19 = vmul.f32 %v5810_v60, %v6387_v52  ;;  %v1737_v16 = vmul.f32 %v5807_v42, %v6387_v52  ;;  %v5116_v24 = vunpack.i.h.bf16 %v5114_v14  ;;  %v5115_v3 = vunpack.i.l.bf16 %v5114_v14 }
 0x7d1   :  { %v1785_v21 = vmul.f32 %v5828_v33, %v6387_v52  ;;  %v1773_v56 = vmul.f32 %v5821_v58, %v6387_v52  ;;  %v1692_v61 = vmul.f32 %v5804_v36, %v6387_v52  ;;  %v1376_v14 = vmul.f32 %v5807_v42, %v6214_v10 }
 0x7d2   :  { %v1753_v8 = vsel %vm356_vm8, %v1749_v19, 0.0  ;;  %v1741_v20 = vsel %vm356_vm8, %v1737_v16, 0.0  ;;  %1887 = vmatpush.msrb.mxu2 %v5115_v3 }
 0x7d3   :  { %1754 = vadd.xlane.f32.xlu0 %v1753_v8  ;;  %1742 = vadd.xlane.f32.xlu2 %v1741_v20  ;;  %v1789_v62 = vsel %vm356_vm8, %v1785_v21, 0.0  ;;  %v1777_v19 = vsel %vm356_vm8, %v1773_v56, 0.0  ;;  %v1696_v1 = vsel %vm356_vm8, %v1692_v61, 0.0  ;;  %v1797_v8 = vmul.f32 %v5832_v6, %v6387_v52 }
 0x7d4   :  { %1823 = vadd.xlane.f32.xlu1 %v1822_v30  ;;  %1888 = vmatpush.msrb.mxu2 %v5116_v24  ;;  %v6410_v16 = vpop.xlane.xlu1 %663  ;;  %v1761_v20 = vmul.f32 %v5818_v44, %v6387_v52  ;;  %v1380_v30 = vsel %vm356_vm8, %v1376_v14, 0.0  ;;  %v964_v21 = vmul.f32 %v6236_v34, %v6290_v9  ;;  %v1388_v61 = vmul.f32 %v5810_v60, %v6214_v10 }
 0x7d5   :  { %v1801_v24 = vsel %vm356_vm8, %v1797_v8, 0.0  ;;  %v1021_v8 = vmul.f32 %v6311_v48, %v6301_v49  ;;  %v1331_v48 = vmul.f32 %v5804_v36, %v6214_v10 }
 0x7d6   :  { %v1765_v3 = vsel %vm356_vm8, %v1761_v20, 0.0  ;;  %v998_v14 = vadd.f32 %v6080_v31, %v964_v21  ;;  %v1392_v34 = vsel %vm356_vm8, %v1388_v61, 0.0  ;;  %v1045_v31 = vmul.f32 %v6288_v28, %v6315_v0 }
 0x7d7   :  { %v594_v21 = vmul.f32 %v6290_v9, %v6317_v43  ;;  %v1057_v61 = vmul.f32 %v6307_v32, %v6322_v12  ;;  %v1069_v43 = vmul.f32 %v6297_v45, %v6330_v17  ;;  %v640_v32 = vmul.f32 %v6294_v7, %v6368_v39 }
 0x7d8   :  { %v1081_v45 = vmul.f32 %v6358_v23, %v6335_v37  ;;  %v1093_v39 = vmul.f32 %v6344_v40, %v6325_v57  ;;  %v1423_v57 = vmul.f32 %v5768_v29, %v6200_v38 }
 0x7db   :  { %1790 = vadd.xlane.f32.xlu0 %v1789_v62  ;;  %1778 = vadd.xlane.f32.xlu2 %v1777_v19  ;;  %v723_v62 = vmul.f32 %v5841_v5, %v5905_v51  ;;  %v1009_v19 = vmul.f32 %v6280_v54, %v6294_v7 }
 0x7dc   :  { %1697 = vadd.xlane.f32.xlu1 %v1696_v1  ;;  %v6423_v56 = vpop.xlane.xlu1 %676  ;;  %v1809_v1 = vmul.f32 %v5837_v13, %v6387_v52 }
 0x7dd   :  { %v727_v20 = vsel %vm356_vm8, %v723_v62, 0.0 }
 0x7de   :  { %v1813_v51 = vsel %vm356_vm8, %v1809_v1, 0.0  ;;  %v1335_v1 = vsel %vm356_vm8, %v1331_v48, 0.0 }
 0x7e3   :  { %1381 = vadd.xlane.f32.xlu0 %v1380_v30  ;;  %1802 = vadd.xlane.f32.xlu2 %v1801_v24  ;;  %v1011_v30 = vadd.f32 %v1009_v19, %v998_v14  ;;  %v1033_v24 = vmul.f32 %v6327_v2, %v6309_v53  ;;  %v1399_v2 = vmul.f32 %v5757_v15, %v6200_v38  ;;  %v8654_v14 = vld [vmem:[#allocation17_spill] sm:$0xff] }
 0x7e4   :  { %1766 = vadd.xlane.f32.xlu1 %v1765_v3  ;;  %v6451_v62 = vpop.xlane.xlu1 %1333  ;;  %v626_v28 = vadd.f32 %v8654_v14, %v594_v21 }
 0x7e5   :  { %v1023_v54 = vadd.f32 %v1021_v8, %v1011_v30  ;;  %v1411_v30 = vmul.f32 %v5764_v22, %v6200_v38 }
 0x7e7   :  { %v1035_v3 = vadd.f32 %v1033_v24, %v1023_v54  ;;  %v642_v24 = vadd.f32 %v640_v32, %v626_v28  ;;  %v666_v54 = vmul.f32 %v6309_v53, %v6337_v59  ;;  %v1413_v21 = vsel %vm356_vm8, %v1411_v30, 0.0 }
 0x7e8   :  { %v692_v59 = vmul.f32 %v6322_v12, %v6396_v35  ;;  %v705_v28 = vmul.f32 %v6330_v17, %v6352_v46  ;;  %v1425_v35 = vsel %vm356_vm8, %v1423_v57, 0.0  ;;  %v718_v32 = vmul.f32 %v6335_v37, %v6370_v47  ;;  %v6520_v57 = vpop.xlane.xlu2 %702 }
 0x7e9   :  { %v1047_v19 = vadd.f32 %v1045_v31, %v1035_v3  ;;  %v1400_v31 = vmul.f32 %v5818_v44, %v6214_v10  ;;  %v731_v46 = vmul.f32 %v6344_v40, %v6375_v18 }
 0x7eb   :  { %1393 = vadd.xlane.f32.xlu0 %v1392_v34  ;;  %728 = vadd.xlane.f32.xlu2 %v727_v20  ;;  %v1059_v8 = vadd.f32 %v1057_v61, %v1047_v19  ;;  %v1401_v34 = vsel %vm356_vm8, %v1399_v2, 0.0  ;;  %v653_v20 = vmul.f32 %v6301_v49, %v6332_v4  ;;  %v679_v4 = vmul.f32 %v6315_v0, %v6350_v25 }
 0x7ec   :  { %1814 = vadd.xlane.f32.xlu1 %v1813_v51  ;;  %v6474_v3 = vpop.xlane.xlu1 %1378  ;;  %v1404_v19 = vsel %vm356_vm8, %v1400_v31, 0.0  ;;  %v1412_v25 = vmul.f32 %v5821_v58, %v6214_v10 }
 0x7ed   :  { %v1071_v51 = vadd.f32 %v1069_v43, %v1059_v8  ;;  %v655_v48 = vadd.f32 %v653_v20, %v642_v24  ;;  %v1821_v20 = vmul.f32 %v5841_v5, %v6387_v52  ;;  %v1424_v24 = vmul.f32 %v5828_v33, %v6214_v10 }
 0x7ee   :  { %v1435_v52 = vmul.f32 %v5773_v41, %v6200_v38 }
 0x7ef   :  { %v1083_v61 = vadd.f32 %v1081_v45, %v1071_v51  ;;  %v668_v2 = vadd.f32 %v666_v54, %v655_v48  ;;  %v1825_v51 = vsel %vm356_vm8, %v1821_v20, 0.0  ;;  %v1428_v54 = vsel %vm356_vm8, %v1424_v24, 0.0 }
 0x7f0   :  { %v1448_v48 = vmul.f32 %v5837_v13, %v6214_v10  ;;  %v1437_v18 = vsel %vm356_vm8, %v1435_v52, 0.0 }
 0x7f1   :  { %v1095_v23 = vadd.f32 %v1093_v39, %v1083_v61 }
 0x7f2   :  { %v1452_v39 = vsel %vm356_vm8, %v1448_v48, 0.0 }
 0x7f3   :  { %1336 = vadd.xlane.f32.xlu2 %v1335_v1  ;;  %v681_v1 = vadd.f32 %v679_v4, %v668_v2  ;;  %v1447_v4 = vmul.f32 %v5777_v50, %v6200_v38  ;;  %v1459_v2 = vmul.f32 %v5786_v11, %v6200_v38  ;;  %v1460_v38 = vmul.f32 %v5841_v5, %v6214_v10 }
 0x7f4   :  { %1402 = vadd.xlane.f32.xlu1 %v1401_v34  ;;  %v1416_v34 = vsel %vm356_vm8, %v1412_v25, 0.0  ;;  %v6489_v43 = vpop.xlane.xlu1 %1390 }
 0x7f5   :  { %v694_v14 = vadd.f32 %v692_v59, %v681_v1  ;;  %v1461_v59 = vsel %vm356_vm8, %v1459_v2, 0.0 }
 0x7f7   :  { %v707_v8 = vadd.f32 %v705_v28, %v694_v14  ;;  %v5341_v14 = vld [vmem:[%s8497_s8] ss:$0 sm:$0xff]  ;;  %v1464_v28 = vsel %vm356_vm8, %v1460_v38, 0.0 }
 0x7f9   :  { %v720_v30 = vadd.f32 %v718_v32, %v707_v8 }
 0x7fa   :  { %v6512_v61 = vpop.xlane.xlu0 %715 }
 0x7fb   :  { %1414 = vadd.xlane.f32.xlu2 %v1413_v21  ;;  %v733_v31 = vadd.f32 %v731_v46, %v720_v30  ;;  %v1449_v21 = vsel %vm356_vm8, %v1447_v4, 0.0 }
 0x7fc   :  { %1405 = vadd.xlane.f32.xlu1 %v1404_v19 }
 0x7ff   :  { %1100 = vrot.lane.b32.xlu0 %v1095_v23, %s5360_s29  ;;  %v1436_v23 = vmul.f32 %v5832_v6, %v6214_v10 }
 0x801   :  { %v1440_v1 = vsel %vm356_vm8, %v1436_v23, 0.0 }
 0x803   :  { %1426 = vadd.xlane.f32.xlu2 %v1425_v35 }
 0x804   :  { %1417 = vadd.xlane.f32.xlu1 %v1416_v34 }
 0x80b   :  { %1826 = vadd.xlane.f32.xlu2 %v1825_v51 }
 0x80c   :  { %1429 = vadd.xlane.f32.xlu1 %v1428_v54  ;;  %v1099_v45 = vpop.permute.xlu1 %1098 }
 0x80d   :  { %v1104_v47 = vsel %vm356_vm8, %v733_v31, %v1099_v45 }
 0x80e   :  { %4871 = vmatmul.msk.f32.vlgmr.msrb.gmra.mxu2 %vm312_vm9, %v1104_v47 }
 0x813   :  { %1438 = vadd.xlane.f32.xlu2 %v1437_v18 }
 0x814   :  { %1453 = vadd.xlane.f32.xlu1 %v1452_v39 }
 0x81b   :  { %1450 = vadd.xlane.f32.xlu2 %v1449_v21 }
 0x81e   :  { %v1695_v19 = vpop.xlane.xlu0 %1694  ;;  %v1752_v35 = vpop.xlane.xlu2 %1751 }
 0x81f   :  { %v1699_v34 = vmul.f32 %v1695_v19, %v6290_v9  ;;  %v1756_v46 = vmul.f32 %v1752_v35, %v6301_v49 }
 0x823   :  { %1462 = vadd.xlane.f32.xlu2 %v1461_v59 }
 0x825   :  { %v1730_v8 = vpop.f32.mrf.mxu1 }
 0x826   :  { %v1764_v25 = vpop.xlane.xlu0 %1763  ;;  %v1731_v20 = vadd.f32 %v1730_v8, %v1699_v34  ;;  %v1800_v10 = vpop.xlane.xlu2 %1799  ;;  %v595_v8 = vmul.f32 %v6290_v9, %v6381_v26  ;;  %v680_v26 = vmul.f32 %v6315_v0, %v6423_v56  ;;  %v706_v56 = vmul.f32 %v6330_v17, %v6520_v57 }
 0x827   :  { %v1768_v54 = vmul.f32 %v1764_v25, %v6309_v53  ;;  %v1804_v39 = vmul.f32 %v1800_v10, %v6330_v17 }
 0x82b   :  { %1441 = vadd.xlane.f32.xlu2 %v1440_v1 }
 0x82d   :  { %1858 = vrot.lane.b32.xlu1 %v5341_v14, %s5359_s2 }
 0x82e   :  { %v1776_v24 = vpop.xlane.xlu0 %1775 }
 0x82f   :  { %v1780_v45 = vmul.f32 %v1776_v24, %v6315_v0  ;;  %v641_v24 = vmul.f32 %v6294_v7, %v6348_v63 }
 0x833   :  { %1465 = vadd.xlane.f32.xlu2 %v1464_v28 }
 0x836   :  { %v1812_v21 = vpop.xlane.xlu0 %1811 }
 0x837   :  { %v1740_v32 = vpop.xlane.xlu1 %1739  ;;  %v1816_v59 = vmul.f32 %v1812_v21, %v6335_v37 }
 0x838   :  { %v1744_v30 = vmul.f32 %v1740_v32, %v6294_v7 }
 0x83a   :  { %v1746_v51 = vadd.f32 %v1744_v30, %v1731_v20  ;;  %v8655_v20 = vld [vmem:[#allocation18_spill] sm:$0xff] }
 0x83b   :  { %v629_v30 = vadd.f32 %v8655_v20, %v595_v8 }
 0x83c   :  { %v1758_v31 = vadd.f32 %v1756_v46, %v1746_v51 }
 0x83d   :  { %v643_v51 = vadd.f32 %v641_v24, %v629_v30 }
 0x83e   :  { %v1770_v47 = vadd.f32 %v1768_v54, %v1758_v31  ;;  %v654_v54 = vmul.f32 %v6301_v49, %v6362_v55  ;;  %v667_v31 = vmul.f32 %v6309_v53, %v6410_v16  ;;  %v693_v55 = vmul.f32 %v6322_v12, %v6383_v27 }
 0x83f   :  { %v1788_v52 = vpop.xlane.xlu1 %1787 }
 0x840   :  { %v1782_v48 = vadd.f32 %v1780_v45, %v1770_v47  ;;  %v1792_v18 = vmul.f32 %v1788_v52, %v6322_v12  ;;  %v656_v47 = vadd.f32 %v654_v54, %v643_v51 }
 0x842   :  { %v1794_v4 = vadd.f32 %v1792_v18, %v1782_v48  ;;  %v669_v48 = vadd.f32 %v667_v31, %v656_v47 }
 0x844   :  { %v1806_v2 = vadd.f32 %v1804_v39, %v1794_v4  ;;  %v682_v18 = vadd.f32 %v680_v26, %v669_v48 }
 0x846   :  { %v1743_v19 = vpop.xlane.xlu2 %1742  ;;  %v1818_v1 = vadd.f32 %v1816_v59, %v1806_v2  ;;  %v1755_v25 = vpop.xlane.xlu0 %1754  ;;  %v695_v2 = vadd.f32 %v693_v55, %v682_v18 }
 0x847   :  { %v1824_v23 = vpop.xlane.xlu1 %1823  ;;  %v1745_v16 = vmul.f32 %v1743_v19, %v6294_v7 }
 0x848   :  { %v1828_v14 = vmul.f32 %v6344_v40, %v1824_v23 }
 0x84a   :  { %v1830_v38 = vadd.f32 %v1828_v14, %v1818_v1  ;;  %v719_v1 = vmul.f32 %v6335_v37, %v6512_v61  ;;  %v1757_v14 = vmul.f32 %v1755_v25, %v6301_v49 }
 0x84c   :  { %1834 = vrot.lane.b32.xlu0 %v1830_v38, %s5360_s29 }
 0x84d   :  { %v1733_v63 = vpop.f32.mrf.mxu1 }
 0x84e   :  { %v1779_v28 = vpop.xlane.xlu2 %1778  ;;  %v1791_v34 = vpop.xlane.xlu0 %1790 }
 0x84f   :  { %v1698_v35 = vpop.xlane.xlu1 %1697  ;;  %v1781_v54 = vmul.f32 %v1779_v28, %v6315_v0  ;;  %v1793_v61 = vmul.f32 %v1791_v34, %v6322_v12 }
 0x850   :  { %v1700_v52 = vmul.f32 %v1698_v35, %v6290_v9  ;;  %v708_v35 = vadd.f32 %v706_v56, %v695_v2  ;;  %v1369_v2 = vpop.f32.mrf.mxu2 }
 0x852   :  { %v1734_v39 = vadd.f32 %v1733_v63, %v1700_v52  ;;  %v721_v20 = vadd.f32 %v719_v1, %v708_v35 }
 0x854   :  { %v1747_v59 = vadd.f32 %v1745_v16, %v1734_v39 }
 0x856   :  { %v1803_v32 = vpop.xlane.xlu2 %1802  ;;  %v6548_v45 = vpop.xlane.xlu0 %1381  ;;  %v1759_v8 = vadd.f32 %v1757_v14, %v1747_v59 }
 0x857   :  { %v1767_v46 = vpop.xlane.xlu1 %1766 }
 0x858   :  { %v1769_v38 = vmul.f32 %v1767_v46, %v6309_v53  ;;  %v1372_v59 = vpop.f32.mrf.mxu2 }
 0x85a   :  { %v1771_v30 = vadd.f32 %v1769_v38, %v1759_v8  ;;  %v8656_v38 = vld [vmem:[#allocation5_spill] sm:$0xff]  ;;  %v1383_v8 = vmul.f32 %v6474_v3, %v6294_v7 }
 0x85c   :  { %v1783_v47 = vadd.f32 %v1781_v54, %v1771_v30 }
 0x85e   :  { %v729_v10 = vpop.xlane.xlu2 %728  ;;  %v6558_v23 = vpop.xlane.xlu0 %1393  ;;  %v1795_v46 = vadd.f32 %v1793_v61, %v1783_v47 }
 0x85f   :  { %v1815_v4 = vpop.xlane.xlu1 %1814  ;;  %v732_v27 = vmul.f32 %v6344_v40, %v729_v10  ;;  %v1805_v10 = vmul.f32 %v1803_v32, %v6330_v17 }
 0x860   :  { %v1817_v48 = vmul.f32 %v1815_v4, %v6335_v37 }
 0x861   :  { %v734_v51 = vadd.f32 %v732_v27, %v721_v20  ;;  %v1807_v52 = vadd.f32 %v1805_v10, %v1795_v46  ;;  %v1338_v27 = vmul.f32 %v6451_v62, %v6290_v9 }
 0x863   :  { %v1819_v63 = vadd.f32 %v1817_v48, %v1807_v52  ;;  %v1370_v30 = vadd.f32 %v1369_v2, %v1338_v27  ;;  %v1384_v2 = vmul.f32 %v6548_v45, %v6294_v7 }
 0x865   :  { %v1385_v54 = vadd.f32 %v1383_v8, %v1370_v30 }
 0x866   :  { %v6555_v21 = vpop.xlane.xlu2 %1336 }
 0x867   :  { %v1403_v24 = vpop.xlane.xlu1 %1402 }
 0x86e   :  { %v1415_v19 = vpop.xlane.xlu2 %1414 }
 0x86f   :  { %v1406_v26 = vpop.xlane.xlu1 %1405  ;;  %v1419_v47 = vmul.f32 %v1415_v19, %v6315_v0  ;;  %v1339_v19 = vmul.f32 %v6555_v21, %v6290_v9 }
 0x871   :  { %v1101_v31 = vpop.permute.xlu0 %1100 }
 0x872   :  { %v1105_v57 = vsel %vm356_vm8, %v734_v51, %v1101_v31  ;;  %v1395_v51 = vmul.f32 %v6489_v43, %v6301_v49  ;;  %v1407_v31 = vmul.f32 %v1403_v24, %v6309_v53 }
 0x873   :  { %4872 = vmatmul.msk.f32.gmra.mxu2 %vm312_vm9, %v1105_v57 }
 0x874   :  { %v1397_v57 = vadd.f32 %v1395_v51, %v1385_v54 }
 0x876   :  { %v1427_v25 = vpop.xlane.xlu2 %1426  ;;  %v1409_v61 = vadd.f32 %v1407_v31, %v1397_v57  ;;  %v6617_v31 = vld [vmem:[%s8502_s3] sm:$0xff] }
 0x877   :  { %v1418_v55 = vpop.xlane.xlu1 %1417  ;;  %v1431_v46 = vmul.f32 %v1427_v25, %v6322_v12  ;;  %v1373_v25 = vadd.f32 %v1372_v59, %v1339_v19  ;;  %v6639_v19 = vld [vmem:[%s8502_s3 + $0x8] sm:$0xff] }
 0x878   :  { %v1421_v10 = vadd.f32 %v1419_v47, %v1409_v61  ;;  %v1420_v27 = vmul.f32 %v1418_v55, %v6315_v0 }
 0x87a   :  { %v1433_v48 = vadd.f32 %v1431_v46, %v1421_v10  ;;  %v8659_v10 = vmov 2  }
 0x87e   :  { %v1827_v18 = vpop.xlane.xlu2 %1826 }
 0x87f   :  { %v1829_v28 = vmul.f32 %v6344_v40, %v1827_v18  ;;  %v1430_v16 = vpop.xlane.xlu1 %1429 }
 0x881   :  { %v1831_v39 = vadd.f32 %v1829_v28, %v1819_v63 }
 0x883   :  { %1836 = vrot.lane.b32.xlu0 %v1831_v39, %s5360_s29 }
 0x886   :  { %v1439_v14 = vpop.xlane.xlu2 %1438 }
 0x887   :  { %v1454_v34 = vpop.xlane.xlu1 %1453  ;;  %v1443_v62 = vmul.f32 %v1439_v14, %v6330_v17  ;;  %v1396_v14 = vmul.f32 %v6558_v23, %v6301_v49 }
 0x888   :  { %v1456_v7 = vmul.f32 %v1454_v34, %v6335_v37 }
 0x889   :  { %v1445_v18 = vadd.f32 %v1443_v62, %v1433_v48 }
 0x88e   :  { %v1451_v20 = vpop.xlane.xlu2 %1450 }
 0x88f   :  { %v1455_v3 = vmul.f32 %v1451_v20, %v6335_v37  ;;  %v1432_v20 = vmul.f32 %v1430_v16, %v6322_v12  ;;  %v8657_v12 = vld [vmem:[#allocation7_spill] sm:$0xff]  ;;  %v5361_v16 = vmov 32.0  }
 0x890   :  { %5267 = vrcp.f32 %v5361_v16 }
 0x891   :  { %v1890_v56 = vpop.f32.mrf.mxu2  ;;  %v1457_v43 = vadd.f32 %v1455_v3, %v1445_v18  ;;  %v6630_v18 = vld [vmem:[%s8502_s3 + $0x10] sm:$0xff] }
 0x896   :  { %v1463_v52 = vpop.xlane.xlu2 %1462  ;;  %v5268_v37 = vpop.eup %5267 }
 0x897   :  { %v1467_v63 = vmul.f32 %v6344_v40, %v1463_v52  ;;  %v1919_v34 = vmul.f32 32.0, %v5268_v37  ;;  %vm1923_vm0 = vweird.f32 %v5268_v37 }
 0x899   :  { %v1469_v28 = vadd.f32 %v1467_v63, %v1457_v43  ;;  %v8660_v63 = vmov 0  }
 0x89f   :  { %v6575_v1 = vpop.permute.xlu1 %1858 }
 0x8a0   :  { %v1891_v32 = vadd.f32 %v1890_v56, %v6575_v1  ;;  %v1386_v56 = vadd.f32 %v1384_v2, %v1373_v25  ;;  %v8661_v25 = vmov 1  }
 0x8a2   :  { %v6579_v4 = vadd.f32 %v1891_v32, %v8656_v38  ;;  %v1442_v32 = vpop.xlane.xlu2 %1441  ;;  %v1408_v38 = vmul.f32 %v1406_v26, %v6309_v53 }
 0x8a3   :  { %v1444_v9 = vmul.f32 %v1442_v32, %v6330_v17  ;;  %v8662_v32 = vld [vmem:[#allocation9_spill] sm:$0xff] }
 0x8a4   :  { %v1906_v35 = vsel %vm312_vm9, %v6579_v4, 0.0 }
 0x8a5   :  { %1907 = vadd.xlane.f32.xlu2 %v1906_v35  ;;  %v1398_v35 = vadd.f32 %v1396_v14, %v1386_v56 }
 0x8a7   :  { %v1410_v8 = vadd.f32 %v1408_v38, %v1398_v35 }
 0x8a9   :  { %v1422_v30 = vadd.f32 %v1420_v27, %v1410_v8  ;;  %v8663_v8 = vld [vmem:[#allocation11_spill] sm:$0xff] }
 0x8aa   :  { %v1466_v59 = vpop.xlane.xlu2 %1465 }
 0x8ab   :  { %v1434_v21 = vadd.f32 %v1432_v20, %v1422_v30  ;;  %v1468_v45 = vmul.f32 %v6344_v40, %v1466_v59  ;;  %v1920_v40 = vsub.f32 1.0, %v1919_v34 }
 0x8ad   :  { %v1446_v51 = vadd.f32 %v1444_v9, %v1434_v21  ;;  %v1921_v57 = vmul.f32 %v5268_v37, %v1920_v40 }
 0x8af   :  { %v1458_v54 = vadd.f32 %v1456_v7, %v1446_v51  ;;  %v1922_v47 = vadd.f32 %v5268_v37, %v1921_v57 }
 0x8b1   :  { %v1470_v49 = vadd.f32 %v1468_v45, %v1458_v54  ;;  %v6620_v61 = vsel %vm1923_vm0, %v5268_v37, %v1922_v47  ;;  %v6662_v54 = vld [vmem:[%s8502_s3 + $0x18] sm:$0xff]  ;;  %vm2149_vm0 = vcmask 1045504  }
 0x8b2   :  { %8658 = vst [vmem:[#allocation3_spill] sm:$0xff] %v6620_v61 }
 0x8be   :  { %v1835_v39 = vpop.permute.xlu0 %1834 }
 0x8bf   :  { %v1840_v24 = vsel %vm356_vm8, %v1469_v28, %v1835_v39 }
 0x8c0   :  { %4873 = vmatmul.msk.f32.gmra.mxu2 %vm312_vm9, %v1840_v24 }
 0x8f5   :  { %v1837_v23 = vpop.permute.xlu0 %1836 }
 0x8f6   :  { %v1893_v53 = vpop.f32.mrf.mxu2  ;;  %v1841_v26 = vsel %vm356_vm8, %v1470_v49, %v1837_v23 }
 0x8f7   :  { %v1894_v0 = vadd.f32 %v1893_v53, %v6575_v1  ;;  %4874 = vmatmul.msk.f32.gmra.mxu2 %vm312_vm9, %v1841_v26 }
 0x8f9   :  { %v1903_v55 = vadd.f32 %v1894_v0, %v8657_v12  ;;  %v6670_v12 = vld [vmem:[%s8503_s11] sm:$0xf] }
 0x8fa   :  { %v6676_v40 = vperm.slane %v6670_v12, 1 }
 0x8fb   :  { %v1909_v17 = vsel %vm312_vm9, %v1903_v55, 0.0 }
 0x8fc   :  { %1910 = vadd.xlane.f32.xlu0 %v1909_v17  ;;  %v6673_v17 = vperm.slane %v6670_v12, 0 }
 0x910   :  { %2059 = vperm.xlu0 %5117, %v6617_v31  }
 0x918   :  { %v1908_v46 = vpop.xlane.xlu2 %1907  ;;  %5122 = vset.pattern.permute.xlu0 %v8659_v10 }
 0x919   :  { %v1925_v62 = vmul.f32 %v6620_v61, %v1908_v46  ;;  %2094 = vperm.xlu0 %5122, %v6630_v18  }
 0x91b   :  { %v1929_v52 = vsub.f32 %v6579_v4, %v1925_v62 }
 0x91d   :  { %v1933_v48 = vmul.f32 %v1929_v52, %v1929_v52 }
 0x91f   :  { %v1937_v3 = vsel %vm312_vm9, %v1933_v48, 0.0 }
 0x920   :  { %1938 = vadd.xlane.f32.xlu1 %v1937_v3 }
 0x921   :  { %5124 = vset.pattern.permute.xlu0 %v8660_v63 }
 0x939   :  { %2088 = vperm.xlu1 %5119, %v6617_v31  }
 0x941   :  { %2097 = vperm.xlu1 %5119, %v6662_v54  }
 0x943   :  { %v1896_v2 = vpop.f32.mrf.mxu2 }
 0x944   :  { %v1897_v56 = vadd.f32 %v1896_v2, %v6575_v1 }
 0x946   :  { %v6647_v14 = vadd.f32 %v1897_v56, %v8662_v32 }
 0x948   :  { %v1912_v27 = vsel %vm312_vm9, %v6647_v14, 0.0 }
 0x949   :  { %5130 = vset.pattern.permute.xlu1 %v8661_v25 }
 0x96f   :  { %v1911_v43 = vpop.xlane.xlu0 %1910 }
 0x970   :  { %v1926_v28 = vmul.f32 %v6620_v61, %v1911_v43 }
 0x972   :  { %v1930_v39 = vsub.f32 %v1903_v55, %v1926_v28 }
 0x974   :  { %v1934_v4 = vmul.f32 %v1930_v39, %v1930_v39 }
 0x976   :  { %v1940_v24 = vsel %vm312_vm9, %v1934_v4, 0.0 }
 0x977   :  { %1941 = vadd.xlane.f32.xlu2 %v1940_v24 }
 0x97a   :  { %v1899_v38 = vpop.f32.mrf.mxu2 }
 0x97b   :  { %v1900_v35 = vadd.f32 %v1899_v38, %v6575_v1 }
 0x97d   :  { %v6653_v20 = vadd.f32 %v1900_v35, %v8663_v8 }
 0x97f   :  { %v1915_v9 = vsel %vm312_vm9, %v6653_v20, 0.0 }
 0x982   :  { %v2060_v2 = vpop.permute.xlu0 %2059 }
 0x983   :  { %v6692_v8 = vrot.slane %v2060_v2, 7 }
 0x985   :  { %8665 = vst [vmem:[#allocation2_spill] sm:$0xff] %v6692_v8 }
 0x98f   :  { %2062 = vperm.xlu2 %5118, %v6639_v19  }
 0x993   :  { %v1939_v30 = vpop.xlane.xlu1 %1938 }
 0x994   :  { %v1949_v21 = vmul.f32 %v1939_v30, %v6620_v61 }
 0x996   :  { %v1953_v59 = vadd.f32 1e-05, %v1949_v21 }
 0x997   :  { %5120 = vset.pattern.permute.xlu2 %v8659_v10 }
 0x998   :  { %2091 = vperm.xlu2 %5120, %v6639_v19   ;;  %5269 = vrsqrt.f32 %v1953_v59  ;;  %vm1963_vm2 = vweird.f32 %v1953_v59 }
 0x99e   :  { %v5270_v51 = vpop.eup %5269 }
 0x99f   :  { %v1958_v7 = vmul.f32 %v5270_v51, %v1953_v59  ;;  %vm1964_vm1 = vweird.f32 %v5270_v51 }
 0x9a0   :  { %5121 = vset.pattern.permute.xlu2 %v8661_v25  ;;  %vm1965_vm4 = vmor %vm1963_vm2, %vm1964_vm1 }
 0x9a1   :  { %v1959_v45 = vmul.f32 %v5270_v51, %v1958_v7 }
 0x9a3   :  { %v1960_v1 = vmul.f32 0.5, %v1959_v45 }
 0x9a5   :  { %v1961_v49 = vsub.f32 1.5, %v1960_v1 }
 0x9a7   :  { %v1962_v26 = vmul.f32 %v5270_v51, %v1961_v49 }
 0x9a9   :  { %v1966_v55 = vsel %vm1965_vm4, %v5270_v51, %v1962_v26 }
 0x9aa   :  { %v1997_v16 = vmul.f32 %v1966_v55, %v1929_v52  ;;  %v8664_v52 = vld [vmem:[#allocation4_spill] sm:$0xff] }
 0x9ab   :  { %v2089_v56 = vpop.permute.xlu1 %2088 }
 0x9ac   :  { %v2002_v57 = vmul.f32 %v6673_v17, %v1997_v16  ;;  %v6694_v30 = vrot.slane %v2089_v56, 6 }
 0x9ae   :  { %v6682_v48 = vadd.f32 %v6676_v40, %v2002_v57  ;;  %8666 = vst [vmem:[#allocation17_spill] sm:$0xff] %v6694_v30 }
 0x9b0   :  { %v2011_v28 = vmul.f32 %v6682_v48, %v8664_v52 }
 0x9b2   :  { %v2020_v38 = vrot.slane %v2011_v28, 7 }
 0x9b4   :  { %v6703_v51 = vsel %vm2019_vm12, 0.0, %v2020_v38 }
 0x9b5   :  { %v2082_v45 = vmul.f32 %v6692_v8, %v6703_v51  ;;  %v2112_v1 = vmul.f32 %v6694_v30, %v6703_v51 }
 0x9b7   :  { %v2123_v55 = vrot.slane %v2082_v45, 1  ;;  %v2186_v45 = vld [vmem:[%s8504_s12 + $0x30] sm:$0xff] }
 0x9c1   :  { %1913 = vadd.xlane.f32.xlu2 %v1912_v27 }
 0x9c9   :  { %1916 = vadd.xlane.f32.xlu2 %v1915_v9 }
 0x9e1   :  { %2065 = vperm.xlu2 %5121, %v6630_v18  }
 0x9ea   :  { %v1942_v23 = vpop.xlane.xlu2 %1941 }
 0x9eb   :  { %v1950_v53 = vmul.f32 %v1942_v23, %v6620_v61 }
 0x9ed   :  { %v1954_v0 = vadd.f32 1e-05, %v1950_v53 }
 0x9ef   :  { %5271 = vrsqrt.f32 %v1954_v0  ;;  %vm1973_vm10 = vweird.f32 %v1954_v0 }
 0x9f2   :  { %v6679_v62 = vpop.permute.xlu2 %2062 }
 0x9f3   :  { %v2071_v9 = vrot.slane %v6679_v62, 7 }
 0x9f5   :  { %v5272_v37 = vpop.eup %5271  ;;  %v6714_v49 = vsel %vm2019_vm12, %v6692_v8, %v2071_v9 }
 0x9f6   :  { %v1968_v34 = vmul.f32 %v5272_v37, %v1954_v0  ;;  %vm1974_vm7 = vweird.f32 %v5272_v37  ;;  %8668 = vst [vmem:[#allocation18_spill] sm:$0xff] %v6714_v49 }
 0x9f7   :  { %vm1975_vm11 = vmor %vm1973_vm10, %vm1974_vm7  ;;  %vm2175_vm7 = vcmask 523264  }
 0x9f8   :  { %v1969_v47 = vmul.f32 %v5272_v37, %v1968_v34 }
 0x9fa   :  { %v1970_v46 = vmul.f32 0.5, %v1969_v47  ;;  %v6687_v35 = vpop.permute.xlu2 %2091 }
 0x9fb   :  { %v2101_v21 = vrot.slane %v6687_v35, 6 }
 0x9fc   :  { %v1971_v3 = vsub.f32 1.5, %v1970_v46 }
 0x9fd   :  { %v6720_v23 = vsel %vm2099_vm13, %v6694_v30, %v2101_v21 }
 0x9fe   :  { %v1972_v43 = vmul.f32 %v5272_v37, %v1971_v3  ;;  %8669 = vst [vmem:[#allocation5_spill] sm:$0xff] %v6720_v23 }
 0xa00   :  { %v1976_v4 = vsel %vm1975_vm11, %v5272_v37, %v1972_v43  ;;  %v2150_v37 = vrot.slane %v2112_v1, 2  ;;  %v2185_v1 = vld [vmem:[%s8504_s12 + $0x28] sm:$0xff]  ;;  %vm2196_vm11 = vcmask 785408  }
 0xa01   :  { %v1998_v24 = vmul.f32 %v1976_v4, %v1930_v39  ;;  %v8667_v39 = vld [vmem:[#allocation6_spill] sm:$0xff] }
 0xa03   :  { %v2003_v32 = vmul.f32 %v6673_v17, %v1998_v24 }
 0xa05   :  { %v6690_v27 = vadd.f32 %v6676_v40, %v2003_v32 }
 0xa07   :  { %v6700_v59 = vmul.f32 %v6690_v27, %v8667_v39 }
 0xa09   :  { %v2021_v7 = vrot.slane %v6700_v59, 7 }
 0xa0b   :  { %v6725_v53 = vsel %vm2019_vm12, %v2020_v38, %v2021_v7 }
 0xa0c   :  { %v6729_v26 = vmul.f32 %v6714_v49, %v6725_v53  ;;  %v6733_v0 = vmul.f32 %v6720_v23, %v6725_v53 }
 0xa0e   :  { %v8570_v16 = vrot.slane %v6729_v26, 1  ;;  %v2151_v34 = vrot.slane %v6733_v0, 2 }
 0xa10   :  { %v2125_v57 = vsel %vm2122_vm14, %v2123_v55, %v8570_v16  ;;  %v2152_v47 = vsel %vm2149_vm0, %v2150_v37, %v2151_v34  ;;  %v2184_v55 = vld [vmem:[%s8504_s12 + $0x20] sm:$0xff] }
 0xa11   :  { %2132 = vrot.lane.b32.xlu1 %v2125_v57, %s5359_s2  ;;  %2159 = vrot.lane.b32.xlu0 %v2152_v47, %s5357_s25  ;;  %v2183_v57 = vld [vmem:[%s8504_s12 + $0x18] sm:$0xff]  ;;  %v2182_v47 = vld [vmem:[%s8504_s12 + $0x10] sm:$0xff] }
 0xa34   :  { %v1914_v46 = vpop.xlane.xlu2 %1913 }
 0xa35   :  { %v1927_v3 = vmul.f32 %v6620_v61, %v1914_v46  ;;  %v2181_v46 = vld [vmem:[%s8504_s12 + $0x8] sm:$0xff] }
 0xa37   :  { %v6747_v43 = vsub.f32 %v6647_v14, %v1927_v3  ;;  %v2191_v14 = vld [vmem:[%s8504_s12 + $0x58] sm:$0xff]  ;;  %v2180_v3 = vld [vmem:[%s8504_s12] sm:$0xff] }
 0xa38   :  { %2213 = vmatpush.msrb.mxu3 %v2191_v14 }
 0xa39   :  { %v1935_v28 = vmul.f32 %v6747_v43, %v6747_v43 }
 0xa3b   :  { %v1943_v4 = vsel %vm312_vm9, %v1935_v28, 0.0 }
 0xa3c   :  { %1944 = vadd.xlane.f32.xlu2 %v1943_v4  ;;  %v1917_v24 = vpop.xlane.xlu2 %1916 }
 0xa3d   :  { %v1928_v2 = vmul.f32 %v6620_v61, %v1917_v24 }
 0xa3f   :  { %v6754_v56 = vsub.f32 %v6653_v20, %v1928_v2  ;;  %v2190_v20 = vld [vmem:[%s8504_s12 + $0x50] sm:$0xff] }
 0xa40   :  { %2214 = vmatpush.msrb.mxu3 %v2190_v20 }
 0xa41   :  { %v1936_v32 = vmul.f32 %v6754_v56, %v6754_v56 }
 0xa43   :  { %v1946_v38 = vsel %vm312_vm9, %v1936_v32, 0.0 }
 0xa44   :  { %1947 = vadd.xlane.f32.xlu2 %v1946_v38  ;;  %v6789_v37 = vpop.permute.xlu2 %2065 }
 0xa5c   :  { %2068 = vperm.xlu2 %5121, %v6662_v54  }
 0xa64   :  { %5123 = vset.pattern.permute.xlu2 %v8660_v63 }
 0xa65   :  { %2036 = vperm.xlu2 %5123, %v6617_v31   ;;  %v2189_v31 = vld [vmem:[%s8504_s12 + $0x48] sm:$0xff] }
 0xa66   :  { %2215 = vmatpush.msrb.mxu3 %v2189_v31 }
 0xa6d   :  { %2041 = vperm.xlu2 %5123, %v6639_v19   ;;  %v2187_v19 = vld [vmem:[%s8504_s12 + $0x38] sm:$0xff] }
 0xa75   :  { %2046 = vperm.xlu2 %5123, %v6630_v18   ;;  %v2188_v18 = vld [vmem:[%s8504_s12 + $0x40] sm:$0xff] }
 0xa76   :  { %2216 = vmatpush.msrb.mxu3 %v2188_v18  ;;  %v2098_v18 = vpop.permute.xlu1 %2097 }
 0xa78   :  { %2217 = vmatpush.msrb.mxu3 %v2187_v19 }
 0xa7a   :  { %2218 = vmatpush.msrb.mxu3 %v2186_v45 }
 0xa7c   :  { %2219 = vmatpush.msrb.mxu3 %v2185_v1 }
 0xa7d   :  { %5131 = vset.pattern.permute.xlu2 %v8659_v10 }
 0xa7e   :  { %2220 = vmatpush.msrb.mxu3 %v2184_v55 }
 0xa80   :  { %2221 = vmatpush.msrb.mxu3 %v2183_v57  ;;  %v2095_v57 = vpop.permute.xlu0 %2094 }
 0xa82   :  { %2222 = vmatpush.msrb.mxu3 %v2182_v47 }
 0xa84   :  { %2223 = vmatpush.msrb.mxu3 %v2181_v46 }
 0xa86   :  { %2224 = vmatpush.msrb.mxu3 %v2180_v3 }
 0xaaf   :  { %v1945_v28 = vpop.xlane.xlu2 %1944 }
 0xab0   :  { %v1951_v4 = vmul.f32 %v1945_v28, %v6620_v61 }
 0xab2   :  { %v1955_v24 = vadd.f32 1e-05, %v1951_v4 }
 0xab4   :  { %5273 = vrsqrt.f32 %v1955_v24  ;;  %vm1983_vm2 = vweird.f32 %v1955_v24 }
 0xab7   :  { %v1948_v2 = vpop.xlane.xlu2 %1947 }
 0xab8   :  { %v1952_v32 = vmul.f32 %v1948_v2, %v6620_v61 }
 0xaba   :  { %v5274_v38 = vpop.eup %5273  ;;  %v1956_v14 = vadd.f32 1e-05, %v1952_v32 }
 0xabb   :  { %v1978_v20 = vmul.f32 %v5274_v38, %v1955_v24  ;;  %vm1984_vm1 = vweird.f32 %v5274_v38  ;;  %v2160_v24 = vpop.permute.xlu0 %2159 }
 0xabc   :  { %5275 = vrsqrt.f32 %v1956_v14  ;;  %vm1985_vm4 = vmor %vm1983_vm2, %vm1984_vm1  ;;  %vm1993_vm1 = vweird.f32 %v1956_v14 }
 0xabd   :  { %v1979_v31 = vmul.f32 %v5274_v38, %v1978_v20 }
 0xabf   :  { %v1980_v19 = vmul.f32 0.5, %v1979_v31  ;;  %v2069_v45 = vpop.permute.xlu2 %2068 }
 0xac0   :  { %v6842_v62 = vrot.slane %v2069_v45, 7 }
 0xac1   :  { %v1981_v1 = vsub.f32 1.5, %v1980_v19  ;;  %v2133_v19 = vpop.permute.xlu1 %2132 }
 0xac2   :  { %v5276_v55 = vpop.eup %5275  ;;  %8675 = vst [vmem:[#allocation22_spill] sm:$0xff] %v6842_v62 }
 0xac3   :  { %v1982_v47 = vmul.f32 %v5274_v38, %v1981_v1  ;;  %v1988_v46 = vmul.f32 %v5276_v55, %v1956_v14  ;;  %vm1994_vm10 = vweird.f32 %v5276_v55 }
 0xac4   :  { %vm1995_vm2 = vmor %vm1993_vm1, %vm1994_vm10 }
 0xac5   :  { %v1986_v3 = vsel %vm1985_vm4, %v5274_v38, %v1982_v47  ;;  %v1989_v28 = vmul.f32 %v5276_v55, %v1988_v46  ;;  %v2103_v46 = vrot.slane %v2095_v57, 6 }
 0xac6   :  { %v1999_v4 = vmul.f32 %v1986_v3, %v6747_v43  ;;  %v2073_v3 = vrot.slane %v6789_v37, 7 }
 0xac7   :  { %v1990_v2 = vmul.f32 0.5, %v1989_v28  ;;  %v6806_v32 = vpop.permute.xlu2 %2036 }
 0xac8   :  { %8670 = vst [vmem:[#allocation7_spill] sm:$0xff] %v6806_v32  ;;  %v2004_v20 = vmul.f32 %v6673_v17, %v1999_v4  ;;  %v2054_v31 = vmul.f32 %v6806_v32, %v6703_v51  ;;  %v8671_v51 = vld [vmem:[#allocation8_spill] sm:$0xff]  ;;  %v6829_v14 = vsel %vm2019_vm12, %v2071_v9, %v2073_v3  ;;  %v8676_v9 = vld [vmem:[#allocation10_spill] sm:$0xff]  ;;  %v6863_v0 = vsel %vm2019_vm12, %v2073_v3, %v6842_v62 }
 0xac9   :  { %v1991_v16 = vsub.f32 1.5, %v1990_v2  ;;  %8673 = vst [vmem:[#allocation11_spill] sm:$0xff] %v6829_v14 }
 0xaca   :  { %v6812_v1 = vadd.f32 %v6676_v40, %v2004_v20  ;;  %v2171_v38 = vsel %vm312_vm9, %v2054_v31, %v2133_v19  ;;  %v6840_v19 = vrot.slane %v2098_v18, 6  ;;  %8679 = vst [vmem:[#allocation24_spill] sm:$0xff] %v6863_v0 }
 0xacb   :  { %v1992_v43 = vmul.f32 %v5276_v55, %v1991_v16  ;;  %v2176_v47 = vsel %vm2175_vm7, %v2171_v38, %v2160_v24  ;;  %v6824_v16 = vsel %vm2099_vm13, %v2101_v21, %v2103_v46 }
 0xacc   :  { %4875 = vmatmul.msk.f32.vlgmr.msrb.gmra.mxu3 %vm2196_vm11, %v2176_v47  ;;  %v2013_v28 = vmul.f32 %v6812_v1, %v8671_v51  ;;  %8672 = vst [vmem:[#allocation9_spill] sm:$0xff] %v6824_v16  ;;  %v6859_v45 = vsel %vm2099_vm13, %v2103_v46, %v6840_v19 }
 0xacd   :  { %v1996_v4 = vsel %vm1995_vm2, %v5276_v55, %v1992_v43  ;;  %8674 = vst [vmem:[#allocation21_spill] sm:$0xff] %v6840_v19 }
 0xace   :  { %v2000_v2 = vmul.f32 %v1996_v4, %v6754_v56  ;;  %v2023_v20 = vrot.slane %v2013_v28, 7  ;;  %8678 = vst [vmem:[#allocation23_spill] sm:$0xff] %v6859_v45 }
 0xad0   :  { %v2005_v37 = vmul.f32 %v6673_v17, %v2000_v2  ;;  %v2024_v57 = vsel %vm2019_vm12, %v2021_v7, %v2023_v20  ;;  %v8677_v7 = vrot.slane %v6729_v26, 1 }
 0xad1   :  { %v2114_v55 = vmul.f32 %v6824_v16, %v2024_v57  ;;  %v2084_v56 = vmul.f32 %v6829_v14, %v2024_v57 }
 0xad2   :  { %v6838_v35 = vadd.f32 %v6676_v40, %v2005_v37 }
 0xad3   :  { %v2153_v21 = vrot.slane %v2114_v55, 2  ;;  %v2126_v31 = vrot.slane %v2084_v56, 1  ;;  %v6883_v56 = vpop.permute.xlu2 %2041 }
 0xad4   :  { %v2014_v17 = vmul.f32 %v6838_v35, %v8676_v9  ;;  %8680 = vst [vmem:[#allocation25_spill] sm:$0xff] %v6883_v56 }
 0xad5   :  { %v2154_v59 = vsel %vm2149_vm0, %v2151_v34, %v2153_v21  ;;  %v2127_v24 = vsel %vm2122_vm14, %v8677_v7, %v2126_v31 }
 0xad6   :  { %2161 = vrot.lane.b32.xlu0 %v2154_v59, %s5357_s25  ;;  %2134 = vrot.lane.b32.xlu1 %v2127_v24, %s5359_s2  ;;  %v2025_v40 = vrot.slane %v2014_v17, 7  ;;  %v2055_v17 = vmul.f32 %v6883_v56, %v6725_v53  ;;  %v2345_v53 = vld [vmem:[%s8506_s14 + $0xb8] sm:$0xff] }
 0xad7   :  { %2395 = vmatpush.msra.mxu1 %v2345_v53  ;;  %v2334_v53 = vld [vmem:[%s8506_s14 + $0x60] sm:$0xff] }
 0xad8   :  { %v6855_v18 = vsel %vm2019_vm12, %v2023_v20, %v2025_v40  ;;  %v2033_v26 = vsel %vm2019_vm12, %v2025_v40, 0.0 }
 0xad9   :  { %v2115_v34 = vmul.f32 %v6859_v45, %v6855_v18  ;;  %v2085_v38 = vmul.f32 %v6863_v0, %v6855_v18  ;;  %v2086_v43 = vmul.f32 %v6842_v62, %v2033_v26  ;;  %v2116_v47 = vmul.f32 %v6840_v19, %v2033_v26 }
 0xadb   :  { %v2155_v28 = vrot.slane %v2115_v34, 2  ;;  %v2128_v4 = vrot.slane %v2085_v38, 1  ;;  %v2130_v46 = vrot.slane %v2086_v43, 1  ;;  %v2157_v2 = vrot.slane %v2116_v47, 2  ;;  %v6890_v24 = vpop.permute.xlu2 %2046  ;;  %v2344_v43 = vld [vmem:[%s8506_s14 + $0xb0] sm:$0xff]  ;;  %v2342_v47 = vld [vmem:[%s8506_s14 + $0xa0] sm:$0xff] }
 0xadc   :  { %8681 = vst [vmem:[#allocation26_spill] sm:$0xff] %v6890_v24  ;;  %v2056_v40 = vmul.f32 %v6890_v24, %v2024_v57  ;;  %2396 = vmatpush.msra.mxu1 %v2344_v43  ;;  %v2343_v57 = vld [vmem:[%s8506_s14 + $0xa8] sm:$0xff] }
 0xadd   :  { %v2156_v20 = vsel %vm2149_vm0, %v2153_v21, %v2155_v28  ;;  %v2129_v3 = vsel %vm2122_vm14, %v2126_v31, %v2128_v4  ;;  %v6875_v37 = vsel %vm2122_vm14, %v2128_v4, %v2130_v46  ;;  %v6878_v55 = vsel %vm2149_vm0, %v2155_v28, %v2157_v2  ;;  %v2341_v28 = vld [vmem:[%s8506_s14 + $0x98] sm:$0xff]  ;;  %v2340_v4 = vld [vmem:[%s8506_s14 + $0x90] sm:$0xff]  ;;  %v2339_v46 = vld [vmem:[%s8506_s14 + $0x88] sm:$0xff] }
 0xade   :  { %2163 = vrot.lane.b32.xlu0 %v2156_v20, %s5357_s25  ;;  %2136 = vrot.lane.b32.xlu1 %v2129_v3, %s5359_s2  ;;  %v6920_v2 = vld [vmem:[%s8505_s13] ss:$0 sm:$0xff] }
 0xadf   :  { %2397 = vmatpush.msra.mxu1 %v2343_v57  ;;  %v2338_v20 = vld [vmem:[%s8506_s14 + $0x80] sm:$0xff] }
 0xae1   :  { %2398 = vmatpush.msra.mxu1 %v2342_v47  ;;  %v2333_v47 = vld [vmem:[%s8506_s14 + $0x58] sm:$0xff] }
 0xae3   :  { %2399 = vmatpush.msra.mxu1 %v2341_v28 }
 0xae5   :  { %2400 = vmatpush.msra.mxu1 %v2340_v4 }
 0xae6   :  { %2051 = vperm.xlu0 %5124, %v6662_v54  }
 0xae7   :  { %2401 = vmatpush.msra.mxu1 %v2339_v46 }
 0xae9   :  { %2402 = vmatpush.msra.mxu1 %v2338_v20 }
 0xb48   :  { %v2162_v21 = vpop.permute.xlu0 %2161  ;;  %v2135_v59 = vpop.permute.xlu1 %2134 }
 0xb49   :  { %v2172_v31 = vsel %vm312_vm9, %v2055_v17, %v2135_v59 }
 0xb4a   :  { %v2177_v7 = vsel %vm2175_vm7, %v2172_v31, %v2162_v21 }
 0xb4b   :  { %4876 = vmatmul.msk.f32.gmra.mxu3 %vm2196_vm11, %v2177_v7  ;;  %v2337_v7 = vld [vmem:[%s8506_s14 + $0x78] sm:$0xff] }
 0xb4c   :  { %2358 = vmatpush.msrb.mxu0 %v2337_v7  ;;  %v2331_v7 = vld [vmem:[%s8506_s14 + $0x48] sm:$0xff] }
 0xb4f   :  { %v2226_v3 = vpop.f32.mrf.mxu3 }
 0xb50   :  { %v2164_v26 = vpop.permute.xlu0 %2163  ;;  %v2137_v34 = vpop.permute.xlu1 %2136  ;;  %v2227_v17 = vadd.f32 %v6920_v2, %v2226_v3  ;;  %v2332_v3 = vld [vmem:[%s8506_s14 + $0x50] sm:$0xff] }
 0xb51   :  { %v2173_v54 = vsel %vm312_vm9, %v2056_v40, %v2137_v34  ;;  %v2336_v40 = vld [vmem:[%s8506_s14 + $0x70] sm:$0xff] }
 0xb52   :  { %v2178_v38 = vsel %vm2175_vm7, %v2173_v54, %v2164_v26  ;;  %v2238_v21 = vmax.f32 %v2227_v17, 0.0  ;;  %v2335_v54 = vld [vmem:[%s8506_s14 + $0x68] sm:$0xff]  ;;  %2359 = vmatpush.msrb.mxu0 %v2336_v40 }
 0xb53   :  { %4877 = vmatmul.msk.f32.gmra.mxu3 %vm2196_vm11, %v2178_v38 }
 0xb54   :  { %v2242_v59 = vmul.f32 %v2238_v21, %v8664_v52  ;;  %2360 = vmatpush.msrb.mxu0 %v2335_v54 }
 0xb56   :  { %v2250_v26 = vrot.slane %v2242_v59, 7  ;;  %2361 = vmatpush.msrb.mxu0 %v2334_v53 }
 0xb58   :  { %v2262_v43 = vsel %vm2019_vm12, 0.0, %v2250_v26  ;;  %2362 = vmatpush.msrb.mxu0 %v2333_v47 }
 0xb59   :  { %v2268_v4 = vmul.f32 %v2262_v43, %v6692_v8  ;;  %v2273_v46 = vmul.f32 %v2262_v43, %v6694_v30 }
 0xb5a   :  { %2363 = vmatpush.msrb.mxu0 %v2332_v3  ;;  %v2328_v3 = vld [vmem:[%s8506_s14 + $0x30] sm:$0xff] }
 0xb5c   :  { %2364 = vmatpush.msrb.mxu0 %v2331_v7 }
 0xbce   :  { %v2229_v31 = vpop.f32.mrf.mxu3 }
 0xbcf   :  { %v2230_v34 = vadd.f32 %v6920_v2, %v2229_v31 }
 0xbd1   :  { %v2239_v38 = vmax.f32 %v2230_v34, 0.0  ;;  %v2309_v34 = vrot.slane %v2273_v46, 2 }
 0xbd3   :  { %v2243_v57 = vmul.f32 %v2239_v38, %v8667_v39  ;;  %v2283_v38 = vrot.slane %v2268_v4, 1  ;;  %v2329_v4 = vld [vmem:[%s8506_s14 + $0x38] sm:$0xff] }
 0xbd5   :  { %v2251_v28 = vrot.slane %v2243_v57, 7 }
 0xbd6   :  { %v2232_v20 = vpop.f32.mrf.mxu3 }
 0xbd7   :  { %v2252_v17 = vsel %vm2019_vm12, %v2250_v26, %v2251_v28  ;;  %v2233_v21 = vadd.f32 %v6920_v2, %v2232_v20  ;;  %v2330_v26 = vld [vmem:[%s8506_s14 + $0x40] sm:$0xff] }
 0xbd8   :  { %v2274_v59 = vmul.f32 %v2252_v17, %v6720_v23  ;;  %v2269_v31 = vmul.f32 %v2252_v17, %v6714_v49  ;;  %2365 = vmatpush.msrb.mxu0 %v2330_v26  ;;  %v2325_v26 = vld [vmem:[%s8506_s14 + $0x18] sm:$0xff] }
 0xbd9   :  { %v2240_v40 = vmax.f32 %v2233_v21, 0.0 }
 0xbda   :  { %v2310_v54 = vrot.slane %v2274_v59, 2  ;;  %v2284_v53 = vrot.slane %v2269_v31, 1  ;;  %2366 = vmatpush.msrb.mxu0 %v2329_v4  ;;  %v2327_v31 = vld [vmem:[%s8506_s14 + $0x28] sm:$0xff] }
 0xbdb   :  { %v6958_v57 = vmul.f32 %v2240_v40, %v8671_v51  ;;  %v2326_v40 = vld [vmem:[%s8506_s14 + $0x20] sm:$0xff] }
 0xbdc   :  { %v2311_v47 = vsel %vm2149_vm0, %v2309_v34, %v2310_v54  ;;  %v2285_v20 = vsel %vm2122_vm14, %v2283_v38, %v2284_v53  ;;  %2367 = vmatpush.msrb.mxu0 %v2328_v3  ;;  %v2265_v3 = vmul.f32 %v2252_v17, %v6883_v56  ;;  %v7033_v17 = vld [vmem:[%s8507_s15] ss:$0 sm:$0xff] }
 0xbdd   :  { %v2253_v49 = vrot.slane %v6958_v57, 7  ;;  %4879 = vmatmul.msk.f32.vlgmr.msra.gmra.mxu1 %vm2175_vm7, %v2311_v47  ;;  %2292 = vrot.lane.b32.xlu2 %v2285_v20, %s5357_s25  ;;  %v2264_v47 = vmul.f32 %v2262_v43, %v6806_v32 }
 0xbde   :  { %2368 = vmatpush.msrb.mxu0 %v2327_v31 }
 0xbdf   :  { %v6974_v46 = vsel %vm2019_vm12, %v2251_v28, %v2253_v49 }
 0xbe0   :  { %v6981_v21 = vmul.f32 %v6974_v46, %v6824_v16  ;;  %v6985_v59 = vmul.f32 %v6974_v46, %v6829_v14  ;;  %2369 = vmatpush.msrb.mxu0 %v2326_v40  ;;  %v8698_v14 = vld [vmem:[#allocation13_spill] sm:$0xff] }
 0xbe2   :  { %v2312_v28 = vrot.slane %v6981_v21, 2  ;;  %v2286_v7 = vrot.slane %v6985_v59, 1  ;;  %2370 = vmatpush.msrb.mxu0 %v2325_v26 }
 0xbe4   :  { %v2313_v34 = vsel %vm2149_vm0, %v2310_v54, %v2312_v28  ;;  %v2287_v38 = vsel %vm2122_vm14, %v2284_v53, %v2286_v7  ;;  %v2324_v54 = vld [vmem:[%s8506_s14 + $0x10] sm:$0xff]  ;;  %v2323_v53 = vld [vmem:[%s8506_s14 + $0x8] sm:$0xff] }
 0xbe5   :  { %2138 = vrot.lane.b32.xlu2 %v6875_v37, %s5359_s2  ;;  %4880 = vmatmul.msk.f32.gmra.mxu1 %vm2175_vm7, %v2313_v34  ;;  %v2322_v37 = vld [vmem:[%s8506_s14] sm:$0xff]  ;;  %v7023_v34 = vpop.permute.xlu0 %2051 }
 0xbe6   :  { %2294 = vrot.lane.b32.xlu1 %v2287_v38, %s5357_s25  ;;  %2371 = vmatpush.msrb.mxu0 %v2324_v54  ;;  %8682 = vst [vmem:[#allocation27_spill] sm:$0xff] %v7023_v34  ;;  %v2057_v38 = vmul.f32 %v7023_v34, %v6855_v18 }
 0xbe8   :  { %2372 = vmatpush.msrb.mxu0 %v2323_v53 }
 0xbea   :  { %2373 = vmatpush.msrb.mxu0 %v2322_v37 }
 0xbee   :  { %2165 = vrot.lane.b32.xlu1 %v6878_v55, %s5357_s25 }
 0xc37   :  { %v2293_v20 = vpop.permute.xlu2 %2292 }
 0xc38   :  { %v2318_v4 = vsel %vm2175_vm7, %v2264_v47, %v2293_v20 }
 0xc39   :  { %2374 = vmatmul.f32.vlgmr.msrb.gmra.mxu0 %v2318_v4 }
 0xc3f   :  { %v2139_v55 = vpop.permute.xlu2 %2138 }
 0xc40   :  { %v2174_v26 = vsel %vm312_vm9, %v2057_v38, %v2139_v55 }
 0xc58   :  { %v2295_v31 = vpop.permute.xlu1 %2294 }
 0xc59   :  { %v2319_v40 = vsel %vm2175_vm7, %v2265_v3, %v2295_v31 }
 0xc5a   :  { %2377 = vmatmul.f32.gmra.mxu0 %v2319_v40  ;;  %v2404_v47 = vpop.f32.mrf.mxu1 }
 0xc60   :  { %v2166_v54 = vpop.permute.xlu1 %2165 }
 0xc61   :  { %v2179_v43 = vsel %vm2175_vm7, %v2174_v26, %v2166_v54 }
 0xc62   :  { %4878 = vmatmul.msk.f32.gmra.mxu3 %vm2196_vm11, %v2179_v43  ;;  %v2407_v55 = vpop.f32.mrf.mxu1 }
 0xcb6   :  { %v2375_v53 = vpop.f32.mrf.mxu0 }
 0xcb7   :  { %v2376_v37 = vadd.f32 %v7033_v17, %v2375_v53 }
 0xcb9   :  { %v2405_v20 = vadd.f32 %v2404_v47, %v2376_v37 }
 0xcbb   :  { %v2416_v4 = vmul.f32 %v2405_v20, %v8664_v52 }
 0xcbd   :  { %v2420_v18 = vadd.f32 %v2416_v4, %v6682_v48 }
 0xcbf   :  { %v2424_v3 = vsel %vm312_vm9, %v2420_v18, 0.0 }
 0xcc0   :  { %2425 = vadd.xlane.f32.xlu2 %v2424_v3 }
 0xcd7   :  { %v2378_v31 = vpop.f32.mrf.mxu0 }
 0xcd8   :  { %v2379_v40 = vadd.f32 %v7033_v17, %v2378_v31 }
 0xcda   :  { %v2408_v38 = vadd.f32 %v2407_v55, %v2379_v40 }
 0xcdc   :  { %v2417_v26 = vmul.f32 %v2408_v38, %v8667_v39  ;;  %v8699_v39 = vld [vmem:[#allocation14_spill] sm:$0xff] }
 0xcde   :  { %v2421_v54 = vadd.f32 %v2417_v26, %v6690_v27 }
 0xce0   :  { %v2427_v43 = vsel %vm312_vm9, %v2421_v54, 0.0 }
 0xce1   :  { %2428 = vadd.xlane.f32.xlu1 %v2427_v43 }
 0xce5   :  { %v2235_v53 = vpop.f32.mrf.mxu3 }
 0xce6   :  { %v2236_v37 = vadd.f32 %v6920_v2, %v2235_v53 }
 0xce8   :  { %v2241_v47 = vmax.f32 %v2236_v37, 0.0 }
 0xcea   :  { %v2245_v48 = vmul.f32 %v2241_v47, %v8676_v9 }
 0xcec   :  { %v2255_v20 = vrot.slane %v2245_v48, 7 }
 0xcee   :  { %v2256_v4 = vsel %vm2019_vm12, %v2253_v49, %v2255_v20  ;;  %v2263_v3 = vsel %vm2019_vm12, %v2255_v20, 0.0 }
 0xcef   :  { %v2271_v31 = vmul.f32 %v2256_v4, %v6863_v0  ;;  %v2272_v27 = vmul.f32 %v2263_v3, %v6842_v62  ;;  %v2276_v40 = vmul.f32 %v2256_v4, %v6859_v45  ;;  %v2277_v2 = vmul.f32 %v2263_v3, %v6840_v19 }
 0xcf1   :  { %v2288_v55 = vrot.slane %v2271_v31, 1  ;;  %v2290_v38 = vrot.slane %v2272_v27, 1  ;;  %v2314_v26 = vrot.slane %v2276_v40, 2  ;;  %v2316_v53 = vrot.slane %v2277_v2, 2 }
 0xcf3   :  { %v2315_v43 = vsel %vm2149_vm0, %v2312_v28, %v2314_v26  ;;  %v2289_v49 = vsel %vm2122_vm14, %v2286_v7, %v2288_v55  ;;  %v2291_v57 = vsel %vm2122_vm14, %v2288_v55, %v2290_v38  ;;  %v2317_v47 = vsel %vm2149_vm0, %v2314_v26, %v2316_v53  ;;  %v7094_v53 = vld [vmem:[%s8498_s7 + $0x20] sm:$0xff] }
 0xcf4   :  { %4881 = vmatmul.msk.f32.gmra.mxu1 %vm2175_vm7, %v2315_v43  ;;  %v5125_v37 = vpack.i.bf16 %v2291_v57, %v2289_v49  ;;  %v2266_v26 = vmul.f32 %v6974_v46, %v6890_v24  ;;  %v2267_v43 = vmul.f32 %v2256_v4, %v7023_v34  ;;  %v7081_v57 = vld [vmem:[%s8498_s7 + $0x30] sm:$0xff]  ;;  %v7089_v4 = vld [vmem:[%s8498_s7 + $0x28] sm:$0xff]  ;;  %8686 = vst [vmem:[#allocation31_spill] sm:$0xff] %v7094_v53 }
 0xcf5   :  { %8684 = vst [vmem:[#allocation29_spill] sm:$0xff] %v7081_v57 }
 0xcf6   :  { %8685 = vst [vmem:[#allocation30_spill] sm:$0xff] %v7089_v4 }
 0xcfa   :  { %5126 = vrot.lane.b32.xlu1 %v5125_v37, %s5357_s25 }
 0xcfc   :  { %4882 = vmatmul.msk.f32.gmra.mxu1 %vm2175_vm7, %v2317_v47 }
 0xd33   :  { %v2426_v48 = vpop.xlane.xlu2 %2425 }
 0xd34   :  { %v2436_v21 = vmul.f32 %v2426_v48, %v6620_v61 }
 0xd36   :  { %v2440_v28 = vsub.f32 %v2420_v18, %v2436_v21 }
 0xd38   :  { %v2444_v20 = vmul.f32 %v2440_v28, %v2440_v28 }
 0xd3a   :  { %v2448_v3 = vsel %vm312_vm9, %v2444_v20, 0.0 }
 0xd3b   :  { %2449 = vadd.xlane.f32.xlu0 %v2448_v3 }
 0xd54   :  { %v2429_v59 = vpop.xlane.xlu1 %2428 }
 0xd55   :  { %v2437_v7 = vmul.f32 %v2429_v59, %v6620_v61 }
 0xd57   :  { %v2441_v31 = vsub.f32 %v2421_v54, %v2437_v7  ;;  %v7076_v54 = vld [vmem:[%s8498_s7 + $0x38] sm:$0xff] }
 0xd58   :  { %8683 = vst [vmem:[#allocation28_spill] sm:$0xff] %v7076_v54  ;;  %2564 = vmatpush.msra.mxu2 %v7076_v54 }
 0xd59   :  { %v2445_v27 = vmul.f32 %v2441_v31, %v2441_v31 }
 0xd5a   :  { %2565 = vmatpush.msra.mxu2 %v7081_v57 }
 0xd5b   :  { %v2451_v40 = vsel %vm312_vm9, %v2445_v27, 0.0 }
 0xd5c   :  { %2452 = vadd.xlane.f32.xlu2 %v2451_v40  ;;  %2566 = vmatpush.msra.mxu2 %v7089_v4 }
 0xd5e   :  { %2567 = vmatpush.msra.mxu2 %v7094_v53 }
 0xd6c   :  { %v5127_v55 = vpop.permute.xlu1 %5126 }
 0xd6d   :  { %v5128_v38 = vunpack.i.l.bf16 %v5127_v55  ;;  %v5129_v18 = vunpack.i.h.bf16 %v5127_v55  ;;  %v7103_v55 = vperm.slane %v6670_v12, 2 }
 0xd6f   :  { %v2320_v2 = vsel %vm2175_vm7, %v2266_v26, %v5128_v38  ;;  %v2321_v49 = vsel %vm2175_vm7, %v2267_v43, %v5129_v18 }
 0xd70   :  { %2380 = vmatmul.f32.gmra.mxu0 %v2320_v2  ;;  %v7106_v2 = vperm.slane %v6670_v12, 3 }
 0xd78   :  { %2383 = vmatmul.f32.gmra.mxu0 %v2321_v49 }
 0xdae   :  { %v2450_v47 = vpop.xlane.xlu0 %2449 }
 0xdaf   :  { %v2460_v48 = vmul.f32 %v2450_v47, %v6620_v61 }
 0xdb1   :  { %v2464_v21 = vadd.f32 1e-05, %v2460_v48 }
 0xdb3   :  { %5277 = vrsqrt.f32 %v2464_v21  ;;  %vm2474_vm4 = vweird.f32 %v2464_v21 }
 0xdb9   :  { %v5278_v20 = vpop.eup %5277 }
 0xdba   :  { %v2469_v3 = vmul.f32 %v5278_v20, %v2464_v21  ;;  %vm2475_vm13 = vweird.f32 %v5278_v20 }
 0xdbb   :  { %vm2476_vm10 = vmor %vm2474_vm4, %vm2475_vm13 }
 0xdbc   :  { %v2470_v59 = vmul.f32 %v5278_v20, %v2469_v3 }
 0xdbe   :  { %v2471_v7 = vmul.f32 0.5, %v2470_v59 }
 0xdc0   :  { %v2472_v27 = vsub.f32 1.5, %v2471_v7 }
 0xdc2   :  { %v2473_v40 = vmul.f32 %v5278_v20, %v2472_v27 }
 0xdc4   :  { %v2477_v38 = vsel %vm2476_vm10, %v5278_v20, %v2473_v40 }
 0xdc5   :  { %v2508_v26 = vmul.f32 %v2477_v38, %v2440_v28  ;;  %v7118_v28 = vld [vmem:[%s8499_s9 + $0x18] sm:$0x1] }
 0xdc6   :  { %4897 = vmatpush.xpose.msk.msrb.mxu1 %vm356_vm8, %v7118_v28 }
 0xdc7   :  { %v2513_v18 = vmul.f32 %v7103_v55, %v2508_v26 }
 0xdc9   :  { %v7110_v43 = vadd.f32 %v7106_v2, %v2513_v18  ;;  %v7131_v18 = vld [vmem:[%s8499_s9 + $0x10] sm:$0xff] }
 0xdca   :  { %4898 = vmatpush.xpose.msk.msrb.mxu1 %vm356_vm8, %v7131_v18 }
 0xdcb   :  { %8687 = vst [vmem:[#allocation32_spill] sm:$0xff] %v7110_v43  ;;  %4893 = vmatmul.msk.f32.vlgmr.msra.gmra.mxu2 %vm312_vm9, %v7110_v43 }
 0xdce   :  { %4907 = vmatpush.xpose.msk.msra.mxu1 %vm356_vm8, %v7118_v28 }
 0xdcf   :  { %v2453_v49 = vpop.xlane.xlu2 %2452 }
 0xdd0   :  { %v2461_v47 = vmul.f32 %v2453_v49, %v6620_v61 }
 0xdd2   :  { %v2465_v48 = vadd.f32 1e-05, %v2461_v47  ;;  %4908 = vmatpush.xpose.msk.msra.mxu1 %vm356_vm8, %v7131_v18 }
 0xdd4   :  { %5279 = vrsqrt.f32 %v2465_v48  ;;  %vm2484_vm2 = vweird.f32 %v2465_v48 }
 0xdda   :  { %v5280_v21 = vpop.eup %5279 }
 0xddb   :  { %v2479_v12 = vmul.f32 %v5280_v21, %v2465_v48  ;;  %vm2485_vm1 = vweird.f32 %v5280_v21 }
 0xddc   :  { %vm2486_vm13 = vmor %vm2484_vm2, %vm2485_vm1 }
 0xddd   :  { %v2480_v20 = vmul.f32 %v5280_v21, %v2479_v12 }
 0xddf   :  { %v2481_v3 = vmul.f32 0.5, %v2480_v20  ;;  %v2410_v20 = vpop.f32.mrf.mxu1 }
 0xde1   :  { %v2482_v59 = vsub.f32 1.5, %v2481_v3 }
 0xde3   :  { %v2483_v7 = vmul.f32 %v5280_v21, %v2482_v59 }
 0xde5   :  { %v2487_v27 = vsel %vm2486_vm13, %v5280_v21, %v2483_v7 }
 0xde6   :  { %v2509_v40 = vmul.f32 %v2487_v27, %v2441_v31  ;;  %v7142_v31 = vld [vmem:[%s8497_s8 + $0x1] ss:$0 sm:$0xff] }
 0xde8   :  { %v2514_v38 = vmul.f32 %v7103_v55, %v2509_v40 }
 0xdea   :  { %v7124_v26 = vadd.f32 %v7106_v2, %v2514_v38 }
 0xdec   :  { %8688 = vst [vmem:[#allocation33_spill] sm:$0xff] %v7124_v26  ;;  %4894 = vmatmul.msk.f32.gmra.mxu2 %vm312_vm9, %v7124_v26 }
 0xded   :  { %v2381_v21 = vpop.f32.mrf.mxu0 }
 0xdee   :  { %v2382_v12 = vadd.f32 %v7033_v17, %v2381_v21 }
 0xdf0   :  { %v2411_v3 = vadd.f32 %v2410_v20, %v2382_v12 }
 0xdf2   :  { %v2418_v27 = vmul.f32 %v2411_v3, %v8671_v51  ;;  %v2413_v3 = vpop.f32.mrf.mxu1 }
 0xdf5   :  { %v2384_v12 = vpop.f32.mrf.mxu0 }
 0xdf6   :  { %v2385_v20 = vadd.f32 %v7033_v17, %v2384_v12  ;;  %v8689_v17 = vmov 4  }
 0xe4e   :  { %v2569_v49 = vpop.f32.mrf.mxu2 }
 0xe4f   :  { %v2570_v47 = vadd.f32 %v7142_v31, %v2569_v49  ;;  %v2422_v49 = vadd.f32 %v2418_v27, %v6812_v1 }
 0xe51   :  { %3002 = vrot.lane.b32.xlu2 %v2570_v47, %s5356_s24  ;;  %2632 = vrot.lane.b32.xlu1 %v2570_v47, %s5345_s6  ;;  %v2581_v48 = vmul.f32 0.25, %v2570_v47  ;;  %v2430_v21 = vsel %vm312_vm9, %v2422_v49, 0.0 }
 0xe53   :  { %2959 = vrot.lane.b32.xlu0 %v2581_v48, %s5354_s20  ;;  %4899 = vmatmul.msk.f32.vlgmr.msrb.gmra.mxu1 %vm356_vm8, %v2581_v48 }
 0xe6f   :  { %v2572_v59 = vpop.f32.mrf.mxu2 }
 0xe70   :  { %v2573_v7 = vadd.f32 %v7142_v31, %v2572_v59  ;;  %v2414_v59 = vadd.f32 %v2413_v3, %v2385_v20 }
 0xe72   :  { %2634 = vrot.lane.b32.xlu0 %v2573_v7, %s5345_s6  ;;  %v2582_v40 = vmul.f32 0.25, %v2573_v7  ;;  %v7153_v38 = vpack.i.bf16 %v2570_v47, %v2573_v7  ;;  %v2419_v37 = vmul.f32 %v2414_v59, %v8676_v9 }
 0xe74   :  { %2961 = vrot.lane.b32.xlu2 %v2582_v40, %s5354_s20  ;;  %4900 = vmatmul.msk.f32.gmra.mxu1 %vm356_vm8, %v2582_v40  ;;  %v2423_v47 = vadd.f32 %v2419_v37, %v6838_v35 }
 0xe76   :  { %v2433_v46 = vsel %vm312_vm9, %v2423_v47, 0.0 }
 0xe7a   :  { %3004 = vrot.lane.b32.xlu0 %v2573_v7, %s5356_s24 }
 0xe7b   :  { %2431 = vadd.xlane.f32.xlu1 %v2430_v21 }
 0xea4   :  { %2434 = vadd.xlane.f32.xlu0 %v2433_v46 }
 0xeab   :  { %v3003_v24 = vpop.permute.xlu2 %3002 }
 0xec3   :  { %v2633_v46 = vpop.permute.xlu1 %2632 }
 0xec5   :  { %v2960_v34 = vpop.permute.xlu0 %2959 }
 0xec6   :  { %4909 = vmatmul.msk.f32.vlgmr.msra.gmra.mxu1 %vm356_vm8, %v2960_v34 }
 0xece   :  { %v2962_v1 = vpop.permute.xlu2 %2961 }
 0xecf   :  { %4910 = vmatmul.msk.f32.gmra.mxu1 %vm356_vm8, %v2962_v1 }
 0xed0   :  { %v7166_v7 = vpop.f32.mrf.mxu1 }
 0xed1   :  { %2620 = vperm.xlu0 %5124, %v7166_v7  }
 0xed9   :  { %5133 = vset.pattern.permute.xlu0 %v8689_v17 }
 0xeda   :  { %2700 = vperm.xlu0 %5133, %v7166_v7  }
 0xee2   :  { %5139 = vset.pattern.permute.xlu0 %v8661_v25 }
 0xee4   :  { %v2635_v35 = vpop.permute.xlu0 %2634 }
 0xee5   :  { %4901 = vmatpush.xpose.msk.msra.mxu3 %vm356_vm8, %v2635_v35 }
 0xee9   :  { %4902 = vmatpush.xpose.msk.msra.mxu3 %vm356_vm8, %v2633_v46 }
 0xeec   :  { %4903 = vmatmul.msk.f32.vlgmr.msra.gmra.mxu3 %vm356_vm8, %v2581_v48  ;;  %v3005_v37 = vpop.permute.xlu0 %3004  ;;  %v8690_v48 = vmov 5  }
 0xeed   :  { %4911 = vmatpush.xpose.msk.msrb.mxu3 %vm356_vm8, %v3005_v37  ;;  %v8693_v37 = vmov 8  }
 0xeee   :  { %v2432_v27 = vpop.xlane.xlu1 %2431 }
 0xeef   :  { %v2438_v21 = vmul.f32 %v2432_v27, %v6620_v61 }
 0xef1   :  { %v7177_v12 = vsub.f32 %v2422_v49, %v2438_v21  ;;  %4912 = vmatpush.xpose.msk.msrb.mxu3 %vm356_vm8, %v3003_v24 }
 0xef3   :  { %v2446_v20 = vmul.f32 %v7177_v12, %v7177_v12 }
 0xef4   :  { %4904 = vmatmul.msk.f32.gmra.mxu3 %vm356_vm8, %v2582_v40 }
 0xef5   :  { %v2454_v3 = vsel %vm312_vm9, %v2446_v20, 0.0 }
 0xef6   :  { %2455 = vadd.xlane.f32.xlu2 %v2454_v3 }
 0xefc   :  { %4913 = vmatmul.msk.f32.vlgmr.msrb.gmra.mxu3 %vm356_vm8, %v2960_v34  ;;  %v8691_v34 = vmov 6  }
 0xf04   :  { %4914 = vmatmul.msk.f32.gmra.mxu3 %vm356_vm8, %v2962_v1  ;;  %v7197_v1 = vpop.f32.mrf.mxu1 }
 0xf0e   :  { %2676 = vperm.xlu2 %5131, %v7166_v7  }
 0xf16   :  { %5134 = vset.pattern.permute.xlu2 %v8690_v48 }
 0xf17   :  { %v2435_v49 = vpop.xlane.xlu0 %2434  ;;  %2712 = vperm.xlu2 %5134, %v7166_v7  }
 0xf18   :  { %v2439_v24 = vmul.f32 %v2435_v49, %v6620_v61  ;;  %v8694_v49 = vmov 7  }
 0xf1a   :  { %v7190_v59 = vsub.f32 %v2423_v47, %v2439_v24  ;;  %v8692_v47 = vmov 3  }
 0xf1c   :  { %v2447_v40 = vmul.f32 %v7190_v59, %v7190_v59 }
 0xf1e   :  { %v2457_v35 = vsel %vm312_vm9, %v2447_v40, 0.0 }
 0xf1f   :  { %2458 = vadd.xlane.f32.xlu1 %v2457_v35  ;;  %5135 = vset.pattern.permute.xlu2 %v8691_v34 }
 0xf20   :  { %2724 = vperm.xlu2 %5135, %v7166_v7  }
 0xf28   :  { %5136 = vset.pattern.permute.xlu2 %v8660_v63 }
 0xf29   :  { %2625 = vperm.xlu2 %5136, %v7197_v1  }
 0xf38   :  { %2664 = vperm.xlu1 %5130, %v7166_v7  }
 0xf40   :  { %5132 = vset.pattern.permute.xlu1 %v8692_v47 }
 0xf41   :  { %2688 = vperm.xlu1 %5132, %v7166_v7  }
 0xf43   :  { %v2984_v46 = vpop.f32.mrf.mxu1 }
 0xf44   :  { %3034 = vperm.xlu0 %5139, %v2984_v46   ;;  %2992 = vperm.xlu2 %5136, %v2984_v46  }
 0xf49   :  { %5137 = vset.pattern.permute.xlu1 %v8661_v25 }
 0xf4a   :  { %2668 = vperm.xlu1 %5137, %v7197_v1  }
 0xf4c   :  { %5145 = vset.pattern.permute.xlu0 %v8693_v37  ;;  %5140 = vset.pattern.permute.xlu2 %v8692_v47  ;;  %v7210_v27 = vpop.f32.mrf.mxu1 }
 0xf4d   :  { %3118 = vperm.xlu0 %5145, %v2984_v46   ;;  %3058 = vperm.xlu2 %5140, %v2984_v46  }
 0xf52   :  { %5138 = vset.pattern.permute.xlu1 %v8659_v10 }
 0xf53   :  { %2680 = vperm.xlu1 %5138, %v7197_v1  }
 0xf55   :  { %5148 = vset.pattern.permute.xlu0 %v8659_v10  ;;  %5141 = vset.pattern.permute.xlu2 %v8689_v17 }
 0xf56   :  { %3070 = vperm.xlu2 %5141, %v2984_v46   ;;  %3050 = vperm.xlu0 %5148, %v7210_v27  }
 0xf5b   :  { %3046 = vperm.xlu1 %5138, %v2984_v46  }
 0xf5e   :  { %5142 = vset.pattern.permute.xlu2 %v8690_v48  ;;  %5149 = vset.pattern.permute.xlu0 %v8692_v47 }
 0xf5f   :  { %3082 = vperm.xlu2 %5142, %v2984_v46   ;;  %2692 = vperm.xlu0 %5149, %v7197_v1  }
 0xf63   :  { %5143 = vset.pattern.permute.xlu1 %v8691_v34 }
 0xf64   :  { %3094 = vperm.xlu1 %5143, %v2984_v46  }
 0xf67   :  { %5151 = vset.pattern.permute.xlu2 %v8689_v17  ;;  %5159 = vset.pattern.permute.xlu0 %v8691_v34 }
 0xf68   :  { %2704 = vperm.xlu2 %5151, %v7197_v1   ;;  %2728 = vperm.xlu0 %5159, %v7197_v1  }
 0xf69   :  { %v2456_v21 = vpop.xlane.xlu2 %2455 }
 0xf6a   :  { %v2462_v20 = vmul.f32 %v2456_v21, %v6620_v61 }
 0xf6c   :  { %v2466_v3 = vadd.f32 1e-05, %v2462_v20  ;;  %5144 = vset.pattern.permute.xlu1 %v8694_v49 }
 0xf6d   :  { %3106 = vperm.xlu1 %5144, %v2984_v46  }
 0xf6e   :  { %5281 = vrsqrt.f32 %v2466_v3  ;;  %vm2494_vm10 = vweird.f32 %v2466_v3 }
 0xf70   :  { %5152 = vset.pattern.permute.xlu2 %v8692_v47 }
 0xf71   :  { %3062 = vperm.xlu2 %5152, %v7210_v27   ;;  %v7234_v19 = vpop.permute.xlu2 %2676 }
 0xf74   :  { %v5282_v24 = vpop.eup %5281 }
 0xf75   :  { %v2489_v40 = vmul.f32 %v5282_v24, %v2466_v3  ;;  %5146 = vset.pattern.permute.xlu1 %v8660_v63  ;;  %vm2495_vm4 = vweird.f32 %v5282_v24 }
 0xf76   :  { %2997 = vperm.xlu1 %5146, %v7210_v27   ;;  %vm2496_vm1 = vmor %vm2494_vm10, %vm2495_vm4 }
 0xf77   :  { %v2490_v35 = vmul.f32 %v5282_v24, %v2489_v40 }
 0xf79   :  { %v2491_v56 = vmul.f32 0.5, %v2490_v35  ;;  %5153 = vset.pattern.permute.xlu2 %v8689_v17 }
 0xf7a   :  { %3074 = vperm.xlu2 %5153, %v7210_v27  }
 0xf7b   :  { %v2492_v21 = vsub.f32 1.5, %v2491_v56 }
 0xf7d   :  { %v2493_v46 = vmul.f32 %v5282_v24, %v2492_v21 }
 0xf7e   :  { %5147 = vset.pattern.permute.xlu1 %v8661_v25 }
 0xf7f   :  { %3038 = vperm.xlu1 %5147, %v7210_v27   ;;  %v2497_v20 = vsel %vm2496_vm1, %v5282_v24, %v2493_v46 }
 0xf80   :  { %v2510_v32 = vmul.f32 %v2497_v20, %v7177_v12  ;;  %v7247_v12 = vpop.permute.xlu2 %2712 }
 0xf82   :  { %5155 = vset.pattern.permute.xlu2 %v8691_v34  ;;  %v2515_v40 = vmul.f32 %v7103_v55, %v2510_v32 }
 0xf83   :  { %3098 = vperm.xlu2 %5155, %v7210_v27  }
 0xf84   :  { %v7240_v56 = vadd.f32 %v7106_v2, %v2515_v40 }
 0xf86   :  { %8695 = vst [vmem:[#allocation34_spill] sm:$0xff] %v7240_v56  ;;  %4895 = vmatmul.msk.f32.gmra.mxu2 %vm312_vm9, %v7240_v56 }
 0xf87   :  { %5150 = vset.pattern.permute.xlu1 %v8694_v49 }
 0xf88   :  { %2736 = vperm.xlu1 %5150, %v7166_v7   ;;  %v7255_v35 = vpop.permute.xlu2 %2724 }
 0xf8b   :  { %5158 = vset.pattern.permute.xlu2 %v8690_v48 }
 0xf8c   :  { %2716 = vperm.xlu2 %5158, %v7197_v1  }
 0xf90   :  { %5154 = vset.pattern.permute.xlu1 %v8690_v48  ;;  %v7260_v20 = vpop.permute.xlu2 %2625 }
 0xf91   :  { %3086 = vperm.xlu1 %5154, %v7210_v27  }
 0xf92   :  { %v2459_v32 = vpop.xlane.xlu1 %2458 }
 0xf93   :  { %v2463_v3 = vmul.f32 %v2459_v32, %v6620_v61 }
 0xf94   :  { %5161 = vset.pattern.permute.xlu2 %v8693_v37 }
 0xf95   :  { %v2467_v24 = vadd.f32 1e-05, %v2463_v3  ;;  %2752 = vperm.xlu2 %5161, %v7197_v1  }
 0xf97   :  { %5283 = vrsqrt.f32 %v2467_v24  ;;  %vm2504_vm13 = vweird.f32 %v2467_v24 }
 0xf99   :  { %5156 = vset.pattern.permute.xlu1 %v8694_v49 }
 0xf9a   :  { %3110 = vperm.xlu1 %5156, %v7210_v27  }
 0xf9d   :  { %v5284_v21 = vpop.eup %5283  ;;  %3122 = vperm.xlu2 %5161, %v7210_v27  }
 0xf9e   :  { %v2499_v46 = vmul.f32 %v5284_v21, %v2467_v24  ;;  %vm2505_vm2 = vweird.f32 %v5284_v21  ;;  %v2993_v0 = vpop.permute.xlu2 %2992 }
 0xf9f   :  { %vm2506_vm4 = vmor %vm2504_vm13, %vm2505_vm2 }
 0xfa0   :  { %v2500_v40 = vmul.f32 %v5284_v21, %v2499_v46 }
 0xfa2   :  { %v2501_v32 = vmul.f32 0.5, %v2500_v40  ;;  %5157 = vset.pattern.permute.xlu1 %v8693_v37 }
 0xfa3   :  { %2748 = vperm.xlu1 %5157, %v7166_v7  }
 0xfa4   :  { %v2502_v3 = vsub.f32 1.5, %v2501_v32 }
 0xfa5   :  { %5173 = vset.pattern.permute.xlu2 %v8661_v25 }
 0xfa6   :  { %v2503_v62 = vmul.f32 %v5284_v21, %v2502_v3 }
 0xfa7   :  { %v3059_v40 = vpop.permute.xlu2 %3058 }
 0xfa8   :  { %v2507_v45 = vsel %vm2506_vm4, %v5284_v21, %v2503_v62  ;;  %v2621_v62 = vpop.permute.xlu0 %2620  ;;  %v2657_v21 = vpop.f32.mrf.mxu3  ;;  %v3065_v56 = vmul.f32 %v5757_v15, %v3059_v40 }
 0xfa9   :  { %v2511_v27 = vmul.f32 %v2507_v45, %v7190_v59 }
 0xfaa   :  { %v2665_v9 = vpop.permute.xlu1 %2664 }
 0xfab   :  { %5160 = vset.pattern.permute.xlu1 %v8694_v49  ;;  %v2516_v46 = vmul.f32 %v7103_v55, %v2511_v27  ;;  %v8697_v27 = vld [vmem:[#allocation12_spill] sm:$0xff] }
 0xfac   :  { %2740 = vperm.xlu1 %5160, %v7197_v1  }
 0xfad   :  { %v7270_v7 = vadd.f32 %v7106_v2, %v2516_v46  ;;  %v3000_v46 = vmul.f32 %v8697_v27, %v2993_v0 }
 0xfaf   :  { %8696 = vst [vmem:[#allocation35_spill] sm:$0xff] %v7270_v7  ;;  %4896 = vmatmul.msk.f32.gmra.mxu2 %vm312_vm9, %v7270_v7 }
 0xfb0   :  { %v3071_v45 = vpop.permute.xlu2 %3070  ;;  %v7277_v32 = vpop.permute.xlu0 %2700 }
 0xfb1   :  { %v7279_v55 = vpop.f32.mrf.mxu3  ;;  %v3077_v43 = vmul.f32 %v5764_v22, %v3071_v45 }
 0xfb3   :  { %v2689_v24 = vpop.permute.xlu1 %2688 }
 0xfb4   :  { %5172 = vset.pattern.permute.xlu1 %v8660_v63 }
 0xfb8   :  { %v3035_v3 = vpop.permute.xlu0 %3034 }
 0xfb9   :  { %v3083_v2 = vpop.permute.xlu2 %3082  ;;  %v3041_v16 = vmul.f32 %v8698_v14, %v3035_v3  ;;  %v3027_v51 = vpop.f32.mrf.mxu3 }
 0xfba   :  { %v3028_v23 = vadd.f32 %v3027_v51, %v3000_v46  ;;  %v3089_v0 = vmul.f32 %v5768_v29, %v3083_v2 }
 0xfbc   :  { %v7275_v59 = vpop.permute.xlu1 %2668  ;;  %v3043_v30 = vadd.f32 %v3041_v16, %v3028_v23 }
 0xfc0   :  { %v3119_v46 = vpop.permute.xlu0 %3118 }
 0xfc2   :  { %v7286_v7 = vpop.permute.xlu2 %2704 }
 0xfc5   :  { %v7281_v1 = vpop.permute.xlu1 %2680 }
 0xfcb   :  { %v3063_v54 = vpop.permute.xlu2 %3062 }
 0xfcc   :  { %v3066_v49 = vmul.f32 %v5818_v44, %v3063_v54  ;;  %v2707_v54 = vmul.f32 %v5764_v22, %v7277_v32 }
 0xfcd   :  { %v3047_v8 = vpop.permute.xlu1 %3046 }
 0xfce   :  { %v3053_v52 = vmul.f32 %v8699_v39, %v3047_v8 }
 0xfd0   :  { %v3055_v61 = vadd.f32 %v3053_v52, %v3043_v30  ;;  %v3125_v52 = vmul.f32 %v5786_v11, %v3119_v46 }
 0xfd2   :  { %v3067_v26 = vadd.f32 %v3065_v56, %v3055_v61 }
 0xfd4   :  { %v3079_v53 = vadd.f32 %v3077_v43, %v3067_v26  ;;  %v3075_v40 = vpop.permute.xlu2 %3074 }
 0xfd6   :  { %v3095_v4 = vpop.permute.xlu1 %3094  ;;  %v3091_v3 = vadd.f32 %v3089_v0, %v3079_v53 }
 0xfd7   :  { %v3101_v51 = vmul.f32 %v5773_v41, %v3095_v4 }
 0xfd9   :  { %v3103_v16 = vadd.f32 %v3101_v51, %v3091_v3  ;;  %v3030_v3 = vpop.f32.mrf.mxu3 }
 0xfdd   :  { %v3099_v4 = vpop.permute.xlu2 %3098 }
 0xfdf   :  { %v3107_v23 = vpop.permute.xlu1 %3106 }
 0xfe0   :  { %v3113_v8 = vmul.f32 %v5777_v50, %v3107_v23  ;;  %v3051_v23 = vpop.permute.xlu0 %3050 }
 0xfe2   :  { %v3115_v30 = vadd.f32 %v3113_v8, %v3103_v16 }
 0xfe4   :  { %v3127_v61 = vadd.f32 %v3125_v52, %v3115_v30  ;;  %v3054_v52 = vmul.f32 %v5810_v60, %v3051_v23  ;;  %v2628_v30 = vmul.f32 %v8697_v27, %v2621_v62 }
 0xfe6   :  { %v7296_v45 = vsel %vm533_vm3, %v3127_v61, -10000.0  ;;  %v2717_v51 = vpop.permute.xlu2 %2716  ;;  %v2671_v61 = vmul.f32 %v8698_v14, %v2665_v9 }
 0xfe7   :  { %v3131_v43 = vsel %vm356_vm8, %v7296_v45, -inf }
 0xfe8   :  { %v2998_v53 = vpop.permute.xlu1 %2997  ;;  %3132 = vmax.xlane.f32.xlu1 %v3131_v43  ;;  %v2658_v43 = vadd.f32 %v2657_v21, %v2628_v30  ;;  %v2629_v21 = vmul.f32 %v5804_v36, %v7260_v20  ;;  %v2693_v30 = vpop.permute.xlu0 %2692  ;;  %v2684_v20 = vmul.f32 %v5810_v60, %v7281_v1 }
 0xfe9   :  { %v3001_v2 = vmul.f32 %v5804_v36, %v2998_v53 }
 0xfea   :  { %v2673_v37 = vadd.f32 %v2671_v61, %v2658_v43  ;;  %v2661_v32 = vadd.f32 %v7279_v55, %v2629_v21  ;;  %v2708_v21 = vmul.f32 %v5821_v58, %v7286_v7 }
 0xfeb   :  { %v3031_v46 = vadd.f32 %v3030_v3, %v3001_v2  ;;  %v2683_v2 = vmul.f32 %v8699_v39, %v7234_v19  ;;  %v2695_v3 = vmul.f32 %v5757_v15, %v2689_v24  ;;  %v2672_v24 = vmul.f32 %v5807_v42, %v7275_v59 }
 0xfed   :  { %v2685_v62 = vadd.f32 %v2683_v2, %v2673_v37  ;;  %v2719_v37 = vmul.f32 %v5768_v29, %v7247_v12  ;;  %v2696_v2 = vmul.f32 %v5818_v44, %v2693_v30 }
 0xfef   :  { %v2753_v53 = vpop.permute.xlu2 %2752  ;;  %v2697_v9 = vadd.f32 %v2695_v3, %v2685_v62  ;;  %v2731_v3 = vmul.f32 %v5773_v41, %v7255_v35  ;;  %v2720_v35 = vmul.f32 %v5828_v33, %v2717_v51 }
 0xff0   :  { %v2756_v7 = vmul.f32 %v5841_v5, %v2753_v53 }
 0xff1   :  { %v3039_v26 = vpop.permute.xlu1 %3038 }
 0xff2   :  { %v3042_v0 = vmul.f32 %v5807_v42, %v3039_v26 }
 0xff4   :  { %v3044_v8 = vadd.f32 %v3042_v0, %v3031_v46  ;;  %v3078_v0 = vmul.f32 %v5821_v58, %v3075_v40 }
 0xff6   :  { %v3056_v57 = vadd.f32 %v3054_v52, %v3044_v8 }
 0xff7   :  { %v3123_v19 = vpop.permute.xlu2 %3122 }
 0xff8   :  { %v3068_v26 = vadd.f32 %v3066_v49, %v3056_v57  ;;  %v3102_v57 = vmul.f32 %v5832_v6, %v3099_v4  ;;  %v2709_v49 = vadd.f32 %v2707_v54, %v2697_v9  ;;  %v3126_v4 = vmul.f32 %v5841_v5, %v3123_v19 }
 0xffa   :  { %v2737_v16 = vpop.permute.xlu1 %2736  ;;  %v3080_v23 = vadd.f32 %v3078_v0, %v3068_v26  ;;  %v2721_v43 = vadd.f32 %v2719_v37, %v2709_v49  ;;  %v2674_v26 = vadd.f32 %v2672_v24, %v2661_v32  ;;  %v2729_v49 = vpop.permute.xlu0 %2728 }
 0xffb   :  { %v2743_v0 = vmul.f32 %v5777_v50, %v2737_v16 }
 0xffc   :  { %v2686_v12 = vadd.f32 %v2684_v20, %v2674_v26  ;;  %v2733_v62 = vadd.f32 %v2731_v3, %v2721_v43 }
0x1003   :  { %v3087_v34 = vpop.permute.xlu1 %3086 }
0x1004   :  { %v3090_v46 = vmul.f32 %v5828_v33, %v3087_v34 }
0x1006   :  { %v3092_v8 = vadd.f32 %v3090_v46, %v3080_v23  ;;  %v2698_v23 = vadd.f32 %v2696_v2, %v2686_v12 }
0x1008   :  { %v3104_v40 = vadd.f32 %v3102_v57, %v3092_v8  ;;  %v2745_v8 = vadd.f32 %v2743_v0, %v2733_v62  ;;  %v2710_v16 = vadd.f32 %v2708_v21, %v2698_v23 }
0x100c   :  { %v3111_v52 = vpop.permute.xlu1 %3110 }
0x100d   :  { %v3114_v34 = vmul.f32 %v5837_v13, %v3111_v52  ;;  %v2722_v52 = vadd.f32 %v2720_v35, %v2710_v16 }
0x100f   :  { %v3116_v61 = vadd.f32 %v3114_v34, %v3104_v40  ;;  %v2732_v40 = vmul.f32 %v5832_v6, %v2729_v49 }
0x1011   :  { %v3128_v59 = vadd.f32 %v3126_v4, %v3116_v61  ;;  %v2734_v37 = vadd.f32 %v2732_v40, %v2722_v52  ;;  %v2575_v4 = vpop.f32.mrf.mxu2 }
0x1012   :  { %v7346_v61 = vadd.f32 %v7142_v31, %v2575_v4 }
0x1013   :  { %v3130_v55 = vsel %vm534_vm15, %v3128_v59, -10000.0 }
0x1014   :  { %v3134_v1 = vsel %vm356_vm8, %v3130_v55, -inf  ;;  %v7349_v43 = vmul.f32 0.25, %v7346_v61 }
0x1015   :  { %v2749_v9 = vpop.permute.xlu1 %2748  ;;  %3135 = vmax.xlane.f32.xlu2 %v3134_v1 }
0x1016   :  { %v2755_v54 = vmul.f32 %v5786_v11, %v2749_v9 }
0x1018   :  { %v2757_v57 = vadd.f32 %v2755_v54, %v2745_v8 }
0x101a   :  { %v2759_v19 = vsel %vm533_vm3, %v2757_v57, -10000.0 }
0x101b   :  { %v2761_v24 = vsel %vm356_vm8, %v2759_v19, -inf }
0x101c   :  { %2762 = vmax.xlane.f32.xlu0 %v2761_v24 }
0x101e   :  { %v2741_v34 = vpop.permute.xlu1 %2740 }
0x101f   :  { %v2744_v30 = vmul.f32 %v5837_v13, %v2741_v34 }
0x1021   :  { %v2746_v32 = vadd.f32 %v2744_v30, %v2734_v37 }
0x1023   :  { %v2758_v51 = vadd.f32 %v2756_v7, %v2746_v32 }
0x1025   :  { %v2760_v20 = vsel %vm534_vm15, %v2758_v51, -10000.0 }
0x1026   :  { %v2764_v56 = vsel %vm356_vm8, %v2760_v20, -inf }
0x1027   :  { %2765 = vmax.xlane.f32.xlu1 %v2764_v56 }
0x1030   :  { %3693 = vrot.lane.b32.xlu0 %v7349_v43, %s5354_s20 }
0x1032   :  { %v2578_v26 = vpop.f32.mrf.mxu2 }
0x1033   :  { %v7354_v53 = vadd.f32 %v7142_v31, %v2578_v26 }
0x1035   :  { %v7357_v2 = vmul.f32 0.25, %v7354_v53 }
0x1037   :  { %3695 = vrot.lane.b32.xlu2 %v7357_v2, %s5354_s20  ;;  %s5362_s20 = smov 120  }
0x1040   :  { %5163 = vrot.lane.b32.xlu1 %v7153_v38, %s5358_s26 }
0x1048   :  { %3738 = vrot.lane.b32.xlu1 %v7354_v53, %s5356_s24 }
0x1050   :  { %3377 = vrot.lane.b32.xlu1 %v7354_v53, %s5345_s6 }
0x105b   :  { %v3133_v46 = vpop.xlane.xlu1 %3132 }
0x1088   :  { %v3136_v59 = vpop.xlane.xlu2 %3135 }
0x1089   :  { %v3138_v3 = vsub.f32 %v3130_v55, %v3136_v59  ;;  %v3137_v55 = vsub.f32 %v7296_v45, %v3133_v46 }
0x108b   :  { %v3141_v0 = vmul.f32 1.442695, %v3138_v3  ;;  %v3139_v57 = vmul.f32 1.442695, %v3137_v55 }
0x108d   :  { %5285 = vpow2.f32 %v3141_v0 }
0x108f   :  { %v2763_v31 = vpop.xlane.xlu0 %2762 }
0x1090   :  { %v2767_v12 = vsub.f32 %v2759_v19, %v2763_v31 }
0x1091   :  { %v7392_v37 = vpop.permute.xlu2 %3695 }
0x1092   :  { %v2769_v62 = vmul.f32 1.442695, %v2767_v12 }
0x1093   :  { %v7367_v1 = vpop.eup %5285 }
0x1094   :  { %5287 = vpow2.f32 %v2769_v62  ;;  %v3146_v23 = vsel %vm356_vm8, %v7367_v1, 0.0 }
0x1095   :  { %3147 = vadd.xlane.f32.xlu0 %v3146_v23 }
0x109a   :  { %v5288_v9 = vpop.eup %5287  ;;  %v2766_v8 = vpop.xlane.xlu1 %2765 }
0x109b   :  { %v2768_v54 = vsub.f32 %v2760_v20, %v2766_v8  ;;  %v2773_v21 = vsel %vm356_vm8, %v5288_v9, 0.0 }
0x109c   :  { %2774 = vadd.xlane.f32.xlu2 %v2773_v21 }
0x109d   :  { %v2771_v35 = vmul.f32 1.442695, %v2768_v54 }
0x109f   :  { %5289 = vpow2.f32 %v2771_v35 }
0x10a0   :  { %5291 = vpow2.f32 %v3139_v57 }
0x10a2   :  { %v7394_v30 = vpop.permute.xlu0 %3693 }
0x10a5   :  { %v7373_v16 = vpop.eup %5289 }
0x10a6   :  { %v2776_v49 = vsel %vm356_vm8, %v7373_v16, 0.0  ;;  %v7379_v19 = vpop.eup %5291 }
0x10a7   :  { %2777 = vadd.xlane.f32.xlu2 %v2776_v49  ;;  %v3143_v52 = vsel %vm356_vm8, %v7379_v19, 0.0 }
0x10a9   :  { %5168 = vrot.lane.b32.xlu0 %v7153_v38, %s5357_s25 }
0x10af   :  { %3144 = vadd.xlane.f32.xlu2 %v3143_v52 }
0x10b1   :  { %3736 = vrot.lane.b32.xlu0 %v7346_v61, %s5356_s24 }
0x10b2   :  { %v5164_v45 = vpop.permute.xlu1 %5163 }
0x10b3   :  { %v5165_v24 = vunpack.i.l.bf16 %v5164_v45  ;;  %v5166_v40 = vunpack.i.h.bf16 %v5164_v45 }
0x10b5   :  { %3215 = vmatpush.msrb.mxu2 %v5165_v24 }
0x10b7   :  { %3216 = vmatpush.msrb.mxu2 %v5166_v40 }
0x10b9   :  { %4927 = vmatpush.xpose.msk.msra.mxu2 %vm356_vm8, %v7118_v28  ;;  %3375 = vrot.lane.b32.xlu0 %v7346_v61, %s5345_s6 }
0x10ba   :  { %v3739_v38 = vpop.permute.xlu1 %3738 }
0x10bd   :  { %4928 = vmatpush.xpose.msk.msra.mxu2 %vm356_vm8, %v7131_v18 }
0x10c2   :  { %v3378_v34 = vpop.permute.xlu1 %3377 }
0x10c3   :  { %4921 = vmatpush.xpose.msk.msrb.mxu1 %vm356_vm8, %v3378_v34 }
0x1108   :  { %v7396_v32 = vpop.xlane.xlu0 %3147 }
0x110f   :  { %v2775_v7 = vpop.xlane.xlu2 %2774 }
0x1110   :  { %5293 = vrcp.f32 %v2775_v7  ;;  %v2790_v4 = vand.u32 2147483648, %v2775_v7  ;;  %v2788_v3 = vand.u32 2147483647, %v2775_v7  ;;  %vm2784_vm15 = vweird.f32 %v2775_v7 }
0x1112   :  { %v2791_v46 = vor.u32 1.1754944e-38, %v2790_v4  ;;  %vm2789_vm1 = vcmp.eq.f32.partialorder %v2788_v3, 8.507059e+37 }
0x1116   :  { %v5294_v51 = vpop.eup %5293 }
0x1117   :  { %v2780_v20 = vmul.f32 %v5294_v51, %v2775_v7  ;;  %vm2785_vm3 = vweird.f32 %v5294_v51 }
0x1118   :  { %vm2786_vm10 = vmor %vm2784_vm15, %vm2785_vm3 }
0x1119   :  { %v2781_v56 = vsub.f32 1.0, %v2780_v20 }
0x111a   :  { %v2778_v26 = vpop.xlane.xlu2 %2777 }
0x111b   :  { %v2782_v59 = vmul.f32 %v5294_v51, %v2781_v56  ;;  %5295 = vrcp.f32 %v2778_v26  ;;  %v5169_v0 = vpop.permute.xlu0 %5168  ;;  %v2805_v45 = vand.u32 2147483648, %v2778_v26  ;;  %v2803_v40 = vand.u32 2147483647, %v2778_v26 }
0x111c   :  { %v5170_v31 = vunpack.i.l.bf16 %v5169_v0  ;;  %5297 = vrcp.f32 %v7396_v32  ;;  %v5171_v62 = vunpack.i.h.bf16 %v5169_v0  ;;  %vm2799_vm13 = vweird.f32 %v2778_v26 }
0x111d   :  { %v2783_v12 = vadd.f32 %v5294_v51, %v2782_v59  ;;  %v2806_v7 = vor.u32 1.1754944e-38, %v2805_v45  ;;  %vm2804_vm3 = vcmp.eq.f32.partialorder %v2803_v40, 8.507059e+37  ;;  %v8703_v40 = vmov 8  }
0x111e   :  { %2846 = vmatpush.msra.mxu0 %v5170_v31 }
0x111f   :  { %v2787_v23 = vsel %vm2786_vm10, %v5294_v51, %v2783_v12 }
0x1120   :  { %v2792_v8 = vsel %vm2789_vm1, %v2791_v46, %v2787_v23  ;;  %2847 = vmatpush.msra.mxu0 %v5171_v62  ;;  %v3175_v23 = vand.u32 2147483648, %v7396_v32 }
0x1121   :  { %v5296_v54 = vpop.eup %5295  ;;  %v7399_v21 = vmul.f32 %v5288_v9, %v2792_v8 }
0x1122   :  { %4917 = vmatpush.xpose.msk.msrb.mxu0 %vm356_vm8, %v7118_v28  ;;  %v2795_v55 = vmul.f32 %v5296_v54, %v2778_v26  ;;  %v3145_v35 = vpop.xlane.xlu2 %3144  ;;  %v5298_v57 = vpop.eup %5297  ;;  %vm2800_vm2 = vweird.f32 %v5296_v54 }
0x1123   :  { %5299 = vrcp.f32 %v3145_v35  ;;  %v3737_v49 = vpop.permute.xlu0 %3736  ;;  %4905 = vmatmul.msk.f32.vlgmr.msra.gmra.mxu0 %vm356_vm8, %v7399_v21  ;;  %v3165_v24 = vmul.f32 %v5298_v57, %v7396_v32  ;;  %vm2801_vm4 = vmor %vm2799_vm13, %vm2800_vm2  ;;  %v3158_v31 = vand.u32 2147483647, %v3145_v35  ;;  %vm3154_vm10 = vweird.f32 %v3145_v35 }
0x1124   :  { %v2796_v52 = vsub.f32 1.0, %v2795_v55  ;;  %vm3170_vm2 = vweird.f32 %v5298_v57 }
0x1125   :  { %v3166_v51 = vsub.f32 1.0, %v3165_v24  ;;  %vm3159_vm13 = vcmp.eq.f32.partialorder %v3158_v31, 8.507059e+37  ;;  %v8702_v24 = vmov 6  }
0x1126   :  { %4918 = vmatpush.xpose.msk.msrb.mxu0 %vm356_vm8, %v7131_v18  ;;  %v2797_v9 = vmul.f32 %v5296_v54, %v2796_v52 }
0x1127   :  { %v3167_v0 = vmul.f32 %v5298_v57, %v3166_v51 }
0x1128   :  { %v2798_v28 = vadd.f32 %v5296_v54, %v2797_v9  ;;  %v5207_v9 = vpack.i.bf16 %v7346_v61, %v7354_v53 }
0x1129   :  { %v5300_v34 = vpop.eup %5299 }
0x112a   :  { %4931 = vmatpush.xpose.msk.msra.mxu0 %vm356_vm8, %v3739_v38  ;;  %v2802_v20 = vsel %vm2801_vm4, %v5296_v54, %v2798_v28  ;;  %v3150_v56 = vmul.f32 %v5300_v34, %v3145_v35  ;;  %v3160_v38 = vand.u32 2147483648, %v3145_v35  ;;  %vm3155_vm15 = vweird.f32 %v5300_v34 }
0x112b   :  { %v2807_v4 = vsel %vm2804_vm3, %v2806_v7, %v2802_v20  ;;  %v3376_v18 = vpop.permute.xlu0 %3375  ;;  %vm3156_vm1 = vmor %vm3154_vm10, %vm3155_vm15  ;;  %vm3169_vm4 = vweird.f32 %v7396_v32  ;;  %v3173_v54 = vand.u32 2147483647, %v7396_v32  ;;  %v3176_v35 = vor.u32 1.1754944e-38, %v3175_v23 }
0x112c   :  { %v7411_v59 = vmul.f32 %v7373_v16, %v2807_v4  ;;  %v3151_v3 = vsub.f32 1.0, %v3150_v56  ;;  %4922 = vmatpush.xpose.msk.msrb.mxu1 %vm356_vm8, %v3376_v18  ;;  %v3161_v46 = vor.u32 1.1754944e-38, %v3160_v38  ;;  %v3168_v16 = vadd.f32 %v5298_v57, %v3167_v0  ;;  %vm3171_vm3 = vmor %vm3169_vm4, %vm3170_vm2 }
0x112d   :  { %vm3174_vm15 = vcmp.eq.f32.partialorder %v3173_v54, 8.507059e+37 }
0x112e   :  { %4932 = vmatpush.xpose.msk.msra.mxu0 %vm356_vm8, %v3737_v49  ;;  %v3152_v26 = vmul.f32 %v5300_v34, %v3151_v3  ;;  %v3172_v49 = vsel %vm3171_vm3, %v5298_v57, %v3168_v16 }
0x112f   :  { %4906 = vmatmul.msk.f32.gmra.mxu0 %vm356_vm8, %v7411_v59  ;;  %4923 = vmatmul.msk.f32.vlgmr.msrb.gmra.mxu1 %vm356_vm8, %v7349_v43  ;;  %v3177_v52 = vsel %vm3174_vm15, %v3176_v35, %v3172_v49 }
0x1130   :  { %v3153_v12 = vadd.f32 %v5300_v34, %v3152_v26  ;;  %v7431_v45 = vmul.f32 %v7367_v1, %v3177_v52 }
0x1132   :  { %v3157_v62 = vsel %vm3156_vm1, %v5300_v34, %v3153_v12  ;;  %v3261_v54 = vmul.f32 %v5821_v58, %v7431_v45 }
0x1133   :  { %v3162_v8 = vsel %vm3159_vm13, %v3161_v46, %v3157_v62  ;;  %v3225_v46 = vmul.f32 %v5807_v42, %v7431_v45 }
0x1134   :  { %v7422_v55 = vmul.f32 %v7379_v19, %v3162_v8  ;;  %v3265_v35 = vsel %vm356_vm8, %v3261_v54, 0.0 }
0x1135   :  { %v3229_v23 = vsel %vm356_vm8, %v3225_v46, 0.0 }
0x1136   :  { %4915 = vmatmul.msk.f32.vlgmr.msrb.gmra.mxu2 %vm356_vm8, %v7422_v55  ;;  %v3224_v34 = vmul.f32 %v8698_v14, %v7422_v55  ;;  %v3248_v4 = vmul.f32 %v5757_v15, %v7422_v55  ;;  %v3260_v0 = vmul.f32 %v5764_v22, %v7422_v55 }
0x1137   :  { %4919 = vmatmul.msk.f32.vlgmr.msrb.gmra.mxu0 %vm356_vm8, %v7349_v43  ;;  %4924 = vmatmul.msk.f32.gmra.mxu1 %vm356_vm8, %v7357_v2 }
0x1138   :  { %v3226_v51 = vsel %vm356_vm8, %v3224_v34, 0.0  ;;  %v3250_v3 = vsel %vm356_vm8, %v3248_v4, 0.0  ;;  %v3262_v12 = vsel %vm356_vm8, %v3260_v0, 0.0 }
0x113e   :  { %4916 = vmatmul.msk.f32.gmra.mxu2 %vm356_vm8, %v7431_v45 }
0x113f   :  { %4920 = vmatmul.msk.f32.gmra.mxu0 %vm356_vm8, %v7357_v2 }
0x1146   :  { %4929 = vmatmul.msk.f32.vlgmr.msra.gmra.mxu2 %vm356_vm8, %v7394_v30 }
0x1147   :  { %4933 = vmatmul.msk.f32.vlgmr.msra.gmra.mxu0 %vm356_vm8, %v7394_v30 }
0x114e   :  { %4930 = vmatmul.msk.f32.gmra.mxu2 %vm356_vm8, %v7392_v37 }
0x114f   :  { %4934 = vmatmul.msk.f32.gmra.mxu0 %vm356_vm8, %v7392_v37 }
0x11a0   :  { %v7445_v43 = vpop.f32.mrf.mxu0 }
0x11ac   :  { %v7447_v1 = vpop.f32.mrf.mxu0 }
0x11b4   :  { %v7449_v19 = vpop.f32.mrf.mxu0 }
0x11b5   :  { %3467 = vperm.xlu0 %5159, %v7449_v19   ;;  %3407 = vperm.xlu2 %5173, %v7449_v19  }
0x11b6   :  { %3363 = vperm.xlu1 %5172, %v7449_v19  }
0x11b9   :  { %v7454_v2 = vpop.f32.mrf.mxu2 }
0x11bc   :  { %v7456_v30 = vpop.f32.mrf.mxu0 }
0x11bd   :  { %5178 = vset.pattern.permute.xlu0 %v8660_v63  ;;  %5175 = vset.pattern.permute.xlu2 %v8692_v47 }
0x11be   :  { %5174 = vset.pattern.permute.xlu1 %v8659_v10  ;;  %3431 = vperm.xlu2 %5175, %v7449_v19  }
0x11bf   :  { %3419 = vperm.xlu1 %5174, %v7449_v19   ;;  %3368 = vperm.xlu0 %5178, %v7456_v30  }
0x11c1   :  { %v7464_v37 = vpop.f32.mrf.mxu2 }
0x11c6   :  { %5179 = vset.pattern.permute.xlu2 %v8661_v25 }
0x11c7   :  { %5176 = vset.pattern.permute.xlu1 %v8689_v17  ;;  %3411 = vperm.xlu2 %5179, %v7456_v30  }
0x11c8   :  { %3443 = vperm.xlu1 %5176, %v7449_v19   ;;  %5184 = vset.pattern.permute.xlu0 %v8659_v10 }
0x11c9   :  { %v7471_v32 = vpop.f32.mrf.mxu2 }
0x11ca   :  { %3780 = vperm.xlu0 %5184, %v7471_v32  }
0x11cf   :  { %5180 = vset.pattern.permute.xlu2 %v8659_v10 }
0x11d0   :  { %5177 = vset.pattern.permute.xlu1 %v8690_v48  ;;  %3423 = vperm.xlu2 %5180, %v7456_v30  }
0x11d1   :  { %3455 = vperm.xlu1 %5177, %v7449_v19   ;;  %v7484_v57 = vpop.f32.mrf.mxu2 }
0x11d2   :  { %5187 = vset.pattern.permute.xlu0 %v8690_v48 }
0x11d3   :  { %3816 = vperm.xlu0 %5187, %v7471_v32  }
0x11d8   :  { %5183 = vset.pattern.permute.xlu2 %v8661_v25 }
0x11d9   :  { %5181 = vset.pattern.permute.xlu1 %v8692_v47  ;;  %3768 = vperm.xlu2 %5183, %v7471_v32  }
0x11da   :  { %3435 = vperm.xlu1 %5181, %v7456_v30  }
0x11db   :  { %5194 = vset.pattern.permute.xlu0 %v8689_v17 }
0x11dc   :  { %3808 = vperm.xlu0 %5194, %v7484_v57  }
0x11e1   :  { %5188 = vset.pattern.permute.xlu2 %v8702_v24 }
0x11e2   :  { %5182 = vset.pattern.permute.xlu1 %v8660_v63  ;;  %3828 = vperm.xlu2 %5188, %v7471_v32  }
0x11e3   :  { %3726 = vperm.xlu1 %5182, %v7471_v32  }
0x11e4   :  { %5199 = vset.pattern.permute.xlu0 %v8690_v48 }
0x11e5   :  { %3459 = vperm.xlu0 %5199, %v7456_v30  }
0x11ea   :  { %5190 = vset.pattern.permute.xlu2 %v8660_v63  ;;  %v8704_v63 = vmov 7  }
0x11eb   :  { %5185 = vset.pattern.permute.xlu1 %v8692_v47  ;;  %3731 = vperm.xlu2 %5190, %v7484_v57  }
0x11ec   :  { %3792 = vperm.xlu1 %5185, %v7471_v32  }
0x11ed   :  { %5208 = vrot.lane.b32.xlu0 %v5207_v9, %s5357_s25 }
0x11ee   :  { %5213 = vset.pattern.permute.xlu0 %v8703_v40 }
0x11f3   :  { %5191 = vset.pattern.permute.xlu2 %v8661_v25  ;;  %v3180_v25 = vmul.f32 %v5804_v36, %v7431_v45 }
0x11f4   :  { %5186 = vset.pattern.permute.xlu1 %v8689_v17  ;;  %3772 = vperm.xlu2 %5191, %v7484_v57  }
0x11f5   :  { %3804 = vperm.xlu1 %5186, %v7471_v32  }
0x11fc   :  { %5195 = vset.pattern.permute.xlu2 %v8690_v48  ;;  %v3184_v48 = vsel %vm356_vm8, %v3180_v25, 0.0 }
0x11fd   :  { %5189 = vset.pattern.permute.xlu1 %v8703_v40  ;;  %3820 = vperm.xlu2 %5195, %v7484_v57  }
0x11fe   :  { %3852 = vperm.xlu1 %5189, %v7471_v32  }
0x1205   :  { %5198 = vset.pattern.permute.xlu2 %v8703_v40 }
0x1206   :  { %5192 = vset.pattern.permute.xlu1 %v8659_v10  ;;  %3491 = vperm.xlu2 %5198, %v7449_v19  }
0x1207   :  { %3784 = vperm.xlu1 %5192, %v7484_v57  }
0x120e   :  { %5212 = vset.pattern.permute.xlu2 %v8704_v63 }
0x120f   :  { %5193 = vset.pattern.permute.xlu1 %v8692_v47  ;;  %v3179_v47 = vmul.f32 %v8697_v27, %v7422_v55  ;;  %v7533_v53 = vpop.permute.xlu2 %3407 }
0x1210   :  { %3796 = vperm.xlu1 %5193, %v7484_v57  }
0x1211   :  { %v3181_v28 = vsel %vm356_vm8, %v3179_v47, 0.0 }
0x1217   :  { %3185 = vadd.xlane.f32.xlu0 %v3184_v48 }
0x1218   :  { %5196 = vset.pattern.permute.xlu1 %v8702_v24  ;;  %v7545_v20 = vpop.permute.xlu2 %3431 }
0x1219   :  { %3832 = vperm.xlu1 %5196, %v7484_v57  }
0x1221   :  { %5197 = vset.pattern.permute.xlu1 %v8689_v17  ;;  %v7553_v38 = vpop.permute.xlu2 %3411 }
0x1222   :  { %3447 = vperm.xlu1 %5197, %v7456_v30  }
0x1227   :  { %v7529_v61 = vpop.permute.xlu0 %3467 }
0x1228   :  { %v7524_v10 = vpop.permute.xlu1 %3363 }
0x122a   :  { %5200 = vset.pattern.permute.xlu1 %v8702_v24  ;;  %v7562_v16 = vpop.permute.xlu2 %3423 }
0x122b   :  { %3471 = vperm.xlu1 %5200, %v7456_v30   ;;  %3856 = vperm.xlu0 %5213, %v7484_v57  }
0x122f   :  { %3182 = vadd.xlane.f32.xlu2 %v3181_v28 }
0x1231   :  { %v7536_v17 = vpop.permute.xlu1 %3419  ;;  %v7542_v7 = vpop.permute.xlu0 %3368 }
0x1233   :  { %5201 = vset.pattern.permute.xlu1 %v8703_v40  ;;  %v3769_v52 = vpop.permute.xlu2 %3768 }
0x1234   :  { %3495 = vperm.xlu1 %5201, %v7456_v30   ;;  %v3775_v25 = vmul.f32 %v8698_v14, %v3769_v52 }
0x1237   :  { %3227 = vadd.xlane.f32.xlu2 %v3226_v51 }
0x123a   :  { %v7547_v56 = vpop.permute.xlu1 %3443 }
0x123c   :  { %5203 = vrot.lane.b32.xlu1 %v5207_v9, %s5358_s26  ;;  %v3781_v18 = vpop.permute.xlu0 %3780  ;;  %v3761_v9 = vpop.f32.mrf.mxu0 }
0x123d   :  { %v3787_v47 = vmul.f32 %v8699_v39, %v3781_v18  ;;  %v7577_v54 = vpop.permute.xlu2 %3828 }
0x123f   :  { %3251 = vadd.xlane.f32.xlu2 %v3250_v3 }
0x1243   :  { %v7557_v26 = vpop.permute.xlu1 %3455 }
0x1245   :  { %v3817_v31 = vpop.permute.xlu0 %3816 }
0x1247   :  { %3263 = vadd.xlane.f32.xlu2 %v3262_v12  ;;  %v3236_v12 = vmul.f32 %v8699_v39, %v7422_v55 }
0x124c   :  { %v7564_v62 = vpop.permute.xlu1 %3435 }
0x124e   :  { %v3809_v8 = vpop.permute.xlu0 %3808 }
0x124f   :  { %3230 = vadd.xlane.f32.xlu2 %v3229_v23  ;;  %v3238_v23 = vsel %vm356_vm8, %v3236_v12, 0.0 }
0x1255   :  { %v3727_v49 = vpop.permute.xlu1 %3726  ;;  %3266 = vadd.xlane.f32.xlu0 %v3265_v35  ;;  %v3823_v35 = vmul.f32 %v5768_v29, %v3817_v31 }
0x1256   :  { %v3734_v24 = vmul.f32 %v8697_v27, %v3727_v49 }
0x1257   :  { %v3460_v63 = vpop.permute.xlu0 %3459 }
0x1258   :  { %v3762_v40 = vadd.f32 %v3761_v9, %v3734_v24  ;;  %v3732_v9 = vpop.permute.xlu2 %3731 }
0x125a   :  { %v3777_v48 = vadd.f32 %v3775_v25, %v3762_v40 }
0x125c   :  { %v3789_v34 = vadd.f32 %v3787_v47, %v3777_v48  ;;  %v3735_v47 = vmul.f32 %v5804_v36, %v3732_v9 }
0x125e   :  { %v3793_v28 = vpop.permute.xlu1 %3792 }
0x125f   :  { %v3799_v51 = vmul.f32 %v5757_v15, %v3793_v28  ;;  %v5209_v4 = vpop.permute.xlu0 %5208  ;;  %v3764_v28 = vpop.f32.mrf.mxu0 }
0x1260   :  { %v5210_v0 = vunpack.i.l.bf16 %v5209_v4  ;;  %v5211_v46 = vunpack.i.h.bf16 %v5209_v4  ;;  %v3773_v48 = vpop.permute.xlu2 %3772 }
0x1261   :  { %v3801_v3 = vadd.f32 %v3799_v51, %v3789_v34  ;;  %v3765_v34 = vadd.f32 %v3764_v28, %v3735_v47  ;;  %v3400_v51 = vpop.f32.mrf.mxu1 }
0x1262   :  { %3588 = vmatpush.msra.mxu3 %v5210_v0 }
0x1264   :  { %3589 = vmatpush.msra.mxu3 %v5211_v46  ;;  %v3372_v46 = vmul.f32 %v5804_v36, %v7542_v7  ;;  %v3439_v7 = vmul.f32 %v5818_v44, %v7564_v62 }
0x1266   :  { %3239 = vadd.xlane.f32.xlu1 %v3238_v23 }
0x1267   :  { %v3805_v49 = vpop.permute.xlu1 %3804  ;;  %3840 = vperm.xlu2 %5212, %v7471_v32   ;;  %v3776_v32 = vmul.f32 %v5807_v42, %v3773_v48  ;;  %v3415_v48 = vmul.f32 %v5807_v42, %v7553_v38 }
0x1268   :  { %v3811_v18 = vmul.f32 %v5764_v22, %v3805_v49  ;;  %v3821_v23 = vpop.permute.xlu2 %3820 }
0x1269   :  { %v3778_v4 = vadd.f32 %v3776_v32, %v3765_v34  ;;  %v3427_v32 = vmul.f32 %v5810_v60, %v7562_v16 }
0x126a   :  { %v3813_v52 = vadd.f32 %v3811_v18, %v3801_v3  ;;  %v3403_v18 = vpop.f32.mrf.mxu1 }
0x126c   :  { %v7582_v24 = vadd.f32 %v3823_v35, %v3813_v52  ;;  %v3824_v35 = vmul.f32 %v5828_v33, %v3821_v23  ;;  %v3404_v52 = vadd.f32 %v3403_v18, %v3372_v46  ;;  %v3272_v46 = vmul.f32 %v5768_v29, %v7422_v55 }
0x126e   :  { %v3274_v23 = vsel %vm356_vm8, %v3272_v46, 0.0 }
0x126f   :  { %3479 = vperm.xlu2 %5212, %v7449_v19  }
0x1270   :  { %v7585_v40 = vpop.permute.xlu1 %3852 }
0x1277   :  { %3483 = vperm.xlu2 %5212, %v7456_v30   ;;  %v3812_v30 = vmul.f32 %v5821_v58, %v3809_v8  ;;  %v3417_v8 = vadd.f32 %v3415_v48, %v3404_v52  ;;  %v7620_v52 = vld [vmem:[%s8501_s10 + $0x10] sm:$0xff]  ;;  %v3371_v48 = vmul.f32 %v8697_v27, %v7524_v10 }
0x1279   :  { %v3785_v25 = vpop.permute.xlu1 %3784  ;;  %v3429_v28 = vadd.f32 %v3427_v32, %v3417_v8  ;;  %v3401_v32 = vadd.f32 %v3400_v51, %v3371_v48  ;;  %v3438_v51 = vmul.f32 %v5757_v15, %v7545_v20  ;;  %v3859_v48 = vmul.f32 %v5786_v11, %v7585_v40 }
0x127a   :  { %v3788_v31 = vmul.f32 %v5810_v60, %v3785_v25 }
0x127c   :  { %v3790_v3 = vadd.f32 %v3788_v31, %v3778_v4  ;;  %v3441_v31 = vadd.f32 %v3439_v7, %v3429_v28  ;;  %v7631_v7 = vperm.slane %v7620_v52, 1 }
0x127f   :  { %3844 = vperm.xlu2 %5212, %v7484_v57  }
0x1282   :  { %v3797_v19 = vpop.permute.xlu1 %3796 }
0x1283   :  { %v3800_v0 = vmul.f32 %v5818_v44, %v3797_v19  ;;  %v3463_v19 = vmul.f32 %v5828_v33, %v3460_v63 }
0x1285   :  { %v3802_v12 = vadd.f32 %v3800_v0, %v3790_v3 }
0x1287   :  { %v3814_v49 = vadd.f32 %v3812_v30, %v3802_v12  ;;  %v3492_v30 = vpop.permute.xlu2 %3491 }
0x1289   :  { %v3826_v57 = vadd.f32 %v3824_v35, %v3814_v49 }
0x128b   :  { %v3833_v9 = vpop.permute.xlu1 %3832 }
0x128c   :  { %v3836_v25 = vmul.f32 %v5832_v6, %v3833_v9 }
0x128e   :  { %v7600_v47 = vadd.f32 %v3836_v25, %v3826_v57  ;;  %v7625_v57 = vperm.slane %v7620_v52, 0  ;;  %v3186_v25 = vpop.xlane.xlu0 %3185 }
0x1290   :  { %v3188_v8 = vmul.f32 %v3186_v25, %v7625_v57 }
0x1294   :  { %v3448_v34 = vpop.permute.xlu1 %3447 }
0x1295   :  { %v3451_v4 = vmul.f32 %v5821_v58, %v3448_v34  ;;  %v3414_v34 = vmul.f32 %v8698_v14, %v7533_v53  ;;  %v3835_v53 = vmul.f32 %v5773_v41, %v7577_v54 }
0x1297   :  { %v3453_v3 = vadd.f32 %v3451_v4, %v3441_v31  ;;  %v3426_v31 = vmul.f32 %v8699_v39, %v7536_v17  ;;  %v3222_v4 = vadd.f32 %v7464_v37, %v3188_v8  ;;  %v3462_v37 = vmul.f32 %v5768_v29, %v7557_v26 }
0x1298   :  { %v3837_v17 = vadd.f32 %v3835_v53, %v7582_v24  ;;  %v3498_v26 = vmul.f32 %v5786_v11, %v3492_v30  ;;  %v3284_v30 = vmul.f32 %v5773_v41, %v7422_v55 }
0x1299   :  { %v3465_v0 = vadd.f32 %v3463_v19, %v3453_v3  ;;  %v3416_v3 = vadd.f32 %v3414_v34, %v3401_v32 }
0x129b   :  { %v3428_v10 = vadd.f32 %v3426_v31, %v3416_v3 }
0x129d   :  { %v3472_v38 = vpop.permute.xlu1 %3471 }
0x129e   :  { %v3475_v24 = vmul.f32 %v5832_v6, %v3472_v38 }
0x12a2   :  { %v7608_v12 = vpop.xlane.xlu2 %3182 }
0x12a6   :  { %v3496_v16 = vpop.permute.xlu1 %3495 }
0x12a8   :  { %3275 = vadd.xlane.f32.xlu2 %v3274_v23  ;;  %v3450_v23 = vmul.f32 %v5764_v22, %v7547_v56  ;;  %v3474_v56 = vmul.f32 %v5773_v41, %v7529_v61 }
0x12aa   :  { %v7613_v62 = vpop.xlane.xlu2 %3227 }
0x12ae   :  { %v5204_v49 = vpop.permute.xlu1 %5203 }
0x12af   :  { %v5205_v18 = vunpack.i.l.bf16 %v5204_v49  ;;  %v5206_v35 = vunpack.i.h.bf16 %v5204_v49 }
0x12b1   :  { %3949 = vmatpush.msra.mxu1 %v5205_v18  ;;  %v3440_v18 = vadd.f32 %v3438_v51, %v3428_v10  ;;  %v3477_v51 = vadd.f32 %v3475_v24, %v3465_v0 }
0x12b2   :  { %v7615_v63 = vpop.xlane.xlu2 %3251 }
0x12b3   :  { %3950 = vmatpush.msra.mxu1 %v5206_v35  ;;  %v3452_v25 = vadd.f32 %v3450_v23, %v3440_v18  ;;  %v3499_v23 = vmul.f32 %v5841_v5, %v3496_v16 }
0x12b5   :  { %v3464_v8 = vadd.f32 %v3462_v37, %v3452_v25  ;;  %v3857_v37 = vpop.permute.xlu0 %3856 }
0x12b6   :  { %v3860_v16 = vmul.f32 %v5841_v5, %v3857_v37 }
0x12ba   :  { %v7622_v9 = vpop.xlane.xlu2 %3263 }
0x12c2   :  { %v3231_v28 = vpop.xlane.xlu2 %3230 }
0x12c3   :  { %v3233_v19 = vmul.f32 %v3231_v28, %v7631_v7  ;;  %v3476_v28 = vadd.f32 %v3474_v56, %v3464_v8 }
0x12c5   :  { %v7639_v46 = vadd.f32 %v3233_v19, %v3222_v4 }
0x12ca   :  { %v3841_v49 = vpop.permute.xlu2 %3840 }
0x12cb   :  { %v3847_v35 = vmul.f32 %v5777_v50, %v3841_v49  ;;  %v2881_v49 = vmul.f32 %v5757_v15, %v7399_v21 }
0x12cd   :  { %v3849_v20 = vadd.f32 %v3847_v35, %v3837_v17  ;;  %v3286_v35 = vsel %vm356_vm8, %v3284_v30, 0.0  ;;  %v2868_v30 = vmul.f32 %v8699_v39, %v7399_v21 }
0x12cf   :  { %v3861_v32 = vadd.f32 %v3859_v48, %v3849_v20  ;;  %v3296_v20 = vmul.f32 %v5777_v50, %v7422_v55  ;;  %v2870_v37 = vsel %vm356_vm8, %v2868_v30, 0.0 }
0x12d1   :  { %v7682_v56 = vsel %vm1278_vm5, %v3861_v32, -10000.0  ;;  %v3237_v32 = vmul.f32 %v5810_v60, %v7431_v45 }
0x12d2   :  { %v3480_v54 = vpop.permute.xlu2 %3479 }
0x12d3   :  { %v3486_v34 = vmul.f32 %v5777_v50, %v3480_v54 }
0x12d5   :  { %v3488_v31 = vadd.f32 %v3486_v34, %v3476_v28  ;;  %v3298_v28 = vsel %vm356_vm8, %v3296_v20, 0.0  ;;  %v3865_v34 = vsel %vm356_vm8, %v7682_v56, -inf  ;;  %v7729_v20 = vperm.slane %v7620_v52, 2 }
0x12d7   :  { %v3500_v4 = vadd.f32 %v3498_v26, %v3488_v31  ;;  %v3285_v26 = vmul.f32 %v5832_v6, %v7431_v45  ;;  %v3273_v31 = vmul.f32 %v5828_v33, %v7431_v45 }
0x12d9   :  { %v7660_v3 = vsel %vm1278_vm5, %v3500_v4, -10000.0  ;;  %v3289_v24 = vsel %vm356_vm8, %v3285_v26, 0.0  ;;  %v3241_v4 = vsel %vm356_vm8, %v3237_v32, 0.0  ;;  %v3277_v19 = vsel %vm356_vm8, %v3273_v31, 0.0 }
0x12da   :  { %v3484_v40 = vpop.permute.xlu2 %3483  ;;  %v3504_v10 = vsel %vm356_vm8, %v7660_v3, -inf }
0x12db   :  { %v3487_v61 = vmul.f32 %v5837_v13, %v3484_v40  ;;  %3505 = vmax.xlane.f32.xlu1 %v3504_v10  ;;  %v2809_v40 = vmul.f32 %v8697_v27, %v7399_v21  ;;  %v3249_v10 = vmul.f32 %v5818_v44, %v7431_v45 }
0x12dd   :  { %v3489_v53 = vadd.f32 %v3487_v61, %v3477_v51  ;;  %v3309_v51 = vmul.f32 %v5841_v5, %v7431_v45  ;;  %v2811_v61 = vsel %vm356_vm8, %v2809_v40, 0.0 }
0x12df   :  { %v3501_v38 = vadd.f32 %v3499_v23, %v3489_v53  ;;  %v3253_v23 = vsel %vm356_vm8, %v3249_v10, 0.0  ;;  %v3313_v53 = vsel %vm356_vm8, %v3309_v51, 0.0  ;;  %v7752_v10 = vperm.slane %v7620_v52, 5 }
0x12e1   :  { %v7670_v18 = vsel %vm1279_vm6, %v3501_v38, -10000.0  ;;  %v3308_v38 = vmul.f32 %v5786_v11, %v7422_v55 }
0x12e2   :  { %v3845_v17 = vpop.permute.xlu2 %3844  ;;  %v3507_v0 = vsel %vm356_vm8, %v7670_v18, -inf }
0x12e3   :  { %v3848_v25 = vmul.f32 %v5837_v13, %v3845_v17  ;;  %3287 = vadd.xlane.f32.xlu1 %v3286_v35  ;;  %3508 = vmax.xlane.f32.xlu2 %v3507_v0  ;;  %v3310_v17 = vsel %vm356_vm8, %v3308_v38, 0.0  ;;  %v2883_v35 = vsel %vm356_vm8, %v2881_v49, 0.0  ;;  %v2894_v0 = vmul.f32 %v5764_v22, %v7399_v21 }
0x12e4   :  { %v2946_v38 = vmul.f32 %v5786_v11, %v7399_v21 }
0x12e5   :  { %v3850_v48 = vadd.f32 %v3848_v25, %v7600_v47  ;;  %v3297_v25 = vmul.f32 %v5837_v13, %v7431_v45  ;;  %v2896_v55 = vsel %vm356_vm8, %v2894_v0, 0.0  ;;  %v2855_v45 = vmul.f32 %v8698_v14, %v7399_v21 }
0x12e6   :  { %v2948_v49 = vsel %vm356_vm8, %v2946_v38, 0.0  ;;  %v2934_v0 = vmul.f32 %v5837_v13, %v7411_v59 }
0x12e7   :  { %v3862_v8 = vadd.f32 %v3860_v16, %v3850_v48  ;;  %v3301_v16 = vsel %vm356_vm8, %v3297_v25, 0.0  ;;  %v3187_v48 = vmul.f32 %v7608_v12, %v7625_v57  ;;  %v7740_v12 = vperm.slane %v7620_v52, 3 }
0x12e8   :  { %v2938_v25 = vsel %vm356_vm8, %v2934_v0, 0.0 }
0x12e9   :  { %v7686_v54 = vsel %vm1279_vm6, %v3862_v8, -10000.0  ;;  %v3240_v8 = vpop.xlane.xlu1 %3239 }
0x12ea   :  { %v3868_v47 = vsel %vm356_vm8, %v7686_v54, -inf  ;;  %v3244_v26 = vmul.f32 %v3240_v8, %v7729_v20 }
0x12eb   :  { %3299 = vadd.xlane.f32.xlu1 %v3298_v28  ;;  %3866 = vmax.xlane.f32.xlu2 %v3865_v34  ;;  %v3232_v28 = vmul.f32 %v7613_v62, %v7631_v7  ;;  %v2869_v34 = vmul.f32 %v5810_v60, %v7411_v59 }
0x12ec   :  { %3869 = vmax.xlane.f32.xlu0 %v3868_v47  ;;  %v3219_v47 = vadd.f32 %v7454_v2, %v3187_v48  ;;  %v2933_v2 = vmul.f32 %v5777_v50, %v7399_v21 }
0x12ed   :  { %v2873_v31 = vsel %vm356_vm8, %v2869_v34, 0.0 }
0x12ee   :  { %v3234_v32 = vadd.f32 %v3232_v28, %v3219_v47  ;;  %v3267_v28 = vpop.xlane.xlu0 %3266 }
0x12f0   :  { %v3246_v62 = vadd.f32 %v3244_v26, %v3234_v32 }
0x12f3   :  { %3290 = vadd.xlane.f32.xlu1 %v3289_v24  ;;  %3242 = vadd.xlane.f32.xlu2 %v3241_v4  ;;  %v2857_v24 = vsel %vm356_vm8, %v2855_v45, 0.0  ;;  %v3256_v4 = vmul.f32 %v7615_v63, %v7740_v12 }
0x12f4   :  { %3278 = vadd.xlane.f32.xlu0 %v3277_v19  ;;  %v7747_v19 = vperm.slane %v7620_v52, 4 }
0x12f5   :  { %v3258_v40 = vadd.f32 %v3256_v4, %v3246_v62 }
0x12f6   :  { %v3268_v51 = vmul.f32 %v7622_v9, %v7747_v19 }
0x12fb   :  { %2812 = vadd.xlane.f32.xlu1 %v2811_v61  ;;  %3254 = vadd.xlane.f32.xlu2 %v3253_v23  ;;  %v2935_v61 = vsel %vm356_vm8, %v2933_v2, 0.0 }
0x12fc   :  { %3314 = vadd.xlane.f32.xlu0 %v3313_v53  ;;  %v3270_v53 = vadd.f32 %v3268_v51, %v3258_v40 }
0x1303   :  { %2871 = vadd.xlane.f32.xlu1 %v2870_v37  ;;  %3311 = vadd.xlane.f32.xlu2 %v3310_v17  ;;  %v2908_v37 = vmul.f32 %v5828_v33, %v7411_v59  ;;  %v2921_v17 = vmul.f32 %v5832_v6, %v7411_v59 }
0x1304   :  { %2884 = vadd.xlane.f32.xlu0 %v2883_v35 }
0x1305   :  { %v2912_v9 = vsel %vm356_vm8, %v2908_v37, 0.0  ;;  %v2925_v35 = vsel %vm356_vm8, %v2921_v17, 0.0  ;;  %v2856_v37 = vmul.f32 %v5807_v42, %v7411_v59  ;;  %v2810_v17 = vmul.f32 %v5804_v36, %v7411_v59 }
0x130b   :  { %2897 = vadd.xlane.f32.xlu1 %v2896_v55  ;;  %3302 = vadd.xlane.f32.xlu2 %v3301_v16 }
0x1313   :  { %2874 = vadd.xlane.f32.xlu1 %v2873_v31  ;;  %2858 = vadd.xlane.f32.xlu2 %v2857_v24 }
0x131b   :  { %2936 = vadd.xlane.f32.xlu1 %v2935_v61  ;;  %v3276_v23 = vpop.xlane.xlu2 %3275 }
0x131c   :  { %v3280_v63 = vmul.f32 %v3276_v23, %v7752_v10 }
0x131e   :  { %v7758_v30 = vadd.f32 %v3280_v63, %v3270_v53 }
0x1323   :  { %2949 = vadd.xlane.f32.xlu1 %v2948_v49 }
0x132b   :  { %2913 = vadd.xlane.f32.xlu1 %v2912_v9 }
0x1333   :  { %2926 = vadd.xlane.f32.xlu1 %v2925_v35  ;;  %v3269_v35 = vmul.f32 %v3267_v28, %v7747_v19  ;;  %v2920_v28 = vmul.f32 %v5773_v41, %v7399_v21 }
0x133b   :  { %2939 = vadd.xlane.f32.xlu1 %v2938_v25 }
0x134e   :  { %v3506_v55 = vpop.xlane.xlu1 %3505 }
0x134f   :  { %v3510_v16 = vsub.f32 %v7660_v3, %v3506_v55  ;;  %v2860_v55 = vsel %vm356_vm8, %v2856_v37, 0.0  ;;  %v2895_v37 = vmul.f32 %v5821_v58, %v7411_v59 }
0x1351   :  { %v3512_v48 = vmul.f32 1.442695, %v3510_v16  ;;  %v7802_v16 = vperm.slane %v7620_v52, 6 }
0x1353   :  { %5301 = vpow2.f32 %v3512_v48 }
0x1356   :  { %v3509_v8 = vpop.xlane.xlu2 %3508  ;;  %v3288_v32 = vpop.xlane.xlu1 %3287 }
0x1357   :  { %v3511_v34 = vsub.f32 %v7670_v18, %v3509_v8 }
0x1359   :  { %v7774_v45 = vpop.eup %5301  ;;  %v3514_v47 = vmul.f32 1.442695, %v3511_v34  ;;  %v2814_v34 = vsel %vm356_vm8, %v2810_v17, 0.0  ;;  %v8707_v17 = vld [vmem:[#allocation29_spill] sm:$0xff] }
0x135a   :  { %v3516_v26 = vsel %vm356_vm8, %v7774_v45, 0.0 }
0x135b   :  { %5303 = vpow2.f32 %v3514_v47  ;;  %3517 = vadd.xlane.f32.xlu0 %v3516_v26 }
0x135e   :  { %v3867_v31 = vpop.xlane.xlu2 %3866  ;;  %v3300_v23 = vpop.xlane.xlu1 %3299 }
0x135f   :  { %v3870_v24 = vpop.xlane.xlu0 %3869  ;;  %v3871_v62 = vsub.f32 %v7682_v56, %v3867_v31 }
0x1360   :  { %v3872_v3 = vsub.f32 %v7686_v54, %v3870_v24  ;;  %v2907_v24 = vmul.f32 %v5768_v29, %v7399_v21  ;;  %v2882_v21 = vmul.f32 %v5818_v44, %v7411_v59 }
0x1361   :  { %v7780_v4 = vpop.eup %5303  ;;  %v3873_v2 = vmul.f32 1.442695, %v3871_v62 }
0x1362   :  { %v3875_v40 = vmul.f32 1.442695, %v3872_v3  ;;  %v3519_v18 = vsel %vm356_vm8, %v7780_v4, 0.0  ;;  %v2922_v3 = vsel %vm356_vm8, %v2920_v28, 0.0 }
0x1363   :  { %5305 = vpow2.f32 %v3873_v2  ;;  %3520 = vadd.xlane.f32.xlu2 %v3519_v18  ;;  %v2909_v2 = vsel %vm356_vm8, %v2907_v24, 0.0  ;;  %v7819_v18 = vld [vmem:[%s8501_s10 + $0x18] ss:$0 sm:$0xff] }
0x1364   :  { %5307 = vpow2.f32 %v3875_v40  ;;  %v7814_v40 = vperm.slane %v7620_v52, 7  ;;  %v2886_v52 = vsel %vm356_vm8, %v2882_v21, 0.0 }
0x1366   :  { %v3243_v51 = vpop.xlane.xlu2 %3242  ;;  %v3291_v25 = vpop.xlane.xlu1 %3290 }
0x1367   :  { %v3245_v61 = vmul.f32 %v3243_v51, %v7729_v20  ;;  %v3293_v47 = vmul.f32 %v3291_v25, %v7802_v16  ;;  %v3304_v25 = vmul.f32 %v3300_v23, %v7814_v40 }
0x1369   :  { %v7785_v53 = vpop.eup %5305  ;;  %v3247_v56 = vadd.f32 %v3245_v61, %v7639_v46  ;;  %v3279_v46 = vpop.xlane.xlu0 %3278 }
0x136a   :  { %v7788_v63 = vpop.eup %5307  ;;  %v3877_v54 = vsel %vm356_vm8, %v7785_v53, 0.0  ;;  %v3281_v48 = vmul.f32 %v3279_v46, %v7752_v10  ;;  %v8708_v46 = vld [vmem:[#allocation28_spill] sm:$0xff] }
0x136b   :  { %v3880_v38 = vsel %vm356_vm8, %v7788_v63, 0.0  ;;  %3878 = vadd.xlane.f32.xlu0 %v3877_v54 }
0x136c   :  { %3881 = vadd.xlane.f32.xlu2 %v3880_v38 }
0x136e   :  { %v3255_v49 = vpop.xlane.xlu2 %3254  ;;  %v7844_v24 = vpop.xlane.xlu1 %2812 }
0x136f   :  { %v3257_v9 = vmul.f32 %v3255_v49, %v7740_v12 }
0x1371   :  { %v3259_v0 = vadd.f32 %v3257_v9, %v3247_v56  ;;  %v3315_v51 = vpop.xlane.xlu0 %3314  ;;  %v2899_v9 = vsel %vm356_vm8, %v2895_v37, 0.0 }
0x1372   :  { %v3317_v54 = vmul.f32 %v7819_v18, %v3315_v51 }
0x1373   :  { %v3271_v8 = vadd.f32 %v3269_v35, %v3259_v0  ;;  %2861 = vadd.xlane.f32.xlu0 %v2860_v55  ;;  %v8709_v35 = vpack.i.bf16 %v8707_v17, %v8708_v46  ;;  %v3292_v0 = vmul.f32 %v3288_v32, %v7802_v16  ;;  %v8710_v55 = vld [vmem:[#allocation31_spill] sm:$0xff]  ;;  %v2947_v32 = vmul.f32 %v5841_v5, %v7411_v59 }
0x1374   :  { %2815 = vadd.xlane.f32.xlu2 %v2814_v34 }
0x1375   :  { %v3283_v26 = vadd.f32 %v3281_v48, %v3271_v8  ;;  %v8711_v48 = vld [vmem:[#allocation30_spill] sm:$0xff]  ;;  %v3294_v34 = vadd.f32 %v3292_v0, %v7758_v30 }
0x1376   :  { %v3312_v31 = vpop.xlane.xlu2 %3311  ;;  %v8712_v8 = vpack.i.bf16 %v8710_v55, %v8711_v48 }
0x1377   :  { %v3295_v62 = vadd.f32 %v3293_v47, %v3283_v26  ;;  %v3316_v47 = vmul.f32 %v7819_v18, %v3312_v31  ;;  %v3306_v26 = vadd.f32 %v3304_v25, %v3294_v34 }
0x1379   :  { %v3318_v28 = vadd.f32 %v3316_v47, %v3306_v26  ;;  %v7850_v23 = vpop.xlane.xlu0 %2884 }
0x137b   :  { %2923 = vadd.xlane.f32.xlu0 %v2922_v3  ;;  %v2951_v3 = vsel %vm356_vm8, %v2947_v32, 0.0 }
0x137c   :  { %2910 = vadd.xlane.f32.xlu2 %v2909_v2 }
0x137e   :  { %v3303_v61 = vpop.xlane.xlu2 %3302 }
0x137f   :  { %v3305_v56 = vmul.f32 %v3303_v61, %v7814_v40 }
0x1381   :  { %v3307_v38 = vadd.f32 %v3305_v56, %v3295_v62  ;;  %v7846_v62 = vpop.xlane.xlu1 %2871 }
0x1383   :  { %v7825_v49 = vadd.f32 %v3317_v54, %v3307_v38 }
0x1384   :  { %2887 = vadd.xlane.f32.xlu2 %v2886_v52 }
0x1386   :  { %v7855_v30 = vpop.xlane.xlu2 %2858 }
0x1389   :  { %v7853_v2 = vpop.xlane.xlu1 %2897 }
0x138c   :  { %2900 = vadd.xlane.f32.xlu2 %v2899_v9 }
0x138f   :  { %5215 = vrot.lane.b32.xlu0 %v8709_v35, %s5359_s2 }
0x1391   :  { %v2875_v21 = vpop.xlane.xlu1 %2874 }
0x1397   :  { %5220 = vrot.lane.b32.xlu0 %v8712_v8, %s5359_s2 }
0x1399   :  { %v7863_v47 = vpop.xlane.xlu1 %2936 }
0x139f   :  { %3322 = vrot.lane.b32.xlu0 %v3318_v28, %s5360_s29 }
0x13c9   :  { %2952 = vadd.xlane.f32.xlu0 %v2951_v3 }
0x13ce   :  { %v3518_v31 = vpop.xlane.xlu0 %3517 }
0x13cf   :  { %5309 = vrcp.f32 %v3518_v31  ;;  %v3533_v38 = vand.u32 2147483648, %v3518_v31  ;;  %v3531_v59 = vand.u32 2147483647, %v3518_v31  ;;  %vm3527_vm6 = vweird.f32 %v3518_v31 }
0x13d1   :  { %v3534_v17 = vor.u32 1.1754944e-38, %v3533_v38  ;;  %vm3532_vm1 = vcmp.eq.f32.partialorder %v3531_v59, 8.507059e+37 }
0x13d5   :  { %v5310_v51 = vpop.eup %5309 }
0x13d6   :  { %v3523_v61 = vmul.f32 %v5310_v51, %v3518_v31  ;;  %v3521_v56 = vpop.xlane.xlu2 %3520  ;;  %vm3528_vm5 = vweird.f32 %v5310_v51 }
0x13d7   :  { %5311 = vrcp.f32 %v3521_v56  ;;  %vm3529_vm10 = vmor %vm3527_vm6, %vm3528_vm5  ;;  %v3548_v34 = vand.u32 2147483648, %v3521_v56  ;;  %v3546_v28 = vand.u32 2147483647, %v3521_v56  ;;  %vm3542_vm13 = vweird.f32 %v3521_v56 }
0x13d8   :  { %v3524_v54 = vsub.f32 1.0, %v3523_v61 }
0x13d9   :  { %vm3547_vm3 = vcmp.eq.f32.partialorder %v3546_v28, 8.507059e+37 }
0x13da   :  { %v3525_v52 = vmul.f32 %v5310_v51, %v3524_v54 }
0x13dc   :  { %v3526_v37 = vadd.f32 %v5310_v51, %v3525_v52 }
0x13dd   :  { %v5312_v9 = vpop.eup %5311 }
0x13de   :  { %v3530_v46 = vsel %vm3529_vm10, %v5310_v51, %v3526_v37  ;;  %v3538_v35 = vmul.f32 %v5312_v9, %v3521_v56  ;;  %v3879_v0 = vpop.xlane.xlu0 %3878  ;;  %vm3543_vm2 = vweird.f32 %v5312_v9  ;;  %v3549_v51 = vor.u32 1.1754944e-38, %v3548_v34 }
0x13df   :  { %v3535_v25 = vsel %vm3532_vm1, %v3534_v17, %v3530_v46  ;;  %5313 = vrcp.f32 %v3879_v0  ;;  %v7857_v55 = vpop.xlane.xlu2 %3881  ;;  %vm3544_vm4 = vmor %vm3542_vm13, %vm3543_vm2  ;;  %v3894_v34 = vand.u32 2147483648, %v3879_v0  ;;  %vm3888_vm5 = vweird.f32 %v3879_v0 }
0x13e0   :  { %v7860_v48 = vmul.f32 %v7774_v45, %v3535_v25  ;;  %v3539_v8 = vsub.f32 1.0, %v3538_v35  ;;  %5315 = vrcp.f32 %v7857_v55  ;;  %vm3903_vm2 = vweird.f32 %v7857_v55 }
0x13e2   :  { %v3540_v26 = vmul.f32 %v5312_v9, %v3539_v8  ;;  %4925 = vmatmul.msk.f32.vlgmr.msra.gmra.mxu3 %vm356_vm8, %v7860_v48  ;;  %v3552_v32 = vmul.f32 %v8697_v27, %v7860_v48  ;;  %v3597_v25 = vmul.f32 %v8698_v14, %v7860_v48  ;;  %v3892_v8 = vand.u32 2147483647, %v3879_v0 }
0x13e4   :  { %v3541_v3 = vadd.f32 %v5312_v9, %v3540_v26  ;;  %v3554_v45 = vsel %vm356_vm8, %v3552_v32, 0.0  ;;  %vm3893_vm10 = vcmp.eq.f32.partialorder %v3892_v8, 8.507059e+37  ;;  %v3907_v8 = vand.u32 2147483647, %v7857_v55 }
0x13e5   :  { %v5314_v31 = vpop.eup %5313  ;;  %3555 = vadd.xlane.f32.xlu2 %v3554_v45 }
0x13e6   :  { %v5316_v61 = vpop.eup %5315  ;;  %v3545_v54 = vsel %vm3544_vm4, %v5312_v9, %v3541_v3  ;;  %v3884_v38 = vmul.f32 %v5314_v31, %v3879_v0  ;;  %v2862_v37 = vpop.xlane.xlu0 %2861  ;;  %vm3889_vm15 = vweird.f32 %v5314_v31  ;;  %v2878_v3 = vmul.f32 %v7729_v20, %v2875_v21 }
0x13e7   :  { %v3550_v52 = vsel %vm3547_vm3, %v3549_v51, %v3545_v54  ;;  %v3899_v59 = vmul.f32 %v5316_v61, %v7857_v55  ;;  %v2816_v17 = vpop.xlane.xlu2 %2815  ;;  %v2865_v28 = vmul.f32 %v7631_v7, %v2862_v37  ;;  %v7884_v51 = vpop.xlane.xlu1 %2949  ;;  %vm3890_vm6 = vmor %vm3888_vm5, %vm3889_vm15  ;;  %vm3904_vm1 = vweird.f32 %v5316_v61 }
0x13e8   :  { %v7872_v46 = vmul.f32 %v7780_v4, %v3550_v52  ;;  %v3885_v35 = vsub.f32 1.0, %v3884_v38  ;;  %v2819_v56 = vmul.f32 %v7625_v57, %v2816_v17  ;;  %v3599_v52 = vsel %vm356_vm8, %v3597_v25, 0.0  ;;  %vm3905_vm13 = vmor %vm3903_vm2, %vm3904_vm1 }
0x13e9   :  { %v3900_v9 = vsub.f32 1.0, %v3899_v59  ;;  %v2818_v0 = vmul.f32 %v7625_v57, %v7844_v24  ;;  %vm3908_vm4 = vcmp.eq.f32.partialorder %v3907_v8, 8.507059e+37 }
0x13ea   :  { %v3886_v26 = vmul.f32 %v5314_v31, %v3885_v35  ;;  %v2853_v32 = vadd.f32 %v7447_v1, %v2819_v56  ;;  %4926 = vmatmul.msk.f32.gmra.mxu3 %vm356_vm8, %v7872_v46  ;;  %v3553_v4 = vmul.f32 %v5804_v36, %v7872_v46  ;;  %v3895_v1 = vor.u32 1.1754944e-38, %v3894_v34 }
0x13eb   :  { %v3901_v45 = vmul.f32 %v5316_v61, %v3900_v9  ;;  %v3909_v56 = vand.u32 2147483648, %v7857_v55  ;;  %v2864_v34 = vmul.f32 %v7631_v7, %v7855_v30  ;;  %v3598_v24 = vmul.f32 %v5807_v42, %v7872_v46 }
0x13ec   :  { %v3887_v54 = vadd.f32 %v5314_v31, %v3886_v26  ;;  %v2867_v38 = vadd.f32 %v2865_v28, %v2853_v32  ;;  %v3557_v59 = vsel %vm356_vm8, %v3553_v4, 0.0  ;;  %v2850_v28 = vadd.f32 %v7445_v43, %v2818_v0 }
0x13ed   :  { %3600 = vadd.xlane.f32.xlu2 %v3599_v52  ;;  %3558 = vadd.xlane.f32.xlu1 %v3557_v59  ;;  %v3902_v17 = vadd.f32 %v5316_v61, %v3901_v45  ;;  %v3910_v55 = vor.u32 1.1754944e-38, %v3909_v56  ;;  %v3621_v52 = vmul.f32 %v5757_v15, %v7860_v48 }
0x13ee   :  { %v3891_v37 = vsel %vm3890_vm6, %v5314_v31, %v3887_v54  ;;  %v2880_v21 = vadd.f32 %v2878_v3, %v2867_v38  ;;  %v3609_v31 = vmul.f32 %v8699_v39, %v7860_v48  ;;  %v2866_v30 = vadd.f32 %v2864_v34, %v2850_v28 }
0x13ef   :  { %v3896_v35 = vsel %vm3893_vm10, %v3895_v1, %v3891_v37  ;;  %v2911_v9 = vpop.xlane.xlu2 %2910  ;;  %v3906_v26 = vsel %vm3905_vm13, %v5316_v61, %v3902_v17  ;;  %v3602_v61 = vsel %vm356_vm8, %v3598_v24, 0.0  ;;  %v2914_v45 = vpop.xlane.xlu1 %2913  ;;  %v2877_v54 = vmul.f32 %v7729_v20, %v7846_v62 }
0x13f0   :  { %v7893_v25 = vmul.f32 %v7785_v53, %v3896_v35  ;;  %v3611_v32 = vsel %vm356_vm8, %v3609_v31, 0.0  ;;  %v3911_v3 = vsel %vm3908_vm4, %v3910_v55, %v3906_v26  ;;  %v2924_v37 = vpop.xlane.xlu0 %2923  ;;  %v3610_v17 = vmul.f32 %v5810_v60, %v7872_v46 }
0x13f1   :  { %v7914_v43 = vmul.f32 %v7788_v63, %v3911_v3  ;;  %v2879_v1 = vadd.f32 %v2877_v54, %v2866_v30  ;;  %v2890_v63 = vmul.f32 %v7740_v12, %v7850_v23  ;;  %v3623_v62 = vsel %vm356_vm8, %v3621_v52, 0.0 }
0x13f2   :  { %4935 = vmatmul.msk.f32.vlgmr.msra.gmra.mxu1 %vm356_vm8, %v7893_v25  ;;  %v3970_v53 = vmul.f32 %v8699_v39, %v7893_v25  ;;  %v4018_v59 = vmul.f32 %v5773_v41, %v7893_v25  ;;  %v3614_v8 = vsel %vm356_vm8, %v3610_v17, 0.0  ;;  %v2903_v31 = vmul.f32 %v7747_v19, %v7853_v2 }
0x13f3   :  { %v2892_v56 = vadd.f32 %v2890_v63, %v2879_v1  ;;  %v2916_v24 = vmul.f32 %v7752_v10, %v2911_v9  ;;  %v3633_v23 = vmul.f32 %v5764_v22, %v7860_v48  ;;  %v3995_v1 = vmul.f32 %v5821_v58, %v7914_v43 }
0x13f4   :  { %v3972_v4 = vsel %vm356_vm8, %v3970_v53, 0.0  ;;  %v4020_v35 = vsel %vm356_vm8, %v4018_v59, 0.0  ;;  %v3959_v53 = vmul.f32 %v5807_v42, %v7914_v43  ;;  %v3645_v59 = vmul.f32 %v5768_v29, %v7860_v48 }
0x13f5   :  { %3612 = vadd.xlane.f32.xlu2 %v3611_v32  ;;  %3973 = vadd.xlane.f32.xlu0 %v3972_v4  ;;  %v2905_v28 = vadd.f32 %v2903_v31, %v2892_v56  ;;  %v3913_v32 = vmul.f32 %v8697_v27, %v7893_v25  ;;  %v2917_v4 = vmul.f32 %v7752_v10, %v2914_v45 }
0x13f6   :  { %3603 = vadd.xlane.f32.xlu1 %v3602_v61  ;;  %v2929_v27 = vmul.f32 %v7802_v16, %v2924_v37  ;;  %v2942_v63 = vmul.f32 %v7814_v40, %v7863_v47  ;;  %v3647_v56 = vsel %vm356_vm8, %v3645_v59, 0.0  ;;  %v3657_v47 = vmul.f32 %v5773_v41, %v7860_v48 }
0x13f7   :  { %v2888_v39 = vpop.xlane.xlu2 %2887  ;;  %v2927_v34 = vpop.xlane.xlu1 %2926  ;;  %v2918_v61 = vadd.f32 %v2916_v24, %v2905_v28  ;;  %v3915_v42 = vsel %vm356_vm8, %v3913_v32, 0.0  ;;  %v3646_v41 = vmul.f32 %v5828_v33, %v7872_v46 }
0x13f8   :  { %v2891_v38 = vmul.f32 %v7740_v12, %v2888_v39  ;;  %v2930_v9 = vmul.f32 %v7802_v16, %v2927_v34  ;;  %v3635_v39 = vsel %vm356_vm8, %v3633_v23, 0.0  ;;  %v3634_v34 = vmul.f32 %v5821_v58, %v7872_v46 }
0x13f9   :  { %v2931_v52 = vadd.f32 %v2929_v27, %v2918_v61  ;;  %v3958_v58 = vmul.f32 %v8698_v14, %v7893_v25  ;;  %v3650_v32 = vsel %vm356_vm8, %v3646_v41, 0.0  ;;  %v4019_v14 = vmul.f32 %v5832_v6, %v7914_v43 }
0x13fa   :  { %v2893_v0 = vadd.f32 %v2891_v38, %v2880_v21  ;;  %4936 = vmatmul.msk.f32.gmra.mxu1 %vm356_vm8, %v7914_v43  ;;  %v3963_v38 = vsel %vm356_vm8, %v3959_v53, 0.0  ;;  %v3659_v53 = vsel %vm356_vm8, %v3657_v47, 0.0  ;;  %v3670_v27 = vmul.f32 %v5837_v13, %v7872_v46 }
0x13fd   :  { %3624 = vadd.xlane.f32.xlu2 %v3623_v62  ;;  %4021 = vadd.xlane.f32.xlu0 %v4020_v35  ;;  %v2944_v35 = vadd.f32 %v2942_v63, %v2931_v52  ;;  %v3674_v52 = vsel %vm356_vm8, %v3670_v27, 0.0 }
0x13fe   :  { %3615 = vadd.xlane.f32.xlu1 %v3614_v8  ;;  %v3999_v8 = vsel %vm356_vm8, %v3995_v1, 0.0  ;;  %v3983_v1 = vmul.f32 %v5818_v44, %v7914_v43 }
0x13ff   :  { %v2901_v21 = vpop.xlane.xlu2 %2900 }
0x1400   :  { %v2904_v26 = vmul.f32 %v7747_v19, %v2901_v21  ;;  %v2955_v21 = vmul.f32 %v7819_v18, %v7884_v51  ;;  %v3638_v51 = vsel %vm356_vm8, %v3634_v34, 0.0 }
0x1401   :  { %v5216_v55 = vpop.permute.xlu0 %5215 }
0x1402   :  { %v2906_v2 = vadd.f32 %v2904_v26, %v2893_v0  ;;  %v5218_v30 = vunpack.i.h.bf16 %v5216_v55  ;;  %v5217_v3 = vunpack.i.l.bf16 %v5216_v55  ;;  %v3982_v0 = vmul.f32 %v5757_v15, %v7893_v25 }
0x1403   :  { %v2957_v15 = vadd.f32 %v2955_v21, %v2944_v35  ;;  %v3994_v26 = vmul.f32 %v5764_v22, %v7893_v25  ;;  %v4030_v22 = vmul.f32 %v5777_v50, %v7893_v25  ;;  %v3960_v55 = vsel %vm356_vm8, %v3958_v58, 0.0 }
0x1404   :  { %v2919_v54 = vadd.f32 %v2917_v4, %v2906_v2  ;;  %4107 = vmatpush.msrb.mxu3 %v5217_v3  ;;  %v3984_v31 = vsel %vm356_vm8, %v3982_v0, 0.0  ;;  %v4006_v2 = vmul.f32 %v5768_v29, %v7893_v25  ;;  %v4043_v29 = vmul.f32 %v5841_v5, %v7914_v43 }
0x1405   :  { %3636 = vadd.xlane.f32.xlu2 %v3635_v39  ;;  %3964 = vadd.xlane.f32.xlu0 %v3963_v38  ;;  %v3996_v28 = vsel %vm356_vm8, %v3994_v26, 0.0  ;;  %v4032_v4 = vsel %vm356_vm8, %v4030_v22, 0.0  ;;  %v4007_v39 = vmul.f32 %v5828_v33, %v7914_v43  ;;  %v3682_v33 = vmul.f32 %v5841_v5, %v7872_v46 }
0x1406   :  { %3916 = vadd.xlane.f32.xlu1 %v3915_v42  ;;  %4108 = vmatpush.msrb.mxu3 %v5218_v30  ;;  %v7946_v45 = vadd.f32 %v2930_v9, %v2919_v54  ;;  %v3971_v30 = vmul.f32 %v5810_v60, %v7914_v43  ;;  %v4008_v3 = vsel %vm356_vm8, %v4006_v2, 0.0  ;;  %v4023_v9 = vsel %vm356_vm8, %v4019_v14, 0.0 }
0x1407   :  { %v4042_v54 = vmul.f32 %v5786_v11, %v7893_v25  ;;  %v4047_v38 = vsel %vm356_vm8, %v4043_v29, 0.0  ;;  %v4011_v42 = vsel %vm356_vm8, %v4007_v39, 0.0  ;;  %v3914_v25 = vmul.f32 %v5804_v36, %v7914_v43 }
0x1408   :  { %v3975_v61 = vsel %vm356_vm8, %v3971_v30, 0.0  ;;  %v3987_v0 = vsel %vm356_vm8, %v3983_v1, 0.0  ;;  %v3622_v36 = vmul.f32 %v5818_v44, %v7872_v46  ;;  %v3669_v5 = vmul.f32 %v5777_v50, %v7860_v48 }
0x1409   :  { %v5221_v17 = vpop.permute.xlu0 %5220  ;;  %v4044_v60 = vsel %vm356_vm8, %v4042_v54, 0.0  ;;  %v3918_v59 = vsel %vm356_vm8, %v3914_v25, 0.0 }
0x140a   :  { %v5223_v62 = vunpack.i.h.bf16 %v5221_v17  ;;  %v5222_v37 = vunpack.i.l.bf16 %v5221_v17  ;;  %v3686_v17 = vsel %vm356_vm8, %v3682_v33, 0.0  ;;  %v3626_v63 = vsel %vm356_vm8, %v3622_v36, 0.0 }
0x140c   :  { %4109 = vmatpush.msrb.mxu3 %v5222_v37  ;;  %v3681_v37 = vmul.f32 %v5786_v11, %v7860_v48 }
0x140d   :  { %3648 = vadd.xlane.f32.xlu2 %v3647_v56  ;;  %4000 = vadd.xlane.f32.xlu0 %v3999_v8  ;;  %v8022_v56 = vpop.xlane.xlu1 %2939  ;;  %v4031_v8 = vmul.f32 %v5837_v13, %v7914_v43  ;;  %v3658_v13 = vmul.f32 %v5832_v6, %v7872_v46 }
0x140e   :  { %3985 = vadd.xlane.f32.xlu1 %v3984_v31  ;;  %4110 = vmatpush.msrb.mxu3 %v5223_v62  ;;  %v3671_v62 = vsel %vm356_vm8, %v3669_v5, 0.0  ;;  %v3683_v35 = vsel %vm356_vm8, %v3681_v37, 0.0 }
0x140f   :  { %v3662_v41 = vsel %vm356_vm8, %v3658_v13, 0.0 }
0x1411   :  { %v3323_v24 = vpop.permute.xlu0 %3322 }
0x1412   :  { %v3328_v23 = vsel %vm356_vm8, %v2957_v15, %v3323_v24 }
0x1413   :  { %4937 = vmatmul.msk.f32.vlgmr.msrb.gmra.mxu3 %vm312_vm9, %v3328_v23 }
0x1415   :  { %3660 = vadd.xlane.f32.xlu2 %v3659_v53  ;;  %3639 = vadd.xlane.f32.xlu0 %v3638_v51 }
0x1416   :  { %3997 = vadd.xlane.f32.xlu1 %v3996_v28 }
0x141d   :  { %3961 = vadd.xlane.f32.xlu2 %v3960_v55  ;;  %3651 = vadd.xlane.f32.xlu0 %v3650_v32 }
0x141e   :  { %4033 = vadd.xlane.f32.xlu1 %v4032_v4 }
0x1425   :  { %4009 = vadd.xlane.f32.xlu2 %v4008_v3  ;;  %4024 = vadd.xlane.f32.xlu0 %v4023_v9 }
0x1426   :  { %3976 = vadd.xlane.f32.xlu1 %v3975_v61 }
0x142d   :  { %4045 = vadd.xlane.f32.xlu2 %v4044_v60  ;;  %4048 = vadd.xlane.f32.xlu0 %v4047_v38 }
0x142e   :  { %4012 = vadd.xlane.f32.xlu1 %v4011_v42 }
0x1435   :  { %3675 = vadd.xlane.f32.xlu0 %v3674_v52  ;;  %3919 = vadd.xlane.f32.xlu2 %v3918_v59 }
0x143c   :  { %v2953_v9 = vpop.xlane.xlu0 %2952 }
0x143d   :  { %3687 = vadd.xlane.f32.xlu0 %v3686_v17  ;;  %3988 = vadd.xlane.f32.xlu2 %v3987_v0 }
0x1445   :  { %3627 = vadd.xlane.f32.xlu2 %v3626_v63 }
0x1447   :  { %3324 = vrot.lane.b32.xlu1 %v7825_v49, %s5360_s29  ;;  %v4035_v49 = vsel %vm356_vm8, %v4031_v8, 0.0 }
0x144d   :  { %3672 = vadd.xlane.f32.xlu2 %v3671_v62 }
0x1455   :  { %3684 = vadd.xlane.f32.xlu2 %v3683_v35 }
0x1458   :  { %v3556_v44 = vpop.xlane.xlu2 %3555 }
0x1459   :  { %v3560_v21 = vmul.f32 %v3556_v44, %v7625_v57 }
0x145d   :  { %4036 = vadd.xlane.f32.xlu2 %v4035_v49 }
0x1460   :  { %v3559_v31 = vpop.xlane.xlu1 %3558  ;;  %v3601_v50 = vpop.xlane.xlu2 %3600 }
0x1461   :  { %v3605_v47 = vmul.f32 %v3601_v50, %v7631_v7  ;;  %v3561_v53 = vmul.f32 %v3559_v31, %v7625_v57 }
0x1465   :  { %v3591_v15 = vpop.f32.mrf.mxu3 }
0x1466   :  { %v3592_v11 = vadd.f32 %v3591_v15, %v3560_v21 }
0x1468   :  { %v3607_v48 = vadd.f32 %v3605_v47, %v3592_v11  ;;  %v3613_v34 = vpop.xlane.xlu2 %3612  ;;  %v3974_v39 = vpop.xlane.xlu0 %3973 }
0x1469   :  { %v3604_v24 = vpop.xlane.xlu1 %3603  ;;  %v3617_v26 = vmul.f32 %v3613_v34, %v7729_v20  ;;  %v3978_v36 = vmul.f32 %v3974_v39, %v7729_v20 }
0x146a   :  { %v3606_v51 = vmul.f32 %v3604_v24, %v7631_v7 }
0x146b   :  { %v3619_v23 = vadd.f32 %v3617_v26, %v3607_v48 }
0x146d   :  { %v3594_v43 = vpop.f32.mrf.mxu3 }
0x146e   :  { %v3595_v28 = vadd.f32 %v3594_v43, %v3561_v53  ;;  %v5342_v43 = vld [vmem:[%s8497_s8 + $0x1] ss:$0 sm:$0xff] }
0x146f   :  { %v3952_v52 = vpop.f32.mrf.mxu1 }
0x1470   :  { %v3608_v58 = vadd.f32 %v3606_v51, %v3595_v28  ;;  %v3625_v22 = vpop.xlane.xlu2 %3624  ;;  %v4022_v17 = vpop.xlane.xlu0 %4021 }
0x1471   :  { %v3616_v55 = vpop.xlane.xlu1 %3615  ;;  %3663 = vadd.xlane.f32.xlu1 %v3662_v41  ;;  %v3629_v32 = vmul.f32 %v3625_v22, %v7740_v12  ;;  %v4026_v31 = vmul.f32 %v4022_v17, %v7802_v16  ;;  %v2943_v41 = vmul.f32 %v7814_v40, %v8022_v56  ;;  %v2956_v22 = vmul.f32 %v7819_v18, %v2953_v9 }
0x1472   :  { %v3618_v4 = vmul.f32 %v3616_v55, %v7729_v20 }
0x1473   :  { %v3631_v2 = vadd.f32 %v3629_v32, %v3619_v23  ;;  %v2945_v55 = vadd.f32 %v2943_v41, %v7946_v45 }
0x1474   :  { %v3620_v14 = vadd.f32 %v3618_v4, %v3608_v58 }
0x1475   :  { %v2958_v4 = vadd.f32 %v2956_v22, %v2945_v55 }
0x1478   :  { %v3637_v30 = vpop.xlane.xlu2 %3636  ;;  %v3965_v21 = vpop.xlane.xlu0 %3964 }
0x1479   :  { %v3641_v3 = vmul.f32 %v3637_v30, %v7747_v19  ;;  %v3917_v46 = vpop.xlane.xlu1 %3916  ;;  %v3967_v56 = vmul.f32 %v3965_v21, %v7631_v7 }
0x147a   :  { %v3921_v25 = vmul.f32 %v3917_v46, %v7625_v57 }
0x147b   :  { %v3643_v6 = vadd.f32 %v3641_v3, %v3631_v2 }
0x147c   :  { %v3953_v33 = vadd.f32 %v3952_v52, %v3921_v25 }
0x1480   :  { %v3649_v61 = vpop.xlane.xlu2 %3648  ;;  %v4001_v23 = vpop.xlane.xlu0 %4000 }
0x1481   :  { %v3653_v54 = vmul.f32 %v3649_v61, %v7752_v10  ;;  %v3986_v60 = vpop.xlane.xlu1 %3985 }
0x1482   :  { %v3990_v5 = vmul.f32 %v3986_v60, %v7740_v12 }
0x1483   :  { %v3655_v29 = vadd.f32 %v3653_v54, %v3643_v6  ;;  %v3955_v6 = vpop.f32.mrf.mxu1 }
0x1488   :  { %v3661_v38 = vpop.xlane.xlu2 %3660  ;;  %v3640_v51 = vpop.xlane.xlu0 %3639 }
0x1489   :  { %v3665_v42 = vmul.f32 %v3661_v38, %v7802_v16  ;;  %v3998_v0 = vpop.xlane.xlu1 %3997  ;;  %v3642_v54 = vmul.f32 %v3640_v51, %v7747_v19 }
0x148a   :  { %v4002_v37 = vmul.f32 %v3998_v0, %v7747_v19 }
0x148b   :  { %v8040_v27 = vadd.f32 %v3665_v42, %v3655_v29 }
0x1490   :  { %v3962_v59 = vpop.xlane.xlu2 %3961  ;;  %v3652_v46 = vpop.xlane.xlu0 %3651 }
0x1491   :  { %v3966_v1 = vmul.f32 %v3962_v59, %v7631_v7  ;;  %v4034_v15 = vpop.xlane.xlu1 %4033  ;;  %v3654_v45 = vmul.f32 %v3652_v46, %v7752_v10 }
0x1492   :  { %v4038_v11 = vmul.f32 %v4034_v15, %v7814_v40 }
0x1493   :  { %v3968_v63 = vadd.f32 %v3966_v1, %v3953_v33  ;;  %v4003_v1 = vmul.f32 %v4001_v23, %v7747_v19 }
0x1495   :  { %v3980_v62 = vadd.f32 %v3978_v36, %v3968_v63 }
0x1497   :  { %v3992_v35 = vadd.f32 %v3990_v5, %v3980_v62 }
0x1498   :  { %v4010_v44 = vpop.xlane.xlu2 %4009  ;;  %v4025_v33 = vpop.xlane.xlu0 %4024 }
0x1499   :  { %v4004_v8 = vadd.f32 %v4002_v37, %v3992_v35  ;;  %v4014_v49 = vmul.f32 %v4010_v44, %v7752_v10  ;;  %v3977_v53 = vpop.xlane.xlu1 %3976  ;;  %v4027_v36 = vmul.f32 %v4025_v33, %v7802_v16 }
0x149a   :  { %v3979_v42 = vmul.f32 %v3977_v53, %v7729_v20 }
0x149b   :  { %v4016_v50 = vadd.f32 %v4014_v49, %v4004_v8 }
0x149d   :  { %v4028_v47 = vadd.f32 %v4026_v31, %v4016_v50  ;;  %v4112_v50 = vpop.f32.mrf.mxu3 }
0x149f   :  { %v4040_v34 = vadd.f32 %v4038_v11, %v4028_v47  ;;  %v8713_v47 = vld [vmem:[#allocation32_spill] sm:$0xff] }
0x14a0   :  { %v4046_v48 = vpop.xlane.xlu2 %4045  ;;  %v4049_v63 = vpop.xlane.xlu0 %4048 }
0x14a1   :  { %v4050_v24 = vmul.f32 %v7819_v18, %v4046_v48  ;;  %v4013_v58 = vpop.xlane.xlu1 %4012  ;;  %v4051_v20 = vmul.f32 %v7819_v18, %v4049_v63 }
0x14a2   :  { %v4015_v0 = vmul.f32 %v4013_v58, %v7752_v10 }
0x14a3   :  { %v4052_v26 = vadd.f32 %v4050_v24, %v4040_v34 }
0x14a5   :  { %4056 = vrot.lane.b32.xlu2 %v4052_v26, %s5360_s29 }
0x14a8   :  { %v3920_v13 = vpop.xlane.xlu2 %3919  ;;  %v3676_v34 = vpop.xlane.xlu0 %3675 }
0x14a9   :  { %v3922_v32 = vmul.f32 %v3920_v13, %v7625_v57 }
0x14ab   :  { %v3956_v29 = vadd.f32 %v3955_v6, %v3922_v32 }
0x14ad   :  { %4080 = vrot.lane.b32.xlu2 %v5342_v43, %s5359_s2  ;;  %v3969_v9 = vadd.f32 %v3967_v56, %v3956_v29  ;;  %v8714_v43 = vld [vmem:[#allocation33_spill] sm:$0xff] }
0x14af   :  { %v3981_v52 = vadd.f32 %v3979_v42, %v3969_v9 }
0x14b0   :  { %v3989_v28 = vpop.xlane.xlu2 %3988  ;;  %v3688_v13 = vpop.xlane.xlu0 %3687 }
0x14b1   :  { %v3991_v25 = vmul.f32 %v3989_v28, %v7740_v12  ;;  %v3678_v28 = vmul.f32 %v3676_v34, %v7814_v40  ;;  %v3690_v22 = vmul.f32 %v7819_v18, %v3688_v13 }
0x14b3   :  { %v3993_v59 = vadd.f32 %v3991_v25, %v3981_v52 }
0x14b5   :  { %v4005_v17 = vadd.f32 %v4003_v1, %v3993_v59 }
0x14b7   :  { %v4017_v7 = vadd.f32 %v4015_v0, %v4005_v17 }
0x14b8   :  { %v3628_v2 = vpop.xlane.xlu2 %3627 }
0x14b9   :  { %v3325_v30 = vpop.permute.xlu1 %3324  ;;  %v3630_v3 = vmul.f32 %v3628_v2, %v7740_v12  ;;  %v4029_v62 = vadd.f32 %v4027_v36, %v4017_v7 }
0x14ba   :  { %v3329_v61 = vsel %vm356_vm8, %v2958_v4, %v3325_v30  ;;  %v8715_v30 = vld [vmem:[#allocation34_spill] sm:$0xff] }
0x14bb   :  { %v3632_v39 = vadd.f32 %v3630_v3, %v3620_v14  ;;  %4938 = vmatmul.msk.f32.gmra.mxu3 %vm312_vm9, %v3329_v61  ;;  %v8716_v61 = vld [vmem:[#allocation3_spill] sm:$0xff] }
0x14bd   :  { %v3644_v57 = vadd.f32 %v3642_v54, %v3632_v39  ;;  %v8717_v39 = vld [vmem:[#allocation35_spill] sm:$0xff] }
0x14bf   :  { %v3656_v60 = vadd.f32 %v3654_v45, %v3644_v57 }
0x14c0   :  { %v3673_v38 = vpop.xlane.xlu2 %3672 }
0x14c1   :  { %v3677_v19 = vmul.f32 %v3673_v38, %v7814_v40 }
0x14c3   :  { %v3679_v10 = vadd.f32 %v3677_v19, %v8040_v27 }
0x14c8   :  { %v3685_v14 = vpop.xlane.xlu2 %3684 }
0x14c9   :  { %v3689_v44 = vmul.f32 %v7819_v18, %v3685_v14 }
0x14cb   :  { %v3691_v8 = vadd.f32 %v3689_v44, %v3679_v10 }
0x14d0   :  { %v4037_v5 = vpop.xlane.xlu2 %4036 }
0x14d1   :  { %v4039_v37 = vmul.f32 %v4037_v5, %v7814_v40 }
0x14d3   :  { %v4041_v12 = vadd.f32 %v4039_v37, %v4029_v62 }
0x14d5   :  { %v4053_v35 = vadd.f32 %v4051_v20, %v4041_v12 }
0x14d7   :  { %4058 = vrot.lane.b32.xlu0 %v4053_v35, %s5360_s29 }
0x14e4   :  { %v3664_v24 = vpop.xlane.xlu1 %3663 }
0x14e5   :  { %v3666_v26 = vmul.f32 %v3664_v24, %v7802_v16 }
0x14e7   :  { %v3668_v53 = vadd.f32 %v3666_v26, %v3656_v60 }
0x14e9   :  { %v3680_v41 = vadd.f32 %v3678_v28, %v3668_v53 }
0x14eb   :  { %v3692_v55 = vadd.f32 %v3690_v22, %v3680_v41 }
0x14ff   :  { %v4057_v49 = vpop.permute.xlu2 %4056 }
0x1500   :  { %v4062_v31 = vsel %vm356_vm8, %v3691_v8, %v4057_v49 }
0x1501   :  { %4939 = vmatmul.msk.f32.gmra.mxu3 %vm312_vm9, %v4062_v31  ;;  %v8114_v31 = vld [vmem:[%s8503_s11 + $0x4] sm:$0xf] }
0x1502   :  { %v8120_v24 = vperm.slane %v8114_v31, 1 }
0x1507   :  { %v4081_v21 = vpop.permute.xlu2 %4080 }
0x1508   :  { %v4113_v15 = vadd.f32 %v4112_v50, %v4081_v21 }
0x150a   :  { %v4124_v11 = vadd.f32 %v4113_v15, %v8713_v47 }
0x150c   :  { %v4128_v48 = vsel %vm312_vm9, %v4124_v11, 0.0 }
0x150d   :  { %4129 = vadd.xlane.f32.xlu2 %v4128_v48 }
0x153e   :  { %v4115_v23 = vpop.f32.mrf.mxu3 }
0x153f   :  { %v4116_v27 = vadd.f32 %v4115_v23, %v4081_v21 }
0x1541   :  { %v4125_v51 = vadd.f32 %v4116_v27, %v8714_v43 }
0x1543   :  { %v4131_v58 = vsel %vm312_vm9, %v4125_v51, 0.0 }
0x1544   :  { %4132 = vadd.xlane.f32.xlu0 %v4131_v58 }
0x1549   :  { %v4059_v32 = vpop.permute.xlu0 %4058 }
0x154a   :  { %v4063_v4 = vsel %vm356_vm8, %v3692_v55, %v4059_v32 }
0x154b   :  { %4940 = vmatmul.msk.f32.gmra.mxu3 %vm312_vm9, %v4063_v4 }
0x1580   :  { %v4130_v40 = vpop.xlane.xlu2 %4129 }
0x1581   :  { %v4140_v54 = vmul.f32 %v4130_v40, %v8716_v61  ;;  %v8721_v40 = vld [vmem:[#allocation2_spill] sm:$0xff] }
0x1583   :  { %v4144_v56 = vsub.f32 %v4124_v11, %v4140_v54  ;;  %v8117_v11 = vperm.slane %v8114_v31, 0 }
0x1584   :  { %v4118_v16 = vpop.f32.mrf.mxu3 }
0x1585   :  { %v4119_v2 = vadd.f32 %v4118_v16, %v4081_v21  ;;  %v4148_v60 = vmul.f32 %v4144_v56, %v4144_v56  ;;  %v8719_v16 = vld [vmem:[#allocation6_spill] sm:$0xff] }
0x1587   :  { %v4126_v3 = vadd.f32 %v4119_v2, %v8715_v30  ;;  %v4152_v42 = vsel %vm312_vm9, %v4148_v60, 0.0 }
0x1589   :  { %v4134_v6 = vsel %vm312_vm9, %v4126_v3, 0.0 }
0x158a   :  { %4135 = vadd.xlane.f32.xlu1 %v4134_v6 }
0x15b7   :  { %v4133_v57 = vpop.xlane.xlu0 %4132 }
0x15b8   :  { %v4141_v9 = vmul.f32 %v4133_v57, %v8716_v61 }
0x15ba   :  { %v4145_v38 = vsub.f32 %v4125_v51, %v4141_v9  ;;  %v8718_v51 = vld [vmem:[#allocation4_spill] sm:$0xff] }
0x15bc   :  { %v4149_v25 = vmul.f32 %v4145_v38, %v4145_v38 }
0x15be   :  { %v4155_v52 = vsel %vm312_vm9, %v4149_v25, 0.0 }
0x15ce   :  { %v4121_v46 = vpop.f32.mrf.mxu3 }
0x15cf   :  { %v4122_v29 = vadd.f32 %v4121_v46, %v4081_v21 }
0x15d1   :  { %v4127_v18 = vadd.f32 %v4122_v29, %v8717_v39 }
0x15d3   :  { %v4137_v45 = vsel %vm312_vm9, %v4127_v18, 0.0 }
0x15d4   :  { %4138 = vadd.xlane.f32.xlu1 %v4137_v45  ;;  %v8723_v45 = vld [vmem:[#allocation18_spill] sm:$0xff] }
0x15dc   :  { %4153 = vadd.xlane.f32.xlu1 %v4152_v42 }
0x15e4   :  { %4156 = vadd.xlane.f32.xlu1 %v4155_v52 }
0x15fd   :  { %v4136_v59 = vpop.xlane.xlu1 %4135 }
0x15fe   :  { %v4142_v33 = vmul.f32 %v4136_v59, %v8716_v61 }
0x1600   :  { %v8098_v1 = vsub.f32 %v4126_v3, %v4142_v33  ;;  %v8720_v3 = vld [vmem:[#allocation17_spill] sm:$0xff] }
0x1602   :  { %v4150_v14 = vmul.f32 %v8098_v1, %v8098_v1 }
0x1604   :  { %v4158_v17 = vsel %vm312_vm9, %v4150_v14, 0.0 }
0x1605   :  { %4159 = vadd.xlane.f32.xlu1 %v4158_v17 }
0x1647   :  { %v4139_v0 = vpop.xlane.xlu1 %4138 }
0x1648   :  { %v4143_v7 = vmul.f32 %v4139_v0, %v8716_v61 }
0x164a   :  { %v8104_v36 = vsub.f32 %v4127_v18, %v4143_v7  ;;  %v8722_v18 = vld [vmem:[#allocation5_spill] sm:$0xff] }
0x164c   :  { %v4151_v63 = vmul.f32 %v8104_v36, %v8104_v36 }
0x164e   :  { %v4161_v5 = vsel %vm312_vm9, %v4151_v63, 0.0 }
0x164f   :  { %4162 = vadd.xlane.f32.xlu2 %v4161_v5  ;;  %v4154_v62 = vpop.xlane.xlu1 %4153 }
0x1650   :  { %v4164_v37 = vmul.f32 %v4154_v62, %v8716_v61 }
0x1652   :  { %v4168_v20 = vadd.f32 1e-05, %v4164_v37 }
0x1654   :  { %5317 = vrsqrt.f32 %v4168_v20  ;;  %vm4178_vm15 = vweird.f32 %v4168_v20 }
0x1657   :  { %v4157_v12 = vpop.xlane.xlu1 %4156 }
0x1658   :  { %v4165_v35 = vmul.f32 %v4157_v12, %v8716_v61  ;;  %v8724_v12 = vld [vmem:[#allocation8_spill] sm:$0xff] }
0x165a   :  { %v5318_v19 = vpop.eup %5317  ;;  %v4169_v44 = vadd.f32 1e-05, %v4165_v35 }
0x165b   :  { %v4173_v10 = vmul.f32 %v5318_v19, %v4168_v20  ;;  %vm4179_vm3 = vweird.f32 %v5318_v19 }
0x165c   :  { %5319 = vrsqrt.f32 %v4169_v44  ;;  %vm4180_vm5 = vmor %vm4178_vm15, %vm4179_vm3  ;;  %vm4188_vm10 = vweird.f32 %v4169_v44 }
0x165d   :  { %v4174_v8 = vmul.f32 %v5318_v19, %v4173_v10  ;;  %v8725_v10 = vld [vmem:[#allocation9_spill] sm:$0xff] }
0x165f   :  { %v4175_v49 = vmul.f32 0.5, %v4174_v8 }
0x1661   :  { %v4176_v50 = vsub.f32 1.5, %v4175_v49  ;;  %v8726_v49 = vld [vmem:[#allocation11_spill] sm:$0xff] }
0x1662   :  { %v5320_v21 = vpop.eup %5319 }
0x1663   :  { %v4177_v15 = vmul.f32 %v5318_v19, %v4176_v50  ;;  %v4183_v47 = vmul.f32 %v5320_v21, %v4169_v44  ;;  %vm4189_vm6 = vweird.f32 %v5320_v21 }
0x1664   :  { %vm4190_vm1 = vmor %vm4188_vm10, %vm4189_vm6 }
0x1665   :  { %v4181_v48 = vsel %vm4180_vm5, %v5318_v19, %v4177_v15  ;;  %v4184_v34 = vmul.f32 %v5320_v21, %v4183_v47 }
0x1666   :  { %v4212_v26 = vmul.f32 %v4181_v48, %v4144_v56  ;;  %v4952_v48 = vld [vmem:[%s8504_s12 + $0xb8] sm:$0xff] }
0x1667   :  { %v4185_v23 = vmul.f32 0.5, %v4184_v34  ;;  %v4951_v34 = vld [vmem:[%s8504_s12 + $0xb0] sm:$0xff]  ;;  %4356 = vmatpush.msrb.mxu2 %v4952_v48  ;;  %v8732_v48 = vld [vmem:[#allocation7_spill] sm:$0xff] }
0x1668   :  { %v4217_v27 = vmul.f32 %v8117_v11, %v4212_v26  ;;  %v4950_v26 = vld [vmem:[%s8504_s12 + $0xa8] sm:$0xff] }
0x1669   :  { %v4186_v53 = vsub.f32 1.5, %v4185_v23  ;;  %4357 = vmatpush.msrb.mxu2 %v4951_v34  ;;  %v4949_v23 = vld [vmem:[%s8504_s12 + $0xa0] sm:$0xff] }
0x166a   :  { %v8124_v13 = vadd.f32 %v8120_v24, %v4217_v27 }
0x166b   :  { %v4187_v43 = vmul.f32 %v5320_v21, %v4186_v53  ;;  %4358 = vmatpush.msrb.mxu2 %v4950_v26 }
0x166c   :  { %v4226_v28 = vmul.f32 %v8124_v13, %v8718_v51 }
0x166d   :  { %v4191_v58 = vsel %vm4190_vm1, %v5320_v21, %v4187_v43  ;;  %v4948_v43 = vld [vmem:[%s8504_s12 + $0x98] sm:$0xff]  ;;  %4359 = vmatpush.msrb.mxu2 %v4949_v23 }
0x166e   :  { %v4213_v41 = vmul.f32 %v4191_v58, %v4145_v38  ;;  %v4234_v22 = vrot.slane %v4226_v28, 7  ;;  %v4947_v58 = vld [vmem:[%s8504_s12 + $0x90] sm:$0xff] }
0x166f   :  { %4360 = vmatpush.msrb.mxu2 %v4948_v43  ;;  %v8733_v43 = vld [vmem:[#allocation25_spill] sm:$0xff] }
0x1670   :  { %v4218_v55 = vmul.f32 %v8117_v11, %v4213_v41  ;;  %v8133_v4 = vsel %vm2019_vm12, 0.0, %v4234_v22  ;;  %v4946_v41 = vld [vmem:[%s8504_s12 + $0x88] sm:$0xff] }
0x1671   :  { %v4257_v6 = vmul.f32 %v8133_v4, %v8720_v3  ;;  %v4252_v46 = vmul.f32 %v8133_v4, %v8721_v40  ;;  %4361 = vmatpush.msrb.mxu2 %v4947_v58  ;;  %v4248_v34 = vmul.f32 %v8133_v4, %v8732_v48 }
0x1672   :  { %v8130_v32 = vadd.f32 %v8120_v24, %v4218_v55  ;;  %v4944_v55 = vld [vmem:[%s8504_s12 + $0x78] sm:$0xff] }
0x1673   :  { %v4293_v9 = vrot.slane %v4257_v6, 2  ;;  %v4267_v42 = vrot.slane %v4252_v46, 1  ;;  %4362 = vmatpush.msrb.mxu2 %v4946_v41  ;;  %v4942_v46 = vld [vmem:[%s8504_s12 + $0x68] sm:$0xff] }
0x1674   :  { %v4227_v2 = vmul.f32 %v8130_v32, %v8719_v16 }
0x1676   :  { %v4235_v30 = vrot.slane %v4227_v2, 7 }
0x1678   :  { %v4160_v54 = vpop.xlane.xlu1 %4159  ;;  %v8142_v29 = vsel %vm2019_vm12, %v4234_v22, %v4235_v30  ;;  %v4945_v22 = vld [vmem:[%s8504_s12 + $0x80] sm:$0xff] }
0x1679   :  { %v4166_v39 = vmul.f32 %v4160_v54, %v8716_v61  ;;  %v4258_v56 = vmul.f32 %v8142_v29, %v8722_v18  ;;  %v4253_v57 = vmul.f32 %v8142_v29, %v8723_v45  ;;  %4363 = vmatpush.msrb.mxu2 %v4945_v22  ;;  %v8734_v22 = vld [vmem:[#allocation26_spill] sm:$0xff] }
0x167b   :  { %v4170_v60 = vadd.f32 1e-05, %v4166_v39  ;;  %v4294_v38 = vrot.slane %v4258_v56, 2  ;;  %v4268_v25 = vrot.slane %v4253_v57, 1  ;;  %4364 = vmatpush.msrb.mxu2 %v4944_v55  ;;  %v4941_v56 = vld [vmem:[%s8504_s12 + $0x60] sm:$0xff] }
0x167d   :  { %5321 = vrsqrt.f32 %v4170_v60  ;;  %v4295_v52 = vsel %vm2149_vm0, %v4293_v9, %v4294_v38  ;;  %v4269_v59 = vsel %vm2122_vm14, %v4267_v42, %v4268_v25  ;;  %vm4198_vm13 = vweird.f32 %v4170_v60 }
0x167e   :  { %4302 = vrot.lane.b32.xlu0 %v4295_v52, %s5357_s25  ;;  %4276 = vrot.lane.b32.xlu1 %v4269_v59, %s5359_s2  ;;  %v8727_v52 = vld [vmem:[#allocation10_spill] sm:$0xff] }
0x1683   :  { %v5322_v33 = vpop.eup %5321 }
0x1684   :  { %v4193_v14 = vmul.f32 %v5322_v33, %v4170_v60  ;;  %vm4199_vm2 = vweird.f32 %v5322_v33 }
0x1685   :  { %vm4200_vm4 = vmor %vm4198_vm13, %vm4199_vm2 }
0x1686   :  { %v4194_v17 = vmul.f32 %v5322_v33, %v4193_v14 }
0x1688   :  { %v4195_v0 = vmul.f32 0.5, %v4194_v17 }
0x168a   :  { %v4196_v7 = vsub.f32 1.5, %v4195_v0  ;;  %v8728_v0 = vld [vmem:[#allocation23_spill] sm:$0xff] }
0x168c   :  { %v4197_v63 = vmul.f32 %v5322_v33, %v4196_v7 }
0x168e   :  { %v4201_v5 = vsel %vm4200_vm4, %v5322_v33, %v4197_v63  ;;  %v8729_v63 = vld [vmem:[#allocation24_spill] sm:$0xff] }
0x168f   :  { %v4214_v62 = vmul.f32 %v4201_v5, %v8098_v1 }
0x1691   :  { %v4219_v37 = vmul.f32 %v8117_v11, %v4214_v62  ;;  %v8730_v62 = vld [vmem:[#allocation22_spill] sm:$0xff] }
0x1693   :  { %v8156_v20 = vadd.f32 %v8120_v24, %v4219_v37 }
0x1695   :  { %v4228_v35 = vmul.f32 %v8156_v20, %v8724_v12 }
0x1697   :  { %v4237_v19 = vrot.slane %v4228_v35, 7 }
0x1699   :  { %v8161_v44 = vsel %vm2019_vm12, %v4235_v30, %v4237_v19  ;;  %v4943_v30 = vld [vmem:[%s8504_s12 + $0x70] sm:$0xff] }
0x169a   :  { %v4259_v8 = vmul.f32 %v8161_v44, %v8725_v10  ;;  %v4254_v50 = vmul.f32 %v8161_v44, %v8726_v49  ;;  %4365 = vmatpush.msrb.mxu2 %v4943_v30  ;;  %v4250_v55 = vmul.f32 %v8161_v44, %v8734_v22  ;;  %v4981_v44 = vld [vmem:[%s8506_s14 + $0x178] sm:$0xff] }
0x169b   :  { %4540 = vmatpush.msrb.mxu1 %v4981_v44 }
0x169c   :  { %v4296_v21 = vrot.slane %v4259_v8, 2  ;;  %v4270_v1 = vrot.slane %v4254_v50, 1  ;;  %4366 = vmatpush.msrb.mxu2 %v4942_v46 }
0x169e   :  { %v4297_v15 = vsel %vm2149_vm0, %v4294_v38, %v4296_v21  ;;  %v4271_v47 = vsel %vm2122_vm14, %v4268_v25, %v4270_v1  ;;  %4367 = vmatpush.msrb.mxu2 %v4941_v56 }
0x169f   :  { %4304 = vrot.lane.b32.xlu0 %v4297_v15, %s5357_s25  ;;  %4278 = vrot.lane.b32.xlu2 %v4271_v47, %s5359_s2 }
0x16c2   :  { %v4163_v27 = vpop.xlane.xlu2 %4162 }
0x16c3   :  { %v4167_v53 = vmul.f32 %v4163_v27, %v8716_v61 }
0x16c5   :  { %v4171_v28 = vadd.f32 1e-05, %v4167_v53 }
0x16c7   :  { %5323 = vrsqrt.f32 %v4171_v28  ;;  %vm4208_vm15 = vweird.f32 %v4171_v28 }
0x16cd   :  { %v5324_v2 = vpop.eup %5323 }
0x16ce   :  { %v4203_v6 = vmul.f32 %v5324_v2, %v4171_v28  ;;  %vm4209_vm3 = vweird.f32 %v5324_v2  ;;  %v4249_v28 = vmul.f32 %v8142_v29, %v8733_v43  ;;  %v8735_v29 = vld [vmem:[#allocation27_spill] sm:$0xff] }
0x16cf   :  { %vm4210_vm5 = vmor %vm4208_vm15, %vm4209_vm3 }
0x16d0   :  { %v4204_v54 = vmul.f32 %v5324_v2, %v4203_v6 }
0x16d2   :  { %v4205_v39 = vmul.f32 0.5, %v4204_v54 }
0x16d4   :  { %v4206_v57 = vsub.f32 1.5, %v4205_v39 }
0x16d6   :  { %v4207_v9 = vmul.f32 %v5324_v2, %v4206_v57 }
0x16d8   :  { %v4211_v60 = vsel %vm4210_vm5, %v5324_v2, %v4207_v9 }
0x16d9   :  { %v4215_v38 = vmul.f32 %v4211_v60, %v8104_v36  ;;  %v4980_v60 = vld [vmem:[%s8506_s14 + $0x170] sm:$0xff] }
0x16da   :  { %4541 = vmatpush.msrb.mxu1 %v4980_v60  ;;  %v4961_v60 = vld [vmem:[%s8506_s14 + $0xd8] sm:$0xff] }
0x16db   :  { %v4220_v42 = vmul.f32 %v8117_v11, %v4215_v38  ;;  %v4979_v38 = vld [vmem:[%s8506_s14 + $0x168] sm:$0xff] }
0x16dc   :  { %4542 = vmatpush.msrb.mxu1 %v4979_v38 }
0x16dd   :  { %v8211_v25 = vadd.f32 %v8120_v24, %v4220_v42  ;;  %v4978_v42 = vld [vmem:[%s8506_s14 + $0x160] sm:$0xff] }
0x16de   :  { %4543 = vmatpush.msrb.mxu1 %v4978_v42  ;;  %v4960_v42 = vld [vmem:[%s8506_s14 + $0xd0] sm:$0xff] }
0x16df   :  { %v4229_v59 = vmul.f32 %v8211_v25, %v8727_v52 }
0x16e1   :  { %v4239_v33 = vrot.slane %v4229_v59, 7  ;;  %v4977_v59 = vld [vmem:[%s8506_s14 + $0x158] sm:$0xff] }
0x16e2   :  { %4544 = vmatpush.msrb.mxu1 %v4977_v59 }
0x16e3   :  { %v4240_v14 = vsel %vm2019_vm12, %v4237_v19, %v4239_v33  ;;  %v4247_v17 = vsel %vm2019_vm12, %v4239_v33, 0.0  ;;  %v8731_v19 = vld [vmem:[#allocation21_spill] sm:$0xff]  ;;  %v8266_v33 = vld [vmem:[%s8505_s13 + $0x1] ss:$0 sm:$0xff] }
0x16e4   :  { %v4260_v7 = vmul.f32 %v4240_v14, %v8728_v0  ;;  %v4255_v5 = vmul.f32 %v4240_v14, %v8729_v63  ;;  %v4256_v37 = vmul.f32 %v4247_v17, %v8730_v62  ;;  %v4261_v15 = vmul.f32 %v4247_v17, %v8731_v19  ;;  %v4976_v17 = vld [vmem:[%s8506_s14 + $0x150] sm:$0xff] }
0x16e5   :  { %v4251_v39 = vmul.f32 %v4240_v14, %v8735_v29  ;;  %4545 = vmatpush.msrb.mxu1 %v4976_v17 }
0x16e6   :  { %v4298_v36 = vrot.slane %v4260_v7, 2  ;;  %v4272_v35 = vrot.slane %v4255_v5, 1  ;;  %v4274_v11 = vrot.slane %v4256_v37, 1  ;;  %v4300_v47 = vrot.slane %v4261_v15, 2  ;;  %v4975_v7 = vld [vmem:[%s8506_s14 + $0x148] sm:$0xff]  ;;  %v4974_v37 = vld [vmem:[%s8506_s14 + $0x140] sm:$0xff] }
0x16e7   :  { %4546 = vmatpush.msrb.mxu1 %v4975_v7 }
0x16e8   :  { %v4299_v24 = vsel %vm2149_vm0, %v4296_v21, %v4298_v36  ;;  %v4275_v8 = vsel %vm2122_vm14, %v4272_v35, %v4274_v11  ;;  %v4273_v50 = vsel %vm2122_vm14, %v4270_v1, %v4272_v35  ;;  %v4301_v27 = vsel %vm2149_vm0, %v4298_v36, %v4300_v47 }
0x16e9   :  { %4306 = vrot.lane.b32.xlu2 %v4299_v24, %s5357_s25  ;;  %4282 = vrot.lane.b32.xlu0 %v4275_v8, %s5359_s2 }
0x16ea   :  { %4280 = vrot.lane.b32.xlu1 %v4273_v50, %s5359_s2  ;;  %4547 = vmatpush.msrb.mxu1 %v4974_v37 }
0x16f0   :  { %v4303_v26 = vpop.permute.xlu0 %4302  ;;  %v4277_v23 = vpop.permute.xlu1 %4276 }
0x16f1   :  { %v4314_v21 = vsel %vm312_vm9, %v4248_v34, %v4277_v23 }
0x16f2   :  { %v4318_v1 = vsel %vm2175_vm7, %v4314_v21, %v4303_v26  ;;  %4308 = vrot.lane.b32.xlu1 %v4301_v27, %s5357_s25 }
0x16f3   :  { %4954 = vmatmul.msk.f32.vlgmr.msrb.gmra.mxu2 %vm2196_vm11, %v4318_v1 }
0x16f9   :  { %v4279_v53 = vpop.permute.xlu2 %4278 }
0x16fa   :  { %v4315_v58 = vsel %vm312_vm9, %v4249_v28, %v4279_v53 }
0x1711   :  { %v4305_v41 = vpop.permute.xlu0 %4304 }
0x1712   :  { %v4319_v4 = vsel %vm2175_vm7, %v4315_v58, %v4305_v41 }
0x1713   :  { %4955 = vmatmul.msk.f32.gmra.mxu2 %vm2196_vm11, %v4319_v4 }
0x1743   :  { %v4307_v30 = vpop.permute.xlu2 %4306 }
0x175b   :  { %v4283_v54 = vpop.permute.xlu0 %4282 }
0x175c   :  { %v4281_v2 = vpop.permute.xlu1 %4280  ;;  %v4317_v56 = vsel %vm312_vm9, %v4251_v39, %v4283_v54  ;;  %v4965_v54 = vld [vmem:[%s8506_s14 + $0xf8] sm:$0xff]  ;;  %v4964_v39 = vld [vmem:[%s8506_s14 + $0xf0] sm:$0xff] }
0x175d   :  { %v4316_v6 = vsel %vm312_vm9, %v4250_v55, %v4281_v2  ;;  %v4970_v55 = vld [vmem:[%s8506_s14 + $0x120] sm:$0xff]  ;;  %v4969_v2 = vld [vmem:[%s8506_s14 + $0x118] sm:$0xff] }
0x175e   :  { %v4320_v46 = vsel %vm2175_vm7, %v4316_v6, %v4307_v30  ;;  %v4968_v30 = vld [vmem:[%s8506_s14 + $0x110] sm:$0xff]  ;;  %v4967_v6 = vld [vmem:[%s8506_s14 + $0x108] sm:$0xff] }
0x175f   :  { %4956 = vmatmul.msk.f32.gmra.mxu2 %vm2196_vm11, %v4320_v46  ;;  %v4966_v46 = vld [vmem:[%s8506_s14 + $0x100] sm:$0xff] }
0x1764   :  { %v4309_v57 = vpop.permute.xlu1 %4308 }
0x1765   :  { %v4321_v9 = vsel %vm2175_vm7, %v4317_v56, %v4309_v57  ;;  %v4963_v56 = vld [vmem:[%s8506_s14 + $0xe8] sm:$0xff] }
0x1767   :  { %4957 = vmatmul.msk.f32.gmra.mxu2 %vm2196_vm11, %v4321_v9  ;;  %v4962_v9 = vld [vmem:[%s8506_s14 + $0xe0] sm:$0xff] }
0x1776   :  { %v4369_v14 = vpop.f32.mrf.mxu2 }
0x1777   :  { %v4370_v5 = vadd.f32 %v8266_v33, %v4369_v14  ;;  %v4959_v14 = vld [vmem:[%s8506_s14 + $0xc8] sm:$0xff] }
0x1779   :  { %v4381_v36 = vmax.f32 %v4370_v5, 0.0  ;;  %v4958_v5 = vld [vmem:[%s8506_s14 + $0xc0] sm:$0xff] }
0x177b   :  { %v4385_v35 = vmul.f32 %v4381_v36, %v8718_v51 }
0x177d   :  { %v4393_v24 = vrot.slane %v4385_v35, 7 }
0x177f   :  { %v8281_v15 = vsel %vm2019_vm12, 0.0, %v4393_v24 }
0x1780   :  { %v4411_v26 = vmul.f32 %v8281_v15, %v8721_v40  ;;  %v4416_v23 = vmul.f32 %v8281_v15, %v8720_v3  ;;  %v4973_v3 = vld [vmem:[%s8506_s14 + $0x138] sm:$0xff] }
0x1781   :  { %4503 = vmatpush.msrb.mxu0 %v4973_v3 }
0x1782   :  { %v4452_v53 = vrot.slane %v4416_v23, 2  ;;  %v4426_v58 = vrot.slane %v4411_v26, 1 }
0x1796   :  { %v4372_v11 = vpop.f32.mrf.mxu2 }
0x1797   :  { %v4373_v8 = vadd.f32 %v8266_v33, %v4372_v11 }
0x1799   :  { %v4382_v50 = vmax.f32 %v4373_v8, 0.0 }
0x179b   :  { %v4386_v47 = vmul.f32 %v4382_v50, %v8719_v16 }
0x179d   :  { %v4394_v34 = vrot.slane %v4386_v47, 7 }
0x179f   :  { %v8289_v21 = vsel %vm2019_vm12, %v4393_v24, %v4394_v34 }
0x17a0   :  { %v4417_v27 = vmul.f32 %v8289_v21, %v8722_v18  ;;  %v4412_v1 = vmul.f32 %v8289_v21, %v8723_v45  ;;  %v4972_v18 = vld [vmem:[%s8506_s14 + $0x130] sm:$0xff]  ;;  %v4971_v45 = vld [vmem:[%s8506_s14 + $0x128] sm:$0xff] }
0x17a1   :  { %4504 = vmatpush.msrb.mxu0 %v4972_v18 }
0x17a2   :  { %v4453_v28 = vrot.slane %v4417_v27, 2  ;;  %v4427_v41 = vrot.slane %v4412_v1, 1 }
0x17a3   :  { %4505 = vmatpush.msrb.mxu0 %v4971_v45  ;;  %v4408_v45 = vmul.f32 %v8289_v21, %v8733_v43  ;;  %v5233_v43 = vld [vmem:[%s8507_s15 + $0x1] ss:$0 sm:$0xff] }
0x17a4   :  { %v4454_v4 = vsel %vm2149_vm0, %v4452_v53, %v4453_v28  ;;  %v4428_v40 = vsel %vm2122_vm14, %v4426_v58, %v4427_v41 }
0x17a5   :  { %4983 = vmatmul.msk.f32.vlgmr.msrb.gmra.mxu1 %vm2175_vm7, %v4454_v4  ;;  %4435 = vrot.lane.b32.xlu2 %v4428_v40, %s5357_s25 }
0x17a6   :  { %4506 = vmatpush.msrb.mxu0 %v4970_v55 }
0x17a8   :  { %4507 = vmatpush.msrb.mxu0 %v4969_v2 }
0x17aa   :  { %4508 = vmatpush.msrb.mxu0 %v4968_v30 }
0x17ac   :  { %4509 = vmatpush.msrb.mxu0 %v4967_v6 }
0x17ae   :  { %4510 = vmatpush.msrb.mxu0 %v4966_v46 }
0x17b0   :  { %4511 = vmatpush.msrb.mxu0 %v4965_v54 }
0x17b2   :  { %4512 = vmatpush.msrb.mxu0 %v4964_v39 }
0x17b4   :  { %4513 = vmatpush.msrb.mxu0 %v4963_v56 }
0x17b6   :  { %4514 = vmatpush.msrb.mxu0 %v4962_v9 }
0x17b8   :  { %4515 = vmatpush.msrb.mxu0 %v4961_v60 }
0x17ba   :  { %4516 = vmatpush.msrb.mxu0 %v4960_v42 }
0x17bc   :  { %4517 = vmatpush.msrb.mxu0 %v4959_v14 }
0x17be   :  { %4518 = vmatpush.msrb.mxu0 %v4958_v5 }
0x17e2   :  { %v4375_v57 = vpop.f32.mrf.mxu2 }
0x17e3   :  { %v4376_v44 = vadd.f32 %v8266_v33, %v4375_v57 }
0x17e5   :  { %v4383_v38 = vmax.f32 %v4376_v44, 0.0 }
0x17e7   :  { %v4387_v59 = vmul.f32 %v4383_v38, %v8724_v12 }
0x17e9   :  { %v4396_v17 = vrot.slane %v4387_v59, 7 }
0x17ea   :  { %v4378_v7 = vpop.f32.mrf.mxu2 }
0x17eb   :  { %v4397_v37 = vsel %vm2019_vm12, %v4394_v34, %v4396_v17  ;;  %v4379_v36 = vadd.f32 %v8266_v33, %v4378_v7 }
0x17ec   :  { %v4418_v35 = vmul.f32 %v4397_v37, %v8725_v10  ;;  %v4413_v11 = vmul.f32 %v4397_v37, %v8726_v49  ;;  %v4409_v30 = vmul.f32 %v4397_v37, %v8734_v22 }
0x17ed   :  { %v4384_v24 = vmax.f32 %v4379_v36, 0.0 }
0x17ee   :  { %v4455_v8 = vrot.slane %v4418_v35, 2  ;;  %v4429_v50 = vrot.slane %v4413_v11, 1 }
0x17ef   :  { %v4388_v47 = vmul.f32 %v4384_v24, %v8727_v52 }
0x17f0   :  { %v4456_v26 = vsel %vm2149_vm0, %v4453_v28, %v4455_v8  ;;  %v4430_v23 = vsel %vm2122_vm14, %v4427_v41, %v4429_v50 }
0x17f1   :  { %v4398_v27 = vrot.slane %v4388_v47, 7  ;;  %4984 = vmatmul.msk.f32.gmra.mxu1 %vm2175_vm7, %v4456_v26  ;;  %4437 = vrot.lane.b32.xlu0 %v4430_v23, %s5357_s25 }
0x17f3   :  { %v4399_v33 = vsel %vm2019_vm12, %v4396_v17, %v4398_v27  ;;  %v4406_v10 = vsel %vm2019_vm12, %v4398_v27, 0.0 }
0x17f4   :  { %v4415_v49 = vmul.f32 %v4406_v10, %v8730_v62  ;;  %v4414_v34 = vmul.f32 %v4399_v33, %v8729_v63  ;;  %v4419_v1 = vmul.f32 %v4399_v33, %v8728_v0  ;;  %v4420_v41 = vmul.f32 %v4406_v10, %v8731_v19 }
0x17f5   :  { %v4407_v0 = vmul.f32 %v8281_v15, %v8732_v48  ;;  %v4410_v46 = vmul.f32 %v4399_v33, %v8735_v29 }
0x17f6   :  { %v4433_v53 = vrot.slane %v4415_v49, 1  ;;  %v4431_v58 = vrot.slane %v4414_v34, 1  ;;  %v4457_v28 = vrot.slane %v4419_v1, 2  ;;  %v4459_v63 = vrot.slane %v4420_v41, 2 }
0x17f8   :  { %v4434_v4 = vsel %vm2122_vm14, %v4431_v58, %v4433_v53  ;;  %v4458_v40 = vsel %vm2149_vm0, %v4455_v8, %v4457_v28  ;;  %v4432_v3 = vsel %vm2122_vm14, %v4429_v50, %v4431_v58  ;;  %v4460_v19 = vsel %vm2149_vm0, %v4457_v28, %v4459_v63 }
0x17f9   :  { %4441 = vrot.lane.b32.xlu2 %v4434_v4, %s5357_s25  ;;  %4985 = vmatmul.msk.f32.gmra.mxu1 %vm2175_vm7, %v4458_v40 }
0x17fa   :  { %4439 = vrot.lane.b32.xlu1 %v4432_v3, %s5357_s25 }
0x17ff   :  { %v4436_v62 = vpop.permute.xlu2 %4435 }
0x1800   :  { %v4461_v18 = vsel %vm2175_vm7, %v4407_v0, %v4436_v62  ;;  %v4674_v62 = vld [vmem:[%s8508_s16 + $0x18] sm:$0xff] }
0x1801   :  { %4986 = vmatmul.msk.f32.gmra.mxu1 %vm2175_vm7, %v4460_v19  ;;  %4519 = vmatmul.f32.vlgmr.msrb.gmra.mxu0 %v4461_v18  ;;  %v4673_v18 = vld [vmem:[%s8508_s16 + $0x10] sm:$0xff] }
0x1802   :  { %4703 = vmatpush.msra.mxu3 %v4674_v62 }
0x1804   :  { %4704 = vmatpush.msra.mxu3 %v4673_v18 }
0x1822   :  { %v4549_v56 = vpop.f32.mrf.mxu1 }
0x1853   :  { %v4442_v15 = vpop.permute.xlu2 %4441 }
0x1854   :  { %v4464_v54 = vsel %vm2175_vm7, %v4410_v46, %v4442_v15 }
0x1863   :  { %v4438_v55 = vpop.permute.xlu0 %4437 }
0x1864   :  { %v4462_v2 = vsel %vm2175_vm7, %v4408_v45, %v4438_v55  ;;  %v4672_v45 = vld [vmem:[%s8508_s16 + $0x8] sm:$0xff] }
0x1865   :  { %4522 = vmatmul.f32.gmra.mxu0 %v4462_v2  ;;  %v4671_v2 = vld [vmem:[%s8508_s16] sm:$0xff]  ;;  %4705 = vmatpush.msra.mxu3 %v4672_v45 }
0x1867   :  { %4706 = vmatpush.msra.mxu3 %v4671_v2 }
0x186c   :  { %v4440_v6 = vpop.permute.xlu1 %4439 }
0x186d   :  { %v4463_v48 = vsel %vm2175_vm7, %v4409_v30, %v4440_v6 }
0x186e   :  { %4525 = vmatmul.f32.gmra.mxu0 %v4463_v48  ;;  %v4552_v60 = vpop.f32.mrf.mxu1 }
0x1876   :  { %4528 = vmatmul.f32.gmra.mxu0 %v4464_v54  ;;  %v4555_v17 = vpop.f32.mrf.mxu1 }
0x187e   :  { %v4520_v21 = vpop.f32.mrf.mxu0  ;;  %v4558_v50 = vpop.f32.mrf.mxu1 }
0x187f   :  { %v4521_v39 = vadd.f32 %v5233_v43, %v4520_v21 }
0x1881   :  { %v4550_v57 = vadd.f32 %v4549_v56, %v4521_v39 }
0x1883   :  { %v4561_v22 = vmul.f32 %v4550_v57, %v8718_v51  ;;  %v4657_v57 = vperm.slane %v8114_v31, 2 }
0x1885   :  { %v4565_v9 = vadd.f32 %v4561_v22, %v8124_v13 }
0x1887   :  { %v4569_v44 = vsel %vm312_vm9, %v4565_v9, 0.0 }
0x1888   :  { %4570 = vadd.xlane.f32.xlu0 %v4569_v44 }
0x18e2   :  { %v4523_v29 = vpop.f32.mrf.mxu0 }
0x18e3   :  { %v4524_v38 = vadd.f32 %v5233_v43, %v4523_v29 }
0x18e5   :  { %v4553_v42 = vadd.f32 %v4552_v60, %v4524_v38 }
0x18e7   :  { %v4562_v59 = vmul.f32 %v4553_v42, %v8719_v16 }
0x18e9   :  { %v4566_v14 = vadd.f32 %v4562_v59, %v8130_v32 }
0x18eb   :  { %v4526_v7 = vpop.f32.mrf.mxu0  ;;  %v4572_v5 = vsel %vm312_vm9, %v4566_v14, 0.0 }
0x18ec   :  { %v4527_v37 = vadd.f32 %v5233_v43, %v4526_v7  ;;  %4573 = vadd.xlane.f32.xlu1 %v4572_v5 }
0x18ee   :  { %v4556_v36 = vadd.f32 %v4555_v17, %v4527_v37 }
0x18f0   :  { %v4563_v13 = vmul.f32 %v4556_v36, %v8724_v12 }
0x18f2   :  { %v4567_v35 = vadd.f32 %v4563_v13, %v8156_v20 }
0x18f3   :  { %v4529_v11 = vpop.f32.mrf.mxu0 }
0x18f4   :  { %v4530_v24 = vadd.f32 %v5233_v43, %v4529_v11  ;;  %v4575_v8 = vsel %vm312_vm9, %v4567_v35, 0.0 }
0x18f5   :  { %4576 = vadd.xlane.f32.xlu2 %v4575_v8 }
0x18f6   :  { %v4559_v47 = vadd.f32 %v4558_v50, %v4530_v24 }
0x18f8   :  { %v4564_v32 = vmul.f32 %v4559_v47, %v8727_v52 }
0x18fa   :  { %v4568_v26 = vadd.f32 %v4564_v32, %v8211_v25 }
0x18fb   :  { %v4571_v23 = vpop.xlane.xlu0 %4570 }
0x18fc   :  { %v4581_v27 = vmul.f32 %v4571_v23, %v8716_v61  ;;  %v4578_v33 = vsel %vm312_vm9, %v4568_v26, 0.0 }
0x18fd   :  { %4579 = vadd.xlane.f32.xlu0 %v4578_v33 }
0x18fe   :  { %v4585_v10 = vsub.f32 %v4565_v9, %v4581_v27  ;;  %v4662_v9 = vperm.slane %v8114_v31, 3 }
0x1900   :  { %v4589_v49 = vmul.f32 %v4585_v10, %v4585_v10 }
0x1902   :  { %v4593_v20 = vsel %vm312_vm9, %v4589_v49, 0.0 }
0x1903   :  { %4594 = vadd.xlane.f32.xlu1 %v4593_v20 }
0x195f   :  { %v4574_v34 = vpop.xlane.xlu1 %4573 }
0x1960   :  { %v4582_v1 = vmul.f32 %v4574_v34, %v8716_v61 }
0x1962   :  { %v8400_v53 = vsub.f32 %v4566_v14, %v4582_v1 }
0x1964   :  { %v4590_v58 = vmul.f32 %v8400_v53, %v8400_v53 }
0x1966   :  { %v4596_v25 = vsel %vm312_vm9, %v4590_v58, 0.0 }
0x1967   :  { %4597 = vadd.xlane.f32.xlu2 %v4596_v25 }
0x1968   :  { %v4577_v28 = vpop.xlane.xlu2 %4576 }
0x1969   :  { %v4583_v41 = vmul.f32 %v4577_v28, %v8716_v61 }
0x196b   :  { %v8406_v4 = vsub.f32 %v4567_v35, %v4583_v41 }
0x196d   :  { %v4591_v40 = vmul.f32 %v8406_v4, %v8406_v4 }
0x196f   :  { %v4599_v3 = vsel %vm312_vm9, %v4591_v40, 0.0 }
0x1970   :  { %v4580_v63 = vpop.xlane.xlu0 %4579  ;;  %4600 = vadd.xlane.f32.xlu0 %v4599_v3 }
0x1971   :  { %v4584_v0 = vmul.f32 %v4580_v63, %v8716_v61 }
0x1973   :  { %v8418_v19 = vsub.f32 %v4568_v26, %v4584_v0 }
0x1975   :  { %v4592_v55 = vmul.f32 %v8418_v19, %v8418_v19 }
0x1976   :  { %v4595_v30 = vpop.xlane.xlu1 %4594 }
0x1977   :  { %v4605_v6 = vmul.f32 %v4595_v30, %v8716_v61  ;;  %v4602_v48 = vsel %vm312_vm9, %v4592_v55, 0.0 }
0x1978   :  { %4603 = vadd.xlane.f32.xlu1 %v4602_v48 }
0x1979   :  { %v4609_v15 = vadd.f32 1e-05, %v4605_v6 }
0x197b   :  { %5325 = vrsqrt.f32 %v4609_v15  ;;  %vm4619_vm14 = vweird.f32 %v4609_v15 }
0x1981   :  { %v5326_v46 = vpop.eup %5325 }
0x1982   :  { %v4614_v54 = vmul.f32 %v5326_v46, %v4609_v15  ;;  %vm4620_vm12 = vweird.f32 %v5326_v46 }
0x1983   :  { %vm4621_vm0 = vmor %vm4619_vm14, %vm4620_vm12 }
0x1984   :  { %v4615_v43 = vmul.f32 %v5326_v46, %v4614_v54 }
0x1986   :  { %v4616_v21 = vmul.f32 0.5, %v4615_v43 }
0x1988   :  { %v4617_v39 = vsub.f32 1.5, %v4616_v21 }
0x198a   :  { %v4618_v56 = vmul.f32 %v5326_v46, %v4617_v39 }
0x198c   :  { %v4622_v22 = vsel %vm4621_vm0, %v5326_v46, %v4618_v56  ;;  %v4724_v56 = vld [vmem:[%s8510_s5] sm:$0xff] }
0x198d   :  { %v4653_v44 = vmul.f32 %v4622_v22, %v4585_v10 }
0x198f   :  { %v4658_v60 = vmul.f32 %v4657_v57, %v4653_v44 }
0x1991   :  { %v4663_v29 = vadd.f32 %v4662_v9, %v4658_v60 }
0x1993   :  { %v4667_v38 = vmul.f32 %v4663_v29, %v8718_v51 }
0x1995   :  { %4987 = vmatmul.msk.f32.vlgmr.msra.gmra.mxu3 %vm312_vm9, %v4667_v38 }
0x19da   :  { %v4598_v42 = vpop.xlane.xlu2 %4597 }
0x19db   :  { %v4606_v59 = vmul.f32 %v4598_v42, %v8716_v61 }
0x19dd   :  { %v4610_v14 = vadd.f32 1e-05, %v4606_v59 }
0x19df   :  { %5327 = vrsqrt.f32 %v4610_v14  ;;  %vm4629_vm11 = vweird.f32 %v4610_v14 }
0x19e3   :  { %v4601_v17 = vpop.xlane.xlu0 %4600 }
0x19e4   :  { %v4607_v7 = vmul.f32 %v4601_v17, %v8716_v61 }
0x19e5   :  { %v5328_v5 = vpop.eup %5327 }
0x19e6   :  { %v4624_v37 = vmul.f32 %v5328_v5, %v4610_v14  ;;  %v4611_v36 = vadd.f32 1e-05, %v4607_v7  ;;  %vm4630_vm7 = vweird.f32 %v5328_v5 }
0x19e7   :  { %vm4631_vm6 = vmor %vm4629_vm11, %vm4630_vm7 }
0x19e8   :  { %v4625_v13 = vmul.f32 %v5328_v5, %v4624_v37  ;;  %5329 = vrsqrt.f32 %v4611_v36  ;;  %vm4639_vm1 = vweird.f32 %v4611_v36 }
0x19ea   :  { %v4626_v31 = vmul.f32 0.5, %v4625_v13  ;;  %v4727_v13 = vld [vmem:[%s8510_s5 + $0x18] sm:$0xff] }
0x19eb   :  { %v4604_v35 = vpop.xlane.xlu1 %4603 }
0x19ec   :  { %v4627_v11 = vsub.f32 1.5, %v4626_v31  ;;  %v4608_v24 = vmul.f32 %v4604_v35, %v8716_v61 }
0x19ee   :  { %v5330_v8 = vpop.eup %5329  ;;  %v4628_v50 = vmul.f32 %v5328_v5, %v4627_v11  ;;  %v4612_v47 = vadd.f32 1e-05, %v4608_v24 }
0x19ef   :  { %v4634_v32 = vmul.f32 %v5330_v8, %v4611_v36  ;;  %vm4640_vm10 = vweird.f32 %v5330_v8 }
0x19f0   :  { %v4632_v26 = vsel %vm4631_vm6, %v5328_v5, %v4628_v50  ;;  %5331 = vrsqrt.f32 %v4612_v47  ;;  %vm4641_vm2 = vmor %vm4639_vm1, %vm4640_vm10  ;;  %vm4649_vm4 = vweird.f32 %v4612_v47 }
0x19f1   :  { %v4654_v23 = vmul.f32 %v4632_v26, %v8400_v53  ;;  %v4635_v27 = vmul.f32 %v5330_v8, %v4634_v32  ;;  %v4726_v26 = vld [vmem:[%s8510_s5 + $0x10] sm:$0xff] }
0x19f3   :  { %v4636_v33 = vmul.f32 0.5, %v4635_v27  ;;  %v4659_v10 = vmul.f32 %v4657_v57, %v4654_v23 }
0x19f5   :  { %v4637_v49 = vsub.f32 1.5, %v4636_v33  ;;  %v4664_v20 = vadd.f32 %v4662_v9, %v4659_v10 }
0x19f6   :  { %v5332_v34 = vpop.eup %5331 }
0x19f7   :  { %v4638_v1 = vmul.f32 %v5330_v8, %v4637_v49  ;;  %v4644_v61 = vmul.f32 %v5332_v34, %v4612_v47  ;;  %v4668_v58 = vmul.f32 %v4664_v20, %v8719_v16  ;;  %vm4650_vm13 = vweird.f32 %v5332_v34 }
0x19f8   :  { %vm4651_vm3 = vmor %vm4649_vm4, %vm4650_vm13 }
0x19f9   :  { %v4642_v25 = vsel %vm4641_vm2, %v5330_v8, %v4638_v1  ;;  %v4645_v28 = vmul.f32 %v5332_v34, %v4644_v61  ;;  %4988 = vmatmul.msk.f32.gmra.mxu3 %vm312_vm9, %v4668_v58 }
0x19fa   :  { %v4655_v41 = vmul.f32 %v4642_v25, %v8406_v4  ;;  %v5234_v4 = vld [vmem:[%s8509_s17] ss:$0 sm:$0xff] }
0x19fb   :  { %v4646_v53 = vmul.f32 0.5, %v4645_v28 }
0x19fc   :  { %v4660_v40 = vmul.f32 %v4657_v57, %v4655_v41 }
0x19fd   :  { %v4647_v3 = vsub.f32 1.5, %v4646_v53 }
0x19fe   :  { %v4665_v63 = vadd.f32 %v4662_v9, %v4660_v40 }
0x19ff   :  { %v4648_v0 = vmul.f32 %v5332_v34, %v4647_v3 }
0x1a00   :  { %v4669_v62 = vmul.f32 %v4665_v63, %v8724_v12 }
0x1a01   :  { %v4652_v18 = vsel %vm4651_vm3, %v5332_v34, %v4648_v0 }
0x1a02   :  { %v4656_v45 = vmul.f32 %v4652_v18, %v8418_v19  ;;  %4989 = vmatmul.msk.f32.gmra.mxu3 %vm312_vm9, %v4669_v62 }
0x1a04   :  { %v4661_v55 = vmul.f32 %v4657_v57, %v4656_v45 }
0x1a06   :  { %v4666_v2 = vadd.f32 %v4662_v9, %v4661_v55 }
0x1a08   :  { %v4670_v30 = vmul.f32 %v4666_v2, %v8727_v52 }
0x1a0a   :  { %4990 = vmatmul.msk.f32.gmra.mxu3 %vm312_vm9, %v4670_v30  ;;  %vm4784_vm9 = vcmask 195584  }
0x1a18   :  { %v4708_v6 = vpop.f32.mrf.mxu3 }
0x1a19   :  { %v4709_v48 = vadd.f32 %v5234_v4, %v4708_v6 }
0x1a1b   :  { %v4720_v15 = vmul.f32 %v4709_v48, %v8718_v51 }
0x1a1d   :  { %v4728_v46 = vmul.f32 1.442695, %v4720_v15 }
0x1a1f   :  { %5333 = vpow2.f32 %v4728_v46 }
0x1a25   :  { %v5334_v54 = vpop.eup %5333 }
0x1a26   :  { %4740 = vrot.lane.b32.xlu2 %v5334_v54, %s5362_s20 }
0x1a7c   :  { %v4711_v19 = vpop.f32.mrf.mxu3 }
0x1a7d   :  { %v4712_v43 = vadd.f32 %v5234_v4, %v4711_v19 }
0x1a7f   :  { %v4721_v21 = vmul.f32 %v4712_v43, %v8719_v16 }
0x1a80   :  { %v4741_v57 = vpop.permute.xlu2 %4740 }
0x1a81   :  { %v4730_v39 = vmul.f32 1.442695, %v4721_v21  ;;  %v4752_v44 = vmul.f32 %v4741_v57, %v4724_v56 }
0x1a83   :  { %5335 = vpow2.f32 %v4730_v39  ;;  %v4756_v42 = vadd.f32 %v4752_v44, %v4720_v15 }
0x1a85   :  { %v4714_v22 = vpop.f32.mrf.mxu3  ;;  %v4760_v17 = vmul.f32 %v4756_v42, %v8718_v51  ;;  %v4725_v51 = vld [vmem:[%s8510_s5 + $0x8] sm:$0xff] }
0x1a86   :  { %v4715_v9 = vadd.f32 %v5234_v4, %v4714_v22 }
0x1a88   :  { %v4722_v60 = vmul.f32 %v4715_v9, %v8724_v12 }
0x1a89   :  { %v5336_v29 = vpop.eup %5335 }
0x1a8a   :  { %v4732_v38 = vmul.f32 1.442695, %v4722_v60  ;;  %4742 = vrot.lane.b32.xlu0 %v5336_v29, %s5362_s20 }
0x1a8c   :  { %5337 = vpow2.f32 %v4732_v38 }
0x1a8d   :  { %v4717_v59 = vpop.f32.mrf.mxu3 }
0x1a8e   :  { %v4718_v14 = vadd.f32 %v5234_v4, %v4717_v59 }
0x1a90   :  { %v4723_v7 = vmul.f32 %v4718_v14, %v8727_v52 }
0x1a92   :  { %v5338_v5 = vpop.eup %5337  ;;  %v4734_v37 = vmul.f32 1.442695, %v4723_v7  ;;  %4768 = vrot.lane.b32.xlu0 %v4760_v17, %s5360_s29 }
0x1a93   :  { %4744 = vrot.lane.b32.xlu1 %v5338_v5, %s5362_s20 }
0x1a94   :  { %5339 = vpow2.f32 %v4734_v37 }
0x1a9a   :  { %v5340_v36 = vpop.eup %5339 }
0x1a9b   :  { %4746 = vrot.lane.b32.xlu2 %v5340_v36, %s5362_s20 }
0x1af5   :  { %v4747_v31 = vpop.permute.xlu2 %4746 }
0x1af6   :  { %v4755_v35 = vmul.f32 %v4747_v31, %v4727_v13 }
0x1af8   :  { %v4759_v11 = vadd.f32 %v4755_v35, %v4723_v7 }
0x1afa   :  { %v4763_v24 = vmul.f32 %v4759_v11, %v8727_v52 }
0x1afc   :  { %4774 = vrot.lane.b32.xlu1 %v4763_v24, %s5360_s29  ;;  %v4743_v8 = vpop.permute.xlu0 %4742 }
0x1afd   :  { %v4753_v50 = vmul.f32 %v4743_v8, %v4725_v51 }
0x1aff   :  { %v4757_v47 = vadd.f32 %v4753_v50, %v4721_v21 }
0x1b01   :  { %v4761_v32 = vmul.f32 %v4757_v47, %v8719_v16 }
0x1b03   :  { %4770 = vrot.lane.b32.xlu2 %v4761_v32, %s5360_s29 }
0x1b04   :  { %v4769_v23 = vpop.permute.xlu0 %4768 }
0x1b05   :  { %v4745_v52 = vpop.permute.xlu1 %4744  ;;  %v4780_v27 = vsel %vm356_vm8, %v4720_v15, %v4769_v23 }
0x1b06   :  { %v4754_v33 = vmul.f32 %v4745_v52, %v4726_v26  ;;  %4785 = vst.msk [vmem:[%s8511_s18] sm:$0xff] %vm4784_vm9, %v4780_v27 }
0x1b08   :  { %v4758_v10 = vadd.f32 %v4754_v33, %v4722_v60 }
0x1b0a   :  { %v4762_v16 = vmul.f32 %v4758_v10, %v8724_v12 }
0x1b0c   :  { %4772 = vrot.lane.b32.xlu0 %v4762_v16, %s5360_s29 }
0x1b5d   :  { %v4771_v49 = vpop.permute.xlu2 %4770 }
0x1b5e   :  { %v4781_v20 = vsel %vm356_vm8, %v4721_v21, %v4771_v49 }
0x1b5f   :  { %4786 = vst.msk [vmem:[%s8511_s18 + $0x8] sm:$0xff] %vm4784_vm9, %v4781_v20 }
0x1b6e   :  { %v4775_v34 = vpop.permute.xlu1 %4774 }
0x1b6f   :  { %v4783_v1 = vsel %vm356_vm8, %v4723_v7, %v4775_v34 }
0x1b70   :  { %4788 = vst.msk [vmem:[%s8511_s18 + $0x18] sm:$0xff] %vm4784_vm9, %v4783_v1 }
0x1b7e   :  { %v4773_v61 = vpop.permute.xlu0 %4772 }
0x1b7f   :  { %v4782_v12 = vsel %vm356_vm8, %v4722_v60, %v4773_v61 }
0x1b80   :  { %4787 = vst.msk [vmem:[%s8511_s18 + $0x10] sm:$0xff] %vm4784_vm9, %v4782_v12 }

</bundles_post_ra>
